<compile_context>
chip_gen: v7x
topology: tpu7x:2x2x1
jax: 0.10.0
libtpu: 0.0.40
codegen_flags: <defaults>
</compile_context>

<pallas_src>
import jax
import jax.numpy as jnp
from jax import lax
from jax.experimental import pallas as pl
from jax.experimental.pallas import tpu as pltpu

KH = KW = 5
PAD = 2
EPS = 1e-5
CB = 128  # channel block (lane width)


def dwconv_bn_kernel(x_ref, w_ref, gamma_ref, beta_ref, out_ref):
    # x_ref:     (N, H+2*PAD, W+2*PAD, CB)  pre-padded input, one channel block
    # w_ref:     (KH*KW, CB)                per-channel depthwise taps
    # gamma_ref: (1, CB), beta_ref: (1, CB) BN affine params
    # out_ref:   (N, H, W, CB)
    N, Hp, Wp, C = x_ref.shape
    H, W = Hp - 2 * PAD, Wp - 2 * PAD

    # Load all 25 taps once; per-tap rows are cheap vreg extractions afterwards.
    taps = w_ref[...].astype(jnp.float32)                         # (25, CB)

    # --- depthwise convolution ---------------------------------------------
    # Only 5 sublane-misaligned (W-offset) loads; kh offsets are major-dim
    # slices of the already-loaded value (free vreg selection).
    acc = jnp.zeros((N, H, W, C), jnp.float32)
    for kw in range(KW):
        xw = x_ref[:, :, kw:kw + W, :].astype(jnp.float32)        # (N, Hp, W, CB)
        for kh in range(KH):
            acc = acc + xw[:, kh:kh + H, :, :] * taps[kh * KW + kw]

    # --- BatchNorm2d (training mode), fused single-pass stats ---------------
    cnt = jnp.float32(N * H * W)
    s1 = jnp.sum(acc, axis=(0, 1, 2))                             # (CB,)
    s2 = jnp.sum(acc * acc, axis=(0, 1, 2))                       # (CB,)
    mean = s1 / cnt
    var = jnp.maximum(s2 / cnt - mean * mean, 0.0)                # biased var
    scale = gamma_ref[0, :].astype(jnp.float32) * lax.rsqrt(var + EPS)
    bias = beta_ref[0, :].astype(jnp.float32) - mean * scale

    out_ref[...] = (acc * scale + bias).astype(out_ref.dtype)


def dwconv_bn(x_nchw, w, gamma, beta):
    """x_nchw: (N, C, H, W); w: (C, 1, KH, KW); gamma/beta: (C,)."""
    N, C, H, W = x_nchw.shape
    C_pad = ((C + CB - 1) // CB) * CB

    # NCHW -> NHWC, then a single jnp.pad adds the spatial halo and the channel
    # padding (XLA fuses these copies into one HBM pass).
    x = jnp.transpose(x_nchw, (0, 2, 3, 1))
    xp = jnp.pad(x, ((0, 0), (PAD, PAD), (PAD, PAD), (0, C_pad - C)))

    w_taps = jnp.transpose(w.reshape(C, KH * KW), (1, 0))          # (25, C)
    w_taps = jnp.pad(w_taps, ((0, 0), (0, C_pad - C)))
    gamma2 = jnp.pad(gamma, (0, C_pad - C), constant_values=1.0).reshape(1, C_pad)
    beta2 = jnp.pad(beta, (0, C_pad - C)).reshape(1, C_pad)

    Hp, Wp = H + 2 * PAD, W + 2 * PAD
    grid = (C_pad // CB,)

    out_nhwc = pl.pallas_call(
        dwconv_bn_kernel,
        grid=grid,
        in_specs=[
            pl.BlockSpec((N, Hp, Wp, CB), lambda c: (0, 0, 0, c)),
            pl.BlockSpec((KH * KW, CB), lambda c: (0, c)),
            pl.BlockSpec((1, CB), lambda c: (0, c)),
            pl.BlockSpec((1, CB), lambda c: (0, c)),
        ],
        out_specs=pl.BlockSpec((N, H, W, CB), lambda c: (0, 0, 0, c)),
        out_shape=jax.ShapeDtypeStruct((N, H, W, C_pad), x.dtype),
        compiler_params=pltpu.CompilerParams(
            dimension_semantics=("parallel",),          # megacore on v7x
            vmem_limit_bytes=32 * 1024 * 1024,          # small per-block footprint
        ),
    )(xp, w_taps, gamma2, beta2)

    out_nhwc = out_nhwc[..., :C]                         # drop padded channels
    return jnp.transpose(out_nhwc, (0, 3, 1, 2))         # NHWC -> NCHW


def reference(x_nchw, w, gamma, beta):
    # Pure-JAX reference (depthwise conv + train-mode BN) for sanity checking.
    C = x_nchw.shape[1]
    y = lax.conv_general_dilated(
        x_nchw, w, window_strides=(1, 1), padding=((PAD, PAD), (PAD, PAD)),
        feature_group_count=C,
        dimension_numbers=("NCHW", "OIHW", "NCHW"))
    mean = jnp.mean(y, axis=(0, 2, 3), keepdims=True)
    var = jnp.mean((y - mean) ** 2, axis=(0, 2, 3), keepdims=True)
    return (y - mean) / jnp.sqrt(var + EPS) * gamma.reshape(1, C, 1, 1) \
        + beta.reshape(1, C, 1, 1)


if __name__ == "__main__":
    # Small shapes consistent with the module (original: N=1, C=816, 14x14).
    # C=200 exercises both the multi-block channel grid and the channel padding.
    N, C, H, W = 2, 200, 14, 14

    key = jax.random.PRNGKey(0)
    kx, kw_, kg, kb = jax.random.split(key, 4)
    x = jax.random.normal(kx, (N, C, H, W), dtype=jnp.float32)
    w = jax.random.normal(kw_, (C, 1, KH, KW), dtype=jnp.float32) * 0.1
    gamma = 1.0 + 0.1 * jax.random.normal(kg, (C,), dtype=jnp.float32)
    beta = 0.1 * jax.random.normal(kb, (C,), dtype=jnp.float32)

    out = jax.block_until_ready(dwconv_bn(x, w, gamma, beta))
    ref = jax.block_until_ready(reference(x, w, gamma, beta))
    max_err = float(jnp.max(jnp.abs(out - ref)))
    assert max_err < 1e-2, f"mismatch vs reference: {max_err}"

    # TODO(synk): BatchNorm running_mean/running_var buffer updates (momentum
    # tracking) are module side-effects and are not produced here.
    print("KERNEL_OK")
</pallas_src>

<mosaic_0001>
module attributes {stable_mosaic.version = 11 : i64} {
  func.func @dwconv_bn_kernel(%arg0: i32, %arg1: memref<2x18x18x128xf32, #tpu.memory_space<vmem>>, %arg2: memref<25x128xf32, #tpu.memory_space<vmem>>, %arg3: memref<1x128xf32, #tpu.memory_space<vmem>>, %arg4: memref<1x128xf32, #tpu.memory_space<vmem>>, %arg5: memref<2x14x14x128xf32, #tpu.memory_space<vmem>>) attributes {dimension_semantics = [#tpu.dimension_semantics<parallel>], iteration_bounds = array<i64: 2>, scalar_prefetch = 0 : i64, scratch_operands = 0 : i64, tpu.core_type = #tpu.core_type<tc>, window_params = [{transform_indices = @transform_0, window_bounds = array<i64: 2, 18, 18, 128>}, {transform_indices = @transform_1, window_bounds = array<i64: 25, 128>}, {transform_indices = @transform_2, window_bounds = array<i64: 1, 128>}, {transform_indices = @transform_3, window_bounds = array<i64: 1, 128>}, {transform_indices = @transform_4, window_bounds = array<i64: 2, 14, 14, 128>}]} {
    %c0 = arith.constant 0 : index
    %c0_0 = arith.constant 0 : index
    %0 = vector.load %arg2[%c0, %c0_0] : memref<25x128xf32, #tpu.memory_space<vmem>>, vector<25x128xf32>
    %cst = arith.constant 0.000000e+00 : f32
    %1 = vector.broadcast %cst : f32 to vector<2x14x14x128xf32>
    %c0_1 = arith.constant 0 : index
    %c0_2 = arith.constant 0 : index
    %c0_3 = arith.constant 0 : index
    %c0_4 = arith.constant 0 : index
    %2 = vector.load %arg1[%c0_1, %c0_2, %c0_3, %c0_4] : memref<2x18x18x128xf32, #tpu.memory_space<vmem>>, vector<2x18x14x128xf32>
    %3 = vector.extract_strided_slice %2 {offsets = [0, 0, 0, 0], sizes = [2, 14, 14, 128], strides = [1, 1, 1, 1]} : vector<2x18x14x128xf32> to vector<2x14x14x128xf32>
    %4 = vector.extract_strided_slice %0 {offsets = [0, 0], sizes = [1, 128], strides = [1, 1]} : vector<25x128xf32> to vector<1x128xf32>
    %5 = vector.shape_cast %4 : vector<1x128xf32> to vector<128xf32>
    %6 = vector.shape_cast %5 : vector<128xf32> to vector<1x1x1x128xf32>
    %7 = vector.broadcast %6 : vector<1x1x1x128xf32> to vector<2x14x14x128xf32>
    %8 = arith.mulf %3, %7 : vector<2x14x14x128xf32>
    %9 = arith.addf %1, %8 : vector<2x14x14x128xf32>
    %10 = vector.extract_strided_slice %2 {offsets = [0, 1, 0, 0], sizes = [2, 14, 14, 128], strides = [1, 1, 1, 1]} : vector<2x18x14x128xf32> to vector<2x14x14x128xf32>
    %11 = vector.extract_strided_slice %0 {offsets = [5, 0], sizes = [1, 128], strides = [1, 1]} : vector<25x128xf32> to vector<1x128xf32>
    %12 = vector.shape_cast %11 : vector<1x128xf32> to vector<128xf32>
    %13 = vector.shape_cast %12 : vector<128xf32> to vector<1x1x1x128xf32>
    %14 = vector.broadcast %13 : vector<1x1x1x128xf32> to vector<2x14x14x128xf32>
    %15 = arith.mulf %10, %14 : vector<2x14x14x128xf32>
    %16 = arith.addf %9, %15 : vector<2x14x14x128xf32>
    %17 = vector.extract_strided_slice %2 {offsets = [0, 2, 0, 0], sizes = [2, 14, 14, 128], strides = [1, 1, 1, 1]} : vector<2x18x14x128xf32> to vector<2x14x14x128xf32>
    %18 = vector.extract_strided_slice %0 {offsets = [10, 0], sizes = [1, 128], strides = [1, 1]} : vector<25x128xf32> to vector<1x128xf32>
    %19 = vector.shape_cast %18 : vector<1x128xf32> to vector<128xf32>
    %20 = vector.shape_cast %19 : vector<128xf32> to vector<1x1x1x128xf32>
    %21 = vector.broadcast %20 : vector<1x1x1x128xf32> to vector<2x14x14x128xf32>
    %22 = arith.mulf %17, %21 : vector<2x14x14x128xf32>
    %23 = arith.addf %16, %22 : vector<2x14x14x128xf32>
    %24 = vector.extract_strided_slice %2 {offsets = [0, 3, 0, 0], sizes = [2, 14, 14, 128], strides = [1, 1, 1, 1]} : vector<2x18x14x128xf32> to vector<2x14x14x128xf32>
    %25 = vector.extract_strided_slice %0 {offsets = [15, 0], sizes = [1, 128], strides = [1, 1]} : vector<25x128xf32> to vector<1x128xf32>
    %26 = vector.shape_cast %25 : vector<1x128xf32> to vector<128xf32>
    %27 = vector.shape_cast %26 : vector<128xf32> to vector<1x1x1x128xf32>
    %28 = vector.broadcast %27 : vector<1x1x1x128xf32> to vector<2x14x14x128xf32>
    %29 = arith.mulf %24, %28 : vector<2x14x14x128xf32>
    %30 = arith.addf %23, %29 : vector<2x14x14x128xf32>
    %31 = vector.extract_strided_slice %2 {offsets = [0, 4, 0, 0], sizes = [2, 14, 14, 128], strides = [1, 1, 1, 1]} : vector<2x18x14x128xf32> to vector<2x14x14x128xf32>
    %32 = vector.extract_strided_slice %0 {offsets = [20, 0], sizes = [1, 128], strides = [1, 1]} : vector<25x128xf32> to vector<1x128xf32>
    %33 = vector.shape_cast %32 : vector<1x128xf32> to vector<128xf32>
    %34 = vector.shape_cast %33 : vector<128xf32> to vector<1x1x1x128xf32>
    %35 = vector.broadcast %34 : vector<1x1x1x128xf32> to vector<2x14x14x128xf32>
    %36 = arith.mulf %31, %35 : vector<2x14x14x128xf32>
    %37 = arith.addf %30, %36 : vector<2x14x14x128xf32>
    %c0_5 = arith.constant 0 : index
    %c0_6 = arith.constant 0 : index
    %c1 = arith.constant 1 : index
    %c0_7 = arith.constant 0 : index
    %38 = vector.load %arg1[%c0_5, %c0_6, %c1, %c0_7] : memref<2x18x18x128xf32, #tpu.memory_space<vmem>>, vector<2x18x14x128xf32>
    %39 = vector.extract_strided_slice %38 {offsets = [0, 0, 0, 0], sizes = [2, 14, 14, 128], strides = [1, 1, 1, 1]} : vector<2x18x14x128xf32> to vector<2x14x14x128xf32>
    %40 = vector.extract_strided_slice %0 {offsets = [1, 0], sizes = [1, 128], strides = [1, 1]} : vector<25x128xf32> to vector<1x128xf32>
    %41 = vector.shape_cast %40 : vector<1x128xf32> to vector<128xf32>
    %42 = vector.shape_cast %41 : vector<128xf32> to vector<1x1x1x128xf32>
    %43 = vector.broadcast %42 : vector<1x1x1x128xf32> to vector<2x14x14x128xf32>
    %44 = arith.mulf %39, %43 : vector<2x14x14x128xf32>
    %45 = arith.addf %37, %44 : vector<2x14x14x128xf32>
    %46 = vector.extract_strided_slice %38 {offsets = [0, 1, 0, 0], sizes = [2, 14, 14, 128], strides = [1, 1, 1, 1]} : vector<2x18x14x128xf32> to vector<2x14x14x128xf32>
    %47 = vector.extract_strided_slice %0 {offsets = [6, 0], sizes = [1, 128], strides = [1, 1]} : vector<25x128xf32> to vector<1x128xf32>
    %48 = vector.shape_cast %47 : vector<1x128xf32> to vector<128xf32>
    %49 = vector.shape_cast %48 : vector<128xf32> to vector<1x1x1x128xf32>
    %50 = vector.broadcast %49 : vector<1x1x1x128xf32> to vector<2x14x14x128xf32>
    %51 = arith.mulf %46, %50 : vector<2x14x14x128xf32>
    %52 = arith.addf %45, %51 : vector<2x14x14x128xf32>
    %53 = vector.extract_strided_slice %38 {offsets = [0, 2, 0, 0], sizes = [2, 14, 14, 128], strides = [1, 1, 1, 1]} : vector<2x18x14x128xf32> to vector<2x14x14x128xf32>
    %54 = vector.extract_strided_slice %0 {offsets = [11, 0], sizes = [1, 128], strides = [1, 1]} : vector<25x128xf32> to vector<1x128xf32>
    %55 = vector.shape_cast %54 : vector<1x128xf32> to vector<128xf32>
    %56 = vector.shape_cast %55 : vector<128xf32> to vector<1x1x1x128xf32>
    %57 = vector.broadcast %56 : vector<1x1x1x128xf32> to vector<2x14x14x128xf32>
    %58 = arith.mulf %53, %57 : vector<2x14x14x128xf32>
    %59 = arith.addf %52, %58 : vector<2x14x14x128xf32>
    %60 = vector.extract_strided_slice %38 {offsets = [0, 3, 0, 0], sizes = [2, 14, 14, 128], strides = [1, 1, 1, 1]} : vector<2x18x14x128xf32> to vector<2x14x14x128xf32>
    %61 = vector.extract_strided_slice %0 {offsets = [16, 0], sizes = [1, 128], strides = [1, 1]} : vector<25x128xf32> to vector<1x128xf32>
    %62 = vector.shape_cast %61 : vector<1x128xf32> to vector<128xf32>
    %63 = vector.shape_cast %62 : vector<128xf32> to vector<1x1x1x128xf32>
    %64 = vector.broadcast %63 : vector<1x1x1x128xf32> to vector<2x14x14x128xf32>
    %65 = arith.mulf %60, %64 : vector<2x14x14x128xf32>
    %66 = arith.addf %59, %65 : vector<2x14x14x128xf32>
    %67 = vector.extract_strided_slice %38 {offsets = [0, 4, 0, 0], sizes = [2, 14, 14, 128], strides = [1, 1, 1, 1]} : vector<2x18x14x128xf32> to vector<2x14x14x128xf32>
    %68 = vector.extract_strided_slice %0 {offsets = [21, 0], sizes = [1, 128], strides = [1, 1]} : vector<25x128xf32> to vector<1x128xf32>
    %69 = vector.shape_cast %68 : vector<1x128xf32> to vector<128xf32>
    %70 = vector.shape_cast %69 : vector<128xf32> to vector<1x1x1x128xf32>
    %71 = vector.broadcast %70 : vector<1x1x1x128xf32> to vector<2x14x14x128xf32>
    %72 = arith.mulf %67, %71 : vector<2x14x14x128xf32>
    %73 = arith.addf %66, %72 : vector<2x14x14x128xf32>
    %c0_8 = arith.constant 0 : index
    %c0_9 = arith.constant 0 : index
    %c2 = arith.constant 2 : index
    %c0_10 = arith.constant 0 : index
    %74 = vector.load %arg1[%c0_8, %c0_9, %c2, %c0_10] : memref<2x18x18x128xf32, #tpu.memory_space<vmem>>, vector<2x18x14x128xf32>
    %75 = vector.extract_strided_slice %74 {offsets = [0, 0, 0, 0], sizes = [2, 14, 14, 128], strides = [1, 1, 1, 1]} : vector<2x18x14x128xf32> to vector<2x14x14x128xf32>
    %76 = vector.extract_strided_slice %0 {offsets = [2, 0], sizes = [1, 128], strides = [1, 1]} : vector<25x128xf32> to vector<1x128xf32>
    %77 = vector.shape_cast %76 : vector<1x128xf32> to vector<128xf32>
    %78 = vector.shape_cast %77 : vector<128xf32> to vector<1x1x1x128xf32>
    %79 = vector.broadcast %78 : vector<1x1x1x128xf32> to vector<2x14x14x128xf32>
    %80 = arith.mulf %75, %79 : vector<2x14x14x128xf32>
    %81 = arith.addf %73, %80 : vector<2x14x14x128xf32>
    %82 = vector.extract_strided_slice %74 {offsets = [0, 1, 0, 0], sizes = [2, 14, 14, 128], strides = [1, 1, 1, 1]} : vector<2x18x14x128xf32> to vector<2x14x14x128xf32>
    %83 = vector.extract_strided_slice %0 {offsets = [7, 0], sizes = [1, 128], strides = [1, 1]} : vector<25x128xf32> to vector<1x128xf32>
    %84 = vector.shape_cast %83 : vector<1x128xf32> to vector<128xf32>
    %85 = vector.shape_cast %84 : vector<128xf32> to vector<1x1x1x128xf32>
    %86 = vector.broadcast %85 : vector<1x1x1x128xf32> to vector<2x14x14x128xf32>
    %87 = arith.mulf %82, %86 : vector<2x14x14x128xf32>
    %88 = arith.addf %81, %87 : vector<2x14x14x128xf32>
    %89 = vector.extract_strided_slice %74 {offsets = [0, 2, 0, 0], sizes = [2, 14, 14, 128], strides = [1, 1, 1, 1]} : vector<2x18x14x128xf32> to vector<2x14x14x128xf32>
    %90 = vector.extract_strided_slice %0 {offsets = [12, 0], sizes = [1, 128], strides = [1, 1]} : vector<25x128xf32> to vector<1x128xf32>
    %91 = vector.shape_cast %90 : vector<1x128xf32> to vector<128xf32>
    %92 = vector.shape_cast %91 : vector<128xf32> to vector<1x1x1x128xf32>
    %93 = vector.broadcast %92 : vector<1x1x1x128xf32> to vector<2x14x14x128xf32>
    %94 = arith.mulf %89, %93 : vector<2x14x14x128xf32>
    %95 = arith.addf %88, %94 : vector<2x14x14x128xf32>
    %96 = vector.extract_strided_slice %74 {offsets = [0, 3, 0, 0], sizes = [2, 14, 14, 128], strides = [1, 1, 1, 1]} : vector<2x18x14x128xf32> to vector<2x14x14x128xf32>
    %97 = vector.extract_strided_slice %0 {offsets = [17, 0], sizes = [1, 128], strides = [1, 1]} : vector<25x128xf32> to vector<1x128xf32>
    %98 = vector.shape_cast %97 : vector<1x128xf32> to vector<128xf32>
    %99 = vector.shape_cast %98 : vector<128xf32> to vector<1x1x1x128xf32>
    %100 = vector.broadcast %99 : vector<1x1x1x128xf32> to vector<2x14x14x128xf32>
    %101 = arith.mulf %96, %100 : vector<2x14x14x128xf32>
    %102 = arith.addf %95, %101 : vector<2x14x14x128xf32>
    %103 = vector.extract_strided_slice %74 {offsets = [0, 4, 0, 0], sizes = [2, 14, 14, 128], strides = [1, 1, 1, 1]} : vector<2x18x14x128xf32> to vector<2x14x14x128xf32>
    %104 = vector.extract_strided_slice %0 {offsets = [22, 0], sizes = [1, 128], strides = [1, 1]} : vector<25x128xf32> to vector<1x128xf32>
    %105 = vector.shape_cast %104 : vector<1x128xf32> to vector<128xf32>
    %106 = vector.shape_cast %105 : vector<128xf32> to vector<1x1x1x128xf32>
    %107 = vector.broadcast %106 : vector<1x1x1x128xf32> to vector<2x14x14x128xf32>
    %108 = arith.mulf %103, %107 : vector<2x14x14x128xf32>
    %109 = arith.addf %102, %108 : vector<2x14x14x128xf32>
    %c0_11 = arith.constant 0 : index
    %c0_12 = arith.constant 0 : index
    %c3 = arith.constant 3 : index
    %c0_13 = arith.constant 0 : index
    %110 = vector.load %arg1[%c0_11, %c0_12, %c3, %c0_13] : memref<2x18x18x128xf32, #tpu.memory_space<vmem>>, vector<2x18x14x128xf32>
    %111 = vector.extract_strided_slice %110 {offsets = [0, 0, 0, 0], sizes = [2, 14, 14, 128], strides = [1, 1, 1, 1]} : vector<2x18x14x128xf32> to vector<2x14x14x128xf32>
    %112 = vector.extract_strided_slice %0 {offsets = [3, 0], sizes = [1, 128], strides = [1, 1]} : vector<25x128xf32> to vector<1x128xf32>
    %113 = vector.shape_cast %112 : vector<1x128xf32> to vector<128xf32>
    %114 = vector.shape_cast %113 : vector<128xf32> to vector<1x1x1x128xf32>
    %115 = vector.broadcast %114 : vector<1x1x1x128xf32> to vector<2x14x14x128xf32>
    %116 = arith.mulf %111, %115 : vector<2x14x14x128xf32>
    %117 = arith.addf %109, %116 : vector<2x14x14x128xf32>
    %118 = vector.extract_strided_slice %110 {offsets = [0, 1, 0, 0], sizes = [2, 14, 14, 128], strides = [1, 1, 1, 1]} : vector<2x18x14x128xf32> to vector<2x14x14x128xf32>
    %119 = vector.extract_strided_slice %0 {offsets = [8, 0], sizes = [1, 128], strides = [1, 1]} : vector<25x128xf32> to vector<1x128xf32>
    %120 = vector.shape_cast %119 : vector<1x128xf32> to vector<128xf32>
    %121 = vector.shape_cast %120 : vector<128xf32> to vector<1x1x1x128xf32>
    %122 = vector.broadcast %121 : vector<1x1x1x128xf32> to vector<2x14x14x128xf32>
    %123 = arith.mulf %118, %122 : vector<2x14x14x128xf32>
    %124 = arith.addf %117, %123 : vector<2x14x14x128xf32>
    %125 = vector.extract_strided_slice %110 {offsets = [0, 2, 0, 0], sizes = [2, 14, 14, 128], strides = [1, 1, 1, 1]} : vector<2x18x14x128xf32> to vector<2x14x14x128xf32>
    %126 = vector.extract_strided_slice %0 {offsets = [13, 0], sizes = [1, 128], strides = [1, 1]} : vector<25x128xf32> to vector<1x128xf32>
    %127 = vector.shape_cast %126 : vector<1x128xf32> to vector<128xf32>
    %128 = vector.shape_cast %127 : vector<128xf32> to vector<1x1x1x128xf32>
    %129 = vector.broadcast %128 : vector<1x1x1x128xf32> to vector<2x14x14x128xf32>
    %130 = arith.mulf %125, %129 : vector<2x14x14x128xf32>
    %131 = arith.addf %124, %130 : vector<2x14x14x128xf32>
    %132 = vector.extract_strided_slice %110 {offsets = [0, 3, 0, 0], sizes = [2, 14, 14, 128], strides = [1, 1, 1, 1]} : vector<2x18x14x128xf32> to vector<2x14x14x128xf32>
    %133 = vector.extract_strided_slice %0 {offsets = [18, 0], sizes = [1, 128], strides = [1, 1]} : vector<25x128xf32> to vector<1x128xf32>
    %134 = vector.shape_cast %133 : vector<1x128xf32> to vector<128xf32>
    %135 = vector.shape_cast %134 : vector<128xf32> to vector<1x1x1x128xf32>
    %136 = vector.broadcast %135 : vector<1x1x1x128xf32> to vector<2x14x14x128xf32>
    %137 = arith.mulf %132, %136 : vector<2x14x14x128xf32>
    %138 = arith.addf %131, %137 : vector<2x14x14x128xf32>
    %139 = vector.extract_strided_slice %110 {offsets = [0, 4, 0, 0], sizes = [2, 14, 14, 128], strides = [1, 1, 1, 1]} : vector<2x18x14x128xf32> to vector<2x14x14x128xf32>
    %140 = vector.extract_strided_slice %0 {offsets = [23, 0], sizes = [1, 128], strides = [1, 1]} : vector<25x128xf32> to vector<1x128xf32>
    %141 = vector.shape_cast %140 : vector<1x128xf32> to vector<128xf32>
    %142 = vector.shape_cast %141 : vector<128xf32> to vector<1x1x1x128xf32>
    %143 = vector.broadcast %142 : vector<1x1x1x128xf32> to vector<2x14x14x128xf32>
    %144 = arith.mulf %139, %143 : vector<2x14x14x128xf32>
    %145 = arith.addf %138, %144 : vector<2x14x14x128xf32>
    %c0_14 = arith.constant 0 : index
    %c0_15 = arith.constant 0 : index
    %c4 = arith.constant 4 : index
    %c0_16 = arith.constant 0 : index
    %146 = vector.load %arg1[%c0_14, %c0_15, %c4, %c0_16] : memref<2x18x18x128xf32, #tpu.memory_space<vmem>>, vector<2x18x14x128xf32>
    %147 = vector.extract_strided_slice %146 {offsets = [0, 0, 0, 0], sizes = [2, 14, 14, 128], strides = [1, 1, 1, 1]} : vector<2x18x14x128xf32> to vector<2x14x14x128xf32>
    %148 = vector.extract_strided_slice %0 {offsets = [4, 0], sizes = [1, 128], strides = [1, 1]} : vector<25x128xf32> to vector<1x128xf32>
    %149 = vector.shape_cast %148 : vector<1x128xf32> to vector<128xf32>
    %150 = vector.shape_cast %149 : vector<128xf32> to vector<1x1x1x128xf32>
    %151 = vector.broadcast %150 : vector<1x1x1x128xf32> to vector<2x14x14x128xf32>
    %152 = arith.mulf %147, %151 : vector<2x14x14x128xf32>
    %153 = arith.addf %145, %152 : vector<2x14x14x128xf32>
    %154 = vector.extract_strided_slice %146 {offsets = [0, 1, 0, 0], sizes = [2, 14, 14, 128], strides = [1, 1, 1, 1]} : vector<2x18x14x128xf32> to vector<2x14x14x128xf32>
    %155 = vector.extract_strided_slice %0 {offsets = [9, 0], sizes = [1, 128], strides = [1, 1]} : vector<25x128xf32> to vector<1x128xf32>
    %156 = vector.shape_cast %155 : vector<1x128xf32> to vector<128xf32>
    %157 = vector.shape_cast %156 : vector<128xf32> to vector<1x1x1x128xf32>
    %158 = vector.broadcast %157 : vector<1x1x1x128xf32> to vector<2x14x14x128xf32>
    %159 = arith.mulf %154, %158 : vector<2x14x14x128xf32>
    %160 = arith.addf %153, %159 : vector<2x14x14x128xf32>
    %161 = vector.extract_strided_slice %146 {offsets = [0, 2, 0, 0], sizes = [2, 14, 14, 128], strides = [1, 1, 1, 1]} : vector<2x18x14x128xf32> to vector<2x14x14x128xf32>
    %162 = vector.extract_strided_slice %0 {offsets = [14, 0], sizes = [1, 128], strides = [1, 1]} : vector<25x128xf32> to vector<1x128xf32>
    %163 = vector.shape_cast %162 : vector<1x128xf32> to vector<128xf32>
    %164 = vector.shape_cast %163 : vector<128xf32> to vector<1x1x1x128xf32>
    %165 = vector.broadcast %164 : vector<1x1x1x128xf32> to vector<2x14x14x128xf32>
    %166 = arith.mulf %161, %165 : vector<2x14x14x128xf32>
    %167 = arith.addf %160, %166 : vector<2x14x14x128xf32>
    %168 = vector.extract_strided_slice %146 {offsets = [0, 3, 0, 0], sizes = [2, 14, 14, 128], strides = [1, 1, 1, 1]} : vector<2x18x14x128xf32> to vector<2x14x14x128xf32>
    %169 = vector.extract_strided_slice %0 {offsets = [19, 0], sizes = [1, 128], strides = [1, 1]} : vector<25x128xf32> to vector<1x128xf32>
    %170 = vector.shape_cast %169 : vector<1x128xf32> to vector<128xf32>
    %171 = vector.shape_cast %170 : vector<128xf32> to vector<1x1x1x128xf32>
    %172 = vector.broadcast %171 : vector<1x1x1x128xf32> to vector<2x14x14x128xf32>
    %173 = arith.mulf %168, %172 : vector<2x14x14x128xf32>
    %174 = arith.addf %167, %173 : vector<2x14x14x128xf32>
    %175 = vector.extract_strided_slice %146 {offsets = [0, 4, 0, 0], sizes = [2, 14, 14, 128], strides = [1, 1, 1, 1]} : vector<2x18x14x128xf32> to vector<2x14x14x128xf32>
    %176 = vector.extract_strided_slice %0 {offsets = [24, 0], sizes = [1, 128], strides = [1, 1]} : vector<25x128xf32> to vector<1x128xf32>
    %177 = vector.shape_cast %176 : vector<1x128xf32> to vector<128xf32>
    %178 = vector.shape_cast %177 : vector<128xf32> to vector<1x1x1x128xf32>
    %179 = vector.broadcast %178 : vector<1x1x1x128xf32> to vector<2x14x14x128xf32>
    %180 = arith.mulf %175, %179 : vector<2x14x14x128xf32>
    %181 = arith.addf %174, %180 : vector<2x14x14x128xf32>
    %cst_17 = arith.constant dense<0.000000e+00> : vector<128xf32>
    %182 = vector.multi_reduction <add>, %181, %cst_17 [0, 1, 2] : vector<2x14x14x128xf32> to vector<128xf32>
    %183 = arith.mulf %181, %181 : vector<2x14x14x128xf32>
    %cst_18 = arith.constant dense<0.000000e+00> : vector<128xf32>
    %184 = vector.multi_reduction <add>, %183, %cst_18 [0, 1, 2] : vector<2x14x14x128xf32> to vector<128xf32>
    %cst_19 = arith.constant 3.920000e+02 : f32
    %185 = vector.broadcast %cst_19 : f32 to vector<128xf32>
    %186 = arith.divf %182, %185 : vector<128xf32>
    %cst_20 = arith.constant 3.920000e+02 : f32
    %187 = vector.broadcast %cst_20 : f32 to vector<128xf32>
    %188 = arith.divf %184, %187 : vector<128xf32>
    %189 = arith.mulf %186, %186 : vector<128xf32>
    %190 = arith.subf %188, %189 : vector<128xf32>
    %cst_21 = arith.constant 0.000000e+00 : f32
    %191 = vector.broadcast %cst_21 : f32 to vector<128xf32>
    %192 = arith.maximumf %190, %191 : vector<128xf32>
    %c0_22 = arith.constant 0 : index
    %c0_23 = arith.constant 0 : index
    %193 = vector.load %arg3[%c0_22, %c0_23] : memref<1x128xf32, #tpu.memory_space<vmem>>, vector<1x128xf32>
    %194 = vector.shape_cast %193 : vector<1x128xf32> to vector<128xf32>
    %cst_24 = arith.constant 9.99999974E-6 : f32
    %195 = vector.broadcast %cst_24 : f32 to vector<128xf32>
    %196 = arith.addf %192, %195 : vector<128xf32>
    %197 = math.rsqrt %196 : vector<128xf32>
    %198 = arith.mulf %194, %197 : vector<128xf32>
    %c0_25 = arith.constant 0 : index
    %c0_26 = arith.constant 0 : index
    %199 = vector.load %arg4[%c0_25, %c0_26] : memref<1x128xf32, #tpu.memory_space<vmem>>, vector<1x128xf32>
    %200 = vector.shape_cast %199 : vector<1x128xf32> to vector<128xf32>
    %201 = arith.mulf %186, %198 : vector<128xf32>
    %202 = arith.subf %200, %201 : vector<128xf32>
    %203 = vector.shape_cast %198 : vector<128xf32> to vector<1x1x1x128xf32>
    %204 = vector.broadcast %203 : vector<1x1x1x128xf32> to vector<2x14x14x128xf32>
    %205 = arith.mulf %181, %204 : vector<2x14x14x128xf32>
    %206 = vector.shape_cast %202 : vector<128xf32> to vector<1x1x1x128xf32>
    %207 = vector.broadcast %206 : vector<1x1x1x128xf32> to vector<2x14x14x128xf32>
    %208 = arith.addf %205, %207 : vector<2x14x14x128xf32>
    %c0_27 = arith.constant 0 : index
    %c0_28 = arith.constant 0 : index
    %c0_29 = arith.constant 0 : index
    %c0_30 = arith.constant 0 : index
    %209 = vector.load %arg5[%c0_27, %c0_28, %c0_29, %c0_30] : memref<2x14x14x128xf32, #tpu.memory_space<vmem>>, vector<2x14x14x128xf32>
    tpu.vector_store %arg5[%c0_27, %c0_28, %c0_29, %c0_30], %208 {strides = array<i32>} : memref<2x14x14x128xf32, #tpu.memory_space<vmem>>, vector<2x14x14x128xf32>,
    return
  }
  func.func @transform_0(%arg0: i32) -> (i32, i32, i32, i32) {
    %c0_i32 = arith.constant 0 : i32
    %c0_i32_0 = arith.constant 0 : i32
    %c0_i32_1 = arith.constant 0 : i32
    %c0_i32_2 = arith.constant 0 : i32
    return %c0_i32, %c0_i32_0, %c0_i32_1, %arg0 : i32, i32, i32, i32
  }
  func.func @transform_1(%arg0: i32) -> (i32, i32) {
    %c0_i32 = arith.constant 0 : i32
    %c0_i32_0 = arith.constant 0 : i32
    return %c0_i32, %arg0 : i32, i32
  }
  func.func @transform_2(%arg0: i32) -> (i32, i32) {
    %c0_i32 = arith.constant 0 : i32
    %c0_i32_0 = arith.constant 0 : i32
    return %c0_i32, %arg0 : i32, i32
  }
  func.func @transform_3(%arg0: i32) -> (i32, i32) {
    %c0_i32 = arith.constant 0 : i32
    %c0_i32_0 = arith.constant 0 : i32
    return %c0_i32, %arg0 : i32, i32
  }
  func.func @transform_4(%arg0: i32) -> (i32, i32, i32, i32) {
    %c0_i32 = arith.constant 0 : i32
    %c0_i32_0 = arith.constant 0 : i32
    %c0_i32_1 = arith.constant 0 : i32
    %c0_i32_2 = arith.constant 0 : i32
    return %c0_i32, %c0_i32_0, %c0_i32_1, %arg0 : i32, i32, i32, i32
  }
}

</mosaic_0001>

<bundles_post_ra>
// kernel: tpu_custom_call.1
= control target key start
LH: loop header
LB: loop body
LE: loop exit
PB: predicated region body
PF: predicated region fallthrough
CT: control target
= control target key end

     0   :  { %s4954_s15 = smov 0   ;;  %s4956_s16 = smov 0   ;;  %s14064_s0 = inlined_call_operand.vmem [shape: f32[2,18,18,256], index: 0, kind: input, shape index: {}]   ;;  %s14065_s1 = inlined_call_operand.vmem [shape: f32[25,256], index: 1, kind: input, shape index: {}]   ;;  %s14066_s2 = inlined_call_operand.vmem [shape: f32[1,256], index: 2, kind: input, shape index: {}]   ;;  %s14067_s3 = inlined_call_operand.vmem [shape: f32[1,256], index: 3, kind: input, shape index: {}]   ;;  %s14068_s4 = inlined_call_operand.vmem [shape: f32[2,14,14,256], index: 4, kind: output, shape index: {}]  }
   0x1   :  { %s4958_s17 = smov 0  }
   0x2 LB: > { %s4970_s18 = sadd.s32 4294967295, %s4927_s17   ;;  %s4973_s19 = sadd.s32 1, %s4927_s17   ;;  %s4927_s17 = sphi %s4958_s17, %s17577_s17   ;;  %s4923_s16 = sphi %s4956_s16, %s17576_s16   ;;  %s4919_s15 = sphi %s4954_s15, %s17575_s15  }
   0x3   : > { %s18_s20 = ssub.s32 %s4927_s17, %s4973_s19  ;;  %s21_s21 = sadd.s32 1, %s4923_s16 }
   0x4   : > { %p19_p0 = scmp.eq.s32.totalorder %s18_s20, 0  ;;  %p28_p1 = scmp.ne.s32.totalorder %s4923_s16, %s4919_s15 }
   0x5   : > { %p29_p2 = scmp.eq.s32.totalorder %s4927_s17, 0  ;;  %p136_p3 = scmp.eq.s32.totalorder %s4970_s18, 1 }
   0x6   : > { %s4983_s22 = scalar_select %p19_p0, %s4923_s16, %s21_s21  }
   0x7   : > { %p4985_p4 = por %p29_p2, %p28_p1  ;;  %p4989_p5 = por %p136_p3, %p28_p1 }
   0x8   : > { %p4796_p6 = scmp.ge.s32.totalorder %s4927_s17, 2 }
   0xa   : > { %158 = sbr.rel (%p4796_p6) target bundleno = 82 (0x52), region = 16 }
  0x11   : > { %161 = sbr.rel (!%p4985_p4) target bundleno = 75 (0x4b), region = 20  ;;  %s163_s25 = sand.u32 (%p4985_p4), 1, %s4923_s16  }
  0x12   : > { %s4797_s26 = sshll.u32 (%p4985_p4), %s4927_s17, 3  ;;  %s4806_s27 = smul.u32 (%p4985_p4), 864, %s163_s25 }
  0x13   : > { %s5001_s30 = scalar_lea.vmem (%p4985_p4), %s14064_s0, %s4797_s26 }
  0x14   : > { %v409_v0 = vld [vmem:[%s5001_s30] sm:$0xff] (%p4985_p4)  ;;  %v411_v1 = vld [vmem:[%s5001_s30 + $0x10] sm:$0xff] (%p4985_p4)  ;;  %s5009_s5 = scalar_lea.vmem (%p4985_p4), [#allocation2], %s4806_s27 }
  0x15   : > { %v413_v2 = vld [vmem:[%s5001_s30 + $0x20] sm:$0xff] (%p4985_p4)  ;;  %v415_v3 = vld [vmem:[%s5001_s30 + $0x30] sm:$0xff] (%p4985_p4)  ;;  %410 = vst [vmem:[%s5009_s5] sm:$0xff] (%p4985_p4), %v409_v0  ;;  %412 = vst [vmem:[%s5009_s5 + $0x8] sm:$0xff] (%p4985_p4), %v411_v1 }
  0x16   : > { %v417_v4 = vld [vmem:[%s5001_s30 + $0x40] sm:$0xff] (%p4985_p4)  ;;  %v419_v5 = vld [vmem:[%s5001_s30 + $0x50] sm:$0xff] (%p4985_p4)  ;;  %414 = vst [vmem:[%s5009_s5 + $0x10] sm:$0xff] (%p4985_p4), %v413_v2  ;;  %416 = vst [vmem:[%s5009_s5 + $0x18] sm:$0xff] (%p4985_p4), %v415_v3 }
  0x17   : > { %418 = vst [vmem:[%s5009_s5 + $0x20] sm:$0xff] (%p4985_p4), %v417_v4  ;;  %420 = vst [vmem:[%s5009_s5 + $0x28] sm:$0xff] (%p4985_p4), %v419_v5  ;;  %v421_v6 = vld [vmem:[%s5001_s30 + $0x60] sm:$0xff] (%p4985_p4)  ;;  %v423_v7 = vld [vmem:[%s5001_s30 + $0x70] sm:$0xff] (%p4985_p4) }
  0x18   : > { %v425_v8 = vld [vmem:[%s5001_s30 + $0x80] sm:$0xff]  ;;  %422 = vst [vmem:[%s5009_s5 + $0x30] sm:$0xff] %v421_v6  ;;  %424 = vst [vmem:[%s5009_s5 + $0x38] sm:$0xff] %v423_v7  ;;  %v427_v9 = vld [vmem:[%s5001_s30 + $0x90] sm:$0xff] }
  0x19   : > { %426 = vst [vmem:[%s5009_s5 + $0x40] sm:$0xff] %v425_v8  ;;  %v429_v10 = vld [vmem:[%s5001_s30 + $0xa0] sm:$0xff]  ;;  %v431_v11 = vld [vmem:[%s5001_s30 + $0xb0] sm:$0xff]  ;;  %428 = vst [vmem:[%s5009_s5 + $0x48] sm:$0xff] %v427_v9 }
  0x1a   : > { %430 = vst [vmem:[%s5009_s5 + $0x50] sm:$0xff] %v429_v10  ;;  %432 = vst [vmem:[%s5009_s5 + $0x58] sm:$0xff] %v431_v11  ;;  %v433_v12 = vld [vmem:[%s5001_s30 + $0xc0] sm:$0xff]  ;;  %v435_v13 = vld [vmem:[%s5001_s30 + $0xd0] sm:$0xff] }
  0x1b   : > { %v437_v14 = vld [vmem:[%s5001_s30 + $0xe0] sm:$0xff]  ;;  %434 = vst [vmem:[%s5009_s5 + $0x60] sm:$0xff] %v433_v12  ;;  %436 = vst [vmem:[%s5009_s5 + $0x68] sm:$0xff] %v435_v13  ;;  %v439_v15 = vld [vmem:[%s5001_s30 + $0xf0] sm:$0xff] }
  0x1c   : > { %438 = vst [vmem:[%s5009_s5 + $0x70] sm:$0xff] %v437_v14  ;;  %v441_v16 = vld [vmem:[%s5001_s30 + $0x100] sm:$0xff]  ;;  %v443_v17 = vld [vmem:[%s5001_s30 + $0x110] sm:$0xff]  ;;  %440 = vst [vmem:[%s5009_s5 + $0x78] sm:$0xff] %v439_v15 }
  0x1d   : > { %442 = vst [vmem:[%s5009_s5 + $0x80] sm:$0xff] %v441_v16  ;;  %444 = vst [vmem:[%s5009_s5 + $0x88] sm:$0xff] %v443_v17  ;;  %v445_v18 = vld [vmem:[%s5001_s30 + $0x120] sm:$0xff]  ;;  %v447_v19 = vld [vmem:[%s5001_s30 + $0x130] sm:$0xff] }
  0x1e   : > { %v449_v20 = vld [vmem:[%s5001_s30 + $0x140] sm:$0xff]  ;;  %446 = vst [vmem:[%s5009_s5 + $0x90] sm:$0xff] %v445_v18  ;;  %448 = vst [vmem:[%s5009_s5 + $0x98] sm:$0xff] %v447_v19  ;;  %v451_v21 = vld [vmem:[%s5001_s30 + $0x150] sm:$0xff] }
  0x1f   : > { %450 = vst [vmem:[%s5009_s5 + $0xa0] sm:$0xff] %v449_v20  ;;  %v453_v22 = vld [vmem:[%s5001_s30 + $0x160] sm:$0xff]  ;;  %v455_v23 = vld [vmem:[%s5001_s30 + $0x170] sm:$0xff]  ;;  %452 = vst [vmem:[%s5009_s5 + $0xa8] sm:$0xff] %v451_v21 }
  0x20   : > { %454 = vst [vmem:[%s5009_s5 + $0xb0] sm:$0xff] %v453_v22  ;;  %456 = vst [vmem:[%s5009_s5 + $0xb8] sm:$0xff] %v455_v23  ;;  %v457_v24 = vld [vmem:[%s5001_s30 + $0x180] sm:$0xff]  ;;  %v459_v25 = vld [vmem:[%s5001_s30 + $0x190] sm:$0xff] }
  0x21   : > { %v461_v26 = vld [vmem:[%s5001_s30 + $0x1a0] sm:$0xff]  ;;  %458 = vst [vmem:[%s5009_s5 + $0xc0] sm:$0xff] %v457_v24  ;;  %460 = vst [vmem:[%s5009_s5 + $0xc8] sm:$0xff] %v459_v25  ;;  %v463_v27 = vld [vmem:[%s5001_s30 + $0x1b0] sm:$0xff] }
  0x22   : > { %462 = vst [vmem:[%s5009_s5 + $0xd0] sm:$0xff] %v461_v26  ;;  %v465_v28 = vld [vmem:[%s5001_s30 + $0x1c0] sm:$0xff]  ;;  %v467_v29 = vld [vmem:[%s5001_s30 + $0x1d0] sm:$0xff]  ;;  %464 = vst [vmem:[%s5009_s5 + $0xd8] sm:$0xff] %v463_v27 }
  0x23   : > { %466 = vst [vmem:[%s5009_s5 + $0xe0] sm:$0xff] %v465_v28  ;;  %468 = vst [vmem:[%s5009_s5 + $0xe8] sm:$0xff] %v467_v29  ;;  %v469_v30 = vld [vmem:[%s5001_s30 + $0x1e0] sm:$0xff]  ;;  %v471_v31 = vld [vmem:[%s5001_s30 + $0x1f0] sm:$0xff] }
  0x24   : > { %v473_v32 = vld [vmem:[%s5001_s30 + $0x200] sm:$0xff]  ;;  %470 = vst [vmem:[%s5009_s5 + $0xf0] sm:$0xff] %v469_v30  ;;  %472 = vst [vmem:[%s5009_s5 + $0xf8] sm:$0xff] %v471_v31  ;;  %v475_v33 = vld [vmem:[%s5001_s30 + $0x210] sm:$0xff] }
  0x25   : > { %474 = vst [vmem:[%s5009_s5 + $0x100] sm:$0xff] %v473_v32  ;;  %v477_v34 = vld [vmem:[%s5001_s30 + $0x220] sm:$0xff]  ;;  %v479_v35 = vld [vmem:[%s5001_s30 + $0x230] sm:$0xff]  ;;  %476 = vst [vmem:[%s5009_s5 + $0x108] sm:$0xff] %v475_v33 }
  0x26   : > { %478 = vst [vmem:[%s5009_s5 + $0x110] sm:$0xff] %v477_v34  ;;  %480 = vst [vmem:[%s5009_s5 + $0x118] sm:$0xff] %v479_v35  ;;  %v481_v36 = vld [vmem:[%s5001_s30 + $0x240] sm:$0xff]  ;;  %v483_v37 = vld [vmem:[%s5001_s30 + $0x250] sm:$0xff] }
  0x27   : > { %v485_v38 = vld [vmem:[%s5001_s30 + $0x260] sm:$0xff]  ;;  %482 = vst [vmem:[%s5009_s5 + $0x120] sm:$0xff] %v481_v36  ;;  %484 = vst [vmem:[%s5009_s5 + $0x128] sm:$0xff] %v483_v37  ;;  %v487_v39 = vld [vmem:[%s5001_s30 + $0x270] sm:$0xff] }
  0x28   : > { %486 = vst [vmem:[%s5009_s5 + $0x130] sm:$0xff] %v485_v38  ;;  %v489_v40 = vld [vmem:[%s5001_s30 + $0x280] sm:$0xff]  ;;  %v491_v41 = vld [vmem:[%s5001_s30 + $0x290] sm:$0xff]  ;;  %488 = vst [vmem:[%s5009_s5 + $0x138] sm:$0xff] %v487_v39 }
  0x29   : > { %490 = vst [vmem:[%s5009_s5 + $0x140] sm:$0xff] %v489_v40  ;;  %492 = vst [vmem:[%s5009_s5 + $0x148] sm:$0xff] %v491_v41  ;;  %v493_v42 = vld [vmem:[%s5001_s30 + $0x2a0] sm:$0xff]  ;;  %v495_v43 = vld [vmem:[%s5001_s30 + $0x2b0] sm:$0xff] }
  0x2a   : > { %v497_v44 = vld [vmem:[%s5001_s30 + $0x2c0] sm:$0xff]  ;;  %494 = vst [vmem:[%s5009_s5 + $0x150] sm:$0xff] %v493_v42  ;;  %496 = vst [vmem:[%s5009_s5 + $0x158] sm:$0xff] %v495_v43  ;;  %v499_v45 = vld [vmem:[%s5001_s30 + $0x2d0] sm:$0xff] }
  0x2b   : > { %498 = vst [vmem:[%s5009_s5 + $0x160] sm:$0xff] %v497_v44  ;;  %v501_v46 = vld [vmem:[%s5001_s30 + $0x2e0] sm:$0xff]  ;;  %v503_v47 = vld [vmem:[%s5001_s30 + $0x2f0] sm:$0xff]  ;;  %500 = vst [vmem:[%s5009_s5 + $0x168] sm:$0xff] %v499_v45 }
  0x2c   : > { %502 = vst [vmem:[%s5009_s5 + $0x170] sm:$0xff] %v501_v46  ;;  %504 = vst [vmem:[%s5009_s5 + $0x178] sm:$0xff] %v503_v47  ;;  %v505_v48 = vld [vmem:[%s5001_s30 + $0x300] sm:$0xff]  ;;  %v507_v49 = vld [vmem:[%s5001_s30 + $0x310] sm:$0xff] }
  0x2d   : > { %v509_v50 = vld [vmem:[%s5001_s30 + $0x320] sm:$0xff]  ;;  %506 = vst [vmem:[%s5009_s5 + $0x180] sm:$0xff] %v505_v48  ;;  %508 = vst [vmem:[%s5009_s5 + $0x188] sm:$0xff] %v507_v49  ;;  %v511_v51 = vld [vmem:[%s5001_s30 + $0x330] sm:$0xff] }
  0x2e   : > { %510 = vst [vmem:[%s5009_s5 + $0x190] sm:$0xff] %v509_v50  ;;  %v513_v52 = vld [vmem:[%s5001_s30 + $0x340] sm:$0xff]  ;;  %v515_v53 = vld [vmem:[%s5001_s30 + $0x350] sm:$0xff]  ;;  %512 = vst [vmem:[%s5009_s5 + $0x198] sm:$0xff] %v511_v51 }
  0x2f   : > { %514 = vst [vmem:[%s5009_s5 + $0x1a0] sm:$0xff] %v513_v52  ;;  %516 = vst [vmem:[%s5009_s5 + $0x1a8] sm:$0xff] %v515_v53  ;;  %v517_v54 = vld [vmem:[%s5001_s30 + $0x360] sm:$0xff]  ;;  %v519_v55 = vld [vmem:[%s5001_s30 + $0x370] sm:$0xff] }
  0x30   : > { %v521_v56 = vld [vmem:[%s5001_s30 + $0x380] sm:$0xff]  ;;  %518 = vst [vmem:[%s5009_s5 + $0x1b0] sm:$0xff] %v517_v54  ;;  %520 = vst [vmem:[%s5009_s5 + $0x1b8] sm:$0xff] %v519_v55  ;;  %v523_v57 = vld [vmem:[%s5001_s30 + $0x390] sm:$0xff] }
  0x31   : > { %522 = vst [vmem:[%s5009_s5 + $0x1c0] sm:$0xff] %v521_v56  ;;  %v525_v58 = vld [vmem:[%s5001_s30 + $0x3a0] sm:$0xff]  ;;  %v527_v59 = vld [vmem:[%s5001_s30 + $0x3b0] sm:$0xff]  ;;  %524 = vst [vmem:[%s5009_s5 + $0x1c8] sm:$0xff] %v523_v57 }
  0x32   : > { %526 = vst [vmem:[%s5009_s5 + $0x1d0] sm:$0xff] %v525_v58  ;;  %528 = vst [vmem:[%s5009_s5 + $0x1d8] sm:$0xff] %v527_v59  ;;  %v529_v60 = vld [vmem:[%s5001_s30 + $0x3c0] sm:$0xff]  ;;  %v531_v61 = vld [vmem:[%s5001_s30 + $0x3d0] sm:$0xff] }
  0x33   : > { %v533_v62 = vld [vmem:[%s5001_s30 + $0x3e0] sm:$0xff]  ;;  %530 = vst [vmem:[%s5009_s5 + $0x1e0] sm:$0xff] %v529_v60  ;;  %532 = vst [vmem:[%s5009_s5 + $0x1e8] sm:$0xff] %v531_v61  ;;  %v535_v63 = vld [vmem:[%s5001_s30 + $0x3f0] sm:$0xff] }
  0x34   : > { %534 = vst [vmem:[%s5009_s5 + $0x1f0] sm:$0xff] %v533_v62  ;;  %v537_v0 = vld [vmem:[%s5001_s30 + $0x400] sm:$0xff]  ;;  %v539_v1 = vld [vmem:[%s5001_s30 + $0x410] sm:$0xff]  ;;  %536 = vst [vmem:[%s5009_s5 + $0x1f8] sm:$0xff] %v535_v63 }
  0x35   : > { %538 = vst [vmem:[%s5009_s5 + $0x200] sm:$0xff] %v537_v0  ;;  %540 = vst [vmem:[%s5009_s5 + $0x208] sm:$0xff] %v539_v1  ;;  %v541_v2 = vld [vmem:[%s5001_s30 + $0x420] sm:$0xff]  ;;  %v543_v3 = vld [vmem:[%s5001_s30 + $0x430] sm:$0xff] }
  0x36   : > { %v545_v4 = vld [vmem:[%s5001_s30 + $0x440] sm:$0xff]  ;;  %542 = vst [vmem:[%s5009_s5 + $0x210] sm:$0xff] %v541_v2  ;;  %544 = vst [vmem:[%s5009_s5 + $0x218] sm:$0xff] %v543_v3  ;;  %v547_v5 = vld [vmem:[%s5001_s30 + $0x450] sm:$0xff] }
  0x37   : > { %546 = vst [vmem:[%s5009_s5 + $0x220] sm:$0xff] %v545_v4  ;;  %v549_v6 = vld [vmem:[%s5001_s30 + $0x460] sm:$0xff]  ;;  %v551_v7 = vld [vmem:[%s5001_s30 + $0x470] sm:$0xff]  ;;  %548 = vst [vmem:[%s5009_s5 + $0x228] sm:$0xff] %v547_v5 }
  0x38   : > { %550 = vst [vmem:[%s5009_s5 + $0x230] sm:$0xff] %v549_v6  ;;  %552 = vst [vmem:[%s5009_s5 + $0x238] sm:$0xff] %v551_v7  ;;  %v553_v8 = vld [vmem:[%s5001_s30 + $0x480] sm:$0xff]  ;;  %v555_v9 = vld [vmem:[%s5001_s30 + $0x490] sm:$0xff] }
  0x39   : > { %v557_v10 = vld [vmem:[%s5001_s30 + $0x4a0] sm:$0xff]  ;;  %554 = vst [vmem:[%s5009_s5 + $0x240] sm:$0xff] %v553_v8  ;;  %556 = vst [vmem:[%s5009_s5 + $0x248] sm:$0xff] %v555_v9  ;;  %v559_v11 = vld [vmem:[%s5001_s30 + $0x4b0] sm:$0xff] }
  0x3a   : > { %558 = vst [vmem:[%s5009_s5 + $0x250] sm:$0xff] %v557_v10  ;;  %v561_v12 = vld [vmem:[%s5001_s30 + $0x4c0] sm:$0xff]  ;;  %v563_v13 = vld [vmem:[%s5001_s30 + $0x4d0] sm:$0xff]  ;;  %560 = vst [vmem:[%s5009_s5 + $0x258] sm:$0xff] %v559_v11 }
  0x3b   : > { %562 = vst [vmem:[%s5009_s5 + $0x260] sm:$0xff] %v561_v12  ;;  %564 = vst [vmem:[%s5009_s5 + $0x268] sm:$0xff] %v563_v13  ;;  %v565_v14 = vld [vmem:[%s5001_s30 + $0x4e0] sm:$0xff]  ;;  %v567_v15 = vld [vmem:[%s5001_s30 + $0x4f0] sm:$0xff] }
  0x3c   : > { %v569_v16 = vld [vmem:[%s5001_s30 + $0x500] sm:$0xff]  ;;  %566 = vst [vmem:[%s5009_s5 + $0x270] sm:$0xff] %v565_v14  ;;  %568 = vst [vmem:[%s5009_s5 + $0x278] sm:$0xff] %v567_v15  ;;  %v571_v17 = vld [vmem:[%s5001_s30 + $0x510] sm:$0xff] }
  0x3d   : > { %570 = vst [vmem:[%s5009_s5 + $0x280] sm:$0xff] %v569_v16  ;;  %v573_v18 = vld [vmem:[%s5001_s30 + $0x520] sm:$0xff]  ;;  %v575_v19 = vld [vmem:[%s5001_s30 + $0x530] sm:$0xff]  ;;  %572 = vst [vmem:[%s5009_s5 + $0x288] sm:$0xff] %v571_v17 }
  0x3e   : > { %574 = vst [vmem:[%s5009_s5 + $0x290] sm:$0xff] %v573_v18  ;;  %576 = vst [vmem:[%s5009_s5 + $0x298] sm:$0xff] %v575_v19  ;;  %v577_v20 = vld [vmem:[%s5001_s30 + $0x540] sm:$0xff]  ;;  %v579_v21 = vld [vmem:[%s5001_s30 + $0x550] sm:$0xff] }
  0x3f   : > { %v581_v22 = vld [vmem:[%s5001_s30 + $0x560] sm:$0xff]  ;;  %578 = vst [vmem:[%s5009_s5 + $0x2a0] sm:$0xff] %v577_v20  ;;  %580 = vst [vmem:[%s5009_s5 + $0x2a8] sm:$0xff] %v579_v21  ;;  %v583_v23 = vld [vmem:[%s5001_s30 + $0x570] sm:$0xff] }
  0x40   : > { %582 = vst [vmem:[%s5009_s5 + $0x2b0] sm:$0xff] %v581_v22  ;;  %v585_v24 = vld [vmem:[%s5001_s30 + $0x580] sm:$0xff]  ;;  %v587_v25 = vld [vmem:[%s5001_s30 + $0x590] sm:$0xff]  ;;  %584 = vst [vmem:[%s5009_s5 + $0x2b8] sm:$0xff] %v583_v23 }
  0x41   : > { %586 = vst [vmem:[%s5009_s5 + $0x2c0] sm:$0xff] %v585_v24  ;;  %588 = vst [vmem:[%s5009_s5 + $0x2c8] sm:$0xff] %v587_v25  ;;  %v589_v26 = vld [vmem:[%s5001_s30 + $0x5a0] sm:$0xff]  ;;  %v591_v27 = vld [vmem:[%s5001_s30 + $0x5b0] sm:$0xff] }
  0x42   : > { %v593_v28 = vld [vmem:[%s5001_s30 + $0x5c0] sm:$0xff]  ;;  %590 = vst [vmem:[%s5009_s5 + $0x2d0] sm:$0xff] %v589_v26  ;;  %592 = vst [vmem:[%s5009_s5 + $0x2d8] sm:$0xff] %v591_v27  ;;  %v595_v29 = vld [vmem:[%s5001_s30 + $0x5d0] sm:$0xff] }
  0x43   : > { %594 = vst [vmem:[%s5009_s5 + $0x2e0] sm:$0xff] %v593_v28  ;;  %v597_v30 = vld [vmem:[%s5001_s30 + $0x5e0] sm:$0xff]  ;;  %v599_v31 = vld [vmem:[%s5001_s30 + $0x5f0] sm:$0xff]  ;;  %596 = vst [vmem:[%s5009_s5 + $0x2e8] sm:$0xff] %v595_v29 }
  0x44   : > { %598 = vst [vmem:[%s5009_s5 + $0x2f0] sm:$0xff] %v597_v30  ;;  %600 = vst [vmem:[%s5009_s5 + $0x2f8] sm:$0xff] %v599_v31  ;;  %v601_v32 = vld [vmem:[%s5001_s30 + $0x600] sm:$0xff]  ;;  %v603_v33 = vld [vmem:[%s5001_s30 + $0x610] sm:$0xff] }
  0x45   : > { %v605_v34 = vld [vmem:[%s5001_s30 + $0x620] sm:$0xff]  ;;  %602 = vst [vmem:[%s5009_s5 + $0x300] sm:$0xff] %v601_v32  ;;  %604 = vst [vmem:[%s5009_s5 + $0x308] sm:$0xff] %v603_v33  ;;  %v607_v35 = vld [vmem:[%s5001_s30 + $0x630] sm:$0xff] }
  0x46   : > { %606 = vst [vmem:[%s5009_s5 + $0x310] sm:$0xff] %v605_v34  ;;  %v609_v36 = vld [vmem:[%s5001_s30 + $0x640] sm:$0xff]  ;;  %v611_v37 = vld [vmem:[%s5001_s30 + $0x650] sm:$0xff]  ;;  %608 = vst [vmem:[%s5009_s5 + $0x318] sm:$0xff] %v607_v35 }
  0x47   : > { %610 = vst [vmem:[%s5009_s5 + $0x320] sm:$0xff] %v609_v36  ;;  %612 = vst [vmem:[%s5009_s5 + $0x328] sm:$0xff] %v611_v37  ;;  %v613_v38 = vld [vmem:[%s5001_s30 + $0x660] sm:$0xff]  ;;  %v615_v39 = vld [vmem:[%s5001_s30 + $0x670] sm:$0xff] }
  0x48   : > { %v617_v40 = vld [vmem:[%s5001_s30 + $0x680] sm:$0xff]  ;;  %614 = vst [vmem:[%s5009_s5 + $0x330] sm:$0xff] %v613_v38  ;;  %616 = vst [vmem:[%s5009_s5 + $0x338] sm:$0xff] %v615_v39  ;;  %v619_v41 = vld [vmem:[%s5001_s30 + $0x690] sm:$0xff] }
  0x49   : > { %618 = vst [vmem:[%s5009_s5 + $0x340] sm:$0xff] %v617_v40  ;;  %v621_v42 = vld [vmem:[%s5001_s30 + $0x6a0] sm:$0xff]  ;;  %v623_v43 = vld [vmem:[%s5001_s30 + $0x6b0] sm:$0xff]  ;;  %620 = vst [vmem:[%s5009_s5 + $0x348] sm:$0xff] %v619_v41 }
  0x4a   : > { %622 = vst [vmem:[%s5009_s5 + $0x350] sm:$0xff] %v621_v42  ;;  %624 = vst [vmem:[%s5009_s5 + $0x358] sm:$0xff] %v623_v43 }
  0x4b PF: > { %630 = sbr.rel (!%p4985_p4) target bundleno = 82 (0x52), region = 58  ;;  %s632_s6 = sand.u32 (%p4985_p4), 1, %s4923_s16  }
  0x4c   : > { %s4799_s7 = sshll.u32 (%p4985_p4), %s4927_s17, 3  ;;  %s4798_s8 = sshll.u32 (%p4985_p4), %s632_s6, 5 }
  0x4d   : > { %s636_s11 = scalar_lea.vmem (%p4985_p4), %s14065_s1, %s4799_s7  ;;  %s634_s12 = scalar_lea.vmem (%p4985_p4), [#allocation3], %s4798_s8 }
  0x4e   : > { %v670_v44 = vld [vmem:[%s636_s11] sm:$0xff] (%p4985_p4)  ;;  %v672_v45 = vld [vmem:[%s636_s11 + $0x10] sm:$0xff] (%p4985_p4) }
  0x4f   : > { %v674_v46 = vld [vmem:[%s636_s11 + $0x20] sm:$0xff] (%p4985_p4)  ;;  %671 = vst [vmem:[%s634_s12] sm:$0xff] (%p4985_p4), %v670_v44  ;;  %673 = vst [vmem:[%s634_s12 + $0x8] sm:$0xff] (%p4985_p4), %v672_v45  ;;  %v676_v47 = vld [vmem:[%s636_s11 + $0x30] sm:$0xff] (%p4985_p4) }
  0x50   : > { %675 = vst [vmem:[%s634_s12 + $0x10] sm:$0xff] (%p4985_p4), %v674_v46  ;;  %677 = vst [vmem:[%s634_s12 + $0x18] sm:$0xff] (%p4985_p4), %v676_v47 }
  0x52 PF: > { %p4800_p7 = scmp.ge.s32.totalorder %s4927_s17, 1  ;;  %p694_p8 = scmp.lt.s32.totalorder %s4927_s17, 3 }
  0x54   : > { %p695_p9 = pnand %p4800_p7, %p694_p8 }
  0x56   : > { %698 = sbr.rel (%p695_p9) target bundleno = 1264 (0x4f0), region = 104 }
  0x5d   : > { %s5231_s13 = sand.u32 1, %s4919_s15   ;;  %v824_v48 = vlaneseq  ;;  %vm4012_vm0 = vcmask 1045504   ;;  %p742_p10 = scmp.lt.s32.totalorder %s4970_s18, 1 }
  0x5e   : > { %s4801_s14 = sshll.u32 %s5231_s13, 5  ;;  %s4807_s20 = smul.u32 864, %s5231_s13 }
  0x5f   : > { %v5234_v49 = vshrl.u32 %v824_v48, 7  ;;  %s5240_s21 = scalar_lea.vmem [#allocation3], %s4801_s14  ;;  %s4808_s30 = smul.u32 448, %s5231_s13 }
  0x60   : > { %v748_v51 = vld [vmem:[%s5240_s21] sm:$0xff]  ;;  %s5246_s17 = scalar_lea.vmem [#allocation2], %s4807_s20  ;;  %s4803_s6 = sshll.u32 (%p4989_p5), %s4970_s18, 3 }
  0x61   : > { %14743 = vst [vmem:[#allocation5_spill] sm:$0xff] %v5234_v49  ;;  %v5238_v50 = vsub.s32 0, %v5234_v49  ;;  %v5244_v52 = vsub.s32 5, %v5234_v49  ;;  %v5249_v53 = vld [vmem:[%s5246_s17 + $0x1e0] sm:$0xff]  ;;  %v5252_v54 = vld [vmem:[%s5246_s17 + $0x1e8] sm:$0x3f]  ;;  %s13943_s9 = scalar_lea.vmem (%p4989_p5), %s14068_s4, %s4803_s6 }
  0x62   : > { %14746 = vst [vmem:[#allocation8_spill] sm:$0xff] %v5249_v53  ;;  %14747 = vst [vmem:[#allocation9_spill] sm:$0xff] %v5252_v54  ;;  %v5255_v55 = vld [vmem:[%s5246_s17 + $0x1f8] sm:$0xff]  ;;  %v5258_v56 = vld [vmem:[%s5246_s17 + $0x200] sm:$0x3f]  ;;  %s743_s15 = scalar_select %p742_p10, %s4970_s18, 1 }
  0x63   : > { %14744 = vst [vmem:[#allocation6_spill] sm:$0xff] %v5238_v50  ;;  %14745 = vst [vmem:[#allocation7_spill] sm:$0xff] %v5244_v52  ;;  %v5261_v57 = vld [vmem:[%s5246_s17 + $0x210] sm:$0xff]  ;;  %v5264_v58 = vld [vmem:[%s5246_s17 + $0x218] sm:$0x3f]  ;;  %v5267_v59 = vrot.slane %v748_v51, %v5238_v50  ;;  %v5279_v63 = vrot.slane %v748_v51, %v5244_v52  ;;  %s13744_s5 = scalar_lea.vmem [#allocation4], %s4808_s30 }
  0x64   : > { %14748 = vst [vmem:[#allocation10_spill] sm:$0xff] %v5255_v55  ;;  %14749 = vst [vmem:[#allocation11_spill] sm:$0xff] %v5258_v56  ;;  %v5270_v60 = vld [vmem:[%s5246_s17 + $0x228] sm:$0xff]  ;;  %v5273_v61 = vld [vmem:[%s5246_s17 + $0x230] sm:$0x3f]  ;;  %s744_s26 = scalar_lea.vmem %s14066_s2, %s743_s15  ;;  %s747_s29 = scalar_lea.vmem %s14067_s3, %s743_s15 }
  0x65   : > { %14750 = vst [vmem:[#allocation12_spill] sm:$0xff] %v5261_v57  ;;  %14751 = vst [vmem:[#allocation13_spill] sm:$0xff] %v5264_v58  ;;  %v5276_v62 = vld [vmem:[%s5246_s17 + $0x240] sm:$0xff]  ;;  %v5282_v0 = vld [vmem:[%s5246_s17 + $0x248] sm:$0x3f]  ;;  %v860_v3 = vmul.f32 %v5267_v59, %v5249_v53  ;;  %v861_v4 = vmul.f32 %v5267_v59, %v5252_v54  ;;  %v862_v5 = vmul.f32 %v5267_v59, %v5255_v55 }
  0x66   : > { %14752 = vst [vmem:[#allocation14_spill] sm:$0xff] %v5270_v60  ;;  %14753 = vst [vmem:[#allocation15_spill] sm:$0xff] %v5273_v61  ;;  %v5285_v1 = vld [vmem:[%s5246_s17 + $0x258] sm:$0xff]  ;;  %v5288_v2 = vld [vmem:[%s5246_s17 + $0x260] sm:$0x3f]  ;;  %v863_v6 = vmul.f32 %v5267_v59, %v5258_v56  ;;  %v864_v10 = vmul.f32 %v5267_v59, %v5261_v57  ;;  %v865_v11 = vmul.f32 %v5267_v59, %v5264_v58 }
  0x67   : > { %14754 = vst [vmem:[#allocation16_spill] sm:$0xff] %v5276_v62  ;;  %14755 = vst [vmem:[#allocation17_spill] sm:$0xff] %v5279_v63  ;;  %v5299_v7 = vld [vmem:[%s5246_s17 + $0x270] sm:$0xff]  ;;  %v5302_v8 = vld [vmem:[%s5246_s17 + $0x278] sm:$0x3f]  ;;  %v866_v12 = vmul.f32 %v5267_v59, %v5270_v60  ;;  %v867_v13 = vmul.f32 %v5267_v59, %v5273_v61  ;;  %v868_v17 = vmul.f32 %v5267_v59, %v5276_v62 }
  0x68   : > { %14756 = vst [vmem:[#allocation18_spill] sm:$0xff] %v5282_v0  ;;  %14757 = vst [vmem:[#allocation19_spill] sm:$0xff] %v5285_v1  ;;  %v5305_v9 = vld [vmem:[%s5246_s17 + $0x288] sm:$0xff]  ;;  %v5316_v14 = vld [vmem:[%s5246_s17 + $0x290] sm:$0x3f]  ;;  %v869_v18 = vmul.f32 %v5267_v59, %v5282_v0  ;;  %v870_v19 = vmul.f32 %v5267_v59, %v5285_v1  ;;  %v871_v20 = vmul.f32 %v5267_v59, %v5288_v2 }
  0x69   : > { %14758 = vst [vmem:[#allocation20_spill] sm:$0xff] %v5288_v2  ;;  %14759 = vst [vmem:[#allocation21_spill] sm:$0xff] %v5299_v7  ;;  %v5319_v15 = vld [vmem:[%s5246_s17 + $0x2a0] sm:$0xff]  ;;  %v5322_v16 = vld [vmem:[%s5246_s17 + $0x2a8] sm:$0x3f]  ;;  %v872_v24 = vmul.f32 %v5267_v59, %v5299_v7  ;;  %v873_v25 = vmul.f32 %v5267_v59, %v5302_v8  ;;  %v874_v26 = vmul.f32 %v5267_v59, %v5305_v9 }
  0x6a   : > { %14760 = vst [vmem:[#allocation22_spill] sm:$0xff] %v5302_v8  ;;  %14761 = vst [vmem:[#allocation23_spill] sm:$0xff] %v5305_v9  ;;  %v5333_v21 = vld [vmem:[%s5246_s17 + $0x2b8] sm:$0xff]  ;;  %v5336_v22 = vld [vmem:[%s5246_s17 + $0x2c0] sm:$0x3f]  ;;  %v875_v27 = vmul.f32 %v5267_v59, %v5316_v14  ;;  %v876_v31 = vmul.f32 %v5267_v59, %v5319_v15  ;;  %v877_v32 = vmul.f32 %v5267_v59, %v5322_v16 }
  0x6b   : > { %14762 = vst [vmem:[#allocation24_spill] sm:$0xff] %v5316_v14  ;;  %14763 = vst [vmem:[#allocation25_spill] sm:$0xff] %v5319_v15  ;;  %v5339_v23 = vld [vmem:[%s5246_s17 + $0x2d0] sm:$0xff]  ;;  %v5350_v28 = vld [vmem:[%s5246_s17 + $0x2d8] sm:$0x3f]  ;;  %v878_v33 = vmul.f32 %v5267_v59, %v5333_v21  ;;  %v879_v34 = vmul.f32 %v5267_v59, %v5336_v22  ;;  %v976_v39 = vmul.f32 %v5279_v63, %v5255_v55 }
  0x6c   : > { %14764 = vst [vmem:[#allocation26_spill] sm:$0xff] %v5322_v16  ;;  %14765 = vst [vmem:[#allocation27_spill] sm:$0xff] %v5333_v21  ;;  %v5353_v29 = vld [vmem:[%s5246_s17 + $0x2e8] sm:$0xff]  ;;  %v5356_v30 = vld [vmem:[%s5246_s17 + $0x2f0] sm:$0x3f]  ;;  %v880_v35 = vmul.f32 %v5267_v59, %v5339_v23  ;;  %v881_v36 = vmul.f32 %v5267_v59, %v5350_v28  ;;  %v977_v40 = vmul.f32 %v5279_v63, %v5258_v56 }
  0x6d   : > { %14766 = vst [vmem:[#allocation28_spill] sm:$0xff] %v5336_v22  ;;  %14767 = vst [vmem:[#allocation29_spill] sm:$0xff] %v5339_v23  ;;  %v882_v37 = vmul.f32 %v5267_v59, %v5353_v29  ;;  %v883_v38 = vmul.f32 %v5267_v59, %v5356_v30  ;;  %v978_v41 = vmul.f32 %v5279_v63, %v5261_v57  ;;  %v5407_v53 = vld [vmem:[%s5246_s17 + $0x300] sm:$0xff] }
  0x6e   : > { %14768 = vst [vmem:[#allocation30_spill] sm:$0xff] %v5350_v28  ;;  %14769 = vst [vmem:[#allocation31_spill] sm:$0xff] %v5353_v29  ;;  %v979_v42 = vmul.f32 %v5279_v63, %v5264_v58  ;;  %v980_v43 = vmul.f32 %v5279_v63, %v5270_v60  ;;  %v981_v44 = vmul.f32 %v5279_v63, %v5273_v61 }
  0x6f   : > { %14770 = vst [vmem:[#allocation32_spill] sm:$0xff] %v5356_v30  ;;  %v982_v45 = vmul.f32 %v5279_v63, %v5276_v62  ;;  %v983_v46 = vmul.f32 %v5279_v63, %v5282_v0  ;;  %v984_v47 = vmul.f32 %v5279_v63, %v5285_v1  ;;  %v985_v48 = vmul.f32 %v5279_v63, %v5288_v2  ;;  %v5410_v2 = vld [vmem:[%s5246_s17 + $0x308] sm:$0x3f] }
  0x70   : > { %v986_v51 = vmul.f32 %v5279_v63, %v5299_v7  ;;  %v987_v52 = vmul.f32 %v5279_v63, %v5302_v8  ;;  %v988_v50 = vmul.f32 %v5279_v63, %v5305_v9  ;;  %v989_v56 = vmul.f32 %v5279_v63, %v5316_v14  ;;  %14771 = vst [vmem:[#allocation33_spill] sm:$0xff] %v5407_v53 }
  0x71   : > { %v990_v55 = vmul.f32 %v5279_v63, %v5319_v15  ;;  %v991_v54 = vmul.f32 %v5279_v63, %v5322_v16  ;;  %14772 = vst [vmem:[#allocation34_spill] sm:$0xff] %v5410_v2  ;;  %v992_v7 = vmul.f32 %v5279_v63, %v5333_v21  ;;  %v993_v8 = vmul.f32 %v5279_v63, %v5336_v22 }
  0x72   : > { %v994_v9 = vmul.f32 %v5279_v63, %v5339_v23  ;;  %v995_v14 = vmul.f32 %v5279_v63, %v5350_v28  ;;  %v996_v15 = vmul.f32 %v5279_v63, %v5353_v29  ;;  %v997_v16 = vmul.f32 %v5279_v63, %v5356_v30 }
  0x73   : > { %v998_v1 = vmul.f32 %v5279_v63, %v5407_v53  ;;  %v999_v21 = vmul.f32 %v5279_v63, %v5410_v2  ;;  %v5428_v0 = vadd.f32 %v976_v39, %v860_v3  ;;  %v5430_v22 = vadd.f32 %v977_v40, %v861_v4 }
  0x74   : > { %v5432_v23 = vadd.f32 %v978_v41, %v862_v5  ;;  %v5434_v62 = vadd.f32 %v979_v42, %v863_v6  ;;  %v5436_v28 = vadd.f32 %v980_v43, %v864_v10  ;;  %v5438_v29 = vadd.f32 %v981_v44, %v865_v11  ;;  %v5560_v43 = vld [vmem:[%s5246_s17 + $0xb0] sm:$0x3f]  ;;  %v5563_v44 = vld [vmem:[%s5246_s17 + $0xc0] sm:$0xff] }
  0x75   : > { %v5440_v61 = vadd.f32 %v982_v45, %v866_v12  ;;  %v5442_v30 = vadd.f32 %v983_v46, %v867_v13  ;;  %v5444_v53 = vadd.f32 %v984_v47, %v868_v17  ;;  %v5446_v63 = vadd.f32 %v985_v48, %v869_v18  ;;  %v753_v18 = vld [vmem:[%s5246_s17 + $0x8] sm:$0x3f]  ;;  %14796 = vst [vmem:[#allocation58_spill] sm:$0xff] %v5560_v43 }
  0x76   : > { %v5448_v3 = vadd.f32 %v986_v51, %v870_v19  ;;  %v5450_v4 = vadd.f32 %v987_v52, %v871_v20  ;;  %v5452_v5 = vadd.f32 %v988_v50, %v872_v24  ;;  %v5454_v6 = vadd.f32 %v989_v56, %v873_v25  ;;  %v5497_v19 = vld [vmem:[%s5246_s17 + $0x60] sm:$0xff]  ;;  %v5509_v25 = vld [vmem:[%s5240_s21 + $0x8] sm:$0xff]  ;;  %14797 = vst [vmem:[#allocation59_spill] sm:$0xff] %v5563_v44 }
  0x77   : > { %v5456_v10 = vadd.f32 %v990_v55, %v874_v26  ;;  %v5458_v11 = vadd.f32 %v991_v54, %v875_v27  ;;  %v5460_v12 = vadd.f32 %v992_v7, %v876_v31  ;;  %v5462_v13 = vadd.f32 %v993_v8, %v877_v32  ;;  %v752_v7 = vld [vmem:[%s5246_s17] sm:$0xff]  ;;  %v5479_v8 = vld [vmem:[%s5246_s17 + $0x18] sm:$0xff]  ;;  %14777 = vst [vmem:[#allocation39_spill] sm:$0xff] %v5497_v19  ;;  %v5512_v26 = vld [vmem:[%s5246_s17 + $0x68] sm:$0x3f] }
  0x78   : > { %v5464_v52 = vadd.f32 %v994_v9, %v878_v33  ;;  %v5466_v17 = vadd.f32 %v995_v14, %v879_v34  ;;  %v5468_v50 = vadd.f32 %v996_v15, %v880_v35  ;;  %v5470_v56 = vadd.f32 %v997_v16, %v881_v36  ;;  %v5482_v9 = vld [vmem:[%s5246_s17 + $0x20] sm:$0x3f]  ;;  %v5485_v14 = vld [vmem:[%s5246_s17 + $0x30] sm:$0xff]  ;;  %v5488_v15 = vld [vmem:[%s5246_s17 + $0x38] sm:$0x3f]  ;;  %14781 = vst [vmem:[#allocation43_spill] sm:$0xff] %v5509_v25 }
  0x79   : > { %v5472_v55 = vadd.f32 %v998_v1, %v882_v37  ;;  %v5474_v54 = vadd.f32 %v999_v21, %v883_v38  ;;  %14773 = vst [vmem:[#allocation35_spill] sm:$0xff] %v5485_v14  ;;  %14774 = vst [vmem:[#allocation36_spill] sm:$0xff] %v5488_v15  ;;  %v5491_v16 = vld [vmem:[%s5246_s17 + $0x48] sm:$0xff]  ;;  %v5494_v1 = vld [vmem:[%s5246_s17 + $0x50] sm:$0x3f]  ;;  %v5500_v20 = vsub.s32 2, %v5234_v49  ;;  %v5521_v32 = vmul.f32 %v5267_v59, %v752_v7 }
  0x7a   : > { %14775 = vst [vmem:[#allocation37_spill] sm:$0xff] %v5491_v16  ;;  %14776 = vst [vmem:[#allocation38_spill] sm:$0xff] %v5494_v1  ;;  %v5503_v21 = vsub.s32 7, %v5234_v49  ;;  %v5506_v24 = vsub.s32 4, %v5234_v49  ;;  %v5515_v27 = vld [vmem:[%s5246_s17 + $0x78] sm:$0xff]  ;;  %v5524_v33 = vmul.f32 %v5267_v59, %v753_v18  ;;  %v5528_v34 = vmul.f32 %v5267_v59, %v5479_v8  ;;  %v5535_v36 = vld [vmem:[%s5246_s17 + $0x90] sm:$0xff] }
  0x7b   : > { %14778 = vst [vmem:[#allocation40_spill] sm:$0xff] %v5500_v20  ;;  %14782 = vst [vmem:[#allocation44_spill] sm:$0xff] %v5512_v26  ;;  %v5518_v31 = vld [vmem:[%s5246_s17 + $0x80] sm:$0x3f]  ;;  %v5532_v35 = vmul.f32 %v5267_v59, %v5482_v9  ;;  %v5538_v37 = vld [vmem:[%s5246_s17 + $0x98] sm:$0x3f]  ;;  %v5545_v39 = vmul.f32 %v5267_v59, %v5485_v14  ;;  %v5549_v40 = vmul.f32 %v5267_v59, %v5488_v15 }
  0x7c   : > { %14779 = vst [vmem:[#allocation41_spill] sm:$0xff] %v5503_v21  ;;  %14780 = vst [vmem:[#allocation42_spill] sm:$0xff] %v5506_v24  ;;  %v5541_v38 = vld [vmem:[%s5246_s17 + $0xa8] sm:$0xff]  ;;  %v5553_v41 = vmul.f32 %v5267_v59, %v5491_v16  ;;  %v5557_v42 = vmul.f32 %v5267_v59, %v5494_v1  ;;  %v5570_v46 = vmul.f32 %v5267_v59, %v5497_v19  ;;  %v5585_v7 = vld [vmem:[%s5246_s17 + $0xd8] sm:$0xff] }
  0x7d   : > { %14783 = vst [vmem:[#allocation45_spill] sm:$0xff] %v5515_v27  ;;  %14784 = vst [vmem:[#allocation46_spill] sm:$0xff] %v5518_v31  ;;  %v5566_v45 = vld [vmem:[%s5246_s17 + $0xc8] sm:$0x3f]  ;;  %v5574_v47 = vmul.f32 %v5267_v59, %v5512_v26  ;;  %v5578_v48 = vmul.f32 %v5267_v59, %v5515_v27  ;;  %v5582_v51 = vmul.f32 %v5267_v59, %v5518_v31  ;;  %v5588_v18 = vld [vmem:[%s5246_s17 + $0xe0] sm:$0x3f] }
  0x7e   : > { %14785 = vst [vmem:[#allocation47_spill] sm:$0xff] %v5521_v32  ;;  %14786 = vst [vmem:[#allocation48_spill] sm:$0xff] %v5524_v33  ;;  %v5591_v49 = vld [vmem:[%s5246_s17 + $0xf0] sm:$0xff]  ;;  %v5595_v24 = vmul.f32 %v5267_v59, %v5535_v36  ;;  %v5599_v21 = vmul.f32 %v5267_v59, %v5538_v37  ;;  %v14829_v33 = vld [vmem:[#allocation16_spill] sm:$0xff] }
  0x7f   : > { %14787 = vst [vmem:[#allocation49_spill] sm:$0xff] %v5528_v34  ;;  %14788 = vst [vmem:[#allocation50_spill] sm:$0xff] %v5532_v35  ;;  %v14830_v32 = vld [vmem:[#allocation18_spill] sm:$0xff] }
  0x80   : > { %14789 = vst [vmem:[#allocation51_spill] sm:$0xff] %v5535_v36  ;;  %14790 = vst [vmem:[#allocation52_spill] sm:$0xff] %v5538_v37 }
  0x81   : > { %14791 = vst [vmem:[#allocation53_spill] sm:$0xff] %v5541_v38  ;;  %14792 = vst [vmem:[#allocation54_spill] sm:$0xff] %v5545_v39  ;;  %v5641_v39 = vld [vmem:[%s5246_s17 + $0x138] sm:$0xff] }
  0x82   : > { %14793 = vst [vmem:[#allocation55_spill] sm:$0xff] %v5549_v40  ;;  %14794 = vst [vmem:[#allocation56_spill] sm:$0xff] %v5553_v41  ;;  %v5635_v41 = vld [vmem:[%s5246_s17 + $0x120] sm:$0xff]  ;;  %v5638_v40 = vld [vmem:[%s5246_s17 + $0x128] sm:$0x3f] }
  0x83   : > { %14795 = vst [vmem:[#allocation57_spill] sm:$0xff] %v5557_v42  ;;  %14798 = vst [vmem:[#allocation60_spill] sm:$0xff] %v5566_v45  ;;  %v5616_v42 = vld [vmem:[%s5246_s17 + $0x110] sm:$0x3f]  ;;  %v5665_v34 = vmul.f32 %v5267_v59, %v5635_v41 }
  0x84   : > { %14799 = vst [vmem:[#allocation61_spill] sm:$0xff] %v5570_v46  ;;  %14800 = vst [vmem:[#allocation62_spill] sm:$0xff] %v5574_v47  ;;  %v5610_v47 = vld [vmem:[%s5246_s17 + $0xf8] sm:$0x3f]  ;;  %v5613_v46 = vld [vmem:[%s5246_s17 + $0x108] sm:$0xff]  ;;  %v5661_v35 = vmul.f32 %v5267_v59, %v5616_v42 }
  0x85   : > { %14801 = vst [vmem:[#allocation63_spill] sm:$0xff] %v5578_v48  ;;  %14802 = vst [vmem:[#allocation64_spill] sm:$0xff] %v5582_v51  ;;  %v5603_v48 = vmul.f32 %v5267_v59, %v5541_v38  ;;  %v5607_v51 = vmul.f32 %v5267_v59, %v5560_v43  ;;  %v5708_v43 = vld [vmem:[%s5246_s17 + $0x318] sm:$0xff] }
  0x86   : > { %14803 = vst [vmem:[#allocation65_spill] sm:$0xff] %v5585_v7  ;;  %14804 = vst [vmem:[#allocation66_spill] sm:$0xff] %v5588_v18 }
  0x87   : > { %14805 = vst [vmem:[#allocation67_spill] sm:$0xff] %v5591_v49  ;;  %14806 = vst [vmem:[#allocation68_spill] sm:$0xff] %v5595_v24  ;;  %v5620_v24 = vmul.f32 %v5267_v59, %v5563_v44  ;;  %v14840_v44 = vld [vmem:[#allocation28_spill] sm:$0xff] }
  0x88   : > { %14807 = vst [vmem:[#allocation69_spill] sm:$0xff] %v5599_v21  ;;  %14808 = vst [vmem:[#allocation70_spill] sm:$0xff] %v5603_v48  ;;  %v5624_v21 = vmul.f32 %v5267_v59, %v5566_v45  ;;  %v5628_v48 = vmul.f32 %v5267_v59, %v5585_v7  ;;  %v14838_v7 = vld [vmem:[#allocation26_spill] sm:$0xff]  ;;  %v14839_v45 = vld [vmem:[#allocation27_spill] sm:$0xff] }
  0x89   : > { %14809 = vst [vmem:[#allocation71_spill] sm:$0xff] %v5607_v51  ;;  %14810 = vst [vmem:[#allocation72_spill] sm:$0xff] %v5610_v47  ;;  %v5632_v51 = vmul.f32 %v5267_v59, %v5588_v18  ;;  %v14837_v18 = vld [vmem:[#allocation25_spill] sm:$0xff] }
  0x8a   : > { %14811 = vst [vmem:[#allocation73_spill] sm:$0xff] %v5613_v46  ;;  %14812 = vst [vmem:[#allocation74_spill] sm:$0xff] %v5616_v42 }
  0x8b   : > { %14813 = vst [vmem:[#allocation75_spill] sm:$0xff] %v5620_v24  ;;  %14814 = vst [vmem:[#allocation76_spill] sm:$0xff] %v5624_v21  ;;  %v5645_v24 = vmul.f32 %v5267_v59, %v5591_v49  ;;  %v5649_v21 = vmul.f32 %v5267_v59, %v5610_v47  ;;  %v14835_v47 = vld [vmem:[#allocation23_spill] sm:$0xff]  ;;  %v14836_v49 = vld [vmem:[#allocation24_spill] sm:$0xff] }
  0x8c   : > { %14815 = vst [vmem:[#allocation77_spill] sm:$0xff] %v5628_v48  ;;  %14816 = vst [vmem:[#allocation78_spill] sm:$0xff] %v5632_v51  ;;  %v5653_v48 = vmul.f32 %v5267_v59, %v5613_v46  ;;  %v5657_v51 = vrot.slane %v5509_v25, %v5500_v20  ;;  %v14834_v46 = vld [vmem:[#allocation22_spill] sm:$0xff] }
  0x8d   : > { %14817 = vst [vmem:[#allocation79_spill] sm:$0xff] %v5635_v41  ;;  %14818 = vst [vmem:[#allocation80_spill] sm:$0xff] %v5638_v40 }
  0x8e   : > { %14819 = vst [vmem:[#allocation81_spill] sm:$0xff] %v5641_v39  ;;  %14820 = vst [vmem:[#allocation82_spill] sm:$0xff] %v5645_v24  ;;  %v5669_v24 = vmul.f32 %v5267_v59, %v5638_v40  ;;  %v1092_v20 = vmul.f32 %v5657_v51, %v5261_v57  ;;  %v14832_v40 = vld [vmem:[#allocation20_spill] sm:$0xff]  ;;  %v1114_v26 = vmul.f32 %v5657_v51, %v5708_v43 }
  0x8f   : > { %14821 = vst [vmem:[#allocation83_spill] sm:$0xff] %v5649_v21  ;;  %14822 = vst [vmem:[#allocation84_spill] sm:$0xff] %v5653_v48  ;;  %v5673_v21 = vmul.f32 %v5267_v59, %v5641_v39  ;;  %v1093_v48 = vmul.f32 %v5657_v51, %v5264_v58  ;;  %v14831_v39 = vld [vmem:[#allocation19_spill] sm:$0xff]  ;;  %v1099_v41 = vmul.f32 %v5657_v51, %v14832_v40  ;;  %v14833_v58 = vld [vmem:[#allocation21_spill] sm:$0xff] }
  0x90   : > { %14823 = vst [vmem:[#allocation85_spill] sm:$0xff] %v5657_v51  ;;  %14824 = vst [vmem:[#allocation86_spill] sm:$0xff] %v5661_v35  ;;  %v1094_v35 = vmul.f32 %v5657_v51, %v5270_v60  ;;  %v1098_v57 = vmul.f32 %v5657_v51, %v14831_v39  ;;  %v1100_v42 = vmul.f32 %v5657_v51, %v14833_v58 }
  0x91   : > { %14825 = vst [vmem:[#allocation87_spill] sm:$0xff] %v5665_v34  ;;  %14826 = vst [vmem:[#allocation88_spill] sm:$0xff] %v5669_v24  ;;  %v14828_v34 = vld [vmem:[#allocation15_spill] sm:$0xff]  ;;  %v1096_v24 = vmul.f32 %v5657_v51, %v14829_v33  ;;  %v1101_v60 = vmul.f32 %v5657_v51, %v14834_v46  ;;  %v1103_v33 = vmul.f32 %v5657_v51, %v14836_v49  ;;  %v5711_v46 = vld [vmem:[%s5246_s17 + $0x320] sm:$0x3f] }
  0x92   : > { %14827 = vst [vmem:[#allocation89_spill] sm:$0xff] %v5673_v21  ;;  %v1095_v25 = vmul.f32 %v5657_v51, %v14828_v34  ;;  %v1097_v21 = vmul.f32 %v5657_v51, %v14830_v32  ;;  %v1102_v34 = vmul.f32 %v5657_v51, %v14835_v47  ;;  %v1104_v32 = vmul.f32 %v5657_v51, %v14837_v18  ;;  %v14843_v47 = vld [vmem:[#allocation29_spill] sm:$0xff]  ;;  %v14844_v49 = vld [vmem:[#allocation30_spill] sm:$0xff]  ;;  %v14845_v18 = vld [vmem:[#allocation31_spill] sm:$0xff] }
  0x93   : > { %v1105_v39 = vmul.f32 %v5657_v51, %v14838_v7  ;;  %v1106_v40 = vmul.f32 %v5657_v51, %v14839_v45  ;;  %v1107_v58 = vmul.f32 %v5657_v51, %v14840_v44  ;;  %14841 = vst [vmem:[#allocation90_spill] sm:$0xff] %v5708_v43  ;;  %14842 = vst [vmem:[#allocation91_spill] sm:$0xff] %v5711_v46  ;;  %v14846_v7 = vld [vmem:[#allocation32_spill] sm:$0xff]  ;;  %v14847_v45 = vld [vmem:[#allocation33_spill] sm:$0xff] }
  0x94   : > { %v1108_v38 = vmul.f32 %v5657_v51, %v14843_v47  ;;  %v1109_v37 = vmul.f32 %v5657_v51, %v14844_v49  ;;  %v1110_v36 = vmul.f32 %v5657_v51, %v14845_v18  ;;  %v1111_v31 = vmul.f32 %v5657_v51, %v14846_v7 }
  0x95   : > { %v1112_v27 = vmul.f32 %v5657_v51, %v14847_v45  ;;  %v1113_v44 = vmul.f32 %v5657_v51, %v5410_v2  ;;  %v1115_v47 = vmul.f32 %v5657_v51, %v5711_v46  ;;  %v5730_v49 = vadd.f32 %v1092_v20, %v5428_v0  ;;  %v14872_v51 = vld [vmem:[#allocation74_spill] sm:$0xff] }
  0x96   : > { %v5733_v18 = vadd.f32 %v1093_v48, %v5430_v22  ;;  %v5736_v7 = vadd.f32 %v1094_v35, %v5432_v23  ;;  %v5739_v45 = vadd.f32 %v1095_v25, %v5434_v62  ;;  %v5742_v2 = vadd.f32 %v1096_v24, %v5436_v28  ;;  %v791_v24 = vld [vmem:[%s5246_s17 + $0x1d0] sm:$0x3f] }
  0x97   : > { %v5745_v43 = vadd.f32 %v1097_v21, %v5438_v29  ;;  %v5748_v0 = vadd.f32 %v1098_v57, %v5440_v61  ;;  %v5751_v22 = vadd.f32 %v1099_v41, %v5442_v30  ;;  %v5754_v20 = vadd.f32 %v1100_v42, %v5444_v53  ;;  %v790_v21 = vld [vmem:[%s5246_s17 + $0x1c8] sm:$0xff]  ;;  %v14862_v41 = vld [vmem:[#allocation53_spill] sm:$0xff]  ;;  %v14864_v48 = vld [vmem:[#allocation59_spill] sm:$0xff] }
  0x98   : > { %v5757_v23 = vadd.f32 %v1101_v60, %v5446_v63  ;;  %v5760_v62 = vadd.f32 %v1102_v34, %v5448_v3  ;;  %v5763_v28 = vadd.f32 %v1103_v33, %v5450_v4  ;;  %v5766_v29 = vadd.f32 %v1104_v32, %v5452_v5  ;;  %v788_v60 = vld [vmem:[%s5246_s17 + $0x1b0] sm:$0xff]  ;;  %v789_v63 = vld [vmem:[%s5246_s17 + $0x1b8] sm:$0x3f]  ;;  %v14858_v34 = vld [vmem:[#allocation45_spill] sm:$0xff] }
  0x99   : > { %v5769_v57 = vadd.f32 %v1105_v39, %v5454_v6  ;;  %v5772_v61 = vadd.f32 %v1106_v40, %v5456_v10  ;;  %v5775_v53 = vadd.f32 %v1107_v58, %v5458_v11  ;;  %v5780_v30 = vadd.f32 %v1108_v38, %v5460_v12  ;;  %v5792_v6 = vld [vmem:[%s5246_s17 + $0x140] sm:$0x3f]  ;;  %v14857_v32 = vld [vmem:[#allocation44_spill] sm:$0xff]  ;;  %v14860_v38 = vld [vmem:[#allocation51_spill] sm:$0xff] }
  0x9a   : > { %v5783_v3 = vadd.f32 %v1109_v37, %v5462_v13  ;;  %v5786_v4 = vadd.f32 %v1110_v36, %v5464_v52  ;;  %v5789_v5 = vadd.f32 %v1111_v31, %v5466_v17  ;;  %14848 = vst [vmem:[#allocation92_spill] sm:$0xff] %v5792_v6  ;;  %v5795_v58 = vadd.f32 %v1112_v27, %v5468_v50  ;;  %v14852_v52 = vld [vmem:[#allocation17_spill] sm:$0xff]  ;;  %v14859_v36 = vld [vmem:[#allocation46_spill] sm:$0xff]  ;;  %v14861_v39 = vld [vmem:[#allocation52_spill] sm:$0xff] }
  0x9b   : > { %v5798_v10 = vadd.f32 %v1113_v44, %v5470_v56  ;;  %v5801_v11 = vadd.f32 %v1114_v26, %v5472_v55  ;;  %v5804_v12 = vadd.f32 %v1115_v47, %v5474_v54  ;;  %v5808_v13 = vmul.f32 %v5267_v59, %v5792_v6  ;;  %v14863_v44 = vld [vmem:[#allocation58_spill] sm:$0xff] }
  0x9c   : > { %v944_v17 = vmul.f32 %v14852_v52, %v5479_v8  ;;  %v945_v50 = vmul.f32 %v14852_v52, %v5482_v9  ;;  %v946_v56 = vmul.f32 %v14852_v52, %v5485_v14  ;;  %v5819_v55 = vmul.f32 %v5267_v59, %v788_v60  ;;  %v14873_v14 = vld [vmem:[#allocation79_spill] sm:$0xff] }
  0x9d   : > { %14849 = vst [vmem:[#allocation93_spill] sm:$0xff] %v5801_v11  ;;  %14850 = vst [vmem:[#allocation94_spill] sm:$0xff] %v5804_v12  ;;  %v5822_v54 = vmul.f32 %v5267_v59, %v789_v63  ;;  %v947_v25 = vmul.f32 %v14852_v52, %v5488_v15  ;;  %v948_v8 = vmul.f32 %v14852_v52, %v5491_v16  ;;  %v14865_v63 = vld [vmem:[#allocation60_spill] sm:$0xff]  ;;  %v5863_v16 = vld [vmem:[%s5246_s17 + $0x150] sm:$0xff] }
  0x9e   : > { %14851 = vst [vmem:[#allocation95_spill] sm:$0xff] %v5808_v13  ;;  %14853 = vst [vmem:[#allocation17_spill] sm:$0xff] %v5819_v55  ;;  %v5829_v26 = vmul.f32 %v5267_v59, %v790_v21  ;;  %v5832_v9 = vmul.f32 %v5267_v59, %v791_v24  ;;  %v949_v27 = vmul.f32 %v14852_v52, %v5494_v1  ;;  %v14868_v1 = vld [vmem:[#allocation67_spill] sm:$0xff]  ;;  %v14871_v15 = vld [vmem:[#allocation73_spill] sm:$0xff] }
  0x9f   : > { %14854 = vst [vmem:[#allocation96_spill] sm:$0xff] %v5822_v54  ;;  %v950_v31 = vmul.f32 %v14852_v52, %v5497_v19  ;;  %v951_v33 = vmul.f32 %v14852_v52, %v14857_v32  ;;  %v952_v35 = vmul.f32 %v14852_v52, %v14858_v34  ;;  %v953_v37 = vmul.f32 %v14852_v52, %v14859_v36  ;;  %v14866_v32 = vld [vmem:[#allocation65_spill] sm:$0xff]  ;;  %v14867_v19 = vld [vmem:[#allocation66_spill] sm:$0xff]  ;;  %v14885_v12 = vld [vmem:[#allocation48_spill] sm:$0xff] }
  0xa0   : > { %14855 = vst [vmem:[#allocation97_spill] sm:$0xff] %v5829_v26  ;;  %14856 = vst [vmem:[#allocation98_spill] sm:$0xff] %v5832_v9  ;;  %v954_v59 = vmul.f32 %v14852_v52, %v14860_v38  ;;  %v955_v40 = vmul.f32 %v14852_v52, %v14861_v39  ;;  %v956_v42 = vmul.f32 %v14852_v52, %v14862_v41  ;;  %v14870_v41 = vld [vmem:[#allocation72_spill] sm:$0xff]  ;;  %v14883_v13 = vld [vmem:[#allocation9_spill] sm:$0xff] }
  0xa1   : > { %v957_v47 = vmul.f32 %v14852_v52, %v14863_v44  ;;  %v958_v60 = vmul.f32 %v14852_v52, %v14864_v48  ;;  %v959_v34 = vmul.f32 %v14852_v52, %v14865_v63  ;;  %v960_v36 = vmul.f32 %v14852_v52, %v14866_v32  ;;  %14869 = vst [vmem:[#allocation99_spill] sm:$0xff] %v5863_v16  ;;  %v5874_v9 = vld [vmem:[%s5246_s17 + $0x158] sm:$0x3f] }
  0xa2   : > { %v961_v38 = vmul.f32 %v14852_v52, %v14867_v19  ;;  %v962_v39 = vmul.f32 %v14852_v52, %v14868_v1  ;;  %v963_v44 = vmul.f32 %v14852_v52, %v14870_v41  ;;  %v964_v48 = vmul.f32 %v14852_v52, %v14871_v15  ;;  %14874 = vst [vmem:[#allocation100_spill] sm:$0xff] %v5874_v9  ;;  %v14875_v19 = vld [vmem:[#allocation80_spill] sm:$0xff]  ;;  %v14876_v1 = vld [vmem:[#allocation81_spill] sm:$0xff] }
  0xa3   : > { %v965_v63 = vmul.f32 %v14852_v52, %v14872_v51  ;;  %v966_v32 = vmul.f32 %v14852_v52, %v14873_v14  ;;  %v967_v26 = vmul.f32 %v14852_v52, %v14875_v19  ;;  %v968_v54 = vmul.f32 %v14852_v52, %v14876_v1  ;;  %v14881_v19 = vld [vmem:[#allocation8_spill] sm:$0xff] }
  0xa4   : > { %v969_v41 = vmul.f32 %v14852_v52, %v5792_v6  ;;  %v5884_v15 = vmul.f32 %v14852_v52, %v5863_v16  ;;  %v5888_v51 = vmul.f32 %v14852_v52, %v5874_v9  ;;  %v5891_v14 = vmul.f32 %v14852_v52, %v790_v21  ;;  %v14884_v16 = vld [vmem:[#allocation47_spill] sm:$0xff] }
  0xa5   : > { %v5894_v55 = vmul.f32 %v14852_v52, %v791_v24  ;;  %v5898_v1 = vmul.f32 %v14852_v52, %v14881_v19  ;;  %v5902_v6 = vmul.f32 %v14852_v52, %v14883_v13  ;;  %v5908_v9 = vadd.f32 %v945_v50, %v14885_v12  ;;  %v14889_v19 = vld [vmem:[#allocation55_spill] sm:$0xff]  ;;  %v14890_v52 = vld [vmem:[#allocation56_spill] sm:$0xff]  ;;  %v14892_v12 = vld [vmem:[#allocation61_spill] sm:$0xff] }
  0xa6   : > { %14877 = vst [vmem:[#allocation101_spill] sm:$0xff] %v5884_v15  ;;  %14878 = vst [vmem:[#allocation102_spill] sm:$0xff] %v5888_v51  ;;  %v5905_v15 = vadd.f32 %v944_v17, %v14884_v16  ;;  %v14886_v51 = vld [vmem:[#allocation49_spill] sm:$0xff]  ;;  %v5923_v13 = vadd.f32 %v950_v31, %v14890_v52  ;;  %v5929_v50 = vadd.f32 %v952_v35, %v14892_v12  ;;  %v14905_v35 = vld [vmem:[#allocation71_spill] sm:$0xff] }
  0xa7   : > { %14879 = vst [vmem:[#allocation103_spill] sm:$0xff] %v5891_v14  ;;  %14880 = vst [vmem:[#allocation104_spill] sm:$0xff] %v5894_v55  ;;  %v5911_v21 = vadd.f32 %v946_v56, %v14886_v51  ;;  %v14887_v14 = vld [vmem:[#allocation50_spill] sm:$0xff]  ;;  %v14891_v16 = vld [vmem:[#allocation57_spill] sm:$0xff]  ;;  %v5950_v12 = vadd.f32 %v959_v34, %v14905_v35 }
  0xa8   : > { %14882 = vst [vmem:[#allocation105_spill] sm:$0xff] %v5898_v1  ;;  %v5914_v24 = vadd.f32 %v947_v25, %v14887_v14  ;;  %v14888_v55 = vld [vmem:[#allocation54_spill] sm:$0xff]  ;;  %v5920_v1 = vadd.f32 %v949_v27, %v14889_v19  ;;  %v5926_v17 = vadd.f32 %v951_v33, %v14891_v16  ;;  %v14895_v14 = vld [vmem:[#allocation63_spill] sm:$0xff]  ;;  %v14899_v19 = vld [vmem:[#allocation68_spill] sm:$0xff] }
  0xa9   : > { %v5917_v11 = vadd.f32 %v948_v8, %v14888_v55  ;;  %v14893_v51 = vld [vmem:[#allocation62_spill] sm:$0xff]  ;;  %v5935_v25 = vadd.f32 %v954_v59, %v14895_v14  ;;  %v14897_v55 = vld [vmem:[#allocation64_spill] sm:$0xff]  ;;  %v5941_v27 = vadd.f32 %v956_v42, %v14899_v19  ;;  %v14901_v31 = vld [vmem:[#allocation69_spill] sm:$0xff]  ;;  %14906 = vst [vmem:[#allocation56_spill] sm:$0xff] %v5950_v12 }
  0xaa   : > { %v5932_v56 = vadd.f32 %v953_v37, %v14893_v51  ;;  %v5938_v8 = vadd.f32 %v955_v40, %v14897_v55  ;;  %v5944_v52 = vadd.f32 %v957_v47, %v14901_v31  ;;  %v14903_v33 = vld [vmem:[#allocation70_spill] sm:$0xff]  ;;  %v14907_v37 = vld [vmem:[#allocation75_spill] sm:$0xff]  ;;  %v14909_v59 = vld [vmem:[#allocation76_spill] sm:$0xff] }
  0xab   : > { %14896 = vst [vmem:[#allocation48_spill] sm:$0xff] %v5935_v25  ;;  %14900 = vst [vmem:[#allocation50_spill] sm:$0xff] %v5941_v27  ;;  %v5947_v16 = vadd.f32 %v958_v60, %v14903_v33  ;;  %v5953_v51 = vadd.f32 %v960_v36, %v14907_v37  ;;  %v5956_v14 = vadd.f32 %v961_v38, %v14909_v59  ;;  %v14911_v40 = vld [vmem:[#allocation77_spill] sm:$0xff]  ;;  %v14913_v42 = vld [vmem:[#allocation78_spill] sm:$0xff] }
  0xac   : > { %14894 = vst [vmem:[#allocation47_spill] sm:$0xff] %v5932_v56  ;;  %14898 = vst [vmem:[#allocation49_spill] sm:$0xff] %v5938_v8  ;;  %v5959_v55 = vadd.f32 %v962_v39, %v14911_v40  ;;  %v5962_v19 = vadd.f32 %v963_v44, %v14913_v42  ;;  %v14915_v47 = vld [vmem:[#allocation82_spill] sm:$0xff]  ;;  %v14917_v60 = vld [vmem:[#allocation83_spill] sm:$0xff] }
  0xad   : > { %14902 = vst [vmem:[#allocation54_spill] sm:$0xff] %v5944_v52  ;;  %14904 = vst [vmem:[#allocation55_spill] sm:$0xff] %v5947_v16  ;;  %v5965_v31 = vadd.f32 %v964_v48, %v14915_v47  ;;  %v5968_v33 = vadd.f32 %v965_v63, %v14917_v60  ;;  %v14919_v34 = vld [vmem:[#allocation41_spill] sm:$0xff]  ;;  %v14920_v35 = vld [vmem:[#allocation43_spill] sm:$0xff] }
  0xae   : > { %14908 = vst [vmem:[#allocation57_spill] sm:$0xff] %v5953_v51  ;;  %14910 = vst [vmem:[#allocation61_spill] sm:$0xff] %v5956_v14  ;;  %v5972_v12 = vrot.slane %v14920_v35, %v14919_v34  ;;  %v14922_v36 = vld [vmem:[#allocation84_spill] sm:$0xff]  ;;  %v14924_v38 = vld [vmem:[#allocation86_spill] sm:$0xff] }
  0xaf   : > { %14912 = vst [vmem:[#allocation62_spill] sm:$0xff] %v5959_v55  ;;  %14914 = vst [vmem:[#allocation63_spill] sm:$0xff] %v5962_v19  ;;  %v5975_v37 = vadd.f32 %v966_v32, %v14922_v36  ;;  %v5978_v59 = vadd.f32 %v967_v26, %v14924_v38  ;;  %v14926_v39 = vld [vmem:[#allocation87_spill] sm:$0xff]  ;;  %v14928_v44 = vld [vmem:[#allocation88_spill] sm:$0xff] }
  0xb0   : > { %14916 = vst [vmem:[#allocation64_spill] sm:$0xff] %v5965_v31  ;;  %14918 = vst [vmem:[#allocation68_spill] sm:$0xff] %v5968_v33  ;;  %v5981_v40 = vadd.f32 %v968_v54, %v14926_v39  ;;  %v5984_v42 = vadd.f32 %v969_v41, %v14928_v44  ;;  %v14930_v48 = vld [vmem:[#allocation14_spill] sm:$0xff]  ;;  %v14931_v47 = vld [vmem:[#allocation15_spill] sm:$0xff] }
  0xb1   : > { %14921 = vst [vmem:[#allocation69_spill] sm:$0xff] %v5972_v12  ;;  %14923 = vst [vmem:[#allocation70_spill] sm:$0xff] %v5975_v37  ;;  %v1208_v63 = vmul.f32 %v5972_v12, %v14930_v48  ;;  %v1209_v60 = vmul.f32 %v5972_v12, %v14931_v47  ;;  %v14932_v35 = vld [vmem:[#allocation16_spill] sm:$0xff]  ;;  %v14933_v36 = vld [vmem:[#allocation18_spill] sm:$0xff] }
  0xb2   : > { %14925 = vst [vmem:[#allocation71_spill] sm:$0xff] %v5978_v59  ;;  %14927 = vst [vmem:[#allocation75_spill] sm:$0xff] %v5981_v40  ;;  %v1210_v32 = vmul.f32 %v5972_v12, %v14932_v35  ;;  %v1211_v26 = vmul.f32 %v5972_v12, %v14933_v36  ;;  %v14934_v38 = vld [vmem:[#allocation19_spill] sm:$0xff]  ;;  %v14935_v39 = vld [vmem:[#allocation20_spill] sm:$0xff] }
  0xb3   : > { %14929 = vst [vmem:[#allocation76_spill] sm:$0xff] %v5984_v42  ;;  %v1212_v54 = vmul.f32 %v5972_v12, %v14934_v38  ;;  %v1213_v41 = vmul.f32 %v5972_v12, %v14935_v39  ;;  %v14936_v44 = vld [vmem:[#allocation21_spill] sm:$0xff]  ;;  %v14937_v34 = vld [vmem:[#allocation22_spill] sm:$0xff]  ;;  %v14938_v47 = vld [vmem:[#allocation23_spill] sm:$0xff] }
  0xb4   : > { %v1214_v48 = vmul.f32 %v5972_v12, %v14936_v44  ;;  %v1215_v42 = vmul.f32 %v5972_v12, %v14937_v34  ;;  %v1216_v40 = vmul.f32 %v5972_v12, %v14938_v47  ;;  %v14939_v59 = vld [vmem:[#allocation24_spill] sm:$0xff]  ;;  %v14940_v35 = vld [vmem:[#allocation25_spill] sm:$0xff]  ;;  %v14941_v33 = vld [vmem:[#allocation26_spill] sm:$0xff] }
  0xb5   : > { %v1217_v37 = vmul.f32 %v5972_v12, %v14939_v59  ;;  %v1218_v36 = vmul.f32 %v5972_v12, %v14940_v35  ;;  %v1219_v38 = vmul.f32 %v5972_v12, %v14941_v33  ;;  %v14942_v31 = vld [vmem:[#allocation27_spill] sm:$0xff]  ;;  %v14943_v19 = vld [vmem:[#allocation28_spill] sm:$0xff]  ;;  %v14944_v55 = vld [vmem:[#allocation29_spill] sm:$0xff] }
  0xb6   : > { %v1220_v39 = vmul.f32 %v5972_v12, %v14942_v31  ;;  %v1221_v44 = vmul.f32 %v5972_v12, %v14943_v19  ;;  %v1222_v34 = vmul.f32 %v5972_v12, %v14944_v55  ;;  %v14945_v14 = vld [vmem:[#allocation30_spill] sm:$0xff]  ;;  %v6019_v51 = vld [vmem:[%s5246_s17 + $0x330] sm:$0xff]  ;;  %v6022_v59 = vld [vmem:[%s5246_s17 + $0x338] sm:$0x3f] }
  0xb7   : > { %v1223_v47 = vmul.f32 %v5972_v12, %v14945_v14  ;;  %14946 = vst [vmem:[#allocation77_spill] sm:$0xff] %v6019_v51  ;;  %v14947_v35 = vld [vmem:[#allocation31_spill] sm:$0xff]  ;;  %v14948_v33 = vld [vmem:[#allocation32_spill] sm:$0xff]  ;;  %v14949_v31 = vld [vmem:[#allocation33_spill] sm:$0xff]  ;;  %v1229_v14 = vmul.f32 %v5972_v12, %v5711_v46  ;;  %v1230_v56 = vmul.f32 %v5972_v12, %v6019_v51  ;;  %v6053_v46 = vadd.f32 %v1212_v54, %v5742_v2 }
  0xb8   : > { %v1224_v16 = vmul.f32 %v5972_v12, %v14947_v35  ;;  %v1225_v52 = vmul.f32 %v5972_v12, %v14948_v33  ;;  %v1226_v27 = vmul.f32 %v5972_v12, %v14949_v31  ;;  %v14950_v19 = vld [vmem:[#allocation34_spill] sm:$0xff]  ;;  %v1231_v35 = vmul.f32 %v5972_v12, %v6022_v59 }
  0xb9   : > { %v1227_v8 = vmul.f32 %v5972_v12, %v14950_v19  ;;  %v14951_v55 = vld [vmem:[#allocation90_spill] sm:$0xff]  ;;  %v6041_v33 = vadd.f32 %v1208_v63, %v5730_v49  ;;  %v6044_v31 = vadd.f32 %v1209_v60, %v5733_v18  ;;  %v6047_v19 = vadd.f32 %v1210_v32, %v5736_v7  ;;  %v14973_v63 = vld [vmem:[#allocation105_spill] sm:$0xff] }
  0xba   : > { %v1228_v25 = vmul.f32 %v5972_v12, %v14951_v55  ;;  %v6050_v55 = vadd.f32 %v1211_v26, %v5739_v45  ;;  %v6056_v51 = vadd.f32 %v1213_v41, %v5745_v43  ;;  %v6059_v12 = vadd.f32 %v1214_v48, %v5748_v0  ;;  %v14982_v41 = vld [vmem:[#allocation85_spill] sm:$0xff]  ;;  %v14983_v48 = vld [vmem:[#allocation36_spill] sm:$0xff] }
  0xbb   : > { %v6062_v49 = vadd.f32 %v1215_v42, %v5751_v22  ;;  %v6065_v18 = vadd.f32 %v1216_v40, %v5754_v20  ;;  %v6068_v7 = vadd.f32 %v1217_v37, %v5757_v23  ;;  %v6071_v45 = vadd.f32 %v1218_v36, %v5760_v62  ;;  %v6089_v23 = vld [vmem:[%s5240_s21 + $0x10] sm:$0xff]  ;;  %v14977_v36 = vld [vmem:[#allocation42_spill] sm:$0xff] }
  0xbc   : > { %v6074_v2 = vadd.f32 %v1219_v38, %v5763_v28  ;;  %v6077_v43 = vadd.f32 %v1220_v39, %v5766_v29  ;;  %v6080_v0 = vadd.f32 %v1221_v44, %v5769_v57  ;;  %v6083_v22 = vadd.f32 %v1222_v34, %v5772_v61  ;;  %14952 = vst [vmem:[#allocation78_spill] sm:$0xff] %v6089_v23  ;;  %v14956_v34 = vld [vmem:[#allocation93_spill] sm:$0xff]  ;;  %v14981_v39 = vld [vmem:[#allocation35_spill] sm:$0xff] }
  0xbd   : > { %v6086_v20 = vadd.f32 %v1223_v47, %v5775_v53  ;;  %v6092_v62 = vadd.f32 %v1224_v16, %v5780_v30  ;;  %v6095_v28 = vadd.f32 %v1225_v52, %v5783_v3  ;;  %v6098_v29 = vadd.f32 %v1226_v27, %v5786_v4  ;;  %v14958_v30 = vld [vmem:[#allocation94_spill] sm:$0xff]  ;;  %v14960_v3 = vld [vmem:[#allocation89_spill] sm:$0xff]  ;;  %v14963_v4 = vld [vmem:[#allocation95_spill] sm:$0xff] }
  0xbe   : > { %v6101_v57 = vadd.f32 %v1227_v8, %v5789_v5  ;;  %v6104_v61 = vadd.f32 %v1228_v25, %v5795_v58  ;;  %v6107_v53 = vadd.f32 %v1229_v14, %v5798_v10  ;;  %v6110_v37 = vadd.f32 %v1230_v56, %v14956_v34  ;;  %v14961_v52 = vld [vmem:[#allocation101_spill] sm:$0xff]  ;;  %v14964_v27 = vld [vmem:[#allocation102_spill] sm:$0xff]  ;;  %v14967_v58 = vld [vmem:[#allocation103_spill] sm:$0xff] }
  0xbf   : > { %v6113_v16 = vadd.f32 %v1231_v35, %v14958_v30  ;;  %v6117_v40 = vadd.f32 %v14961_v52, %v14960_v3  ;;  %v6121_v5 = vadd.f32 %v14964_v27, %v14963_v4  ;;  %v14966_v8 = vld [vmem:[#allocation17_spill] sm:$0xff]  ;;  %v14969_v10 = vld [vmem:[#allocation96_spill] sm:$0xff]  ;;  %v14975_v35 = vld [vmem:[#allocation98_spill] sm:$0xff]  ;;  %v6141_v26 = vrot.slane %v6089_v23, %v14977_v36 }
  0xc0   : > { %14953 = vst [vmem:[#allocation82_spill] sm:$0xff] %v6101_v57  ;;  %14954 = vst [vmem:[#allocation83_spill] sm:$0xff] %v6104_v61  ;;  %v6125_v25 = vadd.f32 %v14967_v58, %v14966_v8  ;;  %v14970_v14 = vld [vmem:[#allocation104_spill] sm:$0xff]  ;;  %v14972_v56 = vld [vmem:[#allocation97_spill] sm:$0xff]  ;;  %v6137_v32 = vadd.f32 %v5902_v6, %v14975_v35  ;;  %v1060_v44 = vmul.f32 %v14982_v41, %v14981_v39 }
  0xc1   : > { %14955 = vst [vmem:[#allocation43_spill] sm:$0xff] %v6107_v53  ;;  %14957 = vst [vmem:[#allocation84_spill] sm:$0xff] %v6110_v37  ;;  %v6129_v42 = vadd.f32 %v14970_v14, %v14969_v10  ;;  %v6133_v60 = vadd.f32 %v14973_v63, %v14972_v56  ;;  %v14979_v38 = vld [vmem:[#allocation5_spill] sm:$0xff]  ;;  %v1061_v47 = vmul.f32 %v14982_v41, %v14983_v48  ;;  %v14987_v52 = vld [vmem:[#allocation38_spill] sm:$0xff] }
  0xc2   : > { %14959 = vst [vmem:[#allocation86_spill] sm:$0xff] %v6113_v16  ;;  %14962 = vst [vmem:[#allocation87_spill] sm:$0xff] %v6117_v40  ;;  %v6144_v54 = vsub.s32 1, %v14979_v38  ;;  %v6151_v34 = vsub.s32 6, %v14979_v38  ;;  %v6154_v30 = vsub.s32 3, %v14979_v38  ;;  %v14986_v6 = vld [vmem:[#allocation37_spill] sm:$0xff]  ;;  %v1063_v4 = vmul.f32 %v14982_v41, %v14987_v52 }
  0xc3   : > { %14965 = vst [vmem:[#allocation88_spill] sm:$0xff] %v6121_v5  ;;  %14968 = vst [vmem:[#allocation14_spill] sm:$0xff] %v6125_v25  ;;  %v1062_v3 = vmul.f32 %v14982_v41, %v14986_v6  ;;  %v14988_v27 = vld [vmem:[#allocation39_spill] sm:$0xff]  ;;  %v14989_v58 = vld [vmem:[#allocation44_spill] sm:$0xff] }
  0xc4   : > { %14971 = vst [vmem:[#allocation15_spill] sm:$0xff] %v6129_v42  ;;  %14974 = vst [vmem:[#allocation93_spill] sm:$0xff] %v6133_v60  ;;  %v1064_v8 = vmul.f32 %v14982_v41, %v14988_v27  ;;  %v1065_v10 = vmul.f32 %v14982_v41, %v14989_v58  ;;  %v14990_v14 = vld [vmem:[#allocation45_spill] sm:$0xff]  ;;  %v14991_v63 = vld [vmem:[#allocation46_spill] sm:$0xff] }
  0xc5   : > { %14976 = vst [vmem:[#allocation94_spill] sm:$0xff] %v6137_v32  ;;  %14978 = vst [vmem:[#allocation89_spill] sm:$0xff] %v6141_v26  ;;  %v1066_v56 = vmul.f32 %v14982_v41, %v14990_v14  ;;  %v1067_v35 = vmul.f32 %v14982_v41, %v14991_v63  ;;  %v14992_v38 = vld [vmem:[#allocation51_spill] sm:$0xff]  ;;  %v14993_v48 = vld [vmem:[#allocation52_spill] sm:$0xff] }
  0xc6   : > { %14980 = vst [vmem:[#allocation101_spill] sm:$0xff] %v6144_v54  ;;  %14984 = vst [vmem:[#allocation95_spill] sm:$0xff] %v6151_v34  ;;  %v1068_v39 = vmul.f32 %v14982_v41, %v14992_v38  ;;  %v1069_v36 = vmul.f32 %v14982_v41, %v14993_v48  ;;  %v14994_v23 = vld [vmem:[#allocation53_spill] sm:$0xff]  ;;  %v14995_v34 = vld [vmem:[#allocation58_spill] sm:$0xff] }
  0xc7   : > { %14985 = vst [vmem:[#allocation102_spill] sm:$0xff] %v6154_v30  ;;  %v1070_v30 = vmul.f32 %v14982_v41, %v14994_v23  ;;  %v1071_v54 = vmul.f32 %v14982_v41, %v14995_v34  ;;  %v14996_v58 = vld [vmem:[#allocation59_spill] sm:$0xff]  ;;  %v14997_v27 = vld [vmem:[#allocation60_spill] sm:$0xff]  ;;  %v14998_v63 = vld [vmem:[#allocation65_spill] sm:$0xff] }
  0xc8   : > { %v1072_v14 = vmul.f32 %v14982_v41, %v14996_v58  ;;  %v1073_v52 = vmul.f32 %v14982_v41, %v14997_v27  ;;  %v1074_v6 = vmul.f32 %v14982_v41, %v14998_v63  ;;  %v14999_v32 = vld [vmem:[#allocation66_spill] sm:$0xff]  ;;  %v15000_v60 = vld [vmem:[#allocation67_spill] sm:$0xff]  ;;  %v15001_v42 = vld [vmem:[#allocation72_spill] sm:$0xff] }
  0xc9   : > { %v1075_v38 = vmul.f32 %v14982_v41, %v14999_v32  ;;  %v1076_v48 = vmul.f32 %v14982_v41, %v15000_v60  ;;  %v1077_v23 = vmul.f32 %v14982_v41, %v15001_v42  ;;  %v15002_v25 = vld [vmem:[#allocation73_spill] sm:$0xff]  ;;  %v15003_v5 = vld [vmem:[#allocation74_spill] sm:$0xff]  ;;  %v15004_v40 = vld [vmem:[#allocation79_spill] sm:$0xff] }
  0xca   : > { %v1078_v34 = vmul.f32 %v14982_v41, %v15002_v25  ;;  %v1079_v58 = vmul.f32 %v14982_v41, %v15003_v5  ;;  %v1080_v27 = vmul.f32 %v14982_v41, %v15004_v40  ;;  %v15005_v16 = vld [vmem:[#allocation80_spill] sm:$0xff]  ;;  %v6197_v37 = vld [vmem:[%s5246_s17 + $0x168] sm:$0xff]  ;;  %v6200_v32 = vld [vmem:[%s5246_s17 + $0x170] sm:$0x3f] }
  0xcb   : > { %v1081_v63 = vmul.f32 %v14982_v41, %v15005_v16  ;;  %15006 = vst [vmem:[#allocation17_spill] sm:$0xff] %v6197_v37  ;;  %15007 = vst [vmem:[#allocation103_spill] sm:$0xff] %v6200_v32  ;;  %v15008_v60 = vld [vmem:[#allocation81_spill] sm:$0xff]  ;;  %v15010_v42 = vld [vmem:[#allocation92_spill] sm:$0xff]  ;;  %v6220_v16 = vmul.f32 %v14982_v41, %v6197_v37 }
  0xcc   : > { %v6204_v53 = vmul.f32 %v14982_v41, %v15008_v60  ;;  %v6208_v25 = vmul.f32 %v14982_v41, %v15010_v42  ;;  %v15012_v61 = vld [vmem:[#allocation99_spill] sm:$0xff]  ;;  %v15014_v40 = vld [vmem:[#allocation100_spill] sm:$0xff]  ;;  %v6224_v60 = vmul.f32 %v14982_v41, %v6200_v32  ;;  %v6246_v32 = vadd.f32 %v1061_v47, %v5908_v9 }
  0xcd   : > { %v6212_v5 = vmul.f32 %v14982_v41, %v15012_v61  ;;  %v6216_v57 = vmul.f32 %v14982_v41, %v15014_v40  ;;  %15016 = vst [vmem:[#allocation98_spill] sm:$0xff] %v6220_v16  ;;  %v6243_v16 = vadd.f32 %v1060_v44, %v5905_v15  ;;  %v6264_v15 = vadd.f32 %v1067_v35, %v5926_v17  ;;  %v15034_v17 = vld [vmem:[#allocation55_spill] sm:$0xff]  ;;  %v15040_v35 = vld [vmem:[#allocation61_spill] sm:$0xff] }
  0xce   : > { %15009 = vst [vmem:[#allocation96_spill] sm:$0xff] %v6204_v53  ;;  %15011 = vst [vmem:[#allocation104_spill] sm:$0xff] %v6208_v25  ;;  %v15017_v53 = vld [vmem:[#allocation8_spill] sm:$0xff]  ;;  %v15018_v25 = vld [vmem:[#allocation9_spill] sm:$0xff]  ;;  %v6267_v9 = vadd.f32 %v1068_v39, %v5929_v50 }
  0xcf   : > { %15013 = vst [vmem:[#allocation97_spill] sm:$0xff] %v6212_v5  ;;  %15015 = vst [vmem:[#allocation105_spill] sm:$0xff] %v6216_v57  ;;  %v6228_v42 = vmul.f32 %v14982_v41, %v15017_v53  ;;  %v6232_v61 = vmul.f32 %v14982_v41, %v15018_v25  ;;  %v15020_v5 = vld [vmem:[#allocation10_spill] sm:$0xff]  ;;  %v15021_v57 = vld [vmem:[#allocation11_spill] sm:$0xff]  ;;  %v6249_v53 = vadd.f32 %v1062_v3, %v5911_v21 }
  0xd0   : > { %v6236_v40 = vmul.f32 %v14982_v41, %v15020_v5  ;;  %v6240_v37 = vmul.f32 %v14982_v41, %v15021_v57  ;;  %v6252_v25 = vadd.f32 %v1063_v4, %v5914_v24  ;;  %v6258_v5 = vadd.f32 %v1065_v10, %v5920_v1  ;;  %15022 = vst [vmem:[#allocation35_spill] sm:$0xff] %v6264_v15  ;;  %v15024_v21 = vld [vmem:[#allocation47_spill] sm:$0xff]  ;;  %v15026_v24 = vld [vmem:[#allocation48_spill] sm:$0xff]  ;;  %v15030_v1 = vld [vmem:[#allocation50_spill] sm:$0xff] }
  0xd1   : > { %15019 = vst [vmem:[#allocation5_spill] sm:$0xff] %v6232_v61  ;;  %v6255_v61 = vadd.f32 %v1064_v8, %v5917_v11  ;;  %v6261_v41 = vadd.f32 %v1066_v56, %v5923_v13  ;;  %15023 = vst [vmem:[#allocation85_spill] sm:$0xff] %v6267_v9  ;;  %v6270_v44 = vadd.f32 %v1069_v36, %v15024_v21  ;;  %v15028_v11 = vld [vmem:[#allocation49_spill] sm:$0xff]  ;;  %v15032_v13 = vld [vmem:[#allocation54_spill] sm:$0xff] }
  0xd2   : > { %v6273_v47 = vadd.f32 %v1070_v30, %v15026_v24  ;;  %v6276_v3 = vadd.f32 %v1071_v54, %v15028_v11  ;;  %v6279_v4 = vadd.f32 %v1072_v14, %v15030_v1  ;;  %v6282_v8 = vadd.f32 %v1073_v52, %v15032_v13  ;;  %v15036_v50 = vld [vmem:[#allocation56_spill] sm:$0xff]  ;;  %v15038_v36 = vld [vmem:[#allocation57_spill] sm:$0xff]  ;;  %v15042_v39 = vld [vmem:[#allocation62_spill] sm:$0xff] }
  0xd3   : > { %15025 = vst [vmem:[#allocation36_spill] sm:$0xff] %v6270_v44  ;;  %v6285_v10 = vadd.f32 %v1074_v6, %v15034_v17  ;;  %v6288_v56 = vadd.f32 %v1075_v38, %v15036_v50  ;;  %v6291_v30 = vadd.f32 %v1076_v48, %v15038_v36  ;;  %v6294_v54 = vadd.f32 %v1077_v23, %v15040_v35  ;;  %v15044_v21 = vld [vmem:[#allocation63_spill] sm:$0xff]  ;;  %v15046_v24 = vld [vmem:[#allocation64_spill] sm:$0xff]  ;;  %v15051_v48 = vld [vmem:[#allocation18_spill] sm:$0xff] }
  0xd4   : > { %15027 = vst [vmem:[#allocation8_spill] sm:$0xff] %v6273_v47  ;;  %15029 = vst [vmem:[#allocation9_spill] sm:$0xff] %v6276_v3  ;;  %v6297_v14 = vadd.f32 %v1078_v34, %v15042_v39  ;;  %v6300_v52 = vadd.f32 %v1079_v58, %v15044_v21  ;;  %v6303_v6 = vadd.f32 %v1080_v27, %v15046_v24  ;;  %v15048_v11 = vld [vmem:[#allocation68_spill] sm:$0xff]  ;;  %v15052_v23 = vld [vmem:[#allocation19_spill] sm:$0xff] }
  0xd5   : > { %15031 = vst [vmem:[#allocation11_spill] sm:$0xff] %v6279_v4  ;;  %15033 = vst [vmem:[#allocation47_spill] sm:$0xff] %v6282_v8  ;;  %v6306_v1 = vadd.f32 %v1081_v63, %v15048_v11  ;;  %v15050_v38 = vld [vmem:[#allocation16_spill] sm:$0xff]  ;;  %v1325_v17 = vmul.f32 %v6141_v26, %v15051_v48  ;;  %v1326_v50 = vmul.f32 %v6141_v26, %v15052_v23  ;;  %v15054_v58 = vld [vmem:[#allocation21_spill] sm:$0xff] }
  0xd6   : > { %15035 = vst [vmem:[#allocation48_spill] sm:$0xff] %v6285_v10  ;;  %15037 = vst [vmem:[#allocation49_spill] sm:$0xff] %v6288_v56  ;;  %v1324_v13 = vmul.f32 %v6141_v26, %v15050_v38  ;;  %v15053_v34 = vld [vmem:[#allocation20_spill] sm:$0xff]  ;;  %v1328_v35 = vmul.f32 %v6141_v26, %v15054_v58  ;;  %v15055_v27 = vld [vmem:[#allocation22_spill] sm:$0xff] }
  0xd7   : > { %15039 = vst [vmem:[#allocation50_spill] sm:$0xff] %v6291_v30  ;;  %15041 = vst [vmem:[#allocation54_spill] sm:$0xff] %v6294_v54  ;;  %v1327_v36 = vmul.f32 %v6141_v26, %v15053_v34  ;;  %v1329_v39 = vmul.f32 %v6141_v26, %v15055_v27  ;;  %v15056_v63 = vld [vmem:[#allocation23_spill] sm:$0xff]  ;;  %v15057_v24 = vld [vmem:[#allocation24_spill] sm:$0xff] }
  0xd8   : > { %15043 = vst [vmem:[#allocation55_spill] sm:$0xff] %v6297_v14  ;;  %15045 = vst [vmem:[#allocation56_spill] sm:$0xff] %v6300_v52  ;;  %v1330_v21 = vmul.f32 %v6141_v26, %v15056_v63  ;;  %v1331_v11 = vmul.f32 %v6141_v26, %v15057_v24  ;;  %v822_v38 = vld [vmem:[%s5246_s17 + $0x348] sm:$0xff]  ;;  %v823_v48 = vld [vmem:[%s5246_s17 + $0x350] sm:$0x3f] }
  0xd9   : > { %15047 = vst [vmem:[#allocation57_spill] sm:$0xff] %v6303_v6  ;;  %15049 = vst [vmem:[#allocation61_spill] sm:$0xff] %v6306_v1  ;;  %v15058_v1 = vld [vmem:[#allocation25_spill] sm:$0xff]  ;;  %v15059_v6 = vld [vmem:[#allocation26_spill] sm:$0xff]  ;;  %v1347_v15 = vmul.f32 %v6141_v26, %v823_v48 }
  0xda   : > { %v1332_v23 = vmul.f32 %v6141_v26, %v15058_v1  ;;  %v1333_v34 = vmul.f32 %v6141_v26, %v15059_v6  ;;  %v15060_v52 = vld [vmem:[#allocation27_spill] sm:$0xff]  ;;  %v15061_v14 = vld [vmem:[#allocation28_spill] sm:$0xff]  ;;  %v15062_v54 = vld [vmem:[#allocation29_spill] sm:$0xff] }
  0xdb   : > { %v1334_v58 = vmul.f32 %v6141_v26, %v15060_v52  ;;  %v1335_v27 = vmul.f32 %v6141_v26, %v15061_v14  ;;  %v1336_v63 = vmul.f32 %v6141_v26, %v15062_v54  ;;  %v15063_v30 = vld [vmem:[#allocation30_spill] sm:$0xff]  ;;  %v15064_v56 = vld [vmem:[#allocation31_spill] sm:$0xff]  ;;  %v15065_v8 = vld [vmem:[#allocation32_spill] sm:$0xff] }
  0xdc   : > { %v1337_v24 = vmul.f32 %v6141_v26, %v15063_v30  ;;  %v1338_v10 = vmul.f32 %v6141_v26, %v15064_v56  ;;  %v1339_v1 = vmul.f32 %v6141_v26, %v15065_v8  ;;  %v15066_v4 = vld [vmem:[#allocation33_spill] sm:$0xff]  ;;  %v15067_v3 = vld [vmem:[#allocation34_spill] sm:$0xff]  ;;  %v15069_v44 = vld [vmem:[#allocation91_spill] sm:$0xff]  ;;  %v1345_v56 = vmul.f32 %v6141_v26, %v6022_v59 }
  0xdd   : > { %v1340_v6 = vmul.f32 %v6141_v26, %v15066_v4  ;;  %v1341_v52 = vmul.f32 %v6141_v26, %v15067_v3  ;;  %v15068_v47 = vld [vmem:[#allocation90_spill] sm:$0xff]  ;;  %v1343_v54 = vmul.f32 %v6141_v26, %v15069_v44  ;;  %v15070_v9 = vld [vmem:[#allocation77_spill] sm:$0xff]  ;;  %v1346_v8 = vmul.f32 %v6141_v26, %v822_v38  ;;  %v15093_v48 = vld [vmem:[#allocation75_spill] sm:$0xff] }
  0xde   : > { %v1342_v14 = vmul.f32 %v6141_v26, %v15068_v47  ;;  %v1344_v30 = vmul.f32 %v6141_v26, %v15070_v9  ;;  %v6357_v4 = vadd.f32 %v1324_v13, %v6041_v33  ;;  %v6360_v3 = vadd.f32 %v1325_v17, %v6044_v31  ;;  %v15122_v26 = vld [vmem:[#allocation66_spill] sm:$0xff] }
  0xdf   : > { %v6363_v47 = vadd.f32 %v1326_v50, %v6047_v19  ;;  %v6366_v44 = vadd.f32 %v1327_v36, %v6050_v55  ;;  %v6369_v9 = vadd.f32 %v1328_v35, %v6053_v46  ;;  %v6372_v59 = vadd.f32 %v1329_v39, %v6056_v51  ;;  %v15090_v35 = vld [vmem:[#allocation96_spill] sm:$0xff] }
  0xe0   : > { %v6375_v38 = vadd.f32 %v1330_v21, %v6059_v12  ;;  %v6378_v33 = vadd.f32 %v1331_v11, %v6062_v49  ;;  %v6381_v31 = vadd.f32 %v1332_v23, %v6065_v18  ;;  %v6384_v19 = vadd.f32 %v1333_v34, %v6068_v7  ;;  %v15092_v21 = vld [vmem:[#allocation104_spill] sm:$0xff]  ;;  %v15094_v23 = vld [vmem:[#allocation97_spill] sm:$0xff] }
  0xe1   : > { %v6387_v55 = vadd.f32 %v1334_v58, %v6071_v45  ;;  %v6390_v46 = vadd.f32 %v1335_v27, %v6074_v2  ;;  %v6393_v51 = vadd.f32 %v1336_v63, %v6077_v43  ;;  %v6396_v12 = vadd.f32 %v1337_v24, %v6080_v0  ;;  %v15079_v43 = vld [vmem:[#allocation82_spill] sm:$0xff]  ;;  %v15081_v0 = vld [vmem:[#allocation83_spill] sm:$0xff]  ;;  %v15095_v58 = vld [vmem:[#allocation76_spill] sm:$0xff] }
  0xe2   : > { %v6399_v49 = vadd.f32 %v1338_v10, %v6083_v22  ;;  %v6402_v18 = vadd.f32 %v1339_v1, %v6086_v20  ;;  %v6405_v7 = vadd.f32 %v1340_v6, %v6092_v62  ;;  %v6408_v45 = vadd.f32 %v1341_v52, %v6095_v28  ;;  %v15083_v22 = vld [vmem:[#allocation43_spill] sm:$0xff]  ;;  %v15085_v20 = vld [vmem:[#allocation84_spill] sm:$0xff]  ;;  %v15087_v62 = vld [vmem:[#allocation86_spill] sm:$0xff] }
  0xe3   : > { %15071 = vst [vmem:[#allocation62_spill] sm:$0xff] %v6390_v46  ;;  %15072 = vst [vmem:[#allocation63_spill] sm:$0xff] %v6393_v51  ;;  %v6411_v2 = vadd.f32 %v1342_v14, %v6098_v29  ;;  %v6414_v13 = vadd.f32 %v1343_v54, %v15079_v43  ;;  %v6417_v17 = vadd.f32 %v1344_v30, %v15081_v0  ;;  %v15089_v28 = vld [vmem:[#allocation70_spill] sm:$0xff]  ;;  %v15091_v29 = vld [vmem:[#allocation71_spill] sm:$0xff] }
  0xe4   : > { %15073 = vst [vmem:[#allocation64_spill] sm:$0xff] %v6396_v12  ;;  %15074 = vst [vmem:[#allocation68_spill] sm:$0xff] %v6399_v49  ;;  %v6420_v10 = vadd.f32 %v1345_v56, %v15083_v22  ;;  %v6423_v50 = vadd.f32 %v1346_v8, %v15085_v20  ;;  %v6426_v36 = vadd.f32 %v1347_v15, %v15087_v62  ;;  %v15096_v27 = vld [vmem:[#allocation105_spill] sm:$0xff]  ;;  %v15097_v24 = vld [vmem:[#allocation87_spill] sm:$0xff] }
  0xe5   : > { %15075 = vst [vmem:[#allocation16_spill] sm:$0xff] %v6402_v18  ;;  %15076 = vst [vmem:[#allocation18_spill] sm:$0xff] %v6405_v7  ;;  %v6430_v39 = vadd.f32 %v15090_v35, %v15089_v28  ;;  %v6434_v11 = vadd.f32 %v15092_v21, %v15091_v29  ;;  %v6438_v34 = vadd.f32 %v15094_v23, %v15093_v48  ;;  %v15098_v1 = vld [vmem:[#allocation98_spill] sm:$0xff]  ;;  %v15099_v6 = vld [vmem:[#allocation88_spill] sm:$0xff] }
  0xe6   : > { %15077 = vst [vmem:[#allocation19_spill] sm:$0xff] %v6408_v45  ;;  %15078 = vst [vmem:[#allocation20_spill] sm:$0xff] %v6411_v2  ;;  %v6442_v63 = vadd.f32 %v15096_v27, %v15095_v58  ;;  %v6446_v15 = vadd.f32 %v15098_v1, %v15097_v24  ;;  %v6450_v52 = vadd.f32 %v6224_v60, %v15099_v6  ;;  %v15100_v14 = vld [vmem:[#allocation14_spill] sm:$0xff]  ;;  %v15101_v30 = vld [vmem:[#allocation15_spill] sm:$0xff] }
  0xe7   : > { %15080 = vst [vmem:[#allocation21_spill] sm:$0xff] %v6414_v13  ;;  %15082 = vst [vmem:[#allocation22_spill] sm:$0xff] %v6417_v17  ;;  %v6454_v54 = vadd.f32 %v6228_v42, %v15100_v14  ;;  %v15102_v56 = vld [vmem:[#allocation5_spill] sm:$0xff]  ;;  %v15106_v22 = vld [vmem:[#allocation94_spill] sm:$0xff] }
  0xe8   : > { %15084 = vst [vmem:[#allocation23_spill] sm:$0xff] %v6420_v10  ;;  %15086 = vst [vmem:[#allocation24_spill] sm:$0xff] %v6423_v50  ;;  %v6458_v8 = vadd.f32 %v15102_v56, %v15101_v30  ;;  %v15104_v43 = vld [vmem:[#allocation93_spill] sm:$0xff]  ;;  %v6466_v20 = vadd.f32 %v6240_v37, %v15106_v22  ;;  %v15110_v35 = vld [vmem:[#allocation38_spill] sm:$0xff] }
  0xe9   : > { %15088 = vst [vmem:[#allocation25_spill] sm:$0xff] %v6426_v36  ;;  %v6462_v0 = vadd.f32 %v6236_v40, %v15104_v43  ;;  %v15108_v62 = vld [vmem:[#allocation37_spill] sm:$0xff]  ;;  %v15111_v42 = vld [vmem:[#allocation39_spill] sm:$0xff]  ;;  %v15112_v48 = vld [vmem:[#allocation44_spill] sm:$0xff] }
  0xea   : > { %15103 = vst [vmem:[#allocation26_spill] sm:$0xff] %v6458_v8  ;;  %15107 = vst [vmem:[#allocation28_spill] sm:$0xff] %v6466_v20  ;;  %v15109_v28 = vld [vmem:[#allocation69_spill] sm:$0xff]  ;;  %v15114_v27 = vld [vmem:[#allocation46_spill] sm:$0xff] }
  0xeb   : > { %15105 = vst [vmem:[#allocation27_spill] sm:$0xff] %v6462_v0  ;;  %v1176_v60 = vmul.f32 %v15109_v28, %v15108_v62  ;;  %v1177_v29 = vmul.f32 %v15109_v28, %v15110_v35  ;;  %v1178_v21 = vmul.f32 %v15109_v28, %v15111_v42  ;;  %v1179_v23 = vmul.f32 %v15109_v28, %v15112_v48  ;;  %v15113_v58 = vld [vmem:[#allocation45_spill] sm:$0xff]  ;;  %v15115_v37 = vld [vmem:[#allocation51_spill] sm:$0xff]  ;;  %v15116_v6 = vld [vmem:[#allocation52_spill] sm:$0xff] }
  0xec   : > { %v1180_v40 = vmul.f32 %v15109_v28, %v15113_v58  ;;  %v1181_v24 = vmul.f32 %v15109_v28, %v15114_v27  ;;  %v1182_v1 = vmul.f32 %v15109_v28, %v15115_v37  ;;  %v1183_v14 = vmul.f32 %v15109_v28, %v15116_v6  ;;  %v15117_v30 = vld [vmem:[#allocation53_spill] sm:$0xff]  ;;  %v15118_v43 = vld [vmem:[#allocation58_spill] sm:$0xff]  ;;  %v15119_v62 = vld [vmem:[#allocation59_spill] sm:$0xff] }
  0xed   : > { %v1184_v56 = vmul.f32 %v15109_v28, %v15117_v30  ;;  %v1185_v22 = vmul.f32 %v15109_v28, %v15118_v43  ;;  %v1186_v35 = vmul.f32 %v15109_v28, %v15119_v62  ;;  %v15120_v58 = vld [vmem:[#allocation60_spill] sm:$0xff]  ;;  %v15121_v48 = vld [vmem:[#allocation65_spill] sm:$0xff]  ;;  %v1189_v42 = vmul.f32 %v15109_v28, %v15122_v26  ;;  %v15123_v6 = vld [vmem:[#allocation67_spill] sm:$0xff] }
  0xee   : > { %v1187_v27 = vmul.f32 %v15109_v28, %v15120_v58  ;;  %v1188_v37 = vmul.f32 %v15109_v28, %v15121_v48  ;;  %v1190_v20 = vmul.f32 %v15109_v28, %v15123_v6  ;;  %v15124_v0 = vld [vmem:[#allocation72_spill] sm:$0xff]  ;;  %v15125_v8 = vld [vmem:[#allocation73_spill] sm:$0xff]  ;;  %v15126_v36 = vld [vmem:[#allocation74_spill] sm:$0xff] }
  0xef   : > { %v1191_v30 = vmul.f32 %v15109_v28, %v15124_v0  ;;  %v1192_v43 = vmul.f32 %v15109_v28, %v15125_v8  ;;  %v1193_v62 = vmul.f32 %v15109_v28, %v15126_v36  ;;  %v15127_v50 = vld [vmem:[#allocation79_spill] sm:$0xff]  ;;  %v15128_v10 = vld [vmem:[#allocation80_spill] sm:$0xff]  ;;  %v15129_v17 = vld [vmem:[#allocation81_spill] sm:$0xff] }
  0xf0   : > { %v1194_v58 = vmul.f32 %v15109_v28, %v15127_v50  ;;  %v1195_v48 = vmul.f32 %v15109_v28, %v15128_v10  ;;  %v1196_v26 = vmul.f32 %v15109_v28, %v15129_v17  ;;  %v15130_v13 = vld [vmem:[#allocation92_spill] sm:$0xff]  ;;  %v6513_v2 = vld [vmem:[%s5246_s17 + $0x180] sm:$0xff]  ;;  %v6516_v0 = vld [vmem:[%s5246_s17 + $0x188] sm:$0x3f] }
  0xf1   : > { %v1197_v6 = vmul.f32 %v15109_v28, %v15130_v13  ;;  %15131 = vst [vmem:[#allocation29_spill] sm:$0xff] %v6513_v2  ;;  %15132 = vst [vmem:[#allocation30_spill] sm:$0xff] %v6516_v0  ;;  %v15133_v8 = vld [vmem:[#allocation99_spill] sm:$0xff]  ;;  %v15134_v36 = vld [vmem:[#allocation100_spill] sm:$0xff]  ;;  %v1202_v17 = vmul.f32 %v15109_v28, %v6513_v2  ;;  %v1203_v13 = vmul.f32 %v15109_v28, %v6516_v0 }
  0xf2   : > { %v1198_v45 = vmul.f32 %v15109_v28, %v15133_v8  ;;  %v1199_v7 = vmul.f32 %v15109_v28, %v15134_v36  ;;  %v15135_v50 = vld [vmem:[#allocation17_spill] sm:$0xff]  ;;  %v15136_v10 = vld [vmem:[#allocation103_spill] sm:$0xff]  ;;  %v15137_v12 = vld [vmem:[#allocation10_spill] sm:$0xff]  ;;  %v6534_v8 = vmul.f32 %v15109_v28, %v15021_v57  ;;  %v6545_v2 = vadd.f32 %v1176_v60, %v6243_v16 }
  0xf3   : > { %v1200_v18 = vmul.f32 %v15109_v28, %v15135_v50  ;;  %v1201_v49 = vmul.f32 %v15109_v28, %v15136_v10  ;;  %v1204_v51 = vmul.f32 %v15109_v28, %v15137_v12  ;;  %v15139_v36 = vld [vmem:[#allocation12_spill] sm:$0xff]  ;;  %v15140_v50 = vld [vmem:[#allocation13_spill] sm:$0xff]  ;;  %v6548_v0 = vadd.f32 %v1177_v29, %v6246_v32  ;;  %v15141_v16 = vld [vmem:[#allocation35_spill] sm:$0xff] }
  0xf4   : > { %15138 = vst [vmem:[#allocation31_spill] sm:$0xff] %v6534_v8  ;;  %v6538_v46 = vmul.f32 %v15109_v28, %v15139_v36  ;;  %v6542_v10 = vmul.f32 %v15109_v28, %v15140_v50  ;;  %v6551_v12 = vadd.f32 %v1178_v21, %v6249_v53  ;;  %v6554_v57 = vadd.f32 %v1179_v23, %v6252_v25  ;;  %v15142_v32 = vld [vmem:[#allocation85_spill] sm:$0xff]  ;;  %v15143_v60 = vld [vmem:[#allocation36_spill] sm:$0xff] }
  0xf5   : > { %v6557_v8 = vadd.f32 %v1180_v40, %v6255_v61  ;;  %v6560_v36 = vadd.f32 %v1181_v24, %v6258_v5  ;;  %v6563_v50 = vadd.f32 %v1182_v1, %v6261_v41  ;;  %v6566_v28 = vadd.f32 %v1183_v14, %v15141_v16  ;;  %v15144_v61 = vld [vmem:[#allocation8_spill] sm:$0xff]  ;;  %v15145_v5 = vld [vmem:[#allocation9_spill] sm:$0xff]  ;;  %v15146_v41 = vld [vmem:[#allocation11_spill] sm:$0xff] }
  0xf6   : > { %v6569_v53 = vadd.f32 %v1184_v56, %v15142_v32  ;;  %v6572_v25 = vadd.f32 %v1185_v22, %v15143_v60  ;;  %v6575_v29 = vadd.f32 %v1186_v35, %v15144_v61  ;;  %v6578_v21 = vadd.f32 %v1187_v27, %v15145_v5  ;;  %v15147_v40 = vld [vmem:[#allocation47_spill] sm:$0xff]  ;;  %v15148_v1 = vld [vmem:[#allocation48_spill] sm:$0xff]  ;;  %v15149_v56 = vld [vmem:[#allocation49_spill] sm:$0xff] }
  0xf7   : > { %v6581_v23 = vadd.f32 %v1188_v37, %v15146_v41  ;;  %v6584_v24 = vadd.f32 %v1189_v42, %v15147_v40  ;;  %v6587_v14 = vadd.f32 %v1190_v20, %v15148_v1  ;;  %v6590_v22 = vadd.f32 %v1191_v30, %v15149_v56  ;;  %v15150_v35 = vld [vmem:[#allocation50_spill] sm:$0xff]  ;;  %v15152_v37 = vld [vmem:[#allocation55_spill] sm:$0xff]  ;;  %v15153_v42 = vld [vmem:[#allocation56_spill] sm:$0xff] }
  0xf8   : > { %v6593_v16 = vadd.f32 %v1192_v43, %v15150_v35  ;;  %v15151_v27 = vld [vmem:[#allocation54_spill] sm:$0xff]  ;;  %v6599_v60 = vadd.f32 %v1194_v58, %v15152_v37  ;;  %v6602_v61 = vadd.f32 %v1195_v48, %v15153_v42  ;;  %v15155_v5 = vld [vmem:[#allocation57_spill] sm:$0xff]  ;;  %v6620_v58 = vadd.f32 %v1198_v45, %v6430_v39  ;;  %v6632_v1 = vld [vmem:[%s5246_s17 + $0x211] sm:$0xff] }
  0xf9   : > { %v6596_v32 = vadd.f32 %v1193_v62, %v15151_v27  ;;  %v6605_v20 = vadd.f32 %v1196_v26, %v15155_v5  ;;  %v15157_v41 = vld [vmem:[#allocation61_spill] sm:$0xff]  ;;  %v6614_v43 = vld [vmem:[%s5246_s17 + $0x1e9] sm:$0x3f]  ;;  %v6623_v26 = vadd.f32 %v1199_v7, %v6434_v11  ;;  %v6626_v48 = vadd.f32 %v1200_v18, %v6438_v34  ;;  %15166 = vst [vmem:[#allocation86_spill] sm:$0xff] %v6632_v1  ;;  %v6635_v56 = vld [vmem:[%s5246_s17 + $0x219] sm:$0x3f] }
  0xfa   : > { %15154 = vst [vmem:[#allocation32_spill] sm:$0xff] %v6602_v61  ;;  %v6608_v40 = vadd.f32 %v1197_v6, %v15157_v41  ;;  %v6611_v30 = vld [vmem:[%s5246_s17 + $0x1e1] sm:$0xff]  ;;  %15160 = vst [vmem:[#allocation91_spill] sm:$0xff] %v6614_v43  ;;  %v6617_v62 = vld [vmem:[%s5246_s17 + $0x1f9] sm:$0xff]  ;;  %v6645_v7 = vadd.f32 %v1201_v49, %v6442_v63  ;;  %v6648_v18 = vadd.f32 %v1202_v17, %v6446_v15 }
  0xfb   : > { %15156 = vst [vmem:[#allocation33_spill] sm:$0xff] %v6605_v20  ;;  %15159 = vst [vmem:[#allocation90_spill] sm:$0xff] %v6611_v30  ;;  %v6629_v6 = vld [vmem:[%s5246_s17 + $0x201] sm:$0x3f]  ;;  %v6651_v39 = vadd.f32 %v1203_v13, %v6450_v52  ;;  %v6654_v11 = vadd.f32 %v1204_v51, %v6454_v54  ;;  %v6657_v34 = vld [vmem:[%s5246_s17 + $0x229] sm:$0xff] }
  0xfc   : > { %15158 = vst [vmem:[#allocation34_spill] sm:$0xff] %v6608_v40  ;;  %15161 = vst [vmem:[#allocation77_spill] sm:$0xff] %v6617_v62  ;;  %v6638_v35 = vld [vmem:[%s5240_s21] sm:$0xff]  ;;  %v6660_v37 = vld [vmem:[%s5246_s17 + $0x231] sm:$0x3f] }
  0xfd   : > { %15162 = vst [vmem:[#allocation82_spill] sm:$0xff] %v6620_v58  ;;  %15163 = vst [vmem:[#allocation83_spill] sm:$0xff] %v6623_v26  ;;  %v15169_v27 = vld [vmem:[#allocation101_spill] sm:$0xff]  ;;  %v6666_v49 = vld [vmem:[%s5246_s17 + $0x249] sm:$0x3f] }
  0xfe   : > { %15164 = vst [vmem:[#allocation43_spill] sm:$0xff] %v6626_v48  ;;  %15165 = vst [vmem:[#allocation84_spill] sm:$0xff] %v6629_v6  ;;  %v6642_v45 = vrot.slane %v6638_v35, %v15169_v27  ;;  %v6663_v42 = vld [vmem:[%s5246_s17 + $0x241] sm:$0xff]  ;;  %v6669_v63 = vld [vmem:[%s5246_s17 + $0x259] sm:$0xff] }
  0xff   : > { %15167 = vst [vmem:[#allocation70_spill] sm:$0xff] %v6635_v56  ;;  %15168 = vst [vmem:[#allocation96_spill] sm:$0xff] %v6638_v35  ;;  %v6672_v17 = vld [vmem:[%s5246_s17 + $0x261] sm:$0x3f]  ;;  %v6683_v54 = vld [vmem:[%s5246_s17 + $0x271] sm:$0xff] }
 0x100   : > { %15170 = vst [vmem:[#allocation71_spill] sm:$0xff] %v6642_v45  ;;  %15171 = vst [vmem:[#allocation104_spill] sm:$0xff] %v6645_v7  ;;  %v1512_v13 = vmul.f32 %v6642_v45, %v6611_v30  ;;  %v1513_v51 = vmul.f32 %v6642_v45, %v6614_v43  ;;  %v1514_v15 = vmul.f32 %v6642_v45, %v6617_v62  ;;  %v6686_v5 = vld [vmem:[%s5246_s17 + $0x279] sm:$0x3f]  ;;  %v6689_v41 = vld [vmem:[%s5246_s17 + $0x289] sm:$0xff] }
 0x101   : > { %15172 = vst [vmem:[#allocation75_spill] sm:$0xff] %v6648_v18  ;;  %15173 = vst [vmem:[#allocation97_spill] sm:$0xff] %v6651_v39  ;;  %v1515_v52 = vmul.f32 %v6642_v45, %v6629_v6  ;;  %v1516_v27 = vmul.f32 %v6642_v45, %v6632_v1  ;;  %v1517_v43 = vmul.f32 %v6642_v45, %v6635_v56  ;;  %v6700_v6 = vld [vmem:[%s5246_s17 + $0x291] sm:$0x3f]  ;;  %v6703_v62 = vld [vmem:[%s5246_s17 + $0x2a1] sm:$0xff] }
 0x102   : > { %15174 = vst [vmem:[#allocation76_spill] sm:$0xff] %v6654_v11  ;;  %15175 = vst [vmem:[#allocation105_spill] sm:$0xff] %v6657_v34  ;;  %v1518_v30 = vmul.f32 %v6642_v45, %v6657_v34  ;;  %v1519_v11 = vmul.f32 %v6642_v45, %v6660_v37  ;;  %v6706_v39 = vld [vmem:[%s5246_s17 + $0x2a9] sm:$0x3f]  ;;  %v1520_v1 = vmul.f32 %v6642_v45, %v6663_v42  ;;  %v6717_v18 = vld [vmem:[%s5246_s17 + $0x2b9] sm:$0xff] }
 0x103   : > { %15176 = vst [vmem:[#allocation87_spill] sm:$0xff] %v6660_v37  ;;  %15177 = vst [vmem:[#allocation98_spill] sm:$0xff] %v6663_v42  ;;  %v1521_v56 = vmul.f32 %v6642_v45, %v6666_v49  ;;  %v1522_v34 = vmul.f32 %v6642_v45, %v6669_v63  ;;  %v1523_v37 = vmul.f32 %v6642_v45, %v6672_v17  ;;  %v6720_v7 = vld [vmem:[%s5246_s17 + $0x2c1] sm:$0x3f]  ;;  %v6723_v48 = vld [vmem:[%s5246_s17 + $0x2d1] sm:$0xff] }
 0x104   : > { %15178 = vst [vmem:[#allocation88_spill] sm:$0xff] %v6666_v49  ;;  %15179 = vst [vmem:[#allocation14_spill] sm:$0xff] %v6669_v63  ;;  %v1524_v35 = vmul.f32 %v6642_v45, %v6683_v54  ;;  %v1525_v42 = vmul.f32 %v6642_v45, %v6686_v5  ;;  %v1526_v49 = vmul.f32 %v6642_v45, %v6689_v41  ;;  %v6734_v26 = vld [vmem:[%s5246_s17 + $0x2d9] sm:$0x3f]  ;;  %v6740_v58 = vld [vmem:[%s5246_s17 + $0x2f1] sm:$0x3f] }
 0x105   : > { %15180 = vst [vmem:[#allocation15_spill] sm:$0xff] %v6672_v17  ;;  %15181 = vst [vmem:[#allocation5_spill] sm:$0xff] %v6683_v54  ;;  %v1527_v63 = vmul.f32 %v6642_v45, %v6700_v6  ;;  %v6737_v17 = vld [vmem:[%s5246_s17 + $0x2e9] sm:$0xff]  ;;  %v1528_v40 = vmul.f32 %v6642_v45, %v6703_v62  ;;  %v1529_v54 = vmul.f32 %v6642_v45, %v6706_v39 }
 0x106   : > { %15182 = vst [vmem:[#allocation93_spill] sm:$0xff] %v6686_v5  ;;  %15183 = vst [vmem:[#allocation94_spill] sm:$0xff] %v6689_v41  ;;  %v1530_v5 = vmul.f32 %v6642_v45, %v6717_v18  ;;  %v1531_v41 = vmul.f32 %v6642_v45, %v6720_v7  ;;  %v1533_v20 = vmul.f32 %v6642_v45, %v6734_v26 }
 0x107   : > { %15184 = vst [vmem:[#allocation37_spill] sm:$0xff] %v6700_v6  ;;  %15185 = vst [vmem:[#allocation69_spill] sm:$0xff] %v6703_v62  ;;  %v1532_v6 = vmul.f32 %v6642_v45, %v6723_v48  ;;  %v1534_v61 = vmul.f32 %v6642_v45, %v6737_v17  ;;  %v1535_v62 = vmul.f32 %v6642_v45, %v6740_v58 }
 0x108   : > { %15186 = vst [vmem:[#allocation38_spill] sm:$0xff] %v6706_v39  ;;  %15187 = vst [vmem:[#allocation10_spill] sm:$0xff] %v6717_v18  ;;  %v6759_v39 = vadd.f32 %v1512_v13, %v6357_v4  ;;  %v6762_v18 = vadd.f32 %v1513_v51, %v6360_v3  ;;  %v6777_v45 = vadd.f32 %v1518_v30, %v6375_v38  ;;  %v15204_v38 = vld [vmem:[#allocation64_spill] sm:$0xff] }
 0x109   : > { %15188 = vst [vmem:[#allocation12_spill] sm:$0xff] %v6720_v7  ;;  %15189 = vst [vmem:[#allocation13_spill] sm:$0xff] %v6723_v48  ;;  %v6765_v7 = vadd.f32 %v1514_v15, %v6363_v47  ;;  %v6768_v48 = vadd.f32 %v1515_v52, %v6366_v44  ;;  %v6780_v4 = vadd.f32 %v1519_v11, %v6378_v33  ;;  %v15206_v33 = vld [vmem:[#allocation68_spill] sm:$0xff] }
 0x10a   : > { %15190 = vst [vmem:[#allocation35_spill] sm:$0xff] %v6734_v26  ;;  %15191 = vst [vmem:[#allocation85_spill] sm:$0xff] %v6737_v17  ;;  %v6771_v26 = vadd.f32 %v1516_v27, %v6369_v9  ;;  %v6774_v17 = vadd.f32 %v1517_v43, %v6372_v59  ;;  %v6783_v3 = vadd.f32 %v1520_v1, %v6381_v31  ;;  %v15200_v9 = vld [vmem:[#allocation62_spill] sm:$0xff]  ;;  %v15202_v59 = vld [vmem:[#allocation63_spill] sm:$0xff] }
 0x10b   : > { %15192 = vst [vmem:[#allocation36_spill] sm:$0xff] %v6740_v58  ;;  %15195 = vst [vmem:[#allocation11_spill] sm:$0xff] %v6777_v45  ;;  %v6786_v47 = vadd.f32 %v1521_v56, %v6384_v19  ;;  %v6789_v44 = vadd.f32 %v1522_v34, %v6387_v55  ;;  %v6792_v27 = vadd.f32 %v1523_v37, %v15200_v9  ;;  %v15208_v31 = vld [vmem:[#allocation16_spill] sm:$0xff]  ;;  %v15210_v19 = vld [vmem:[#allocation18_spill] sm:$0xff] }
 0x10c   : > { %15193 = vst [vmem:[#allocation8_spill] sm:$0xff] %v6771_v26  ;;  %15194 = vst [vmem:[#allocation9_spill] sm:$0xff] %v6774_v17  ;;  %v6795_v43 = vadd.f32 %v1524_v35, %v15202_v59  ;;  %v6798_v30 = vadd.f32 %v1525_v42, %v15204_v38  ;;  %v6801_v11 = vadd.f32 %v1526_v49, %v15206_v33  ;;  %v15212_v55 = vld [vmem:[#allocation19_spill] sm:$0xff]  ;;  %v15214_v37 = vld [vmem:[#allocation20_spill] sm:$0xff] }
 0x10d   : > { %15196 = vst [vmem:[#allocation47_spill] sm:$0xff] %v6780_v4  ;;  %15197 = vst [vmem:[#allocation48_spill] sm:$0xff] %v6783_v3  ;;  %v6804_v1 = vadd.f32 %v1527_v63, %v15208_v31  ;;  %v6807_v56 = vadd.f32 %v1528_v40, %v15210_v19  ;;  %v6810_v34 = vadd.f32 %v1529_v54, %v15212_v55  ;;  %v15216_v35 = vld [vmem:[#allocation21_spill] sm:$0xff]  ;;  %v15218_v42 = vld [vmem:[#allocation22_spill] sm:$0xff] }
 0x10e   : > { %15198 = vst [vmem:[#allocation49_spill] sm:$0xff] %v6786_v47  ;;  %15199 = vst [vmem:[#allocation50_spill] sm:$0xff] %v6789_v44  ;;  %v6813_v13 = vadd.f32 %v1530_v5, %v15214_v37  ;;  %v6816_v51 = vadd.f32 %v1531_v41, %v15216_v35  ;;  %v6819_v15 = vadd.f32 %v1532_v6, %v15218_v42  ;;  %v15220_v49 = vld [vmem:[#allocation23_spill] sm:$0xff]  ;;  %v15222_v63 = vld [vmem:[#allocation24_spill] sm:$0xff] }
 0x10f   : > { %15201 = vst [vmem:[#allocation54_spill] sm:$0xff] %v6792_v27  ;;  %15203 = vst [vmem:[#allocation55_spill] sm:$0xff] %v6795_v43  ;;  %v6822_v52 = vadd.f32 %v1533_v20, %v15220_v49  ;;  %v6825_v9 = vadd.f32 %v1534_v61, %v15222_v63  ;;  %v15224_v40 = vld [vmem:[#allocation25_spill] sm:$0xff]  ;;  %v15226_v54 = vld [vmem:[#allocation26_spill] sm:$0xff] }
 0x110   : > { %15205 = vst [vmem:[#allocation56_spill] sm:$0xff] %v6798_v30  ;;  %15207 = vst [vmem:[#allocation57_spill] sm:$0xff] %v6801_v11  ;;  %v6828_v59 = vadd.f32 %v1535_v62, %v15224_v40  ;;  %v15227_v38 = vld [vmem:[#allocation31_spill] sm:$0xff]  ;;  %v15231_v6 = vld [vmem:[#allocation28_spill] sm:$0xff] }
 0x111   : > { %15209 = vst [vmem:[#allocation61_spill] sm:$0xff] %v6804_v1  ;;  %15211 = vst [vmem:[#allocation62_spill] sm:$0xff] %v6807_v56  ;;  %v6832_v33 = vadd.f32 %v15227_v38, %v15226_v54  ;;  %v15229_v5 = vld [vmem:[#allocation27_spill] sm:$0xff]  ;;  %v6840_v20 = vadd.f32 %v6542_v10, %v15231_v6  ;;  %v15234_v61 = vld [vmem:[#allocation89_spill] sm:$0xff] }
 0x112   : > { %15213 = vst [vmem:[#allocation63_spill] sm:$0xff] %v6810_v34  ;;  %15215 = vst [vmem:[#allocation64_spill] sm:$0xff] %v6813_v13  ;;  %v6836_v41 = vadd.f32 %v6538_v46, %v15229_v5  ;;  %v15233_v31 = vld [vmem:[#allocation39_spill] sm:$0xff]  ;;  %v15235_v55 = vld [vmem:[#allocation44_spill] sm:$0xff] }
 0x113   : > { %15217 = vst [vmem:[#allocation68_spill] sm:$0xff] %v6816_v51  ;;  %15219 = vst [vmem:[#allocation16_spill] sm:$0xff] %v6819_v15  ;;  %v1292_v19 = vmul.f32 %v15234_v61, %v15233_v31  ;;  %v1293_v62 = vmul.f32 %v15234_v61, %v15235_v55  ;;  %v15236_v37 = vld [vmem:[#allocation45_spill] sm:$0xff]  ;;  %v15237_v42 = vld [vmem:[#allocation46_spill] sm:$0xff] }
 0x114   : > { %15221 = vst [vmem:[#allocation18_spill] sm:$0xff] %v6822_v52  ;;  %15223 = vst [vmem:[#allocation19_spill] sm:$0xff] %v6825_v9  ;;  %v1294_v35 = vmul.f32 %v15234_v61, %v15236_v37  ;;  %v1295_v49 = vmul.f32 %v15234_v61, %v15237_v42  ;;  %v15238_v63 = vld [vmem:[#allocation51_spill] sm:$0xff]  ;;  %v15239_v40 = vld [vmem:[#allocation52_spill] sm:$0xff] }
 0x115   : > { %15225 = vst [vmem:[#allocation20_spill] sm:$0xff] %v6828_v59  ;;  %15228 = vst [vmem:[#allocation21_spill] sm:$0xff] %v6832_v33  ;;  %v1296_v46 = vmul.f32 %v15234_v61, %v15238_v63  ;;  %v1297_v54 = vmul.f32 %v15234_v61, %v15239_v40  ;;  %v15240_v10 = vld [vmem:[#allocation53_spill] sm:$0xff]  ;;  %v15241_v5 = vld [vmem:[#allocation58_spill] sm:$0xff] }
 0x116   : > { %15230 = vst [vmem:[#allocation22_spill] sm:$0xff] %v6836_v41  ;;  %15232 = vst [vmem:[#allocation23_spill] sm:$0xff] %v6840_v20  ;;  %v1298_v38 = vmul.f32 %v15234_v61, %v15240_v10  ;;  %v1299_v6 = vmul.f32 %v15234_v61, %v15241_v5  ;;  %v15242_v31 = vld [vmem:[#allocation59_spill] sm:$0xff]  ;;  %v15243_v20 = vld [vmem:[#allocation60_spill] sm:$0xff] }
 0x117   : > { %v1300_v55 = vmul.f32 %v15234_v61, %v15242_v31  ;;  %v1301_v37 = vmul.f32 %v15234_v61, %v15243_v20  ;;  %v15244_v41 = vld [vmem:[#allocation65_spill] sm:$0xff]  ;;  %v15245_v33 = vld [vmem:[#allocation66_spill] sm:$0xff]  ;;  %v15246_v59 = vld [vmem:[#allocation67_spill] sm:$0xff] }
 0x118   : > { %v1302_v42 = vmul.f32 %v15234_v61, %v15244_v41  ;;  %v1303_v63 = vmul.f32 %v15234_v61, %v15245_v33  ;;  %v1304_v40 = vmul.f32 %v15234_v61, %v15246_v59  ;;  %v786_v9 = vld [vmem:[%s5246_s17 + $0x198] sm:$0xff]  ;;  %v787_v10 = vld [vmem:[%s5246_s17 + $0x1a0] sm:$0x3f]  ;;  %v15249_v51 = vld [vmem:[#allocation74_spill] sm:$0xff] }
 0x119   : > { %v15247_v52 = vld [vmem:[#allocation72_spill] sm:$0xff]  ;;  %v15248_v15 = vld [vmem:[#allocation73_spill] sm:$0xff]  ;;  %v1307_v20 = vmul.f32 %v15234_v61, %v15249_v51  ;;  %v15250_v41 = vld [vmem:[#allocation79_spill] sm:$0xff]  ;;  %v1319_v4 = vmul.f32 %v15234_v61, %v787_v10  ;;  %v6918_v10 = vadd.f32 %v1293_v62, %v6548_v0  ;;  %v6939_v0 = vadd.f32 %v1300_v55, %v6569_v53 }
 0x11a   : > { %v1305_v5 = vmul.f32 %v15234_v61, %v15247_v52  ;;  %v1306_v31 = vmul.f32 %v15234_v61, %v15248_v15  ;;  %v1308_v13 = vmul.f32 %v15234_v61, %v15250_v41  ;;  %v15251_v33 = vld [vmem:[#allocation80_spill] sm:$0xff]  ;;  %v15252_v34 = vld [vmem:[#allocation81_spill] sm:$0xff]  ;;  %v15254_v11 = vld [vmem:[#allocation99_spill] sm:$0xff] }
 0x11b   : > { %v1309_v59 = vmul.f32 %v15234_v61, %v15251_v33  ;;  %v1310_v56 = vmul.f32 %v15234_v61, %v15252_v34  ;;  %v15253_v1 = vld [vmem:[#allocation92_spill] sm:$0xff]  ;;  %v1312_v15 = vmul.f32 %v15234_v61, %v15254_v11  ;;  %v15256_v43 = vld [vmem:[#allocation17_spill] sm:$0xff]  ;;  %v15257_v27 = vld [vmem:[#allocation103_spill] sm:$0xff]  ;;  %v6960_v53 = vadd.f32 %v1307_v20, %v6590_v22 }
 0x11c   : > { %v1311_v52 = vmul.f32 %v15234_v61, %v15253_v1  ;;  %v15255_v30 = vld [vmem:[#allocation100_spill] sm:$0xff]  ;;  %v1314_v41 = vmul.f32 %v15234_v61, %v15256_v43  ;;  %v1315_v44 = vmul.f32 %v15234_v61, %v15257_v27  ;;  %v15258_v33 = vld [vmem:[#allocation29_spill] sm:$0xff]  ;;  %v15259_v34 = vld [vmem:[#allocation30_spill] sm:$0xff]  ;;  %v1318_v1 = vmul.f32 %v15234_v61, %v786_v9 }
 0x11d   : > { %v1313_v51 = vmul.f32 %v15234_v61, %v15255_v30  ;;  %v1316_v47 = vmul.f32 %v15234_v61, %v15258_v33  ;;  %v1317_v3 = vmul.f32 %v15234_v61, %v15259_v34  ;;  %v4836_v11 = vld [vmem:[%s5246_s17 + $0x210] sm:$0xff]  ;;  %v4837_v30 = vld [vmem:[%s5246_s17 + $0x218] sm:$0x3f]  ;;  %v4838_v17 = vld [vmem:[%s5246_s17 + $0x228] sm:$0xff]  ;;  %v6915_v9 = vadd.f32 %v1292_v19, %v6545_v2 }
 0x11e   : > { %v6900_v45 = vmul.f32 %v4836_v11, %v15234_v61  ;;  %v6904_v43 = vmul.f32 %v4837_v30, %v15234_v61  ;;  %v6908_v27 = vmul.f32 %v4838_v17, %v15234_v61  ;;  %v4839_v33 = vld [vmem:[%s5246_s17 + $0x230] sm:$0x3f]  ;;  %v6921_v34 = vadd.f32 %v1294_v35, %v6551_v12  ;;  %v15264_v22 = vld [vmem:[#allocation82_spill] sm:$0xff] }
 0x11f   : > { %v6912_v26 = vmul.f32 %v4839_v33, %v15234_v61  ;;  %v6924_v11 = vadd.f32 %v1295_v49, %v6554_v57  ;;  %v6927_v30 = vadd.f32 %v1296_v46, %v6557_v8  ;;  %v6930_v17 = vadd.f32 %v1297_v54, %v6560_v36  ;;  %v15269_v46 = vld [vmem:[#allocation96_spill] sm:$0xff]  ;;  %v15275_v55 = vld [vmem:[#allocation75_spill] sm:$0xff]  ;;  %v15281_v20 = vld [vmem:[#allocation86_spill] sm:$0xff] }
 0x120   : > { %v6933_v61 = vadd.f32 %v1298_v38, %v6563_v50  ;;  %v6936_v2 = vadd.f32 %v1299_v6, %v6566_v28  ;;  %v6942_v12 = vadd.f32 %v1301_v37, %v6572_v25  ;;  %v6945_v57 = vadd.f32 %v1302_v42, %v6575_v29  ;;  %v15273_v38 = vld [vmem:[#allocation104_spill] sm:$0xff]  ;;  %v15277_v42 = vld [vmem:[#allocation97_spill] sm:$0xff] }
 0x121   : > { %v6948_v8 = vadd.f32 %v1303_v63, %v6578_v21  ;;  %v6951_v36 = vadd.f32 %v1304_v40, %v6581_v23  ;;  %v6954_v50 = vadd.f32 %v1305_v5, %v6584_v24  ;;  %v6957_v28 = vadd.f32 %v1306_v31, %v6587_v14  ;;  %v15260_v23 = vld [vmem:[#allocation32_spill] sm:$0xff]  ;;  %v15261_v24 = vld [vmem:[#allocation33_spill] sm:$0xff]  ;;  %v15262_v14 = vld [vmem:[#allocation34_spill] sm:$0xff] }
 0x122   : > { %v6963_v25 = vadd.f32 %v1308_v13, %v6593_v16  ;;  %v6966_v29 = vadd.f32 %v1309_v59, %v6596_v32  ;;  %v6969_v21 = vadd.f32 %v1310_v56, %v6599_v60  ;;  %v6972_v19 = vadd.f32 %v1311_v52, %v15260_v23  ;;  %v15266_v16 = vld [vmem:[#allocation83_spill] sm:$0xff]  ;;  %v15279_v40 = vld [vmem:[#allocation77_spill] sm:$0xff]  ;;  %v15280_v5 = vld [vmem:[#allocation84_spill] sm:$0xff] }
 0x123   : > { %v6975_v62 = vadd.f32 %v1312_v15, %v15261_v24  ;;  %v6978_v35 = vadd.f32 %v1313_v51, %v15262_v14  ;;  %v6981_v49 = vadd.f32 %v1314_v41, %v15264_v22  ;;  %v6984_v13 = vadd.f32 %v1315_v44, %v15266_v16  ;;  %v15268_v32 = vld [vmem:[#allocation95_spill] sm:$0xff]  ;;  %v15282_v59 = vld [vmem:[#allocation70_spill] sm:$0xff]  ;;  %v15283_v52 = vld [vmem:[#allocation105_spill] sm:$0xff] }
 0x124   : > { %v6988_v54 = vrot.slane %v15269_v46, %v15268_v32  ;;  %v15271_v60 = vld [vmem:[#allocation43_spill] sm:$0xff]  ;;  %v6994_v6 = vadd.f32 %v1317_v3, %v15273_v38  ;;  %v6997_v37 = vadd.f32 %v1318_v1, %v15275_v55  ;;  %v7000_v63 = vadd.f32 %v1319_v4, %v15277_v42  ;;  %v15285_v41 = vld [vmem:[#allocation98_spill] sm:$0xff]  ;;  %v15286_v33 = vld [vmem:[#allocation88_spill] sm:$0xff] }
 0x125   : > { %15263 = vst [vmem:[#allocation24_spill] sm:$0xff] %v6978_v35  ;;  %15265 = vst [vmem:[#allocation25_spill] sm:$0xff] %v6981_v49  ;;  %v6991_v56 = vadd.f32 %v1316_v47, %v15271_v60  ;;  %v15284_v51 = vld [vmem:[#allocation87_spill] sm:$0xff]  ;;  %v15287_v24 = vld [vmem:[#allocation14_spill] sm:$0xff] }
 0x126   : > { %15267 = vst [vmem:[#allocation26_spill] sm:$0xff] %v6984_v13  ;;  %15270 = vst [vmem:[#allocation31_spill] sm:$0xff] %v6988_v54  ;;  %v1628_v44 = vmul.f32 %v6988_v54, %v15279_v40  ;;  %v1629_v31 = vmul.f32 %v6988_v54, %v15280_v5  ;;  %v1630_v47 = vmul.f32 %v6988_v54, %v15281_v20  ;;  %v15288_v22 = vld [vmem:[#allocation15_spill] sm:$0xff]  ;;  %v15289_v60 = vld [vmem:[#allocation5_spill] sm:$0xff] }
 0x127   : > { %15272 = vst [vmem:[#allocation27_spill] sm:$0xff] %v6991_v56  ;;  %15274 = vst [vmem:[#allocation28_spill] sm:$0xff] %v6994_v6  ;;  %v1631_v3 = vmul.f32 %v6988_v54, %v15282_v59  ;;  %v1632_v15 = vmul.f32 %v6988_v54, %v15283_v52  ;;  %v1633_v4 = vmul.f32 %v6988_v54, %v15284_v51  ;;  %v15290_v55 = vld [vmem:[#allocation93_spill] sm:$0xff]  ;;  %v15291_v32 = vld [vmem:[#allocation94_spill] sm:$0xff] }
 0x128   : > { %15276 = vst [vmem:[#allocation39_spill] sm:$0xff] %v6997_v37  ;;  %15278 = vst [vmem:[#allocation89_spill] sm:$0xff] %v7000_v63  ;;  %v1634_v1 = vmul.f32 %v6988_v54, %v15285_v41  ;;  %v1635_v23 = vmul.f32 %v6988_v54, %v15286_v33  ;;  %v1636_v14 = vmul.f32 %v6988_v54, %v15287_v24  ;;  %v15292_v40 = vld [vmem:[#allocation37_spill] sm:$0xff]  ;;  %v15294_v56 = vld [vmem:[#allocation38_spill] sm:$0xff] }
 0x129   : > { %v1637_v16 = vmul.f32 %v6988_v54, %v15288_v22  ;;  %v1638_v38 = vmul.f32 %v6988_v54, %v15289_v60  ;;  %v1639_v42 = vmul.f32 %v6988_v54, %v15290_v55  ;;  %v1640_v5 = vmul.f32 %v6988_v54, %v15291_v32  ;;  %v15293_v37 = vld [vmem:[#allocation69_spill] sm:$0xff]  ;;  %v7038_v22 = vld [vmem:[%s5246_s17 + $0x309] sm:$0x3f]  ;;  %v15298_v55 = vld [vmem:[#allocation12_spill] sm:$0xff] }
 0x12a   : > { %v1641_v63 = vmul.f32 %v6988_v54, %v15292_v40  ;;  %v1642_v6 = vmul.f32 %v6988_v54, %v15293_v37  ;;  %v1643_v24 = vmul.f32 %v6988_v54, %v15294_v56  ;;  %v7035_v33 = vld [vmem:[%s5246_s17 + $0x301] sm:$0xff]  ;;  %15296 = vst [vmem:[#allocation45_spill] sm:$0xff] %v7038_v22  ;;  %v1645_v51 = vmul.f32 %v6988_v54, %v15298_v55  ;;  %v15300_v40 = vld [vmem:[#allocation35_spill] sm:$0xff] }
 0x12b   : > { %15295 = vst [vmem:[#allocation44_spill] sm:$0xff] %v7035_v33  ;;  %v15297_v60 = vld [vmem:[#allocation10_spill] sm:$0xff]  ;;  %v15299_v32 = vld [vmem:[#allocation13_spill] sm:$0xff]  ;;  %v1647_v59 = vmul.f32 %v6988_v54, %v15300_v40  ;;  %v1649_v56 = vmul.f32 %v6988_v54, %v6740_v58  ;;  %v1650_v13 = vmul.f32 %v6988_v54, %v7035_v33  ;;  %v7057_v55 = vadd.f32 %v1628_v44, %v6759_v39  ;;  %v15304_v58 = vld [vmem:[#allocation8_spill] sm:$0xff] }
 0x12c   : > { %v1644_v41 = vmul.f32 %v6988_v54, %v15297_v60  ;;  %v1646_v52 = vmul.f32 %v6988_v54, %v15299_v32  ;;  %v15301_v37 = vld [vmem:[#allocation85_spill] sm:$0xff]  ;;  %v1651_v60 = vmul.f32 %v6988_v54, %v7038_v22  ;;  %v7060_v32 = vadd.f32 %v1629_v31, %v6762_v18  ;;  %v15310_v44 = vld [vmem:[#allocation47_spill] sm:$0xff]  ;;  %v15312_v31 = vld [vmem:[#allocation48_spill] sm:$0xff] }
 0x12d   : > { %v1648_v20 = vmul.f32 %v6988_v54, %v15301_v37  ;;  %v7063_v40 = vadd.f32 %v1630_v47, %v6765_v7  ;;  %v7066_v37 = vadd.f32 %v1631_v3, %v6768_v48  ;;  %v7069_v49 = vadd.f32 %v1632_v15, %v15304_v58  ;;  %v15306_v33 = vld [vmem:[#allocation9_spill] sm:$0xff]  ;;  %v15308_v54 = vld [vmem:[#allocation11_spill] sm:$0xff]  ;;  %v15316_v58 = vld [vmem:[#allocation50_spill] sm:$0xff] }
 0x12e   : > { %v7072_v35 = vadd.f32 %v1633_v4, %v15306_v33  ;;  %v7075_v39 = vadd.f32 %v1634_v1, %v15308_v54  ;;  %v7078_v18 = vadd.f32 %v1635_v23, %v15310_v44  ;;  %v7081_v7 = vadd.f32 %v1636_v14, %v15312_v31  ;;  %v15314_v48 = vld [vmem:[#allocation49_spill] sm:$0xff]  ;;  %v15318_v15 = vld [vmem:[#allocation54_spill] sm:$0xff]  ;;  %v15320_v33 = vld [vmem:[#allocation55_spill] sm:$0xff] }
 0x12f   : > { %15302 = vst [vmem:[#allocation46_spill] sm:$0xff] %v7063_v40  ;;  %15303 = vst [vmem:[#allocation51_spill] sm:$0xff] %v7066_v37  ;;  %v7084_v47 = vadd.f32 %v1637_v16, %v15314_v48  ;;  %v7087_v3 = vadd.f32 %v1638_v38, %v15316_v58  ;;  %v7090_v4 = vadd.f32 %v1639_v42, %v15318_v15  ;;  %v15322_v1 = vld [vmem:[#allocation56_spill] sm:$0xff]  ;;  %v15324_v23 = vld [vmem:[#allocation57_spill] sm:$0xff] }
 0x130   : > { %15305 = vst [vmem:[#allocation52_spill] sm:$0xff] %v7069_v49  ;;  %15307 = vst [vmem:[#allocation53_spill] sm:$0xff] %v7072_v35  ;;  %v7093_v54 = vadd.f32 %v1640_v5, %v15320_v33  ;;  %v7099_v44 = vadd.f32 %v1642_v6, %v15324_v23  ;;  %v15326_v14 = vld [vmem:[#allocation61_spill] sm:$0xff]  ;;  %v15328_v48 = vld [vmem:[#allocation62_spill] sm:$0xff] }
 0x131   : > { %15309 = vst [vmem:[#allocation58_spill] sm:$0xff] %v7075_v39  ;;  %15311 = vst [vmem:[#allocation59_spill] sm:$0xff] %v7078_v18  ;;  %v7096_v39 = vadd.f32 %v1641_v63, %v15322_v1  ;;  %v7102_v31 = vadd.f32 %v1643_v24, %v15326_v14  ;;  %v1404_v16 = vld [vmem:[%s5246_s17 + $0x1] sm:$0xff]  ;;  %v7106_v38 = vadd.f32 %v1644_v41, %v15328_v48  ;;  %v15330_v58 = vld [vmem:[#allocation63_spill] sm:$0xff] }
 0x132   : > { %15313 = vst [vmem:[#allocation60_spill] sm:$0xff] %v7081_v7  ;;  %15315 = vst [vmem:[#allocation65_spill] sm:$0xff] %v7084_v47  ;;  %v7109_v42 = vadd.f32 %v1645_v51, %v15330_v58  ;;  %v15332_v5 = vld [vmem:[#allocation64_spill] sm:$0xff]  ;;  %v1405_v24 = vld [vmem:[%s5246_s17 + $0x9] sm:$0x3f] }
 0x133   : > { %15317 = vst [vmem:[#allocation66_spill] sm:$0xff] %v7087_v3  ;;  %15319 = vst [vmem:[#allocation67_spill] sm:$0xff] %v7090_v4  ;;  %v7112_v15 = vadd.f32 %v1646_v52, %v15332_v5  ;;  %v15334_v63 = vld [vmem:[#allocation68_spill] sm:$0xff]  ;;  %v7122_v41 = vld [vmem:[%s5246_s17 + $0x21] sm:$0x3f] }
 0x134   : > { %15321 = vst [vmem:[#allocation72_spill] sm:$0xff] %v7093_v54  ;;  %15323 = vst [vmem:[#allocation73_spill] sm:$0xff] %v7096_v39  ;;  %v7115_v6 = vadd.f32 %v1647_v59, %v15334_v63  ;;  %v7119_v33 = vld [vmem:[%s5246_s17 + $0x19] sm:$0xff]  ;;  %v15340_v23 = vld [vmem:[#allocation18_spill] sm:$0xff] }
 0x135   : > { %15325 = vst [vmem:[#allocation74_spill] sm:$0xff] %v7099_v44  ;;  %15327 = vst [vmem:[#allocation79_spill] sm:$0xff] %v7102_v31  ;;  %v15338_v1 = vld [vmem:[#allocation16_spill] sm:$0xff]  ;;  %v7128_v52 = vadd.f32 %v1649_v56, %v15340_v23  ;;  %v15342_v14 = vld [vmem:[#allocation19_spill] sm:$0xff] }
 0x136   : > { %15329 = vst [vmem:[#allocation80_spill] sm:$0xff] %v7106_v38  ;;  %15331 = vst [vmem:[#allocation81_spill] sm:$0xff] %v7109_v42  ;;  %v7125_v51 = vadd.f32 %v1648_v20, %v15338_v1  ;;  %v7131_v48 = vadd.f32 %v1650_v13, %v15342_v14  ;;  %v15344_v59 = vld [vmem:[#allocation20_spill] sm:$0xff]  ;;  %v15350_v20 = vld [vmem:[#allocation22_spill] sm:$0xff] }
 0x137   : > { %15333 = vst [vmem:[#allocation92_spill] sm:$0xff] %v7112_v15  ;;  %15335 = vst [vmem:[#allocation99_spill] sm:$0xff] %v7115_v6  ;;  %v7134_v58 = vadd.f32 %v1651_v60, %v15344_v59  ;;  %v15346_v5 = vld [vmem:[#allocation76_spill] sm:$0xff]  ;;  %v15348_v6 = vld [vmem:[#allocation21_spill] sm:$0xff]  ;;  %v7146_v1 = vadd.f32 %v6908_v27, %v15350_v20 }
 0x138   : > { %15336 = vst [vmem:[#allocation100_spill] sm:$0xff] %v7119_v33  ;;  %15337 = vst [vmem:[#allocation17_spill] sm:$0xff] %v7122_v41  ;;  %v7138_v63 = vadd.f32 %v6900_v45, %v15346_v5  ;;  %v7142_v15 = vadd.f32 %v6904_v43, %v15348_v6  ;;  %v15352_v56 = vld [vmem:[#allocation23_spill] sm:$0xff]  ;;  %v7156_v23 = vld [vmem:[%s5246_s17 + $0x39] sm:$0x3f] }
 0x139   : > { %15339 = vst [vmem:[#allocation103_spill] sm:$0xff] %v7125_v51  ;;  %15341 = vst [vmem:[#allocation29_spill] sm:$0xff] %v7128_v52  ;;  %v7150_v13 = vadd.f32 %v6912_v26, %v15352_v56  ;;  %v7153_v60 = vld [vmem:[%s5246_s17 + $0x31] sm:$0xff]  ;;  %v7159_v45 = vld [vmem:[%s5246_s17 + $0x49] sm:$0xff] }
 0x13a   : > { %15343 = vst [vmem:[#allocation30_spill] sm:$0xff] %v7131_v48  ;;  %15345 = vst [vmem:[#allocation32_spill] sm:$0xff] %v7134_v58  ;;  %v7162_v14 = vld [vmem:[%s5246_s17 + $0x51] sm:$0x3f]  ;;  %v7165_v43 = vld [vmem:[%s5246_s17 + $0x61] sm:$0xff] }
 0x13b   : > { %15347 = vst [vmem:[#allocation33_spill] sm:$0xff] %v7138_v63  ;;  %15349 = vst [vmem:[#allocation34_spill] sm:$0xff] %v7142_v15  ;;  %v7168_v6 = vld [vmem:[%s5246_s17 + $0x69] sm:$0x3f]  ;;  %v7171_v27 = vld [vmem:[%s5246_s17 + $0x79] sm:$0xff] }
 0x13c   : > { %15351 = vst [vmem:[#allocation82_spill] sm:$0xff] %v7146_v1  ;;  %15353 = vst [vmem:[#allocation83_spill] sm:$0xff] %v7150_v13  ;;  %v7174_v26 = vld [vmem:[%s5246_s17 + $0x81] sm:$0x3f]  ;;  %v4840_v59 = vld [vmem:[%s5240_s21 + $0x8] sm:$0xff] }
 0x13d   : > { %15354 = vst [vmem:[#allocation96_spill] sm:$0xff] %v7153_v60  ;;  %15355 = vst [vmem:[#allocation43_spill] sm:$0xff] %v7156_v23  ;;  %v15362_v5 = vld [vmem:[#allocation102_spill] sm:$0xff]  ;;  %v15367_v15 = vld [vmem:[#allocation7_spill] sm:$0xff] }
 0x13e   : > { %15356 = vst [vmem:[#allocation104_spill] sm:$0xff] %v7159_v45  ;;  %15357 = vst [vmem:[#allocation75_spill] sm:$0xff] %v7162_v14  ;;  %v7178_v20 = vrot.slane %v4840_v59, %v15362_v5  ;;  %v15364_v56 = vld [vmem:[#allocation6_spill] sm:$0xff]  ;;  %v15369_v58 = vld [vmem:[#allocation40_spill] sm:$0xff] }
 0x13f   : > { %15358 = vst [vmem:[#allocation97_spill] sm:$0xff] %v7165_v43  ;;  %15359 = vst [vmem:[#allocation8_spill] sm:$0xff] %v7168_v6  ;;  %v15365_v13 = vld [vmem:[#allocation78_spill] sm:$0xff]  ;;  %v7190_v48 = vrot.slane %v15269_v46, %v15369_v58  ;;  %v7193_v52 = vld [vmem:[%s5246_s17 + $0x91] sm:$0xff] }
 0x140   : > { %15360 = vst [vmem:[#allocation9_spill] sm:$0xff] %v7171_v27  ;;  %15361 = vst [vmem:[#allocation11_spill] sm:$0xff] %v7174_v26  ;;  %v7182_v1 = vrot.slane %v15365_v13, %v15364_v56  ;;  %v7186_v63 = vrot.slane %v15365_v13, %v15367_v15  ;;  %v7196_v51 = vld [vmem:[%s5246_s17 + $0x99] sm:$0x3f]  ;;  %v7199_v59 = vld [vmem:[%s5246_s17 + $0xa9] sm:$0xff] }
 0x141   : > { %15363 = vst [vmem:[#allocation47_spill] sm:$0xff] %v7178_v20  ;;  %15370 = vst [vmem:[#allocation50_spill] sm:$0xff] %v7190_v48  ;;  %v15374_v5 = vld [vmem:[#allocation71_spill] sm:$0xff]  ;;  %v7211_v15 = vld [vmem:[%s5246_s17 + $0xc1] sm:$0xff] }
 0x142   : > { %15366 = vst [vmem:[#allocation48_spill] sm:$0xff] %v7182_v1  ;;  %15368 = vst [vmem:[#allocation49_spill] sm:$0xff] %v7186_v63  ;;  %v1480_v56 = vmul.f32 %v15374_v5, %v1404_v16  ;;  %v1481_v1 = vmul.f32 %v15374_v5, %v1405_v24  ;;  %v1482_v13 = vmul.f32 %v15374_v5, %v7119_v33  ;;  %v7208_v58 = vld [vmem:[%s5246_s17 + $0xb1] sm:$0x3f]  ;;  %v7214_v48 = vld [vmem:[%s5246_s17 + $0xc9] sm:$0x3f] }
 0x143   : > { %15371 = vst [vmem:[#allocation54_spill] sm:$0xff] %v7193_v52  ;;  %15372 = vst [vmem:[#allocation55_spill] sm:$0xff] %v7196_v51  ;;  %v1483_v46 = vmul.f32 %v15374_v5, %v7122_v41  ;;  %v1484_v16 = vmul.f32 %v15374_v5, %v7153_v60  ;;  %v1485_v24 = vmul.f32 %v15374_v5, %v7156_v23  ;;  %v7225_v33 = vld [vmem:[%s5246_s17 + $0xd9] sm:$0xff]  ;;  %v7228_v42 = vld [vmem:[%s5246_s17 + $0xe1] sm:$0x3f] }
 0x144   : > { %15373 = vst [vmem:[#allocation56_spill] sm:$0xff] %v7199_v59  ;;  %15375 = vst [vmem:[#allocation57_spill] sm:$0xff] %v7208_v58  ;;  %v1486_v63 = vmul.f32 %v15374_v5, %v7159_v45  ;;  %v1487_v41 = vmul.f32 %v15374_v5, %v7162_v14  ;;  %v7231_v38 = vld [vmem:[%s5246_s17 + $0xf1] sm:$0xff]  ;;  %v1488_v60 = vmul.f32 %v15374_v5, %v7165_v43  ;;  %v7242_v31 = vld [vmem:[%s5246_s17 + $0xf9] sm:$0x3f] }
 0x145   : > { %15376 = vst [vmem:[#allocation61_spill] sm:$0xff] %v7211_v15  ;;  %15377 = vst [vmem:[#allocation62_spill] sm:$0xff] %v7214_v48  ;;  %v1489_v23 = vmul.f32 %v15374_v5, %v7168_v6  ;;  %v1490_v45 = vmul.f32 %v15374_v5, %v7171_v27  ;;  %v1491_v14 = vmul.f32 %v15374_v5, %v7174_v26  ;;  %v7245_v44 = vld [vmem:[%s5246_s17 + $0x109] sm:$0xff]  ;;  %v7248_v39 = vld [vmem:[%s5246_s17 + $0x111] sm:$0x3f] }
 0x146   : > { %15378 = vst [vmem:[#allocation63_spill] sm:$0xff] %v7225_v33  ;;  %15379 = vst [vmem:[#allocation64_spill] sm:$0xff] %v7228_v42  ;;  %v1492_v43 = vmul.f32 %v15374_v5, %v7193_v52  ;;  %v1493_v6 = vmul.f32 %v15374_v5, %v7196_v51  ;;  %v1494_v27 = vmul.f32 %v15374_v5, %v7199_v59  ;;  %v7259_v54 = vld [vmem:[%s5246_s17 + $0x121] sm:$0xff]  ;;  %v1440_v4 = vld [vmem:[%s5246_s17 + $0x1b1] sm:$0xff] }
 0x147   : > { %15380 = vst [vmem:[#allocation68_spill] sm:$0xff] %v7231_v38  ;;  %15381 = vst [vmem:[#allocation16_spill] sm:$0xff] %v7242_v31  ;;  %v1495_v26 = vmul.f32 %v15374_v5, %v7208_v58  ;;  %v1441_v3 = vld [vmem:[%s5246_s17 + $0x1b9] sm:$0x3f]  ;;  %v1496_v47 = vmul.f32 %v15374_v5, %v7211_v15  ;;  %v1497_v52 = vmul.f32 %v15374_v5, %v7214_v48  ;;  %v7272_v7 = vld [vmem:[%s5246_s17 + $0x129] sm:$0x3f] }
 0x148   : > { %15382 = vst [vmem:[#allocation18_spill] sm:$0xff] %v7245_v44  ;;  %15383 = vst [vmem:[#allocation19_spill] sm:$0xff] %v7248_v39  ;;  %v1498_v51 = vmul.f32 %v15374_v5, %v7225_v33  ;;  %v1499_v59 = vmul.f32 %v15374_v5, %v7228_v42  ;;  %v7275_v58 = vld [vmem:[%s5246_s17 + $0x139] sm:$0xff]  ;;  %v7278_v18 = vld [vmem:[%s5246_s17 + $0x141] sm:$0x3f]  ;;  %v1500_v35 = vmul.f32 %v15374_v5, %v7231_v38 }
 0x149   : > { %15384 = vst [vmem:[#allocation20_spill] sm:$0xff] %v7259_v54  ;;  %15385 = vst [vmem:[#allocation76_spill] sm:$0xff] %v7272_v7  ;;  %v1501_v15 = vmul.f32 %v15374_v5, %v7242_v31  ;;  %v1502_v48 = vmul.f32 %v15374_v5, %v7245_v44  ;;  %v1503_v33 = vmul.f32 %v15374_v5, %v7248_v39  ;;  %v7289_v49 = vld [vmem:[%s5246_s17 + $0x1c9] sm:$0xff]  ;;  %v7292_v42 = vld [vmem:[%s5246_s17 + $0x1d1] sm:$0x3f] }
 0x14a   : > { %15386 = vst [vmem:[#allocation21_spill] sm:$0xff] %v7275_v58  ;;  %15387 = vst [vmem:[#allocation22_spill] sm:$0xff] %v7278_v18  ;;  %v7296_v37 = vmul.f32 %v15374_v5, %v7259_v54  ;;  %v7300_v38 = vmul.f32 %v15374_v5, %v7272_v7  ;;  %v7304_v31 = vmul.f32 %v15374_v5, %v7275_v58 }
 0x14b   : > { %15388 = vst [vmem:[#allocation23_spill] sm:$0xff] %v7289_v49  ;;  %v7308_v44 = vmul.f32 %v15374_v5, %v7278_v18  ;;  %v7311_v39 = vmul.f32 %v15374_v5, %v1440_v4  ;;  %v7314_v40 = vmul.f32 %v15374_v5, %v1441_v3  ;;  %v7318_v54 = vmul.f32 %v15374_v5, %v7289_v49 }
 0x14c   : > { %v7322_v7 = vmul.f32 %v15374_v5, %v7292_v42  ;;  %v7325_v58 = vadd.f32 %v1480_v56, %v6915_v9  ;;  %v7328_v18 = vadd.f32 %v1481_v1, %v6918_v10  ;;  %v7331_v4 = vadd.f32 %v1482_v13, %v6921_v34  ;;  %v15404_v1 = vld [vmem:[#allocation98_spill] sm:$0xff] }
 0x14d   : > { %15389 = vst [vmem:[#allocation78_spill] sm:$0xff] %v7314_v40  ;;  %v7334_v3 = vadd.f32 %v1483_v46, %v6924_v11  ;;  %v7337_v40 = vadd.f32 %v1484_v16, %v6927_v30  ;;  %v7340_v49 = vadd.f32 %v1485_v24, %v6930_v17  ;;  %v7343_v5 = vadd.f32 %v1486_v63, %v6933_v61  ;;  %v15411_v46 = vld [vmem:[#allocation37_spill] sm:$0xff] }
 0x14e   : > { %v7346_v9 = vadd.f32 %v1487_v41, %v6936_v2  ;;  %v7349_v10 = vadd.f32 %v1488_v60, %v6939_v0  ;;  %v7352_v34 = vadd.f32 %v1489_v23, %v6942_v12  ;;  %v7355_v11 = vadd.f32 %v1490_v45, %v6945_v57  ;;  %v15405_v60 = vld [vmem:[#allocation88_spill] sm:$0xff]  ;;  %v15406_v23 = vld [vmem:[#allocation14_spill] sm:$0xff]  ;;  %v15412_v24 = vld [vmem:[#allocation69_spill] sm:$0xff] }
 0x14f   : > { %v7358_v30 = vadd.f32 %v1491_v14, %v6948_v8  ;;  %v7361_v17 = vadd.f32 %v1492_v43, %v6951_v36  ;;  %v7364_v61 = vadd.f32 %v1493_v6, %v6954_v50  ;;  %v7367_v2 = vadd.f32 %v1494_v27, %v6957_v28  ;;  %v15394_v28 = vld [vmem:[#allocation24_spill] sm:$0xff]  ;;  %v15407_v14 = vld [vmem:[#allocation15_spill] sm:$0xff]  ;;  %v15408_v6 = vld [vmem:[#allocation5_spill] sm:$0xff] }
 0x150   : > { %v7370_v0 = vadd.f32 %v1495_v26, %v6960_v53  ;;  %v7373_v12 = vadd.f32 %v1496_v47, %v6963_v25  ;;  %v7376_v57 = vadd.f32 %v1497_v52, %v6966_v29  ;;  %v7379_v8 = vadd.f32 %v1498_v51, %v6969_v21  ;;  %v15396_v53 = vld [vmem:[#allocation25_spill] sm:$0xff]  ;;  %v15398_v25 = vld [vmem:[#allocation26_spill] sm:$0xff] }
 0x151   : > { %v7382_v36 = vadd.f32 %v1499_v59, %v6972_v19  ;;  %v7385_v50 = vadd.f32 %v1500_v35, %v6975_v62  ;;  %v7388_v41 = vadd.f32 %v1501_v15, %v15394_v28  ;;  %v7391_v63 = vadd.f32 %v1502_v48, %v15396_v53  ;;  %v15400_v29 = vld [vmem:[#allocation86_spill] sm:$0xff]  ;;  %v15402_v51 = vld [vmem:[#allocation105_spill] sm:$0xff]  ;;  %v15403_v35 = vld [vmem:[#allocation87_spill] sm:$0xff] }
 0x152   : > { %15390 = vst [vmem:[#allocation71_spill] sm:$0xff] %v7376_v57  ;;  %15391 = vst [vmem:[#allocation106_spill] sm:$0xff] %v7379_v8  ;;  %v7394_v47 = vadd.f32 %v1503_v33, %v15398_v25  ;;  %v1744_v52 = vmul.f32 %v7178_v20, %v15400_v29  ;;  %v15401_v21 = vld [vmem:[#allocation70_spill] sm:$0xff]  ;;  %v1746_v62 = vmul.f32 %v7178_v20, %v15402_v51  ;;  %v15409_v26 = vld [vmem:[#allocation93_spill] sm:$0xff] }
 0x153   : > { %15392 = vst [vmem:[#allocation107_spill] sm:$0xff] %v7382_v36  ;;  %15393 = vst [vmem:[#allocation108_spill] sm:$0xff] %v7385_v50  ;;  %v1745_v19 = vmul.f32 %v7178_v20, %v15401_v21  ;;  %v1747_v15 = vmul.f32 %v7178_v20, %v15403_v35  ;;  %v1748_v48 = vmul.f32 %v7178_v20, %v15404_v1  ;;  %v15410_v59 = vld [vmem:[#allocation94_spill] sm:$0xff]  ;;  %v15424_v50 = vld [vmem:[#allocation51_spill] sm:$0xff] }
 0x154   : > { %15395 = vst [vmem:[#allocation24_spill] sm:$0xff] %v7388_v41  ;;  %15397 = vst [vmem:[#allocation25_spill] sm:$0xff] %v7391_v63  ;;  %v1749_v33 = vmul.f32 %v7178_v20, %v15405_v60  ;;  %v1750_v45 = vmul.f32 %v7178_v20, %v15406_v23  ;;  %v1751_v43 = vmul.f32 %v7178_v20, %v15407_v14  ;;  %v15413_v53 = vld [vmem:[#allocation38_spill] sm:$0xff]  ;;  %v15415_v14 = vld [vmem:[#allocation12_spill] sm:$0xff] }
 0x155   : > { %15399 = vst [vmem:[#allocation26_spill] sm:$0xff] %v7394_v47  ;;  %v1752_v27 = vmul.f32 %v7178_v20, %v15408_v6  ;;  %v1753_v56 = vmul.f32 %v7178_v20, %v15409_v26  ;;  %v1754_v13 = vmul.f32 %v7178_v20, %v15410_v59  ;;  %v1755_v16 = vmul.f32 %v7178_v20, %v15411_v46  ;;  %v15414_v29 = vld [vmem:[#allocation10_spill] sm:$0xff]  ;;  %v7429_v23 = vld [vmem:[%s5246_s17 + $0x319] sm:$0xff]  ;;  %v7432_v26 = vld [vmem:[%s5246_s17 + $0x321] sm:$0x3f] }
 0x156   : > { %v1756_v28 = vmul.f32 %v7178_v20, %v15412_v24  ;;  %v1757_v25 = vmul.f32 %v7178_v20, %v15413_v53  ;;  %v1758_v21 = vmul.f32 %v7178_v20, %v15414_v29  ;;  %v1759_v6 = vmul.f32 %v7178_v20, %v15415_v14  ;;  %15416 = vst [vmem:[#allocation86_spill] sm:$0xff] %v7429_v23  ;;  %v15418_v59 = vld [vmem:[#allocation13_spill] sm:$0xff]  ;;  %v15419_v46 = vld [vmem:[#allocation35_spill] sm:$0xff]  ;;  %v15421_v53 = vld [vmem:[#allocation36_spill] sm:$0xff] }
 0x157   : > { %15417 = vst [vmem:[#allocation70_spill] sm:$0xff] %v7432_v26  ;;  %v1760_v60 = vmul.f32 %v7178_v20, %v15418_v59  ;;  %v1761_v1 = vmul.f32 %v7178_v20, %v15419_v46  ;;  %v15420_v24 = vld [vmem:[#allocation85_spill] sm:$0xff]  ;;  %v1763_v51 = vmul.f32 %v7178_v20, %v15421_v53  ;;  %v15422_v29 = vld [vmem:[#allocation44_spill] sm:$0xff]  ;;  %v1765_v14 = vmul.f32 %v7178_v20, %v7038_v22  ;;  %v15423_v41 = vld [vmem:[#allocation46_spill] sm:$0xff] }
 0x158   : > { %v1762_v35 = vmul.f32 %v7178_v20, %v15420_v24  ;;  %v1764_v47 = vmul.f32 %v7178_v20, %v15422_v29  ;;  %v1766_v63 = vmul.f32 %v7178_v20, %v7429_v23  ;;  %v1767_v59 = vmul.f32 %v7178_v20, %v7432_v26  ;;  %v15425_v36 = vld [vmem:[#allocation52_spill] sm:$0xff]  ;;  %v15426_v8 = vld [vmem:[#allocation53_spill] sm:$0xff]  ;;  %v15427_v57 = vld [vmem:[#allocation58_spill] sm:$0xff] }
 0x159   : > { %v7451_v46 = vadd.f32 %v1744_v52, %v7057_v55  ;;  %v7454_v24 = vadd.f32 %v1745_v19, %v7060_v32  ;;  %v7457_v53 = vadd.f32 %v1746_v62, %v15423_v41  ;;  %v7460_v29 = vadd.f32 %v1747_v15, %v15424_v50  ;;  %v15428_v55 = vld [vmem:[#allocation59_spill] sm:$0xff]  ;;  %v15429_v32 = vld [vmem:[#allocation60_spill] sm:$0xff]  ;;  %v15430_v41 = vld [vmem:[#allocation65_spill] sm:$0xff] }
 0x15a   : > { %v7463_v22 = vadd.f32 %v1748_v48, %v15425_v36  ;;  %v7466_v23 = vadd.f32 %v1749_v33, %v15426_v8  ;;  %v7469_v20 = vadd.f32 %v1750_v45, %v15427_v57  ;;  %v7472_v52 = vadd.f32 %v1751_v43, %v15428_v55  ;;  %v15432_v50 = vld [vmem:[#allocation66_spill] sm:$0xff]  ;;  %v15434_v36 = vld [vmem:[#allocation67_spill] sm:$0xff]  ;;  %v15436_v8 = vld [vmem:[#allocation72_spill] sm:$0xff] }
 0x15b   : > { %v7475_v19 = vadd.f32 %v1752_v27, %v15429_v32  ;;  %v7478_v62 = vadd.f32 %v1753_v56, %v15430_v41  ;;  %v7481_v15 = vadd.f32 %v1754_v13, %v15432_v50  ;;  %v7484_v48 = vadd.f32 %v1755_v16, %v15434_v36  ;;  %v15438_v57 = vld [vmem:[#allocation73_spill] sm:$0xff]  ;;  %v15440_v43 = vld [vmem:[#allocation74_spill] sm:$0xff]  ;;  %v15442_v27 = vld [vmem:[#allocation79_spill] sm:$0xff] }
 0x15c   : > { %v7487_v33 = vadd.f32 %v1756_v28, %v15436_v8  ;;  %v7490_v45 = vadd.f32 %v1757_v25, %v15438_v57  ;;  %v7493_v55 = vadd.f32 %v1758_v21, %v15440_v43  ;;  %v7496_v32 = vadd.f32 %v1759_v6, %v15442_v27  ;;  %v15444_v56 = vld [vmem:[#allocation80_spill] sm:$0xff]  ;;  %v15446_v13 = vld [vmem:[#allocation81_spill] sm:$0xff]  ;;  %v15450_v28 = vld [vmem:[#allocation99_spill] sm:$0xff] }
 0x15d   : > { %15431 = vst [vmem:[#allocation46_spill] sm:$0xff] %v7478_v62  ;;  %15433 = vst [vmem:[#allocation51_spill] sm:$0xff] %v7481_v15  ;;  %v7499_v41 = vadd.f32 %v1760_v60, %v15444_v56  ;;  %v7502_v50 = vadd.f32 %v1761_v1, %v15446_v13  ;;  %v15448_v16 = vld [vmem:[#allocation92_spill] sm:$0xff]  ;;  %v7508_v8 = vadd.f32 %v1763_v51, %v15450_v28  ;;  %v15452_v25 = vld [vmem:[#allocation103_spill] sm:$0xff] }
 0x15e   : > { %15435 = vst [vmem:[#allocation52_spill] sm:$0xff] %v7484_v48  ;;  %15437 = vst [vmem:[#allocation53_spill] sm:$0xff] %v7487_v33  ;;  %v7505_v36 = vadd.f32 %v1762_v35, %v15448_v16  ;;  %v7511_v57 = vadd.f32 %v1764_v47, %v15452_v25  ;;  %v15454_v21 = vld [vmem:[#allocation29_spill] sm:$0xff]  ;;  %v15456_v6 = vld [vmem:[#allocation30_spill] sm:$0xff] }
 0x15f   : > { %15439 = vst [vmem:[#allocation58_spill] sm:$0xff] %v7490_v45  ;;  %15441 = vst [vmem:[#allocation59_spill] sm:$0xff] %v7493_v55  ;;  %v7514_v43 = vadd.f32 %v1765_v14, %v15454_v21  ;;  %v7517_v27 = vadd.f32 %v1766_v63, %v15456_v6  ;;  %v15458_v60 = vld [vmem:[#allocation32_spill] sm:$0xff]  ;;  %v15460_v1 = vld [vmem:[#allocation27_spill] sm:$0xff] }
 0x160   : > { %15443 = vst [vmem:[#allocation60_spill] sm:$0xff] %v7496_v32  ;;  %15445 = vst [vmem:[#allocation65_spill] sm:$0xff] %v7499_v41  ;;  %v7520_v56 = vadd.f32 %v1767_v59, %v15458_v60  ;;  %v7524_v13 = vadd.f32 %v7296_v37, %v15460_v1  ;;  %v15462_v35 = vld [vmem:[#allocation28_spill] sm:$0xff]  ;;  %v15464_v16 = vld [vmem:[#allocation39_spill] sm:$0xff] }
 0x161   : > { %15447 = vst [vmem:[#allocation66_spill] sm:$0xff] %v7502_v50  ;;  %15449 = vst [vmem:[#allocation67_spill] sm:$0xff] %v7505_v36  ;;  %v7528_v51 = vadd.f32 %v7300_v38, %v15462_v35  ;;  %v7532_v47 = vadd.f32 %v7304_v31, %v15464_v16  ;;  %v15466_v14 = vld [vmem:[#allocation89_spill] sm:$0xff]  ;;  %v15470_v25 = vld [vmem:[#allocation34_spill] sm:$0xff] }
 0x162   : > { %15451 = vst [vmem:[#allocation72_spill] sm:$0xff] %v7508_v8  ;;  %15453 = vst [vmem:[#allocation73_spill] sm:$0xff] %v7511_v57  ;;  %v7536_v28 = vadd.f32 %v7308_v44, %v15466_v14  ;;  %v15468_v63 = vld [vmem:[#allocation33_spill] sm:$0xff]  ;;  %v15471_v21 = vld [vmem:[#allocation78_spill] sm:$0xff] }
 0x163   : > { %15455 = vst [vmem:[#allocation74_spill] sm:$0xff] %v7514_v43  ;;  %15457 = vst [vmem:[#allocation79_spill] sm:$0xff] %v7517_v27  ;;  %v7540_v59 = vadd.f32 %v7311_v39, %v15468_v63  ;;  %v7544_v37 = vadd.f32 %v15471_v21, %v15470_v25  ;;  %v15473_v6 = vld [vmem:[#allocation82_spill] sm:$0xff]  ;;  %v15475_v60 = vld [vmem:[#allocation83_spill] sm:$0xff] }
 0x164   : > { %15459 = vst [vmem:[#allocation80_spill] sm:$0xff] %v7520_v56  ;;  %15461 = vst [vmem:[#allocation81_spill] sm:$0xff] %v7524_v13  ;;  %v7548_v38 = vadd.f32 %v7318_v54, %v15473_v6  ;;  %v7552_v31 = vadd.f32 %v7322_v7, %v15475_v60  ;;  %v15477_v1 = vld [vmem:[#allocation100_spill] sm:$0xff]  ;;  %v15478_v35 = vld [vmem:[#allocation31_spill] sm:$0xff] }
 0x165   : > { %15463 = vst [vmem:[#allocation92_spill] sm:$0xff] %v7528_v51  ;;  %15465 = vst [vmem:[#allocation99_spill] sm:$0xff] %v7532_v47  ;;  %v1596_v44 = vmul.f32 %v15478_v35, %v15477_v1  ;;  %v15479_v16 = vld [vmem:[#allocation17_spill] sm:$0xff]  ;;  %v15480_v39 = vld [vmem:[#allocation96_spill] sm:$0xff] }
 0x166   : > { %15467 = vst [vmem:[#allocation103_spill] sm:$0xff] %v7536_v28  ;;  %15469 = vst [vmem:[#allocation29_spill] sm:$0xff] %v7540_v59  ;;  %v1597_v14 = vmul.f32 %v15478_v35, %v15479_v16  ;;  %v1598_v63 = vmul.f32 %v15478_v35, %v15480_v39  ;;  %v15481_v59 = vld [vmem:[#allocation43_spill] sm:$0xff]  ;;  %v15482_v21 = vld [vmem:[#allocation104_spill] sm:$0xff] }
 0x167   : > { %15472 = vst [vmem:[#allocation30_spill] sm:$0xff] %v7544_v37  ;;  %15474 = vst [vmem:[#allocation32_spill] sm:$0xff] %v7548_v38  ;;  %v1599_v25 = vmul.f32 %v15478_v35, %v15481_v59  ;;  %v1600_v54 = vmul.f32 %v15478_v35, %v15482_v21  ;;  %v15483_v6 = vld [vmem:[#allocation75_spill] sm:$0xff]  ;;  %v15484_v60 = vld [vmem:[#allocation97_spill] sm:$0xff] }
 0x168   : > { %15476 = vst [vmem:[#allocation27_spill] sm:$0xff] %v7552_v31  ;;  %v1601_v7 = vmul.f32 %v15478_v35, %v15483_v6  ;;  %v1602_v1 = vmul.f32 %v15478_v35, %v15484_v60  ;;  %v15485_v31 = vld [vmem:[#allocation8_spill] sm:$0xff]  ;;  %v15486_v38 = vld [vmem:[#allocation9_spill] sm:$0xff]  ;;  %v15487_v37 = vld [vmem:[#allocation11_spill] sm:$0xff] }
 0x169   : > { %v1603_v16 = vmul.f32 %v15478_v35, %v15485_v31  ;;  %v1604_v39 = vmul.f32 %v15478_v35, %v15486_v38  ;;  %v1605_v59 = vmul.f32 %v15478_v35, %v15487_v37  ;;  %v15488_v28 = vld [vmem:[#allocation54_spill] sm:$0xff]  ;;  %v15489_v47 = vld [vmem:[#allocation55_spill] sm:$0xff]  ;;  %v15490_v6 = vld [vmem:[#allocation56_spill] sm:$0xff] }
 0x16a   : > { %v1606_v21 = vmul.f32 %v15478_v35, %v15488_v28  ;;  %v1607_v51 = vmul.f32 %v15478_v35, %v15489_v47  ;;  %v1608_v13 = vmul.f32 %v15478_v35, %v15490_v6  ;;  %v15491_v56 = vld [vmem:[#allocation57_spill] sm:$0xff]  ;;  %v15493_v43 = vld [vmem:[#allocation62_spill] sm:$0xff]  ;;  %v15494_v57 = vld [vmem:[#allocation63_spill] sm:$0xff] }
 0x16b   : > { %v1609_v60 = vmul.f32 %v15478_v35, %v15491_v56  ;;  %v15492_v27 = vld [vmem:[#allocation61_spill] sm:$0xff]  ;;  %v1611_v38 = vmul.f32 %v15478_v35, %v15493_v43  ;;  %v1612_v37 = vmul.f32 %v15478_v35, %v15494_v57  ;;  %v15495_v8 = vld [vmem:[#allocation64_spill] sm:$0xff]  ;;  %v15501_v43 = vld [vmem:[#allocation19_spill] sm:$0xff] }
 0x16c   : > { %v1610_v31 = vmul.f32 %v15478_v35, %v15492_v27  ;;  %v1613_v28 = vmul.f32 %v15478_v35, %v15495_v8  ;;  %v15496_v36 = vld [vmem:[#allocation68_spill] sm:$0xff]  ;;  %v15500_v27 = vld [vmem:[#allocation18_spill] sm:$0xff]  ;;  %v1617_v55 = vmul.f32 %v15478_v35, %v15501_v43 }
 0x16d   : > { %v1614_v47 = vmul.f32 %v15478_v35, %v15496_v36  ;;  %v15497_v50 = vld [vmem:[#allocation16_spill] sm:$0xff]  ;;  %v1616_v32 = vmul.f32 %v15478_v35, %v15500_v27  ;;  %v15504_v36 = vld [vmem:[#allocation21_spill] sm:$0xff] }
 0x16e   : > { %v1615_v6 = vmul.f32 %v15478_v35, %v15497_v50  ;;  %v7595_v41 = vld [vmem:[%s5246_s17 + $0x151] sm:$0xff]  ;;  %v7598_v56 = vld [vmem:[%s5246_s17 + $0x159] sm:$0x3f]  ;;  %v7610_v48 = vmul.f32 %v15478_v35, %v15504_v36  ;;  %v15505_v50 = vld [vmem:[#allocation22_spill] sm:$0xff]  ;;  %v7630_v36 = vmul.f32 %v15478_v35, %v7292_v42  ;;  %v7650_v42 = vadd.f32 %v1599_v25, %v7334_v3 }
 0x16f   : > { %15498 = vst [vmem:[#allocation28_spill] sm:$0xff] %v7595_v41  ;;  %15499 = vst [vmem:[#allocation39_spill] sm:$0xff] %v7598_v56  ;;  %v15502_v57 = vld [vmem:[#allocation20_spill] sm:$0xff]  ;;  %v7614_v15 = vmul.f32 %v15478_v35, %v15505_v50  ;;  %v7618_v27 = vmul.f32 %v15478_v35, %v7595_v41  ;;  %v7622_v43 = vmul.f32 %v15478_v35, %v7598_v56  ;;  %v15529_v25 = vld [vmem:[#allocation98_spill] sm:$0xff] }
 0x170   : > { %v1618_v45 = vmul.f32 %v15478_v35, %v15502_v57  ;;  %v15503_v8 = vld [vmem:[#allocation76_spill] sm:$0xff]  ;;  %v15508_v57 = vld [vmem:[#allocation23_spill] sm:$0xff]  ;;  %15509 = vst [vmem:[#allocation34_spill] sm:$0xff] %v7630_v36  ;;  %v7644_v56 = vadd.f32 %v1597_v14, %v7328_v18  ;;  %v7653_v36 = vadd.f32 %v1600_v54, %v7337_v40  ;;  %v7665_v18 = vadd.f32 %v1604_v39, %v7349_v10  ;;  %v15531_v54 = vld [vmem:[#allocation14_spill] sm:$0xff] }
 0x171   : > { %v1619_v33 = vmul.f32 %v15478_v35, %v15503_v8  ;;  %15506 = vst [vmem:[#allocation89_spill] sm:$0xff] %v7614_v15  ;;  %15507 = vst [vmem:[#allocation33_spill] sm:$0xff] %v7618_v27  ;;  %v7626_v62 = vmul.f32 %v15478_v35, %v15508_v57  ;;  %v15510_v8 = vld [vmem:[#allocation90_spill] sm:$0xff]  ;;  %v15511_v15 = vld [vmem:[#allocation91_spill] sm:$0xff]  ;;  %v7641_v27 = vadd.f32 %v1596_v44, %v7325_v58 }
 0x172   : > { %v7634_v50 = vmul.f32 %v15478_v35, %v15510_v8  ;;  %v7638_v41 = vmul.f32 %v15478_v35, %v15511_v15  ;;  %v7647_v57 = vadd.f32 %v1598_v63, %v7331_v4  ;;  %v7656_v8 = vadd.f32 %v1601_v7, %v7340_v49  ;;  %v15527_v14 = vld [vmem:[#allocation48_spill] sm:$0xff]  ;;  %v15533_v7 = vld [vmem:[#allocation5_spill] sm:$0xff] }
 0x173   : > { %v7659_v35 = vadd.f32 %v1602_v1, %v7343_v5  ;;  %v7662_v58 = vadd.f32 %v1603_v16, %v7346_v9  ;;  %v7668_v4 = vadd.f32 %v1605_v59, %v7352_v34  ;;  %v7671_v3 = vadd.f32 %v1606_v21, %v7355_v11  ;;  %v15512_v11 = vld [vmem:[#allocation71_spill] sm:$0xff]  ;;  %v15530_v21 = vld [vmem:[#allocation88_spill] sm:$0xff]  ;;  %v15534_v1 = vld [vmem:[#allocation93_spill] sm:$0xff] }
 0x174   : > { %v7674_v40 = vadd.f32 %v1607_v51, %v7358_v30  ;;  %v7677_v49 = vadd.f32 %v1608_v13, %v7361_v17  ;;  %v7680_v5 = vadd.f32 %v1609_v60, %v7364_v61  ;;  %v7683_v9 = vadd.f32 %v1610_v31, %v7367_v2  ;;  %v15514_v30 = vld [vmem:[#allocation106_spill] sm:$0xff]  ;;  %v15516_v17 = vld [vmem:[#allocation107_spill] sm:$0xff]  ;;  %v15518_v61 = vld [vmem:[#allocation108_spill] sm:$0xff] }
 0x175   : > { %v7686_v10 = vadd.f32 %v1611_v38, %v7370_v0  ;;  %v7689_v34 = vadd.f32 %v1612_v37, %v7373_v12  ;;  %v7692_v59 = vadd.f32 %v1613_v28, %v15512_v11  ;;  %v7695_v51 = vadd.f32 %v1614_v47, %v15514_v30  ;;  %v15520_v2 = vld [vmem:[#allocation24_spill] sm:$0xff]  ;;  %v15522_v0 = vld [vmem:[#allocation25_spill] sm:$0xff]  ;;  %v15524_v12 = vld [vmem:[#allocation26_spill] sm:$0xff] }
 0x176   : > { %v7698_v13 = vadd.f32 %v1615_v6, %v15516_v17  ;;  %v7701_v44 = vadd.f32 %v1616_v32, %v15518_v61  ;;  %v7704_v31 = vadd.f32 %v1617_v55, %v15520_v2  ;;  %v7707_v38 = vadd.f32 %v1618_v45, %v15522_v0  ;;  %v15526_v28 = vld [vmem:[#allocation105_spill] sm:$0xff]  ;;  %v15528_v47 = vld [vmem:[#allocation87_spill] sm:$0xff]  ;;  %v15535_v11 = vld [vmem:[#allocation94_spill] sm:$0xff] }
 0x177   : > { %15513 = vst [vmem:[#allocation78_spill] sm:$0xff] %v7692_v59  ;;  %15515 = vst [vmem:[#allocation82_spill] sm:$0xff] %v7695_v51  ;;  %v7710_v37 = vadd.f32 %v1619_v33, %v15524_v12  ;;  %v1860_v39 = vmul.f32 %v15527_v14, %v15526_v28  ;;  %v1861_v63 = vmul.f32 %v15527_v14, %v15528_v47  ;;  %v15532_v6 = vld [vmem:[#allocation15_spill] sm:$0xff]  ;;  %v15536_v17 = vld [vmem:[#allocation37_spill] sm:$0xff] }
 0x178   : > { %15517 = vst [vmem:[#allocation83_spill] sm:$0xff] %v7698_v13  ;;  %15519 = vst [vmem:[#allocation100_spill] sm:$0xff] %v7701_v44  ;;  %v1862_v32 = vmul.f32 %v15527_v14, %v15529_v25  ;;  %v1863_v55 = vmul.f32 %v15527_v14, %v15530_v21  ;;  %v1864_v45 = vmul.f32 %v15527_v14, %v15531_v54  ;;  %v15537_v2 = vld [vmem:[#allocation69_spill] sm:$0xff]  ;;  %v15538_v12 = vld [vmem:[#allocation38_spill] sm:$0xff] }
 0x179   : > { %15521 = vst [vmem:[#allocation31_spill] sm:$0xff] %v7704_v31  ;;  %15523 = vst [vmem:[#allocation17_spill] sm:$0xff] %v7707_v38  ;;  %v1865_v33 = vmul.f32 %v15527_v14, %v15532_v6  ;;  %v1866_v60 = vmul.f32 %v15527_v14, %v15533_v7  ;;  %v1867_v16 = vmul.f32 %v15527_v14, %v15534_v1  ;;  %v15539_v47 = vld [vmem:[#allocation10_spill] sm:$0xff]  ;;  %v15540_v54 = vld [vmem:[#allocation12_spill] sm:$0xff] }
 0x17a   : > { %15525 = vst [vmem:[#allocation23_spill] sm:$0xff] %v7710_v37  ;;  %v1868_v30 = vmul.f32 %v15527_v14, %v15535_v11  ;;  %v1869_v61 = vmul.f32 %v15527_v14, %v15536_v17  ;;  %v1870_v0 = vmul.f32 %v15527_v14, %v15537_v2  ;;  %v1871_v28 = vmul.f32 %v15527_v14, %v15538_v12  ;;  %v15541_v21 = vld [vmem:[#allocation13_spill] sm:$0xff]  ;;  %v15542_v25 = vld [vmem:[#allocation35_spill] sm:$0xff]  ;;  %v7748_v17 = vld [vmem:[%s5246_s17 + $0x339] sm:$0x3f] }
 0x17b   : > { %v1872_v6 = vmul.f32 %v15527_v14, %v15539_v47  ;;  %v1873_v7 = vmul.f32 %v15527_v14, %v15540_v54  ;;  %v1874_v1 = vmul.f32 %v15527_v14, %v15541_v21  ;;  %v1875_v11 = vmul.f32 %v15527_v14, %v15542_v25  ;;  %v7745_v37 = vld [vmem:[%s5246_s17 + $0x331] sm:$0xff]  ;;  %v15544_v2 = vld [vmem:[#allocation85_spill] sm:$0xff]  ;;  %v15548_v21 = vld [vmem:[#allocation86_spill] sm:$0xff] }
 0x17c   : > { %15543 = vst [vmem:[#allocation91_spill] sm:$0xff] %v7745_v37  ;;  %v1876_v38 = vmul.f32 %v15527_v14, %v15544_v2  ;;  %v15545_v12 = vld [vmem:[#allocation36_spill] sm:$0xff]  ;;  %v15547_v54 = vld [vmem:[#allocation45_spill] sm:$0xff]  ;;  %v1880_v51 = vmul.f32 %v15527_v14, %v15548_v21  ;;  %v1881_v25 = vmul.f32 %v15527_v14, %v7432_v26  ;;  %v1882_v59 = vmul.f32 %v15527_v14, %v7745_v37 }
 0x17d   : > { %v1877_v31 = vmul.f32 %v15527_v14, %v15545_v12  ;;  %v15546_v47 = vld [vmem:[#allocation44_spill] sm:$0xff]  ;;  %v1879_v13 = vmul.f32 %v15527_v14, %v15547_v54  ;;  %v1883_v2 = vmul.f32 %v15527_v14, %v7748_v17  ;;  %v7767_v12 = vadd.f32 %v1860_v39, %v7451_v46 }
 0x17e   : > { %v1878_v44 = vmul.f32 %v15527_v14, %v15546_v47  ;;  %v7770_v47 = vadd.f32 %v1861_v63, %v7454_v24  ;;  %v7773_v54 = vadd.f32 %v1862_v32, %v7457_v53  ;;  %v7776_v21 = vadd.f32 %v1863_v55, %v7460_v29  ;;  %v15549_v53 = vld [vmem:[#allocation46_spill] sm:$0xff]  ;;  %v15551_v29 = vld [vmem:[#allocation51_spill] sm:$0xff] }
 0x17f   : > { %v7779_v26 = vadd.f32 %v1864_v45, %v7463_v22  ;;  %v7782_v37 = vadd.f32 %v1865_v33, %v7466_v23  ;;  %v7785_v14 = vadd.f32 %v1866_v60, %v7469_v20  ;;  %v7788_v46 = vadd.f32 %v1867_v16, %v7472_v52  ;;  %v15553_v22 = vld [vmem:[#allocation52_spill] sm:$0xff]  ;;  %v15555_v23 = vld [vmem:[#allocation53_spill] sm:$0xff]  ;;  %v15557_v20 = vld [vmem:[#allocation58_spill] sm:$0xff] }
 0x180   : > { %v7791_v24 = vadd.f32 %v1868_v30, %v7475_v19  ;;  %v7794_v39 = vadd.f32 %v1869_v61, %v15549_v53  ;;  %v7797_v63 = vadd.f32 %v1870_v0, %v15551_v29  ;;  %v7800_v32 = vadd.f32 %v1871_v28, %v15553_v22  ;;  %v15559_v52 = vld [vmem:[#allocation59_spill] sm:$0xff]  ;;  %v15561_v19 = vld [vmem:[#allocation60_spill] sm:$0xff]  ;;  %v15563_v16 = vld [vmem:[#allocation65_spill] sm:$0xff] }
 0x181   : > { %v7803_v55 = vadd.f32 %v1872_v6, %v15555_v23  ;;  %v7806_v45 = vadd.f32 %v1873_v7, %v15557_v20  ;;  %v7809_v33 = vadd.f32 %v1874_v1, %v15559_v52  ;;  %v7812_v60 = vadd.f32 %v1875_v11, %v15561_v19  ;;  %v15565_v61 = vld [vmem:[#allocation66_spill] sm:$0xff]  ;;  %v15567_v28 = vld [vmem:[#allocation67_spill] sm:$0xff]  ;;  %v15569_v6 = vld [vmem:[#allocation72_spill] sm:$0xff] }
 0x182   : > { %15550 = vst [vmem:[#allocation71_spill] sm:$0xff] %v7794_v39  ;;  %15552 = vst [vmem:[#allocation106_spill] sm:$0xff] %v7797_v63  ;;  %v7815_v30 = vadd.f32 %v1876_v38, %v15563_v16  ;;  %v7818_v0 = vadd.f32 %v1877_v31, %v15565_v61  ;;  %v7821_v53 = vadd.f32 %v1878_v44, %v15567_v28  ;;  %v15571_v7 = vld [vmem:[#allocation73_spill] sm:$0xff]  ;;  %v15573_v1 = vld [vmem:[#allocation74_spill] sm:$0xff] }
 0x183   : > { %15554 = vst [vmem:[#allocation107_spill] sm:$0xff] %v7800_v32  ;;  %15556 = vst [vmem:[#allocation108_spill] sm:$0xff] %v7803_v55  ;;  %v7824_v29 = vadd.f32 %v1879_v13, %v15569_v6  ;;  %v7827_v22 = vadd.f32 %v1880_v51, %v15571_v7  ;;  %v7830_v23 = vadd.f32 %v1881_v25, %v15573_v1  ;;  %v15575_v11 = vld [vmem:[#allocation79_spill] sm:$0xff]  ;;  %v15577_v38 = vld [vmem:[#allocation80_spill] sm:$0xff] }
 0x184   : > { %15558 = vst [vmem:[#allocation24_spill] sm:$0xff] %v7806_v45  ;;  %15560 = vst [vmem:[#allocation25_spill] sm:$0xff] %v7809_v33  ;;  %v7833_v20 = vadd.f32 %v1882_v59, %v15575_v11  ;;  %v7836_v52 = vadd.f32 %v1883_v2, %v15577_v38  ;;  %v15579_v31 = vld [vmem:[#allocation81_spill] sm:$0xff]  ;;  %v15581_v44 = vld [vmem:[#allocation92_spill] sm:$0xff] }
 0x185   : > { %15562 = vst [vmem:[#allocation26_spill] sm:$0xff] %v7812_v60  ;;  %15564 = vst [vmem:[#allocation105_spill] sm:$0xff] %v7815_v30  ;;  %v7840_v19 = vadd.f32 %v7610_v48, %v15579_v31  ;;  %v15582_v16 = vld [vmem:[#allocation89_spill] sm:$0xff]  ;;  %v15584_v61 = vld [vmem:[#allocation99_spill] sm:$0xff] }
 0x186   : > { %15566 = vst [vmem:[#allocation87_spill] sm:$0xff] %v7818_v0  ;;  %15568 = vst [vmem:[#allocation46_spill] sm:$0xff] %v7821_v53  ;;  %v7844_v13 = vadd.f32 %v15582_v16, %v15581_v44  ;;  %v15585_v51 = vld [vmem:[#allocation33_spill] sm:$0xff]  ;;  %v15587_v25 = vld [vmem:[#allocation103_spill] sm:$0xff] }
 0x187   : > { %15570 = vst [vmem:[#allocation51_spill] sm:$0xff] %v7824_v29  ;;  %15572 = vst [vmem:[#allocation52_spill] sm:$0xff] %v7827_v22  ;;  %v7848_v28 = vadd.f32 %v15585_v51, %v15584_v61  ;;  %v7852_v6 = vadd.f32 %v7622_v43, %v15587_v25  ;;  %v15589_v59 = vld [vmem:[#allocation29_spill] sm:$0xff]  ;;  %v15591_v7 = vld [vmem:[#allocation30_spill] sm:$0xff] }
 0x188   : > { %15574 = vst [vmem:[#allocation53_spill] sm:$0xff] %v7830_v23  ;;  %15576 = vst [vmem:[#allocation58_spill] sm:$0xff] %v7833_v20  ;;  %v7856_v2 = vadd.f32 %v7626_v62, %v15589_v59  ;;  %v15592_v1 = vld [vmem:[#allocation34_spill] sm:$0xff]  ;;  %v15594_v11 = vld [vmem:[#allocation32_spill] sm:$0xff] }
 0x189   : > { %15578 = vst [vmem:[#allocation59_spill] sm:$0xff] %v7836_v52  ;;  %15580 = vst [vmem:[#allocation60_spill] sm:$0xff] %v7840_v19  ;;  %v7860_v48 = vadd.f32 %v15592_v1, %v15591_v7  ;;  %v7864_v38 = vadd.f32 %v7634_v50, %v15594_v11  ;;  %v15596_v31 = vld [vmem:[#allocation27_spill] sm:$0xff]  ;;  %v15598_v16 = vld [vmem:[#allocation96_spill] sm:$0xff] }
 0x18a   : > { %15583 = vst [vmem:[#allocation65_spill] sm:$0xff] %v7844_v13  ;;  %15586 = vst [vmem:[#allocation66_spill] sm:$0xff] %v7848_v28  ;;  %v7868_v44 = vadd.f32 %v7638_v41, %v15596_v31  ;;  %v15599_v61 = vld [vmem:[#allocation47_spill] sm:$0xff]  ;;  %v15601_v62 = vld [vmem:[#allocation104_spill] sm:$0xff] }
 0x18b   : > { %15588 = vst [vmem:[#allocation67_spill] sm:$0xff] %v7852_v6  ;;  %15590 = vst [vmem:[#allocation72_spill] sm:$0xff] %v7856_v2  ;;  %v1712_v43 = vmul.f32 %v15599_v61, %v15598_v16  ;;  %v15600_v51 = vld [vmem:[#allocation43_spill] sm:$0xff]  ;;  %v1714_v59 = vmul.f32 %v15599_v61, %v15601_v62  ;;  %v15603_v1 = vld [vmem:[#allocation97_spill] sm:$0xff] }
 0x18c   : > { %15593 = vst [vmem:[#allocation73_spill] sm:$0xff] %v7860_v48  ;;  %15595 = vst [vmem:[#allocation74_spill] sm:$0xff] %v7864_v38  ;;  %v1713_v25 = vmul.f32 %v15599_v61, %v15600_v51  ;;  %v15602_v2 = vld [vmem:[#allocation75_spill] sm:$0xff]  ;;  %v1716_v50 = vmul.f32 %v15599_v61, %v15603_v1  ;;  %v15604_v11 = vld [vmem:[#allocation8_spill] sm:$0xff] }
 0x18d   : > { %15597 = vst [vmem:[#allocation79_spill] sm:$0xff] %v7868_v44  ;;  %v1715_v7 = vmul.f32 %v15599_v61, %v15602_v2  ;;  %v1717_v41 = vmul.f32 %v15599_v61, %v15604_v11  ;;  %v15605_v31 = vld [vmem:[#allocation9_spill] sm:$0xff]  ;;  %v15606_v44 = vld [vmem:[#allocation11_spill] sm:$0xff]  ;;  %v15607_v38 = vld [vmem:[#allocation54_spill] sm:$0xff] }
 0x18e   : > { %v1718_v16 = vmul.f32 %v15599_v61, %v15605_v31  ;;  %v1719_v51 = vmul.f32 %v15599_v61, %v15606_v44  ;;  %v1720_v62 = vmul.f32 %v15599_v61, %v15607_v38  ;;  %v15608_v48 = vld [vmem:[#allocation55_spill] sm:$0xff]  ;;  %v15609_v6 = vld [vmem:[#allocation56_spill] sm:$0xff]  ;;  %v15610_v28 = vld [vmem:[#allocation57_spill] sm:$0xff] }
 0x18f   : > { %v1721_v2 = vmul.f32 %v15599_v61, %v15608_v48  ;;  %v1722_v1 = vmul.f32 %v15599_v61, %v15609_v6  ;;  %v1723_v13 = vmul.f32 %v15599_v61, %v15610_v28  ;;  %v15611_v11 = vld [vmem:[#allocation61_spill] sm:$0xff]  ;;  %v15612_v52 = vld [vmem:[#allocation62_spill] sm:$0xff]  ;;  %v15613_v20 = vld [vmem:[#allocation63_spill] sm:$0xff] }
 0x190   : > { %v1724_v19 = vmul.f32 %v15599_v61, %v15611_v11  ;;  %v1725_v31 = vmul.f32 %v15599_v61, %v15612_v52  ;;  %v1726_v44 = vmul.f32 %v15599_v61, %v15613_v20  ;;  %v15614_v23 = vld [vmem:[#allocation64_spill] sm:$0xff]  ;;  %v15617_v53 = vld [vmem:[#allocation18_spill] sm:$0xff]  ;;  %v15618_v0 = vld [vmem:[#allocation19_spill] sm:$0xff] }
 0x191   : > { %v1727_v38 = vmul.f32 %v15599_v61, %v15614_v23  ;;  %v15615_v22 = vld [vmem:[#allocation68_spill] sm:$0xff]  ;;  %v1730_v28 = vmul.f32 %v15599_v61, %v15617_v53  ;;  %v1731_v11 = vmul.f32 %v15599_v61, %v15618_v0  ;;  %v7911_v30 = vld [vmem:[%s5246_s17 + $0x169] sm:$0xff]  ;;  %v7914_v52 = vld [vmem:[%s5246_s17 + $0x171] sm:$0x3f] }
 0x192   : > { %v1728_v48 = vmul.f32 %v15599_v61, %v15615_v22  ;;  %v15616_v29 = vld [vmem:[#allocation16_spill] sm:$0xff]  ;;  %15619 = vst [vmem:[#allocation80_spill] sm:$0xff] %v7911_v30  ;;  %15620 = vst [vmem:[#allocation81_spill] sm:$0xff] %v7914_v52  ;;  %v15623_v22 = vld [vmem:[#allocation21_spill] sm:$0xff] }
 0x193   : > { %v1729_v6 = vmul.f32 %v15599_v61, %v15616_v29  ;;  %v15621_v20 = vld [vmem:[#allocation20_spill] sm:$0xff]  ;;  %v1734_v45 = vmul.f32 %v15599_v61, %v15623_v22  ;;  %v15624_v29 = vld [vmem:[#allocation22_spill] sm:$0xff]  ;;  %v15626_v0 = vld [vmem:[#allocation39_spill] sm:$0xff] }
 0x194   : > { %v1732_v60 = vmul.f32 %v15599_v61, %v15621_v20  ;;  %v15622_v23 = vld [vmem:[#allocation76_spill] sm:$0xff]  ;;  %v1735_v55 = vmul.f32 %v15599_v61, %v15624_v29  ;;  %v7930_v63 = vmul.f32 %v15599_v61, %v15626_v0  ;;  %v7934_v20 = vmul.f32 %v15599_v61, %v7911_v30  ;;  %v15629_v22 = vld [vmem:[#allocation90_spill] sm:$0xff]  ;;  %v15631_v29 = vld [vmem:[#allocation77_spill] sm:$0xff] }
 0x195   : > { %v1733_v33 = vmul.f32 %v15599_v61, %v15622_v23  ;;  %v15625_v53 = vld [vmem:[#allocation28_spill] sm:$0xff]  ;;  %v7938_v23 = vmul.f32 %v15599_v61, %v7914_v52  ;;  %v7942_v39 = vmul.f32 %v15599_v61, %v15629_v22  ;;  %v7950_v0 = vmul.f32 %v15599_v61, %v15631_v29 }
 0x196   : > { %v7926_v32 = vmul.f32 %v15599_v61, %v15625_v53  ;;  %15627 = vst [vmem:[#allocation92_spill] sm:$0xff] %v7930_v63  ;;  %15628 = vst [vmem:[#allocation89_spill] sm:$0xff] %v7934_v20  ;;  %v7946_v53 = vmul.f32 %v15599_v61, %v15511_v15  ;;  %v15632_v63 = vld [vmem:[#allocation84_spill] sm:$0xff]  ;;  %v7957_v20 = vadd.f32 %v1712_v43, %v7641_v27  ;;  %v15648_v43 = vld [vmem:[#allocation49_spill] sm:$0xff] }
 0x197   : > { %v7954_v30 = vmul.f32 %v15599_v61, %v15632_v63  ;;  %v7960_v52 = vadd.f32 %v1713_v25, %v7644_v56  ;;  %v7963_v22 = vadd.f32 %v1714_v59, %v7647_v57  ;;  %v7966_v15 = vadd.f32 %v1715_v7, %v7650_v42  ;;  %v15650_v59 = vld [vmem:[#allocation14_spill] sm:$0xff] }
 0x198   : > { %15630 = vst [vmem:[#allocation99_spill] sm:$0xff] %v7946_v53  ;;  %v7969_v53 = vadd.f32 %v1716_v50, %v7653_v36  ;;  %v7972_v29 = vadd.f32 %v1717_v41, %v7656_v8  ;;  %v7975_v63 = vadd.f32 %v1718_v16, %v7659_v35  ;;  %v7978_v27 = vadd.f32 %v1719_v51, %v7662_v58  ;;  %v1474_v51 = vld [vmem:[%s5246_s17 + $0x349] sm:$0xff] }
 0x199   : > { %v7981_v56 = vadd.f32 %v1720_v62, %v7665_v18  ;;  %v7984_v57 = vadd.f32 %v1721_v2, %v7668_v4  ;;  %v7987_v42 = vadd.f32 %v1722_v1, %v7671_v3  ;;  %v7990_v36 = vadd.f32 %v1723_v13, %v7674_v40  ;;  %v15633_v3 = vld [vmem:[#allocation78_spill] sm:$0xff]  ;;  %v15639_v13 = vld [vmem:[#allocation100_spill] sm:$0xff] }
 0x19a   : > { %v7993_v8 = vadd.f32 %v1724_v19, %v7677_v49  ;;  %v7996_v35 = vadd.f32 %v1725_v31, %v7680_v5  ;;  %v7999_v58 = vadd.f32 %v1726_v44, %v7683_v9  ;;  %v8002_v18 = vadd.f32 %v1727_v38, %v7686_v10  ;;  %v15635_v40 = vld [vmem:[#allocation82_spill] sm:$0xff]  ;;  %v15637_v19 = vld [vmem:[#allocation83_spill] sm:$0xff]  ;;  %v15643_v38 = vld [vmem:[#allocation17_spill] sm:$0xff] }
 0x19b   : > { %v8005_v4 = vadd.f32 %v1728_v48, %v7689_v34  ;;  %v8008_v2 = vadd.f32 %v1729_v6, %v15633_v3  ;;  %v8011_v49 = vadd.f32 %v1730_v28, %v15635_v40  ;;  %v8014_v5 = vadd.f32 %v1731_v11, %v15637_v19  ;;  %v15641_v44 = vld [vmem:[#allocation31_spill] sm:$0xff]  ;;  %v15647_v6 = vld [vmem:[#allocation98_spill] sm:$0xff]  ;;  %v15649_v28 = vld [vmem:[#allocation88_spill] sm:$0xff] }
 0x19c   : > { %v8017_v9 = vadd.f32 %v1732_v60, %v15639_v13  ;;  %v8020_v10 = vadd.f32 %v1733_v33, %v15641_v44  ;;  %v8023_v34 = vadd.f32 %v1734_v45, %v15643_v38  ;;  %v15645_v48 = vld [vmem:[#allocation23_spill] sm:$0xff]  ;;  %v1976_v25 = vmul.f32 %v15648_v43, %v15647_v6  ;;  %v15652_v33 = vld [vmem:[#allocation5_spill] sm:$0xff]  ;;  %v15657_v13 = vld [vmem:[#allocation38_spill] sm:$0xff] }
 0x19d   : > { %15634 = vst [vmem:[#allocation33_spill] sm:$0xff] %v8008_v2  ;;  %15636 = vst [vmem:[#allocation103_spill] sm:$0xff] %v8011_v49  ;;  %v8026_v61 = vadd.f32 %v1735_v55, %v15645_v48  ;;  %v1977_v62 = vmul.f32 %v15648_v43, %v15649_v28  ;;  %v1978_v7 = vmul.f32 %v15648_v43, %v15650_v59  ;;  %v15651_v60 = vld [vmem:[#allocation15_spill] sm:$0xff]  ;;  %v15653_v45 = vld [vmem:[#allocation93_spill] sm:$0xff] }
 0x19e   : > { %15638 = vst [vmem:[#allocation29_spill] sm:$0xff] %v8014_v5  ;;  %15640 = vst [vmem:[#allocation30_spill] sm:$0xff] %v8017_v9  ;;  %v1979_v1 = vmul.f32 %v15648_v43, %v15651_v60  ;;  %v1980_v50 = vmul.f32 %v15648_v43, %v15652_v33  ;;  %v1981_v11 = vmul.f32 %v15648_v43, %v15653_v45  ;;  %v15654_v55 = vld [vmem:[#allocation94_spill] sm:$0xff]  ;;  %v15655_v31 = vld [vmem:[#allocation37_spill] sm:$0xff] }
 0x19f   : > { %15642 = vst [vmem:[#allocation34_spill] sm:$0xff] %v8020_v10  ;;  %15644 = vst [vmem:[#allocation32_spill] sm:$0xff] %v8023_v34  ;;  %v1982_v41 = vmul.f32 %v15648_v43, %v15654_v55  ;;  %v1983_v16 = vmul.f32 %v15648_v43, %v15655_v31  ;;  %v1475_v3 = vld [vmem:[%s5246_s17 + $0x351] sm:$0x3f]  ;;  %v15656_v40 = vld [vmem:[#allocation69_spill] sm:$0xff]  ;;  %v1985_v44 = vmul.f32 %v15648_v43, %v15657_v13 }
 0x1a0   : > { %15646 = vst [vmem:[#allocation27_spill] sm:$0xff] %v8026_v61  ;;  %v1984_v19 = vmul.f32 %v15648_v43, %v15656_v40  ;;  %v15658_v38 = vld [vmem:[#allocation10_spill] sm:$0xff]  ;;  %v15659_v6 = vld [vmem:[#allocation12_spill] sm:$0xff]  ;;  %v15660_v59 = vld [vmem:[#allocation13_spill] sm:$0xff]  ;;  %v1999_v2 = vmul.f32 %v15648_v43, %v1475_v3 }
 0x1a1   : > { %v1986_v48 = vmul.f32 %v15648_v43, %v15658_v38  ;;  %v1987_v28 = vmul.f32 %v15648_v43, %v15659_v6  ;;  %v1988_v60 = vmul.f32 %v15648_v43, %v15660_v59  ;;  %v15661_v33 = vld [vmem:[#allocation35_spill] sm:$0xff]  ;;  %v15662_v55 = vld [vmem:[#allocation85_spill] sm:$0xff]  ;;  %v15663_v61 = vld [vmem:[#allocation36_spill] sm:$0xff] }
 0x1a2   : > { %v1989_v45 = vmul.f32 %v15648_v43, %v15661_v33  ;;  %v1990_v31 = vmul.f32 %v15648_v43, %v15662_v55  ;;  %v1991_v40 = vmul.f32 %v15648_v43, %v15663_v61  ;;  %v15664_v34 = vld [vmem:[#allocation44_spill] sm:$0xff]  ;;  %v15665_v10 = vld [vmem:[#allocation45_spill] sm:$0xff]  ;;  %v15666_v9 = vld [vmem:[#allocation86_spill] sm:$0xff]  ;;  %v1997_v55 = vmul.f32 %v15648_v43, %v7748_v17 }
 0x1a3   : > { %v1992_v13 = vmul.f32 %v15648_v43, %v15664_v34  ;;  %v1993_v38 = vmul.f32 %v15648_v43, %v15665_v10  ;;  %v1994_v6 = vmul.f32 %v15648_v43, %v15666_v9  ;;  %v15667_v5 = vld [vmem:[#allocation70_spill] sm:$0xff]  ;;  %v15668_v49 = vld [vmem:[#allocation91_spill] sm:$0xff]  ;;  %v1998_v61 = vmul.f32 %v15648_v43, %v1474_v51 }
 0x1a4   : > { %v1995_v59 = vmul.f32 %v15648_v43, %v15667_v5  ;;  %v1996_v33 = vmul.f32 %v15648_v43, %v15668_v49  ;;  %v8077_v34 = vadd.f32 %v1976_v25, %v7767_v12  ;;  %v8080_v10 = vadd.f32 %v1977_v62, %v7770_v47  ;;  %v15724_v43 = vld [vmem:[#allocation55_spill] sm:$0xff] }
 0x1a5   : > { %v8083_v9 = vadd.f32 %v1978_v7, %v7773_v54  ;;  %v8086_v5 = vadd.f32 %v1979_v1, %v7776_v21  ;;  %v8089_v49 = vadd.f32 %v1980_v50, %v7779_v26  ;;  %v8092_v17 = vadd.f32 %v1981_v11, %v7782_v37  ;;  %v15669_v54 = vld [vmem:[#allocation71_spill] sm:$0xff]  ;;  %v15670_v21 = vld [vmem:[#allocation106_spill] sm:$0xff]  ;;  %v15673_v37 = vld [vmem:[#allocation108_spill] sm:$0xff] }
 0x1a6   : > { %v8095_v51 = vadd.f32 %v1982_v41, %v7785_v14  ;;  %v8098_v12 = vadd.f32 %v1983_v16, %v7788_v46  ;;  %v8101_v47 = vadd.f32 %v1984_v19, %v7791_v24  ;;  %v8104_v25 = vadd.f32 %v1985_v44, %v15669_v54  ;;  %v15671_v26 = vld [vmem:[#allocation107_spill] sm:$0xff]  ;;  %v15675_v14 = vld [vmem:[#allocation24_spill] sm:$0xff]  ;;  %v15677_v46 = vld [vmem:[#allocation25_spill] sm:$0xff] }
 0x1a7   : > { %v8107_v62 = vadd.f32 %v1986_v48, %v15670_v21  ;;  %v8110_v7 = vadd.f32 %v1987_v28, %v15671_v26  ;;  %v8113_v1 = vadd.f32 %v1988_v60, %v15673_v37  ;;  %v8116_v50 = vadd.f32 %v1989_v45, %v15675_v14  ;;  %v15679_v24 = vld [vmem:[#allocation26_spill] sm:$0xff]  ;;  %v15681_v16 = vld [vmem:[#allocation105_spill] sm:$0xff]  ;;  %v15683_v19 = vld [vmem:[#allocation87_spill] sm:$0xff] }
 0x1a8   : > { %v8119_v11 = vadd.f32 %v1990_v31, %v15677_v46  ;;  %v8122_v41 = vadd.f32 %v1991_v40, %v15679_v24  ;;  %v8125_v3 = vadd.f32 %v1992_v13, %v15681_v16  ;;  %v8128_v44 = vadd.f32 %v1993_v38, %v15683_v19  ;;  %v15685_v48 = vld [vmem:[#allocation46_spill] sm:$0xff]  ;;  %v15687_v60 = vld [vmem:[#allocation51_spill] sm:$0xff]  ;;  %v15689_v45 = vld [vmem:[#allocation52_spill] sm:$0xff] }
 0x1a9   : > { %15672 = vst [vmem:[#allocation96_spill] sm:$0xff] %v8110_v7  ;;  %15674 = vst [vmem:[#allocation47_spill] sm:$0xff] %v8113_v1  ;;  %v8131_v28 = vadd.f32 %v1994_v6, %v15685_v48  ;;  %v8134_v54 = vadd.f32 %v1995_v59, %v15687_v60  ;;  %v8137_v21 = vadd.f32 %v1996_v33, %v15689_v45  ;;  %v15691_v31 = vld [vmem:[#allocation53_spill] sm:$0xff]  ;;  %v15693_v40 = vld [vmem:[#allocation58_spill] sm:$0xff] }
 0x1aa   : > { %15676 = vst [vmem:[#allocation43_spill] sm:$0xff] %v8116_v50  ;;  %15678 = vst [vmem:[#allocation90_spill] sm:$0xff] %v8119_v11  ;;  %v8140_v26 = vadd.f32 %v1997_v55, %v15691_v31  ;;  %v8143_v37 = vadd.f32 %v1998_v61, %v15693_v40  ;;  %v15695_v13 = vld [vmem:[#allocation59_spill] sm:$0xff]  ;;  %v15697_v38 = vld [vmem:[#allocation60_spill] sm:$0xff] }
 0x1ab   : > { %15680 = vst [vmem:[#allocation77_spill] sm:$0xff] %v8122_v41  ;;  %15682 = vst [vmem:[#allocation84_spill] sm:$0xff] %v8125_v3  ;;  %v8146_v14 = vadd.f32 %v1999_v2, %v15695_v13  ;;  %v8150_v46 = vadd.f32 %v7926_v32, %v15697_v38  ;;  %v15699_v6 = vld [vmem:[#allocation65_spill] sm:$0xff]  ;;  %v15700_v24 = vld [vmem:[#allocation92_spill] sm:$0xff] }
 0x1ac   : > { %15684 = vst [vmem:[#allocation78_spill] sm:$0xff] %v8128_v44  ;;  %15686 = vst [vmem:[#allocation82_spill] sm:$0xff] %v8131_v28  ;;  %v8154_v59 = vadd.f32 %v15700_v24, %v15699_v6  ;;  %v15702_v16 = vld [vmem:[#allocation66_spill] sm:$0xff]  ;;  %v15703_v33 = vld [vmem:[#allocation89_spill] sm:$0xff] }
 0x1ad   : > { %15688 = vst [vmem:[#allocation83_spill] sm:$0xff] %v8134_v54  ;;  %15690 = vst [vmem:[#allocation100_spill] sm:$0xff] %v8137_v21  ;;  %v8158_v19 = vadd.f32 %v15703_v33, %v15702_v16  ;;  %v15705_v55 = vld [vmem:[#allocation67_spill] sm:$0xff]  ;;  %v15707_v61 = vld [vmem:[#allocation72_spill] sm:$0xff] }
 0x1ae   : > { %15692 = vst [vmem:[#allocation31_spill] sm:$0xff] %v8140_v26  ;;  %15694 = vst [vmem:[#allocation17_spill] sm:$0xff] %v8143_v37  ;;  %v8162_v48 = vadd.f32 %v7938_v23, %v15705_v55  ;;  %v8166_v2 = vadd.f32 %v7942_v39, %v15707_v61  ;;  %v15709_v60 = vld [vmem:[#allocation73_spill] sm:$0xff]  ;;  %v15710_v45 = vld [vmem:[#allocation99_spill] sm:$0xff] }
 0x1af   : > { %15696 = vst [vmem:[#allocation23_spill] sm:$0xff] %v8146_v14  ;;  %15698 = vst [vmem:[#allocation98_spill] sm:$0xff] %v8150_v46  ;;  %v8170_v32 = vadd.f32 %v15710_v45, %v15709_v60  ;;  %v15712_v31 = vld [vmem:[#allocation74_spill] sm:$0xff]  ;;  %v15714_v13 = vld [vmem:[#allocation79_spill] sm:$0xff] }
 0x1b0   : > { %15701 = vst [vmem:[#allocation88_spill] sm:$0xff] %v8154_v59  ;;  %15704 = vst [vmem:[#allocation14_spill] sm:$0xff] %v8158_v19  ;;  %v8174_v40 = vadd.f32 %v7950_v0, %v15712_v31  ;;  %v8178_v38 = vadd.f32 %v7954_v30, %v15714_v13  ;;  %v15716_v6 = vld [vmem:[#allocation104_spill] sm:$0xff]  ;;  %v15718_v16 = vld [vmem:[#allocation75_spill] sm:$0xff] }
 0x1b1   : > { %15706 = vst [vmem:[#allocation15_spill] sm:$0xff] %v8162_v48  ;;  %15708 = vst [vmem:[#allocation5_spill] sm:$0xff] %v8166_v2  ;;  %v15717_v24 = vld [vmem:[#allocation48_spill] sm:$0xff]  ;;  %v15719_v39 = vld [vmem:[#allocation97_spill] sm:$0xff] }
 0x1b2   : > { %15711 = vst [vmem:[#allocation93_spill] sm:$0xff] %v8170_v32  ;;  %15713 = vst [vmem:[#allocation94_spill] sm:$0xff] %v8174_v40  ;;  %v1828_v23 = vmul.f32 %v15717_v24, %v15716_v6  ;;  %v1829_v33 = vmul.f32 %v15717_v24, %v15718_v16  ;;  %v1830_v55 = vmul.f32 %v15717_v24, %v15719_v39  ;;  %v15720_v61 = vld [vmem:[#allocation8_spill] sm:$0xff]  ;;  %v15721_v45 = vld [vmem:[#allocation9_spill] sm:$0xff] }
 0x1b3   : > { %15715 = vst [vmem:[#allocation37_spill] sm:$0xff] %v8178_v38  ;;  %v1831_v60 = vmul.f32 %v15717_v24, %v15720_v61  ;;  %v1832_v0 = vmul.f32 %v15717_v24, %v15721_v45  ;;  %v15722_v31 = vld [vmem:[#allocation11_spill] sm:$0xff]  ;;  %v15723_v13 = vld [vmem:[#allocation54_spill] sm:$0xff]  ;;  %v1835_v16 = vmul.f32 %v15717_v24, %v15724_v43  ;;  %v15725_v38 = vld [vmem:[#allocation56_spill] sm:$0xff] }
 0x1b4   : > { %v1833_v30 = vmul.f32 %v15717_v24, %v15722_v31  ;;  %v1834_v6 = vmul.f32 %v15717_v24, %v15723_v13  ;;  %v1836_v39 = vmul.f32 %v15717_v24, %v15725_v38  ;;  %v15726_v40 = vld [vmem:[#allocation57_spill] sm:$0xff]  ;;  %v15728_v2 = vld [vmem:[#allocation62_spill] sm:$0xff]  ;;  %v15729_v31 = vld [vmem:[#allocation63_spill] sm:$0xff] }
 0x1b5   : > { %v1837_v61 = vmul.f32 %v15717_v24, %v15726_v40  ;;  %v15727_v32 = vld [vmem:[#allocation61_spill] sm:$0xff]  ;;  %v1839_v48 = vmul.f32 %v15717_v24, %v15728_v2  ;;  %v1840_v19 = vmul.f32 %v15717_v24, %v15729_v31  ;;  %v15730_v59 = vld [vmem:[#allocation64_spill] sm:$0xff]  ;;  %v15733_v40 = vld [vmem:[#allocation18_spill] sm:$0xff] }
 0x1b6   : > { %v1838_v45 = vmul.f32 %v15717_v24, %v15727_v32  ;;  %v1841_v13 = vmul.f32 %v15717_v24, %v15730_v59  ;;  %v15731_v46 = vld [vmem:[#allocation68_spill] sm:$0xff]  ;;  %v1844_v37 = vmul.f32 %v15717_v24, %v15733_v40  ;;  %v15734_v32 = vld [vmem:[#allocation19_spill] sm:$0xff]  ;;  %v8221_v54 = vld [vmem:[%s5246_s17 + $0x181] sm:$0xff] }
 0x1b7   : > { %v1842_v43 = vmul.f32 %v15717_v24, %v15731_v46  ;;  %v15732_v14 = vld [vmem:[#allocation16_spill] sm:$0xff]  ;;  %v1845_v2 = vmul.f32 %v15717_v24, %v15734_v32  ;;  %15737 = vst [vmem:[#allocation69_spill] sm:$0xff] %v8221_v54  ;;  %v8224_v46 = vld [vmem:[%s5246_s17 + $0x189] sm:$0x3f]  ;;  %v15742_v41 = vld [vmem:[#allocation39_spill] sm:$0xff] }
 0x1b8   : > { %v1843_v38 = vmul.f32 %v15717_v24, %v15732_v14  ;;  %v15735_v26 = vld [vmem:[#allocation20_spill] sm:$0xff]  ;;  %15738 = vst [vmem:[#allocation38_spill] sm:$0xff] %v8224_v46  ;;  %v15739_v14 = vld [vmem:[#allocation21_spill] sm:$0xff]  ;;  %v15740_v40 = vld [vmem:[#allocation22_spill] sm:$0xff] }
 0x1b9   : > { %v1846_v31 = vmul.f32 %v15717_v24, %v15735_v26  ;;  %v15736_v21 = vld [vmem:[#allocation76_spill] sm:$0xff]  ;;  %v1848_v28 = vmul.f32 %v15717_v24, %v15739_v14  ;;  %v1849_v44 = vmul.f32 %v15717_v24, %v15740_v40  ;;  %v1851_v26 = vmul.f32 %v15717_v24, %v15742_v41  ;;  %v15745_v50 = vld [vmem:[#allocation81_spill] sm:$0xff] }
 0x1ba   : > { %v1847_v59 = vmul.f32 %v15717_v24, %v15736_v21  ;;  %v15741_v3 = vld [vmem:[#allocation28_spill] sm:$0xff]  ;;  %v8240_v1 = vmul.f32 %v15717_v24, %v15745_v50  ;;  %v8244_v14 = vmul.f32 %v15717_v24, %v8221_v54  ;;  %v8248_v40 = vmul.f32 %v15717_v24, %v8224_v46  ;;  %v4842_v41 = vld [vmem:[%s5246_s17 + $0x201] sm:$0x3f] }
 0x1bb   : > { %v1850_v32 = vmul.f32 %v15717_v24, %v15741_v3  ;;  %v15743_v11 = vld [vmem:[#allocation80_spill] sm:$0xff] }
 0x1bc   : > { %v8236_v21 = vmul.f32 %v15717_v24, %v15743_v11  ;;  %15746 = vst [vmem:[#allocation12_spill] sm:$0xff] %v8248_v40  ;;  %v4841_v3 = vld [vmem:[%s5246_s17 + $0x1f9] sm:$0xff]  ;;  %v8256_v11 = vmul.f32 %v4842_v41, %v15717_v24  ;;  %v8273_v40 = vadd.f32 %v1828_v23, %v7957_v20  ;;  %v8279_v41 = vadd.f32 %v1830_v55, %v7963_v22  ;;  %v8321_v23 = vld [vmem:[%s5246_s17 + $0x1e2] sm:$0xff] }
 0x1bd   : > { %v8252_v7 = vmul.f32 %v4841_v3, %v15717_v24  ;;  %v8266_v54 = vld [vmem:[%s5246_s17 + $0x219] sm:$0x3f]  ;;  %v8276_v3 = vadd.f32 %v1829_v33, %v7960_v52  ;;  %v8291_v20 = vadd.f32 %v1834_v6, %v7975_v63  ;;  %v8294_v52 = vadd.f32 %v1835_v16, %v7978_v27  ;;  %15750 = vst [vmem:[#allocation36_spill] sm:$0xff] %v8321_v23  ;;  %v8363_v6 = vld [vmem:[%s5246_s17 + $0x22a] sm:$0xff]  ;;  %v8366_v16 = vld [vmem:[%s5246_s17 + $0x232] sm:$0x3f] }
 0x1be   : > { %15744 = vst [vmem:[#allocation10_spill] sm:$0xff] %v8236_v21  ;;  %v8259_v21 = vld [vmem:[%s5246_s17 + $0x211] sm:$0xff]  ;;  %v8270_v46 = vmul.f32 %v8266_v54, %v15717_v24  ;;  %v8297_v22 = vadd.f32 %v1836_v39, %v7981_v56  ;;  %v8309_v63 = vadd.f32 %v1840_v19, %v7993_v8  ;;  %v8312_v27 = vadd.f32 %v1841_v13, %v7996_v35  ;;  %v15754_v35 = vld [vmem:[#allocation33_spill] sm:$0xff]  ;;  %v8348_v55 = vld [vmem:[%s5246_s17 + $0x21a] sm:$0x3f] }
 0x1bf   : > { %15747 = vst [vmem:[#allocation13_spill] sm:$0xff] %v8259_v21  ;;  %v8263_v50 = vmul.f32 %v8259_v21, %v15717_v24  ;;  %v8282_v21 = vadd.f32 %v1831_v60, %v7966_v15  ;;  %v8288_v24 = vadd.f32 %v1833_v30, %v7972_v29  ;;  %v8300_v15 = vadd.f32 %v1837_v61, %v7984_v57  ;;  %v15758_v19 = vld [vmem:[#allocation29_spill] sm:$0xff]  ;;  %v8345_v33 = vld [vmem:[%s5246_s17 + $0x212] sm:$0xff]  ;;  %v15763_v60 = vld [vmem:[#allocation30_spill] sm:$0xff] }
 0x1c0   : > { %v8306_v29 = vadd.f32 %v1839_v48, %v7990_v36  ;;  %v8315_v56 = vadd.f32 %v1842_v43, %v7999_v58  ;;  %v8318_v57 = vadd.f32 %v1843_v38, %v8002_v18  ;;  %v8327_v36 = vld [vmem:[%s5246_s17 + $0x1fa] sm:$0xff]  ;;  %v8330_v8 = vadd.f32 %v1844_v37, %v8005_v4  ;;  %v15756_v43 = vld [vmem:[#allocation103_spill] sm:$0xff]  ;;  %v8342_v38 = vld [vmem:[%s5246_s17 + $0x202] sm:$0x3f]  ;;  %15761 = vst [vmem:[#allocation107_spill] sm:$0xff] %v8345_v33 }
 0x1c1   : > { %15748 = vst [vmem:[#allocation35_spill] sm:$0xff] %v8263_v50  ;;  %v8285_v50 = vadd.f32 %v1832_v0, %v7969_v53  ;;  %v8303_v53 = vadd.f32 %v1838_v45, %v7987_v42  ;;  %v8324_v42 = vld [vmem:[%s5246_s17 + $0x1ea] sm:$0x3f]  ;;  %15752 = vst [vmem:[#allocation45_spill] sm:$0xff] %v8327_v36  ;;  %v8333_v58 = vadd.f32 %v1845_v2, %v15754_v35  ;;  %v15767_v0 = vld [vmem:[#allocation32_spill] sm:$0xff] }
 0x1c2   : > { %15749 = vst [vmem:[#allocation85_spill] sm:$0xff] %v8318_v57  ;;  %15751 = vst [vmem:[#allocation44_spill] sm:$0xff] %v8324_v42  ;;  %v8336_v18 = vadd.f32 %v1846_v31, %v15756_v43  ;;  %v8339_v48 = vadd.f32 %v1847_v59, %v15758_v19  ;;  %v8351_v4 = vadd.f32 %v1848_v28, %v15763_v60  ;;  %v15765_v37 = vld [vmem:[#allocation34_spill] sm:$0xff]  ;;  %v15769_v59 = vld [vmem:[#allocation27_spill] sm:$0xff] }
 0x1c3   : > { %15753 = vst [vmem:[#allocation86_spill] sm:$0xff] %v8330_v8  ;;  %15755 = vst [vmem:[#allocation70_spill] sm:$0xff] %v8333_v58  ;;  %v8354_v2 = vadd.f32 %v1849_v44, %v15765_v37  ;;  %v8357_v30 = vadd.f32 %v1850_v32, %v15767_v0  ;;  %v8360_v13 = vadd.f32 %v1851_v26, %v15769_v59  ;;  %v8369_v39 = vld [vmem:[%s5246_s17 + $0x242] sm:$0xff]  ;;  %v8372_v28 = vld [vmem:[%s5246_s17 + $0x24a] sm:$0x3f] }
 0x1c4   : > { %15757 = vst [vmem:[#allocation91_spill] sm:$0xff] %v8336_v18  ;;  %15759 = vst [vmem:[#allocation71_spill] sm:$0xff] %v8339_v48  ;;  %v8375_v61 = vld [vmem:[%s5246_s17 + $0x25a] sm:$0xff]  ;;  %v8378_v44 = vld [vmem:[%s5246_s17 + $0x262] sm:$0x3f] }
 0x1c5   : > { %15760 = vst [vmem:[#allocation106_spill] sm:$0xff] %v8342_v38  ;;  %15762 = vst [vmem:[#allocation108_spill] sm:$0xff] %v8348_v55  ;;  %v15777_v32 = vld [vmem:[#allocation50_spill] sm:$0xff]  ;;  %v8389_v43 = vld [vmem:[%s5246_s17 + $0x272] sm:$0xff] }
 0x1c6   : > { %15764 = vst [vmem:[#allocation24_spill] sm:$0xff] %v8351_v4  ;;  %15766 = vst [vmem:[#allocation25_spill] sm:$0xff] %v8354_v2  ;;  %v2164_v45 = vmul.f32 %v15777_v32, %v8321_v23  ;;  %v2165_v26 = vmul.f32 %v15777_v32, %v8324_v42  ;;  %v2166_v31 = vmul.f32 %v15777_v32, %v8327_v36  ;;  %v8392_v19 = vld [vmem:[%s5246_s17 + $0x27a] sm:$0x3f]  ;;  %v8395_v60 = vld [vmem:[%s5246_s17 + $0x28a] sm:$0xff] }
 0x1c7   : > { %15768 = vst [vmem:[#allocation26_spill] sm:$0xff] %v8357_v30  ;;  %15770 = vst [vmem:[#allocation105_spill] sm:$0xff] %v8360_v13  ;;  %v2167_v35 = vmul.f32 %v15777_v32, %v8342_v38  ;;  %v2168_v37 = vmul.f32 %v15777_v32, %v8345_v33  ;;  %v2169_v0 = vmul.f32 %v15777_v32, %v8348_v55  ;;  %v8406_v23 = vld [vmem:[%s5246_s17 + $0x292] sm:$0x3f]  ;;  %v8409_v38 = vld [vmem:[%s5246_s17 + $0x2a2] sm:$0xff] }
 0x1c8   : > { %15771 = vst [vmem:[#allocation87_spill] sm:$0xff] %v8363_v6  ;;  %15772 = vst [vmem:[#allocation46_spill] sm:$0xff] %v8366_v16  ;;  %v2170_v59 = vmul.f32 %v15777_v32, %v8363_v6  ;;  %v2171_v42 = vmul.f32 %v15777_v32, %v8366_v16  ;;  %v8412_v36 = vld [vmem:[%s5246_s17 + $0x2aa] sm:$0x3f]  ;;  %v2172_v33 = vmul.f32 %v15777_v32, %v8369_v39  ;;  %v8423_v13 = vld [vmem:[%s5246_s17 + $0x2ba] sm:$0xff] }
 0x1c9   : > { %15773 = vst [vmem:[#allocation51_spill] sm:$0xff] %v8369_v39  ;;  %15774 = vst [vmem:[#allocation52_spill] sm:$0xff] %v8372_v28  ;;  %v2173_v55 = vmul.f32 %v15777_v32, %v8372_v28  ;;  %v2174_v6 = vmul.f32 %v15777_v32, %v8375_v61  ;;  %v2175_v16 = vmul.f32 %v15777_v32, %v8378_v44  ;;  %v8426_v30 = vld [vmem:[%s5246_s17 + $0x2c2] sm:$0x3f]  ;;  %v8429_v2 = vld [vmem:[%s5246_s17 + $0x2d2] sm:$0xff] }
 0x1ca   : > { %15775 = vst [vmem:[#allocation53_spill] sm:$0xff] %v8375_v61  ;;  %15776 = vst [vmem:[#allocation58_spill] sm:$0xff] %v8378_v44  ;;  %v2176_v4 = vmul.f32 %v15777_v32, %v8389_v43  ;;  %v2177_v39 = vmul.f32 %v15777_v32, %v8392_v19  ;;  %v2178_v28 = vmul.f32 %v15777_v32, %v8395_v60  ;;  %v8440_v48 = vld [vmem:[%s5246_s17 + $0x2da] sm:$0x3f]  ;;  %v8443_v44 = vld [vmem:[%s5246_s17 + $0x2ea] sm:$0xff] }
 0x1cb   : > { %15778 = vst [vmem:[#allocation59_spill] sm:$0xff] %v8389_v43  ;;  %15779 = vst [vmem:[#allocation60_spill] sm:$0xff] %v8392_v19  ;;  %v2179_v61 = vmul.f32 %v15777_v32, %v8406_v23  ;;  %v8446_v18 = vld [vmem:[%s5246_s17 + $0x2f2] sm:$0x3f]  ;;  %v2180_v58 = vmul.f32 %v15777_v32, %v8409_v38  ;;  %v2181_v43 = vmul.f32 %v15777_v32, %v8412_v36 }
 0x1cc   : > { %15780 = vst [vmem:[#allocation65_spill] sm:$0xff] %v8395_v60  ;;  %15781 = vst [vmem:[#allocation92_spill] sm:$0xff] %v8406_v23  ;;  %v2182_v19 = vmul.f32 %v15777_v32, %v8423_v13  ;;  %v2183_v60 = vmul.f32 %v15777_v32, %v8426_v30  ;;  %v2184_v23 = vmul.f32 %v15777_v32, %v8429_v2 }
 0x1cd   : > { %15782 = vst [vmem:[#allocation66_spill] sm:$0xff] %v8409_v38  ;;  %15783 = vst [vmem:[#allocation89_spill] sm:$0xff] %v8412_v36  ;;  %v2185_v8 = vmul.f32 %v15777_v32, %v8440_v48  ;;  %v2186_v57 = vmul.f32 %v15777_v32, %v8443_v44  ;;  %v2187_v38 = vmul.f32 %v15777_v32, %v8446_v18 }
 0x1ce   : > { %15784 = vst [vmem:[#allocation67_spill] sm:$0xff] %v8423_v13  ;;  %15785 = vst [vmem:[#allocation72_spill] sm:$0xff] %v8426_v30  ;;  %v8465_v36 = vadd.f32 %v2164_v45, %v8077_v34  ;;  %v8468_v13 = vadd.f32 %v2165_v26, %v8080_v10  ;;  %v8471_v30 = vadd.f32 %v2166_v31, %v8083_v9 }
 0x1cf   : > { %15786 = vst [vmem:[#allocation73_spill] sm:$0xff] %v8429_v2  ;;  %15787 = vst [vmem:[#allocation99_spill] sm:$0xff] %v8440_v48  ;;  %v8474_v2 = vadd.f32 %v2167_v35, %v8086_v5  ;;  %v8477_v48 = vadd.f32 %v2168_v37, %v8089_v49  ;;  %v8483_v32 = vadd.f32 %v2170_v59, %v8095_v51  ;;  %v15801_v49 = vld [vmem:[#allocation96_spill] sm:$0xff]  ;;  %v15805_v51 = vld [vmem:[#allocation43_spill] sm:$0xff] }
 0x1d0   : > { %15788 = vst [vmem:[#allocation74_spill] sm:$0xff] %v8443_v44  ;;  %15789 = vst [vmem:[#allocation79_spill] sm:$0xff] %v8446_v18  ;;  %v8480_v44 = vadd.f32 %v2169_v0, %v8092_v17  ;;  %v8486_v34 = vadd.f32 %v2171_v42, %v8098_v12  ;;  %v8489_v10 = vadd.f32 %v2172_v33, %v8101_v47  ;;  %v15803_v17 = vld [vmem:[#allocation47_spill] sm:$0xff]  ;;  %v15807_v12 = vld [vmem:[#allocation90_spill] sm:$0xff] }
 0x1d1   : > { %15790 = vst [vmem:[#allocation104_spill] sm:$0xff] %v8465_v36  ;;  %15791 = vst [vmem:[#allocation48_spill] sm:$0xff] %v8468_v13  ;;  %v8492_v9 = vadd.f32 %v2173_v55, %v8104_v25  ;;  %v8495_v5 = vadd.f32 %v2174_v6, %v8107_v62  ;;  %v8498_v45 = vadd.f32 %v2175_v16, %v15801_v49  ;;  %v15809_v47 = vld [vmem:[#allocation77_spill] sm:$0xff]  ;;  %v15811_v25 = vld [vmem:[#allocation84_spill] sm:$0xff] }
 0x1d2   : > { %15792 = vst [vmem:[#allocation75_spill] sm:$0xff] %v8471_v30  ;;  %15793 = vst [vmem:[#allocation97_spill] sm:$0xff] %v8474_v2  ;;  %v8501_v26 = vadd.f32 %v2176_v4, %v15803_v17  ;;  %v8504_v31 = vadd.f32 %v2177_v39, %v15805_v51  ;;  %v8507_v42 = vadd.f32 %v2178_v28, %v15807_v12  ;;  %v15813_v62 = vld [vmem:[#allocation78_spill] sm:$0xff]  ;;  %v15817_v4 = vld [vmem:[#allocation83_spill] sm:$0xff] }
 0x1d3   : > { %15794 = vst [vmem:[#allocation8_spill] sm:$0xff] %v8477_v48  ;;  %15795 = vst [vmem:[#allocation9_spill] sm:$0xff] %v8480_v44  ;;  %v8510_v33 = vadd.f32 %v2179_v61, %v15809_v47  ;;  %v8513_v55 = vadd.f32 %v2180_v58, %v15811_v25  ;;  %v8516_v6 = vadd.f32 %v2181_v43, %v15813_v62  ;;  %v15815_v16 = vld [vmem:[#allocation82_spill] sm:$0xff]  ;;  %v15819_v37 = vld [vmem:[#allocation100_spill] sm:$0xff] }
 0x1d4   : > { %15796 = vst [vmem:[#allocation11_spill] sm:$0xff] %v8483_v32  ;;  %15797 = vst [vmem:[#allocation33_spill] sm:$0xff] %v8486_v34  ;;  %v8519_v35 = vadd.f32 %v2182_v19, %v15815_v16  ;;  %v8522_v39 = vadd.f32 %v2183_v60, %v15817_v4  ;;  %v8525_v28 = vadd.f32 %v2184_v23, %v15819_v37  ;;  %v15821_v0 = vld [vmem:[#allocation31_spill] sm:$0xff]  ;;  %v15823_v58 = vld [vmem:[#allocation17_spill] sm:$0xff] }
 0x1d5   : > { %15798 = vst [vmem:[#allocation103_spill] sm:$0xff] %v8489_v10  ;;  %15799 = vst [vmem:[#allocation29_spill] sm:$0xff] %v8492_v9  ;;  %v8528_v61 = vadd.f32 %v2185_v8, %v15821_v0  ;;  %v8531_v59 = vadd.f32 %v2186_v57, %v15823_v58  ;;  %v15825_v49 = vld [vmem:[#allocation23_spill] sm:$0xff]  ;;  %v15827_v19 = vld [vmem:[#allocation98_spill] sm:$0xff] }
 0x1d6   : > { %15800 = vst [vmem:[#allocation30_spill] sm:$0xff] %v8495_v5  ;;  %15802 = vst [vmem:[#allocation34_spill] sm:$0xff] %v8498_v45  ;;  %v8534_v43 = vadd.f32 %v2187_v38, %v15825_v49  ;;  %v15828_v17 = vld [vmem:[#allocation10_spill] sm:$0xff]  ;;  %v15829_v60 = vld [vmem:[#allocation88_spill] sm:$0xff] }
 0x1d7   : > { %15804 = vst [vmem:[#allocation32_spill] sm:$0xff] %v8501_v26  ;;  %15806 = vst [vmem:[#allocation27_spill] sm:$0xff] %v8504_v31  ;;  %v8538_v51 = vadd.f32 %v15828_v17, %v15827_v19  ;;  %v8542_v12 = vadd.f32 %v8240_v1, %v15829_v60  ;;  %v15830_v23 = vld [vmem:[#allocation14_spill] sm:$0xff]  ;;  %v15831_v8 = vld [vmem:[#allocation15_spill] sm:$0xff] }
 0x1d8   : > { %15808 = vst [vmem:[#allocation96_spill] sm:$0xff] %v8507_v42  ;;  %15810 = vst [vmem:[#allocation47_spill] sm:$0xff] %v8510_v33  ;;  %v8546_v47 = vadd.f32 %v8244_v14, %v15830_v23  ;;  %v15832_v25 = vld [vmem:[#allocation12_spill] sm:$0xff]  ;;  %v15833_v62 = vld [vmem:[#allocation5_spill] sm:$0xff] }
 0x1d9   : > { %15812 = vst [vmem:[#allocation43_spill] sm:$0xff] %v8513_v55  ;;  %15814 = vst [vmem:[#allocation90_spill] sm:$0xff] %v8516_v6  ;;  %v8550_v57 = vadd.f32 %v15832_v25, %v15831_v8  ;;  %v8554_v38 = vadd.f32 %v8252_v7, %v15833_v62  ;;  %v15834_v16 = vld [vmem:[#allocation93_spill] sm:$0xff]  ;;  %v15835_v37 = vld [vmem:[#allocation94_spill] sm:$0xff] }
 0x1da   : > { %15816 = vst [vmem:[#allocation77_spill] sm:$0xff] %v8519_v35  ;;  %15818 = vst [vmem:[#allocation84_spill] sm:$0xff] %v8522_v39  ;;  %v8558_v4 = vadd.f32 %v8256_v11, %v15834_v16  ;;  %v15836_v0 = vld [vmem:[#allocation35_spill] sm:$0xff]  ;;  %v15837_v58 = vld [vmem:[#allocation37_spill] sm:$0xff] }
 0x1db   : > { %15820 = vst [vmem:[#allocation78_spill] sm:$0xff] %v8525_v28  ;;  %15822 = vst [vmem:[#allocation82_spill] sm:$0xff] %v8528_v61  ;;  %v8562_v1 = vadd.f32 %v15836_v0, %v15835_v37  ;;  %v8566_v14 = vadd.f32 %v8270_v46, %v15837_v58  ;;  %v4845_v49 = vld [vmem:[%s5246_s17 + $0x61] sm:$0xff]  ;;  %v4846_v60 = vld [vmem:[%s5246_s17 + $0x69] sm:$0x3f] }
 0x1dc   : > { %15824 = vst [vmem:[#allocation83_spill] sm:$0xff] %v8531_v59  ;;  %15826 = vst [vmem:[#allocation100_spill] sm:$0xff] %v8534_v43  ;;  %v15839_v19 = vld [vmem:[#allocation49_spill] sm:$0xff]  ;;  %v15840_v62 = vld [vmem:[#allocation54_spill] sm:$0xff] }
 0x1dd   : > { %15838 = vst [vmem:[#allocation31_spill] sm:$0xff] %v8566_v14  ;;  %v1944_v17 = vmul.f32 %v4845_v49, %v15839_v19  ;;  %v1945_v7 = vmul.f32 %v4846_v60, %v15839_v19  ;;  %v4847_v23 = vld [vmem:[%s5246_s17 + $0x79] sm:$0xff]  ;;  %v4848_v8 = vld [vmem:[%s5246_s17 + $0x81] sm:$0x3f]  ;;  %v1948_v16 = vmul.f32 %v15839_v19, %v15840_v62  ;;  %v15841_v37 = vld [vmem:[#allocation55_spill] sm:$0xff] }
 0x1de   : > { %v1946_v11 = vmul.f32 %v4847_v23, %v15839_v19  ;;  %v1947_v25 = vmul.f32 %v4848_v8, %v15839_v19  ;;  %v1949_v46 = vmul.f32 %v15839_v19, %v15841_v37  ;;  %v15842_v0 = vld [vmem:[#allocation56_spill] sm:$0xff]  ;;  %v15843_v49 = vld [vmem:[#allocation57_spill] sm:$0xff]  ;;  %v15845_v59 = vld [vmem:[#allocation62_spill] sm:$0xff] }
 0x1df   : > { %v1950_v58 = vmul.f32 %v15839_v19, %v15842_v0  ;;  %v1951_v14 = vmul.f32 %v15839_v19, %v15843_v49  ;;  %v15844_v43 = vld [vmem:[#allocation61_spill] sm:$0xff]  ;;  %v1953_v23 = vmul.f32 %v15839_v19, %v15845_v59  ;;  %v15846_v61 = vld [vmem:[#allocation63_spill] sm:$0xff]  ;;  %v15847_v28 = vld [vmem:[#allocation64_spill] sm:$0xff] }
 0x1e0   : > { %v1952_v60 = vmul.f32 %v15839_v19, %v15844_v43  ;;  %v1954_v8 = vmul.f32 %v15839_v19, %v15846_v61  ;;  %v1955_v62 = vmul.f32 %v15839_v19, %v15847_v28  ;;  %v1438_v39 = vld [vmem:[%s5246_s17 + $0x199] sm:$0xff]  ;;  %v1439_v37 = vld [vmem:[%s5246_s17 + $0x1a1] sm:$0x3f]  ;;  %v15850_v55 = vld [vmem:[#allocation18_spill] sm:$0xff] }
 0x1e1   : > { %v15848_v35 = vld [vmem:[#allocation68_spill] sm:$0xff]  ;;  %v1958_v43 = vmul.f32 %v15839_v19, %v15850_v55  ;;  %v15851_v33 = vld [vmem:[#allocation19_spill] sm:$0xff]  ;;  %v15854_v26 = vld [vmem:[#allocation21_spill] sm:$0xff]  ;;  %v1971_v2 = vmul.f32 %v15839_v19, %v1439_v37  ;;  %v8644_v37 = vadd.f32 %v1947_v25, %v8282_v21 }
 0x1e2   : > { %v1956_v0 = vmul.f32 %v15839_v19, %v15848_v35  ;;  %v15849_v6 = vld [vmem:[#allocation16_spill] sm:$0xff]  ;;  %v1959_v59 = vmul.f32 %v15839_v19, %v15851_v33  ;;  %v1962_v35 = vmul.f32 %v15839_v19, %v15854_v26  ;;  %v15855_v45 = vld [vmem:[#allocation22_spill] sm:$0xff]  ;;  %v15857_v9 = vld [vmem:[#allocation39_spill] sm:$0xff]  ;;  %v8665_v21 = vadd.f32 %v1954_v8, %v8303_v53 }
 0x1e3   : > { %v1957_v49 = vmul.f32 %v15839_v19, %v15849_v6  ;;  %v15852_v42 = vld [vmem:[#allocation20_spill] sm:$0xff]  ;;  %v1963_v6 = vmul.f32 %v15839_v19, %v15855_v45  ;;  %v1965_v10 = vmul.f32 %v15839_v19, %v15857_v9  ;;  %v15860_v44 = vld [vmem:[#allocation69_spill] sm:$0xff]  ;;  %v15861_v48 = vld [vmem:[#allocation38_spill] sm:$0xff]  ;;  %v1970_v45 = vmul.f32 %v15839_v19, %v1438_v39 }
 0x1e4   : > { %v1960_v61 = vmul.f32 %v15839_v19, %v15852_v42  ;;  %v15853_v31 = vld [vmem:[#allocation76_spill] sm:$0xff]  ;;  %v15859_v42 = vld [vmem:[#allocation81_spill] sm:$0xff]  ;;  %v1969_v26 = vmul.f32 %v15839_v19, %v15861_v48  ;;  %v1973_v9 = vmul.f32 %v8266_v54, %v15839_v19  ;;  %v8638_v48 = vadd.f32 %v1945_v7, %v8276_v3  ;;  %v15865_v53 = vld [vmem:[#allocation70_spill] sm:$0xff] }
 0x1e5   : > { %v1961_v28 = vmul.f32 %v15839_v19, %v15853_v31  ;;  %v15856_v5 = vld [vmem:[#allocation28_spill] sm:$0xff]  ;;  %v1967_v32 = vmul.f32 %v15839_v19, %v15859_v42  ;;  %v1968_v31 = vmul.f32 %v15839_v19, %v15860_v44  ;;  %v4850_v42 = vld [vmem:[%s5246_s17 + $0x231] sm:$0x3f]  ;;  %v8635_v44 = vadd.f32 %v1944_v17, %v8273_v40 }
 0x1e6   : > { %v1964_v55 = vmul.f32 %v15839_v19, %v15856_v5  ;;  %v15858_v33 = vld [vmem:[#allocation80_spill] sm:$0xff]  ;;  %v15862_v5 = vld [vmem:[#allocation13_spill] sm:$0xff]  ;;  %v8632_v36 = vmul.f32 %v4850_v42, %v15839_v19  ;;  %v8641_v39 = vadd.f32 %v1946_v11, %v8279_v41  ;;  %v8647_v54 = vadd.f32 %v1948_v16, %v8285_v50  ;;  %v15891_v42 = vld [vmem:[#allocation58_spill] sm:$0xff] }
 0x1e7   : > { %v1966_v34 = vmul.f32 %v15839_v19, %v15858_v33  ;;  %v1972_v30 = vmul.f32 %v15862_v5, %v15839_v19  ;;  %v4849_v33 = vld [vmem:[%s5246_s17 + $0x229] sm:$0xff]  ;;  %v8650_v5 = vadd.f32 %v1949_v46, %v8288_v24  ;;  %v8656_v40 = vadd.f32 %v1951_v14, %v8294_v52 }
 0x1e8   : > { %v1974_v13 = vmul.f32 %v4849_v33, %v15839_v19  ;;  %v8653_v19 = vadd.f32 %v1950_v58, %v8291_v20  ;;  %v8659_v3 = vadd.f32 %v1952_v60, %v8297_v22  ;;  %v8662_v41 = vadd.f32 %v1953_v23, %v8300_v15  ;;  %v15863_v22 = vld [vmem:[#allocation85_spill] sm:$0xff]  ;;  %v15864_v15 = vld [vmem:[#allocation86_spill] sm:$0xff] }
 0x1e9   : > { %v8668_v50 = vadd.f32 %v1955_v62, %v8306_v29  ;;  %v8671_v24 = vadd.f32 %v1956_v0, %v8309_v63  ;;  %v8674_v20 = vadd.f32 %v1957_v49, %v8312_v27  ;;  %v8677_v52 = vadd.f32 %v1958_v43, %v8315_v56  ;;  %v15866_v29 = vld [vmem:[#allocation91_spill] sm:$0xff]  ;;  %v15868_v27 = vld [vmem:[#allocation24_spill] sm:$0xff]  ;;  %v15869_v56 = vld [vmem:[#allocation25_spill] sm:$0xff] }
 0x1ea   : > { %v8680_v14 = vadd.f32 %v1959_v59, %v15863_v22  ;;  %v8683_v17 = vadd.f32 %v1960_v61, %v15864_v15  ;;  %v8686_v7 = vadd.f32 %v1961_v28, %v15865_v53  ;;  %v8689_v11 = vadd.f32 %v1962_v35, %v15866_v29  ;;  %v15867_v63 = vld [vmem:[#allocation71_spill] sm:$0xff]  ;;  %v15870_v58 = vld [vmem:[#allocation26_spill] sm:$0xff]  ;;  %v15871_v23 = vld [vmem:[#allocation105_spill] sm:$0xff] }
 0x1eb   : > { %v8692_v25 = vadd.f32 %v1963_v6, %v15867_v63  ;;  %v8695_v16 = vadd.f32 %v1964_v55, %v15868_v27  ;;  %v8698_v46 = vadd.f32 %v1965_v10, %v15869_v56  ;;  %v8701_v60 = vadd.f32 %v1966_v34, %v15870_v58  ;;  %v8716_v43 = vld [vmem:[%s5240_s21] sm:$0xff]  ;;  %v15883_v28 = vld [vmem:[#allocation106_spill] sm:$0xff]  ;;  %v15884_v6 = vld [vmem:[#allocation107_spill] sm:$0xff] }
 0x1ec   : > { %v8704_v8 = vadd.f32 %v1967_v32, %v15871_v23  ;;  %v8707_v62 = vadd.f32 %v1968_v31, %v8538_v51  ;;  %v8710_v0 = vadd.f32 %v1969_v26, %v8542_v12  ;;  %v8713_v49 = vadd.f32 %v1970_v45, %v8546_v47  ;;  %15875 = vst [vmem:[#allocation10_spill] sm:$0xff] %v8716_v43  ;;  %v15876_v59 = vld [vmem:[#allocation41_spill] sm:$0xff]  ;;  %v15887_v55 = vld [vmem:[#allocation46_spill] sm:$0xff]  ;;  %v15889_v26 = vld [vmem:[#allocation52_spill] sm:$0xff] }
 0x1ed   : > { %v8720_v10 = vrot.slane %v8716_v43, %v15876_v59  ;;  %v8723_v34 = vadd.f32 %v1971_v2, %v8550_v57  ;;  %v8726_v32 = vadd.f32 %v1972_v30, %v8554_v38  ;;  %v8729_v51 = vadd.f32 %v1973_v9, %v8558_v4  ;;  %v15882_v47 = vld [vmem:[#allocation45_spill] sm:$0xff]  ;;  %v15885_v57 = vld [vmem:[#allocation108_spill] sm:$0xff]  ;;  %v15886_v38 = vld [vmem:[#allocation87_spill] sm:$0xff] }
 0x1ee   : > { %15872 = vst [vmem:[#allocation17_spill] sm:$0xff] %v8707_v62  ;;  %15873 = vst [vmem:[#allocation23_spill] sm:$0xff] %v8710_v0  ;;  %v8732_v12 = vadd.f32 %v1974_v13, %v8562_v1  ;;  %v15888_v1 = vld [vmem:[#allocation51_spill] sm:$0xff]  ;;  %v15890_v9 = vld [vmem:[#allocation53_spill] sm:$0xff] }
 0x1ef   : > { %15874 = vst [vmem:[#allocation98_spill] sm:$0xff] %v8713_v49  ;;  %15877 = vst [vmem:[#allocation88_spill] sm:$0xff] %v8720_v10  ;;  %v2280_v61 = vmul.f32 %v8720_v10, %v15882_v47  ;;  %v2281_v35 = vmul.f32 %v8720_v10, %v15883_v28  ;;  %v2282_v2 = vmul.f32 %v8720_v10, %v15884_v6  ;;  %v15892_v15 = vld [vmem:[#allocation59_spill] sm:$0xff]  ;;  %v15893_v29 = vld [vmem:[#allocation60_spill] sm:$0xff] }
 0x1f0   : > { %15878 = vst [vmem:[#allocation14_spill] sm:$0xff] %v8723_v34  ;;  %15879 = vst [vmem:[#allocation15_spill] sm:$0xff] %v8726_v32  ;;  %v2283_v30 = vmul.f32 %v8720_v10, %v15885_v57  ;;  %v2284_v4 = vmul.f32 %v8720_v10, %v15886_v38  ;;  %v2285_v13 = vmul.f32 %v8720_v10, %v15887_v55  ;;  %v15894_v27 = vld [vmem:[#allocation65_spill] sm:$0xff]  ;;  %v15895_v58 = vld [vmem:[#allocation92_spill] sm:$0xff] }
 0x1f1   : > { %15880 = vst [vmem:[#allocation12_spill] sm:$0xff] %v8729_v51  ;;  %15881 = vst [vmem:[#allocation5_spill] sm:$0xff] %v8732_v12  ;;  %v2286_v31 = vmul.f32 %v8720_v10, %v15888_v1  ;;  %v2287_v45 = vmul.f32 %v8720_v10, %v15889_v26  ;;  %v2288_v33 = vmul.f32 %v8720_v10, %v15890_v9  ;;  %v15896_v59 = vld [vmem:[#allocation66_spill] sm:$0xff]  ;;  %v15897_v47 = vld [vmem:[#allocation89_spill] sm:$0xff] }
 0x1f2   : > { %v2289_v22 = vmul.f32 %v8720_v10, %v15891_v42  ;;  %v2290_v53 = vmul.f32 %v8720_v10, %v15892_v15  ;;  %v2291_v63 = vmul.f32 %v8720_v10, %v15893_v29  ;;  %v2292_v56 = vmul.f32 %v8720_v10, %v15894_v27  ;;  %v8767_v12 = vld [vmem:[%s5246_s17 + $0x302] sm:$0xff]  ;;  %v8770_v42 = vld [vmem:[%s5246_s17 + $0x30a] sm:$0x3f]  ;;  %v15900_v15 = vld [vmem:[#allocation67_spill] sm:$0xff] }
 0x1f3   : > { %v2293_v23 = vmul.f32 %v8720_v10, %v15895_v58  ;;  %v2294_v28 = vmul.f32 %v8720_v10, %v15896_v59  ;;  %v2295_v43 = vmul.f32 %v8720_v10, %v15897_v47  ;;  %15898 = vst [vmem:[#allocation93_spill] sm:$0xff] %v8767_v12  ;;  %15899 = vst [vmem:[#allocation94_spill] sm:$0xff] %v8770_v42  ;;  %v15901_v29 = vld [vmem:[#allocation72_spill] sm:$0xff]  ;;  %v15902_v27 = vld [vmem:[#allocation73_spill] sm:$0xff] }
 0x1f4   : > { %v2296_v9 = vmul.f32 %v8720_v10, %v15900_v15  ;;  %v2297_v26 = vmul.f32 %v8720_v10, %v15901_v29  ;;  %v2298_v1 = vmul.f32 %v8720_v10, %v15902_v27  ;;  %v15903_v58 = vld [vmem:[#allocation99_spill] sm:$0xff]  ;;  %v15904_v59 = vld [vmem:[#allocation74_spill] sm:$0xff]  ;;  %v2301_v47 = vmul.f32 %v8720_v10, %v8446_v18  ;;  %v15905_v57 = vld [vmem:[#allocation104_spill] sm:$0xff] }
 0x1f5   : > { %v2299_v55 = vmul.f32 %v8720_v10, %v15903_v58  ;;  %v2300_v38 = vmul.f32 %v8720_v10, %v15904_v59  ;;  %v2302_v15 = vmul.f32 %v8720_v10, %v8767_v12  ;;  %v2303_v29 = vmul.f32 %v8720_v10, %v8770_v42  ;;  %v15907_v6 = vld [vmem:[#allocation48_spill] sm:$0xff]  ;;  %v15909_v51 = vld [vmem:[#allocation75_spill] sm:$0xff]  ;;  %v15911_v32 = vld [vmem:[#allocation97_spill] sm:$0xff] }
 0x1f6   : > { %v8789_v27 = vadd.f32 %v2280_v61, %v15905_v57  ;;  %v8792_v58 = vadd.f32 %v2281_v35, %v15907_v6  ;;  %v8795_v59 = vadd.f32 %v2282_v2, %v15909_v51  ;;  %v8798_v34 = vadd.f32 %v2283_v30, %v15911_v32  ;;  %v15913_v18 = vld [vmem:[#allocation8_spill] sm:$0xff]  ;;  %v15915_v12 = vld [vmem:[#allocation9_spill] sm:$0xff]  ;;  %v15917_v10 = vld [vmem:[#allocation11_spill] sm:$0xff] }
 0x1f7   : > { %v8801_v49 = vadd.f32 %v2284_v4, %v15913_v18  ;;  %v8804_v0 = vadd.f32 %v2285_v13, %v15915_v12  ;;  %v8807_v61 = vadd.f32 %v2286_v31, %v15917_v10  ;;  %v15919_v35 = vld [vmem:[#allocation33_spill] sm:$0xff]  ;;  %v15921_v51 = vld [vmem:[#allocation103_spill] sm:$0xff]  ;;  %v15925_v18 = vld [vmem:[#allocation30_spill] sm:$0xff] }
 0x1f8   : > { %15906 = vst [vmem:[#allocation35_spill] sm:$0xff] %v8789_v27  ;;  %15908 = vst [vmem:[#allocation37_spill] sm:$0xff] %v8792_v58  ;;  %v8810_v6 = vadd.f32 %v2287_v45, %v15919_v35  ;;  %v8813_v2 = vadd.f32 %v2288_v33, %v15921_v51  ;;  %v15923_v32 = vld [vmem:[#allocation29_spill] sm:$0xff]  ;;  %v8819_v30 = vadd.f32 %v2290_v53, %v15925_v18  ;;  %v15927_v4 = vld [vmem:[#allocation34_spill] sm:$0xff] }
 0x1f9   : > { %15910 = vst [vmem:[#allocation49_spill] sm:$0xff] %v8795_v59  ;;  %15912 = vst [vmem:[#allocation54_spill] sm:$0xff] %v8798_v34  ;;  %v8816_v57 = vadd.f32 %v2289_v22, %v15923_v32  ;;  %v8822_v12 = vadd.f32 %v2291_v63, %v15927_v4  ;;  %v2056_v13 = vld [vmem:[%s5246_s17 + $0x2] sm:$0xff]  ;;  %v2057_v10 = vld [vmem:[%s5246_s17 + $0xa] sm:$0x3f] }
 0x1fa   : > { %15914 = vst [vmem:[#allocation55_spill] sm:$0xff] %v8801_v49  ;;  %15916 = vst [vmem:[#allocation56_spill] sm:$0xff] %v8804_v0  ;;  %v8827_v31 = vld [vmem:[%s5246_s17 + $0x1a] sm:$0xff]  ;;  %v15932_v35 = vld [vmem:[#allocation27_spill] sm:$0xff] }
 0x1fb   : > { %15918 = vst [vmem:[#allocation57_spill] sm:$0xff] %v8807_v61  ;;  %15920 = vst [vmem:[#allocation61_spill] sm:$0xff] %v8810_v6  ;;  %v15930_v45 = vld [vmem:[#allocation32_spill] sm:$0xff]  ;;  %v8833_v22 = vadd.f32 %v2293_v23, %v15932_v35  ;;  %v15936_v32 = vld [vmem:[#allocation47_spill] sm:$0xff] }
 0x1fc   : > { %15922 = vst [vmem:[#allocation62_spill] sm:$0xff] %v8813_v2  ;;  %15924 = vst [vmem:[#allocation63_spill] sm:$0xff] %v8816_v57  ;;  %v8830_v33 = vadd.f32 %v2292_v56, %v15930_v45  ;;  %v15934_v51 = vld [vmem:[#allocation96_spill] sm:$0xff]  ;;  %v8839_v63 = vadd.f32 %v2295_v43, %v15936_v32  ;;  %v8842_v18 = vld [vmem:[%s5246_s17 + $0x22] sm:$0x3f] }
 0x1fd   : > { %15926 = vst [vmem:[#allocation64_spill] sm:$0xff] %v8819_v30  ;;  %15928 = vst [vmem:[#allocation68_spill] sm:$0xff] %v8822_v12  ;;  %v8836_v53 = vadd.f32 %v2294_v28, %v15934_v51  ;;  %v8845_v4 = vld [vmem:[%s5246_s17 + $0x32] sm:$0xff]  ;;  %v8848_v12 = vld [vmem:[%s5246_s17 + $0x3a] sm:$0x3f] }
 0x1fe   : > { %15929 = vst [vmem:[#allocation16_spill] sm:$0xff] %v8827_v31  ;;  %15931 = vst [vmem:[#allocation18_spill] sm:$0xff] %v8830_v33  ;;  %v8851_v30 = vld [vmem:[%s5246_s17 + $0x4a] sm:$0xff]  ;;  %v15946_v35 = vld [vmem:[#allocation77_spill] sm:$0xff] }
 0x1ff   : > { %15933 = vst [vmem:[#allocation19_spill] sm:$0xff] %v8833_v22  ;;  %15935 = vst [vmem:[#allocation20_spill] sm:$0xff] %v8836_v53  ;;  %v15942_v56 = vld [vmem:[#allocation43_spill] sm:$0xff]  ;;  %v15944_v45 = vld [vmem:[#allocation90_spill] sm:$0xff]  ;;  %v8860_v43 = vadd.f32 %v2298_v1, %v15946_v35 }
 0x200   : > { %15937 = vst [vmem:[#allocation76_spill] sm:$0xff] %v8839_v63  ;;  %15938 = vst [vmem:[#allocation21_spill] sm:$0xff] %v8842_v18  ;;  %v8854_v23 = vadd.f32 %v2296_v9, %v15942_v56  ;;  %v8857_v28 = vadd.f32 %v2297_v26, %v15944_v45  ;;  %v15948_v51 = vld [vmem:[#allocation84_spill] sm:$0xff]  ;;  %v8866_v63 = vld [vmem:[%s5246_s17 + $0x52] sm:$0x3f] }
 0x201   : > { %15939 = vst [vmem:[#allocation22_spill] sm:$0xff] %v8845_v4  ;;  %15940 = vst [vmem:[#allocation28_spill] sm:$0xff] %v8848_v12  ;;  %v8863_v32 = vadd.f32 %v2299_v55, %v15948_v51  ;;  %v8869_v53 = vld [vmem:[%s5246_s17 + $0x62] sm:$0xff]  ;;  %v8872_v22 = vld [vmem:[%s5246_s17 + $0x6a] sm:$0x3f] }
 0x202   : > { %15941 = vst [vmem:[#allocation39_spill] sm:$0xff] %v8851_v30  ;;  %15943 = vst [vmem:[#allocation80_spill] sm:$0xff] %v8854_v23  ;;  %v8875_v9 = vld [vmem:[%s5246_s17 + $0x7a] sm:$0xff]  ;;  %v15954_v56 = vld [vmem:[#allocation78_spill] sm:$0xff] }
 0x203   : > { %15945 = vst [vmem:[#allocation81_spill] sm:$0xff] %v8857_v28  ;;  %15947 = vst [vmem:[#allocation69_spill] sm:$0xff] %v8860_v43  ;;  %v8878_v26 = vadd.f32 %v2300_v38, %v15954_v56  ;;  %v15956_v45 = vld [vmem:[#allocation82_spill] sm:$0xff]  ;;  %v15958_v35 = vld [vmem:[#allocation83_spill] sm:$0xff] }
 0x204   : > { %15949 = vst [vmem:[#allocation38_spill] sm:$0xff] %v8863_v32  ;;  %15950 = vst [vmem:[#allocation13_spill] sm:$0xff] %v8866_v63  ;;  %v8881_v1 = vadd.f32 %v2301_v47, %v15956_v45  ;;  %v8884_v55 = vadd.f32 %v2302_v15, %v15958_v35  ;;  %v15960_v51 = vld [vmem:[#allocation100_spill] sm:$0xff]  ;;  %v15962_v43 = vld [vmem:[#allocation31_spill] sm:$0xff] }
 0x205   : > { %15951 = vst [vmem:[#allocation85_spill] sm:$0xff] %v8869_v53  ;;  %15952 = vst [vmem:[#allocation86_spill] sm:$0xff] %v8872_v22  ;;  %v8887_v32 = vadd.f32 %v2303_v29, %v15960_v51  ;;  %v8891_v28 = vadd.f32 %v8632_v36, %v15962_v43  ;;  %v8894_v23 = vld [vmem:[%s5246_s17 + $0x82] sm:$0x3f]  ;;  %v8897_v38 = vld [vmem:[%s5246_s17 + $0x92] sm:$0xff] }
 0x206   : > { %15953 = vst [vmem:[#allocation70_spill] sm:$0xff] %v8875_v9  ;;  %15955 = vst [vmem:[#allocation91_spill] sm:$0xff] %v8878_v26  ;;  %v8900_v56 = vld [vmem:[%s5246_s17 + $0x9a] sm:$0x3f]  ;;  %v15967_v47 = vld [vmem:[#allocation50_spill] sm:$0xff] }
 0x207   : > { %15957 = vst [vmem:[#allocation71_spill] sm:$0xff] %v8881_v1  ;;  %15959 = vst [vmem:[#allocation24_spill] sm:$0xff] %v8884_v55  ;;  %v2132_v45 = vmul.f32 %v15967_v47, %v2056_v13  ;;  %v2133_v15 = vmul.f32 %v15967_v47, %v2057_v10  ;;  %v2134_v29 = vmul.f32 %v15967_v47, %v8827_v31  ;;  %v8907_v35 = vld [vmem:[%s5246_s17 + $0xaa] sm:$0xff]  ;;  %v8910_v36 = vld [vmem:[%s5246_s17 + $0xb2] sm:$0x3f] }
 0x208   : > { %15961 = vst [vmem:[#allocation25_spill] sm:$0xff] %v8887_v32  ;;  %15963 = vst [vmem:[#allocation26_spill] sm:$0xff] %v8891_v28  ;;  %v8913_v43 = vld [vmem:[%s5246_s17 + $0xc2] sm:$0xff]  ;;  %v2135_v51 = vmul.f32 %v15967_v47, %v8842_v18  ;;  %v2136_v13 = vmul.f32 %v15967_v47, %v8845_v4  ;;  %v2137_v10 = vmul.f32 %v15967_v47, %v8848_v12  ;;  %v8924_v28 = vld [vmem:[%s5246_s17 + $0xca] sm:$0x3f] }
 0x209   : > { %15964 = vst [vmem:[#allocation105_spill] sm:$0xff] %v8894_v23  ;;  %15965 = vst [vmem:[#allocation104_spill] sm:$0xff] %v8897_v38  ;;  %v2138_v31 = vmul.f32 %v15967_v47, %v8851_v30  ;;  %v8927_v32 = vld [vmem:[%s5246_s17 + $0xda] sm:$0xff]  ;;  %v8930_v55 = vld [vmem:[%s5246_s17 + $0xe2] sm:$0x3f]  ;;  %v2139_v18 = vmul.f32 %v15967_v47, %v8866_v63  ;;  %v2140_v4 = vmul.f32 %v15967_v47, %v8869_v53 }
 0x20a   : > { %15966 = vst [vmem:[#allocation48_spill] sm:$0xff] %v8900_v56  ;;  %15968 = vst [vmem:[#allocation75_spill] sm:$0xff] %v8907_v35  ;;  %v2141_v12 = vmul.f32 %v15967_v47, %v8872_v22  ;;  %v2142_v30 = vmul.f32 %v15967_v47, %v8875_v9  ;;  %v8941_v1 = vld [vmem:[%s5246_s17 + $0xf2] sm:$0xff]  ;;  %v8944_v26 = vld [vmem:[%s5246_s17 + $0xfa] sm:$0x3f]  ;;  %v2143_v63 = vmul.f32 %v15967_v47, %v8894_v23 }
 0x20b   : > { %15969 = vst [vmem:[#allocation97_spill] sm:$0xff] %v8910_v36  ;;  %15970 = vst [vmem:[#allocation8_spill] sm:$0xff] %v8913_v43  ;;  %v8947_v33 = vld [vmem:[%s5246_s17 + $0x10a] sm:$0xff]  ;;  %v2144_v53 = vmul.f32 %v15967_v47, %v8897_v38  ;;  %v2145_v22 = vmul.f32 %v15967_v47, %v8900_v56  ;;  %v2146_v9 = vmul.f32 %v15967_v47, %v8907_v35  ;;  %v8958_v57 = vld [vmem:[%s5246_s17 + $0x112] sm:$0x3f] }
 0x20c   : > { %15971 = vst [vmem:[#allocation9_spill] sm:$0xff] %v8924_v28  ;;  %15972 = vst [vmem:[#allocation11_spill] sm:$0xff] %v8927_v32  ;;  %v2092_v2 = vld [vmem:[%s5246_s17 + $0x1b2] sm:$0xff]  ;;  %v2093_v6 = vld [vmem:[%s5246_s17 + $0x1ba] sm:$0x3f]  ;;  %v2147_v61 = vmul.f32 %v15967_v47, %v8910_v36  ;;  %v2148_v23 = vmul.f32 %v15967_v47, %v8913_v43  ;;  %v2149_v38 = vmul.f32 %v15967_v47, %v8924_v28 }
 0x20d   : > { %15973 = vst [vmem:[#allocation33_spill] sm:$0xff] %v8930_v55  ;;  %15974 = vst [vmem:[#allocation103_spill] sm:$0xff] %v8941_v1  ;;  %v2150_v56 = vmul.f32 %v15967_v47, %v8927_v32  ;;  %v8971_v0 = vld [vmem:[%s5246_s17 + $0x122] sm:$0xff]  ;;  %v8974_v35 = vld [vmem:[%s5246_s17 + $0x12a] sm:$0x3f]  ;;  %v2151_v34 = vmul.f32 %v15967_v47, %v8930_v55  ;;  %v2152_v36 = vmul.f32 %v15967_v47, %v8941_v1 }
 0x20e   : > { %15975 = vst [vmem:[#allocation29_spill] sm:$0xff] %v8944_v26  ;;  %15976 = vst [vmem:[#allocation30_spill] sm:$0xff] %v8947_v33  ;;  %v8977_v49 = vld [vmem:[%s5246_s17 + $0x13a] sm:$0xff]  ;;  %v2153_v43 = vmul.f32 %v15967_v47, %v8944_v26  ;;  %v2154_v28 = vmul.f32 %v15967_v47, %v8947_v33  ;;  %v8988_v59 = vld [vmem:[%s5246_s17 + $0x142] sm:$0x3f]  ;;  %v2155_v58 = vmul.f32 %v15967_v47, %v8958_v57 }
 0x20f   : > { %15977 = vst [vmem:[#allocation34_spill] sm:$0xff] %v8958_v57  ;;  %15978 = vst [vmem:[#allocation32_spill] sm:$0xff] %v8971_v0  ;;  %v8991_v32 = vld [vmem:[%s5246_s17 + $0x1ca] sm:$0xff]  ;;  %v2156_v27 = vmul.f32 %v15967_v47, %v8971_v0  ;;  %v2157_v55 = vmul.f32 %v15967_v47, %v8974_v35  ;;  %v2158_v1 = vmul.f32 %v15967_v47, %v8977_v49  ;;  %v9002_v26 = vld [vmem:[%s5246_s17 + $0x1d2] sm:$0x3f] }
 0x210   : > { %15979 = vst [vmem:[#allocation27_spill] sm:$0xff] %v8974_v35  ;;  %15980 = vst [vmem:[#allocation96_spill] sm:$0xff] %v8977_v49  ;;  %v2159_v33 = vmul.f32 %v15967_v47, %v8988_v59  ;;  %v2160_v42 = vmul.f32 %v15967_v47, %v2092_v2  ;;  %v2161_v62 = vmul.f32 %v15967_v47, %v2093_v6 }
 0x211   : > { %15981 = vst [vmem:[#allocation47_spill] sm:$0xff] %v8988_v59  ;;  %15982 = vst [vmem:[#allocation43_spill] sm:$0xff] %v8991_v32  ;;  %v9010_v57 = vmul.f32 %v15967_v47, %v8991_v32  ;;  %v9014_v0 = vmul.f32 %v15967_v47, %v9002_v26  ;;  %v9017_v35 = vadd.f32 %v2132_v45, %v8635_v44  ;;  %v16007_v45 = vld [vmem:[#allocation58_spill] sm:$0xff] }
 0x212   : > { %v9020_v49 = vadd.f32 %v2133_v15, %v8638_v48  ;;  %v9023_v59 = vadd.f32 %v2134_v29, %v8641_v39  ;;  %v9026_v2 = vadd.f32 %v2135_v51, %v8644_v37  ;;  %v9029_v6 = vadd.f32 %v2136_v13, %v8647_v54  ;;  %v16008_v29 = vld [vmem:[#allocation59_spill] sm:$0xff]  ;;  %v16010_v13 = vld [vmem:[#allocation65_spill] sm:$0xff] }
 0x213   : > { %v9032_v32 = vadd.f32 %v2137_v10, %v8650_v5  ;;  %v9035_v47 = vadd.f32 %v2138_v31, %v8653_v19  ;;  %v9038_v44 = vadd.f32 %v2139_v18, %v8656_v40  ;;  %v9041_v48 = vadd.f32 %v2140_v4, %v8659_v3  ;;  %v16001_v18 = vld [vmem:[#allocation108_spill] sm:$0xff] }
 0x214   : > { %v9044_v39 = vadd.f32 %v2141_v12, %v8662_v41  ;;  %v9047_v37 = vadd.f32 %v2142_v30, %v8665_v21  ;;  %v9050_v54 = vadd.f32 %v2143_v63, %v8668_v50  ;;  %v9053_v5 = vadd.f32 %v2144_v53, %v8671_v24  ;;  %v16000_v53 = vld [vmem:[#allocation107_spill] sm:$0xff] }
 0x215   : > { %v9056_v19 = vadd.f32 %v2145_v22, %v8674_v20  ;;  %v9059_v40 = vadd.f32 %v2146_v9, %v8677_v52  ;;  %v9062_v3 = vadd.f32 %v2147_v61, %v8680_v14  ;;  %v9065_v41 = vadd.f32 %v2148_v23, %v8683_v17  ;;  %v16002_v23 = vld [vmem:[#allocation87_spill] sm:$0xff]  ;;  %v16003_v9 = vld [vmem:[#allocation46_spill] sm:$0xff] }
 0x216   : > { %v9068_v21 = vadd.f32 %v2149_v38, %v8686_v7  ;;  %v9071_v50 = vadd.f32 %v2150_v56, %v8689_v11  ;;  %v9074_v24 = vadd.f32 %v2151_v34, %v8692_v25  ;;  %v9077_v20 = vadd.f32 %v2152_v36, %v8695_v16  ;;  %v15986_v7 = vld [vmem:[#allocation17_spill] sm:$0xff]  ;;  %v15988_v11 = vld [vmem:[#allocation23_spill] sm:$0xff]  ;;  %v9095_v25 = vld [vmem:[%s5240_s21 + $0x8] sm:$0xff] }
 0x217   : > { %v9080_v52 = vadd.f32 %v2153_v43, %v8698_v46  ;;  %v9083_v14 = vadd.f32 %v2154_v28, %v8701_v60  ;;  %v9086_v17 = vadd.f32 %v2155_v58, %v8704_v8  ;;  %v9089_v61 = vadd.f32 %v2156_v27, %v15986_v7  ;;  %v15990_v34 = vld [vmem:[#allocation42_spill] sm:$0xff]  ;;  %v15996_v8 = vld [vmem:[#allocation15_spill] sm:$0xff]  ;;  %v15998_v27 = vld [vmem:[#allocation12_spill] sm:$0xff] }
 0x218   : > { %v9092_v30 = vadd.f32 %v2157_v55, %v15988_v11  ;;  %v9099_v16 = vrot.slane %v9095_v25, %v15990_v34  ;;  %v15992_v46 = vld [vmem:[#allocation98_spill] sm:$0xff]  ;;  %v9108_v58 = vadd.f32 %v2160_v42, %v15996_v8  ;;  %v9111_v22 = vadd.f32 %v2161_v62, %v15998_v27  ;;  %v16005_v55 = vld [vmem:[#allocation52_spill] sm:$0xff]  ;;  %v16006_v38 = vld [vmem:[#allocation53_spill] sm:$0xff] }
 0x219   : > { %15983 = vst [vmem:[#allocation90_spill] sm:$0xff] %v9080_v52  ;;  %15984 = vst [vmem:[#allocation77_spill] sm:$0xff] %v9083_v14  ;;  %v9102_v12 = vadd.f32 %v2158_v1, %v15992_v46  ;;  %v15994_v60 = vld [vmem:[#allocation14_spill] sm:$0xff]  ;;  %v16004_v1 = vld [vmem:[#allocation51_spill] sm:$0xff] }
 0x21a   : > { %15985 = vst [vmem:[#allocation84_spill] sm:$0xff] %v9086_v17  ;;  %15987 = vst [vmem:[#allocation78_spill] sm:$0xff] %v9089_v61  ;;  %v9105_v31 = vadd.f32 %v2159_v33, %v15994_v60  ;;  %v2396_v63 = vmul.f32 %v9099_v16, %v16000_v53  ;;  %v2397_v4 = vmul.f32 %v9099_v16, %v16001_v18  ;;  %v16009_v43 = vld [vmem:[#allocation60_spill] sm:$0xff]  ;;  %v16012_v46 = vld [vmem:[#allocation66_spill] sm:$0xff] }
 0x21b   : > { %15989 = vst [vmem:[#allocation82_spill] sm:$0xff] %v9092_v30  ;;  %15991 = vst [vmem:[#allocation83_spill] sm:$0xff] %v9099_v16  ;;  %v2398_v28 = vmul.f32 %v9099_v16, %v16002_v23  ;;  %v2399_v33 = vmul.f32 %v9099_v16, %v16003_v9  ;;  %v2400_v42 = vmul.f32 %v9099_v16, %v16004_v1  ;;  %v16011_v7 = vld [vmem:[#allocation92_spill] sm:$0xff]  ;;  %v16013_v8 = vld [vmem:[#allocation89_spill] sm:$0xff] }
 0x21c   : > { %15993 = vst [vmem:[#allocation100_spill] sm:$0xff] %v9102_v12  ;;  %15995 = vst [vmem:[#allocation31_spill] sm:$0xff] %v9105_v31  ;;  %v2401_v62 = vmul.f32 %v9099_v16, %v16005_v55  ;;  %v2402_v56 = vmul.f32 %v9099_v16, %v16006_v38  ;;  %v2403_v15 = vmul.f32 %v9099_v16, %v16007_v45  ;;  %v16014_v53 = vld [vmem:[#allocation67_spill] sm:$0xff]  ;;  %v16015_v34 = vld [vmem:[#allocation72_spill] sm:$0xff] }
 0x21d   : > { %15997 = vst [vmem:[#allocation50_spill] sm:$0xff] %v9108_v58  ;;  %15999 = vst [vmem:[#allocation17_spill] sm:$0xff] %v9111_v22  ;;  %v2404_v36 = vmul.f32 %v9099_v16, %v16008_v29  ;;  %v2405_v51 = vmul.f32 %v9099_v16, %v16009_v43  ;;  %v2406_v10 = vmul.f32 %v9099_v16, %v16010_v13  ;;  %v9146_v58 = vld [vmem:[%s5246_s17 + $0x31a] sm:$0xff]  ;;  %v9149_v31 = vld [vmem:[%s5246_s17 + $0x322] sm:$0x3f] }
 0x21e   : > { %v2407_v11 = vmul.f32 %v9099_v16, %v16011_v7  ;;  %v2408_v60 = vmul.f32 %v9099_v16, %v16012_v46  ;;  %v2409_v27 = vmul.f32 %v9099_v16, %v16013_v8  ;;  %v2410_v18 = vmul.f32 %v9099_v16, %v16014_v53  ;;  %16016 = vst [vmem:[#allocation23_spill] sm:$0xff] %v9146_v58  ;;  %v16018_v12 = vld [vmem:[#allocation73_spill] sm:$0xff]  ;;  %v16019_v7 = vld [vmem:[#allocation99_spill] sm:$0xff]  ;;  %v16020_v46 = vld [vmem:[#allocation74_spill] sm:$0xff] }
 0x21f   : > { %v2411_v22 = vmul.f32 %v9099_v16, %v16015_v34  ;;  %16017 = vst [vmem:[#allocation98_spill] sm:$0xff] %v9149_v31  ;;  %v2412_v13 = vmul.f32 %v9099_v16, %v16018_v12  ;;  %v2413_v43 = vmul.f32 %v9099_v16, %v16019_v7  ;;  %v2414_v29 = vmul.f32 %v9099_v16, %v16020_v46  ;;  %v16021_v8 = vld [vmem:[#allocation79_spill] sm:$0xff]  ;;  %v16022_v53 = vld [vmem:[#allocation93_spill] sm:$0xff]  ;;  %v16023_v34 = vld [vmem:[#allocation94_spill] sm:$0xff] }
 0x220   : > { %v2415_v45 = vmul.f32 %v9099_v16, %v16021_v8  ;;  %v2416_v38 = vmul.f32 %v9099_v16, %v16022_v53  ;;  %v2417_v55 = vmul.f32 %v9099_v16, %v16023_v34  ;;  %v2418_v1 = vmul.f32 %v9099_v16, %v9146_v58  ;;  %v16024_v9 = vld [vmem:[#allocation35_spill] sm:$0xff]  ;;  %v16025_v23 = vld [vmem:[#allocation37_spill] sm:$0xff]  ;;  %v16027_v61 = vld [vmem:[#allocation54_spill] sm:$0xff] }
 0x221   : > { %v2419_v12 = vmul.f32 %v9099_v16, %v9149_v31  ;;  %v9168_v7 = vadd.f32 %v2396_v63, %v16024_v9  ;;  %v9171_v46 = vadd.f32 %v2397_v4, %v16025_v23  ;;  %v16026_v30 = vld [vmem:[#allocation49_spill] sm:$0xff]  ;;  %v9177_v53 = vadd.f32 %v2399_v33, %v16027_v61  ;;  %v16029_v17 = vld [vmem:[#allocation55_spill] sm:$0xff]  ;;  %v16031_v14 = vld [vmem:[#allocation56_spill] sm:$0xff] }
 0x222   : > { %v9174_v8 = vadd.f32 %v2398_v28, %v16026_v30  ;;  %v9180_v34 = vadd.f32 %v2400_v42, %v16029_v17  ;;  %v9183_v58 = vadd.f32 %v2401_v62, %v16031_v14  ;;  %v16033_v52 = vld [vmem:[#allocation57_spill] sm:$0xff]  ;;  %v16037_v4 = vld [vmem:[#allocation62_spill] sm:$0xff]  ;;  %v16039_v30 = vld [vmem:[#allocation63_spill] sm:$0xff] }
 0x223   : > { %16028 = vst [vmem:[#allocation14_spill] sm:$0xff] %v9177_v53  ;;  %v9186_v16 = vadd.f32 %v2402_v56, %v16033_v52  ;;  %v16035_v63 = vld [vmem:[#allocation61_spill] sm:$0xff]  ;;  %v9192_v23 = vadd.f32 %v2404_v36, %v16037_v4  ;;  %v9195_v28 = vadd.f32 %v2405_v51, %v16039_v30  ;;  %v16041_v61 = vld [vmem:[#allocation64_spill] sm:$0xff]  ;;  %v16045_v14 = vld [vmem:[#allocation18_spill] sm:$0xff] }
 0x224   : > { %16030 = vst [vmem:[#allocation15_spill] sm:$0xff] %v9180_v34  ;;  %16032 = vst [vmem:[#allocation12_spill] sm:$0xff] %v9183_v58  ;;  %v9189_v9 = vadd.f32 %v2403_v15, %v16035_v63  ;;  %v9198_v33 = vadd.f32 %v2406_v10, %v16041_v61  ;;  %v16043_v17 = vld [vmem:[#allocation68_spill] sm:$0xff]  ;;  %v9204_v62 = vadd.f32 %v2408_v60, %v16045_v14  ;;  %v16047_v52 = vld [vmem:[#allocation19_spill] sm:$0xff] }
 0x225   : > { %16034 = vst [vmem:[#allocation107_spill] sm:$0xff] %v9186_v16  ;;  %16038 = vst [vmem:[#allocation35_spill] sm:$0xff] %v9192_v23  ;;  %v9201_v42 = vadd.f32 %v2407_v11, %v16043_v17  ;;  %v9207_v56 = vadd.f32 %v2409_v27, %v16047_v52  ;;  %v16049_v15 = vld [vmem:[#allocation20_spill] sm:$0xff]  ;;  %v16055_v10 = vld [vmem:[#allocation81_spill] sm:$0xff] }
 0x226   : > { %16036 = vst [vmem:[#allocation108_spill] sm:$0xff] %v9189_v9  ;;  %16040 = vst [vmem:[#allocation37_spill] sm:$0xff] %v9195_v28  ;;  %v9210_v63 = vadd.f32 %v2410_v18, %v16049_v15  ;;  %v16051_v36 = vld [vmem:[#allocation76_spill] sm:$0xff]  ;;  %v9219_v61 = vadd.f32 %v2413_v43, %v16055_v10  ;;  %v16057_v11 = vld [vmem:[#allocation69_spill] sm:$0xff] }
 0x227   : > { %16042 = vst [vmem:[#allocation49_spill] sm:$0xff] %v9198_v33  ;;  %16044 = vst [vmem:[#allocation54_spill] sm:$0xff] %v9201_v42  ;;  %v9213_v4 = vadd.f32 %v2411_v22, %v16051_v36  ;;  %v16053_v51 = vld [vmem:[#allocation80_spill] sm:$0xff]  ;;  %v9222_v17 = vadd.f32 %v2414_v29, %v16057_v11  ;;  %v16059_v60 = vld [vmem:[#allocation38_spill] sm:$0xff] }
 0x228   : > { %16046 = vst [vmem:[#allocation55_spill] sm:$0xff] %v9204_v62  ;;  %16048 = vst [vmem:[#allocation56_spill] sm:$0xff] %v9207_v56  ;;  %v9216_v30 = vadd.f32 %v2412_v13, %v16053_v51  ;;  %v9225_v14 = vadd.f32 %v2415_v45, %v16059_v60  ;;  %v16061_v27 = vld [vmem:[#allocation91_spill] sm:$0xff]  ;;  %v16065_v22 = vld [vmem:[#allocation24_spill] sm:$0xff] }
 0x229   : > { %16050 = vst [vmem:[#allocation57_spill] sm:$0xff] %v9210_v63  ;;  %16052 = vst [vmem:[#allocation61_spill] sm:$0xff] %v9213_v4  ;;  %v9228_v52 = vadd.f32 %v2416_v38, %v16061_v27  ;;  %v16063_v18 = vld [vmem:[#allocation71_spill] sm:$0xff]  ;;  %v9234_v36 = vadd.f32 %v2418_v1, %v16065_v22  ;;  %v16067_v13 = vld [vmem:[#allocation25_spill] sm:$0xff] }
 0x22a   : > { %16054 = vst [vmem:[#allocation62_spill] sm:$0xff] %v9216_v30  ;;  %16056 = vst [vmem:[#allocation63_spill] sm:$0xff] %v9219_v61  ;;  %v9231_v15 = vadd.f32 %v2417_v55, %v16063_v18  ;;  %v9237_v51 = vadd.f32 %v2419_v12, %v16067_v13  ;;  %v16069_v43 = vld [vmem:[#allocation5_spill] sm:$0xff]  ;;  %v16071_v29 = vld [vmem:[#allocation26_spill] sm:$0xff] }
 0x22b   : > { %16058 = vst [vmem:[#allocation64_spill] sm:$0xff] %v9222_v17  ;;  %16060 = vst [vmem:[#allocation68_spill] sm:$0xff] %v9225_v14  ;;  %v9241_v10 = vadd.f32 %v9010_v57, %v16069_v43  ;;  %v9245_v45 = vadd.f32 %v9014_v0, %v16071_v29  ;;  %v4853_v11 = vld [vmem:[%s5240_s21 + $0x10] sm:$0xff]  ;;  %v16073_v38 = vld [vmem:[#allocation101_spill] sm:$0xff] }
 0x22c   : > { %16062 = vst [vmem:[#allocation18_spill] sm:$0xff] %v9228_v52  ;;  %16064 = vst [vmem:[#allocation19_spill] sm:$0xff] %v9231_v15  ;;  %v9249_v60 = vrot.slane %v4853_v11, %v16073_v38  ;;  %v16075_v55 = vld [vmem:[#allocation95_spill] sm:$0xff]  ;;  %v16077_v1 = vld [vmem:[#allocation16_spill] sm:$0xff] }
 0x22d   : > { %16066 = vst [vmem:[#allocation20_spill] sm:$0xff] %v9234_v36  ;;  %16068 = vst [vmem:[#allocation76_spill] sm:$0xff] %v9237_v51  ;;  %v9252_v27 = vrot.slane %v4853_v11, %v16075_v55  ;;  %v16078_v18 = vld [vmem:[#allocation88_spill] sm:$0xff]  ;;  %v16079_v12 = vld [vmem:[#allocation21_spill] sm:$0xff] }
 0x22e   : > { %16070 = vst [vmem:[#allocation80_spill] sm:$0xff] %v9241_v10  ;;  %16072 = vst [vmem:[#allocation81_spill] sm:$0xff] %v9245_v45  ;;  %v2248_v22 = vmul.f32 %v16078_v18, %v16077_v1  ;;  %v2249_v13 = vmul.f32 %v16078_v18, %v16079_v12  ;;  %v16080_v51 = vld [vmem:[#allocation102_spill] sm:$0xff]  ;;  %v16086_v45 = vld [vmem:[#allocation28_spill] sm:$0xff] }
 0x22f   : > { %16074 = vst [vmem:[#allocation69_spill] sm:$0xff] %v9249_v60  ;;  %16076 = vst [vmem:[#allocation38_spill] sm:$0xff] %v9252_v27  ;;  %v16081_v57 = vld [vmem:[#allocation10_spill] sm:$0xff]  ;;  %v2251_v11 = vmul.f32 %v16078_v18, %v16086_v45  ;;  %v16087_v55 = vld [vmem:[#allocation39_spill] sm:$0xff] }
 0x230   : > { %v9260_v43 = vrot.slane %v16081_v57, %v16080_v51  ;;  %v16083_v10 = vld [vmem:[#allocation6_spill] sm:$0xff]  ;;  %v2252_v1 = vmul.f32 %v16078_v18, %v16087_v55  ;;  %v16088_v27 = vld [vmem:[#allocation13_spill] sm:$0xff]  ;;  %v16094_v15 = vld [vmem:[#allocation48_spill] sm:$0xff] }
 0x231   : > { %v9264_v0 = vrot.slane %v9095_v25, %v16083_v10  ;;  %v16085_v29 = vld [vmem:[#allocation22_spill] sm:$0xff]  ;;  %v2253_v12 = vmul.f32 %v16078_v18, %v16088_v27  ;;  %v16089_v36 = vld [vmem:[#allocation85_spill] sm:$0xff]  ;;  %v2259_v27 = vmul.f32 %v16078_v18, %v16094_v15  ;;  %v16095_v52 = vld [vmem:[#allocation75_spill] sm:$0xff] }
 0x232   : > { %16082 = vst [vmem:[#allocation91_spill] sm:$0xff] %v9260_v43  ;;  %v2250_v38 = vmul.f32 %v16078_v18, %v16085_v29  ;;  %v2254_v57 = vmul.f32 %v16078_v18, %v16089_v36  ;;  %v16090_v51 = vld [vmem:[#allocation86_spill] sm:$0xff]  ;;  %v16092_v43 = vld [vmem:[#allocation105_spill] sm:$0xff]  ;;  %v16093_v29 = vld [vmem:[#allocation104_spill] sm:$0xff]  ;;  %v2260_v36 = vmul.f32 %v16078_v18, %v16095_v52 }
 0x233   : > { %16084 = vst [vmem:[#allocation71_spill] sm:$0xff] %v9264_v0  ;;  %v2255_v25 = vmul.f32 %v16078_v18, %v16090_v51  ;;  %v16091_v10 = vld [vmem:[#allocation70_spill] sm:$0xff]  ;;  %v2257_v45 = vmul.f32 %v16078_v18, %v16092_v43  ;;  %v2258_v55 = vmul.f32 %v16078_v18, %v16093_v29  ;;  %v16096_v14 = vld [vmem:[#allocation97_spill] sm:$0xff]  ;;  %v16097_v51 = vld [vmem:[#allocation8_spill] sm:$0xff] }
 0x234   : > { %v2256_v0 = vmul.f32 %v16078_v18, %v16091_v10  ;;  %v2261_v17 = vmul.f32 %v16078_v18, %v16096_v14  ;;  %v2262_v61 = vmul.f32 %v16078_v18, %v16097_v51  ;;  %v16098_v30 = vld [vmem:[#allocation9_spill] sm:$0xff]  ;;  %v16099_v4 = vld [vmem:[#allocation11_spill] sm:$0xff]  ;;  %v16103_v42 = vld [vmem:[#allocation30_spill] sm:$0xff] }
 0x235   : > { %v2263_v10 = vmul.f32 %v16078_v18, %v16098_v30  ;;  %v2264_v43 = vmul.f32 %v16078_v18, %v16099_v4  ;;  %v16100_v63 = vld [vmem:[#allocation33_spill] sm:$0xff]  ;;  %v16101_v56 = vld [vmem:[#allocation103_spill] sm:$0xff]  ;;  %v2268_v14 = vmul.f32 %v16078_v18, %v16103_v42  ;;  %v16104_v33 = vld [vmem:[#allocation34_spill] sm:$0xff] }
 0x236   : > { %v2265_v29 = vmul.f32 %v16078_v18, %v16100_v63  ;;  %v2266_v15 = vmul.f32 %v16078_v18, %v16101_v56  ;;  %v16102_v62 = vld [vmem:[#allocation29_spill] sm:$0xff]  ;;  %v2269_v51 = vmul.f32 %v16078_v18, %v16104_v33  ;;  %v9307_v28 = vld [vmem:[%s5246_s17 + $0x152] sm:$0xff]  ;;  %v9310_v30 = vld [vmem:[%s5246_s17 + $0x15a] sm:$0x3f] }
 0x237   : > { %v2267_v52 = vmul.f32 %v16078_v18, %v16102_v62  ;;  %16105 = vst [vmem:[#allocation24_spill] sm:$0xff] %v9307_v28  ;;  %16106 = vst [vmem:[#allocation25_spill] sm:$0xff] %v9310_v30  ;;  %v16107_v4 = vld [vmem:[#allocation32_spill] sm:$0xff]  ;;  %v16108_v63 = vld [vmem:[#allocation27_spill] sm:$0xff]  ;;  %v9322_v42 = vmul.f32 %v16078_v18, %v9307_v28  ;;  %v9326_v33 = vmul.f32 %v16078_v18, %v9310_v30 }
 0x238   : > { %v2270_v23 = vmul.f32 %v16078_v18, %v16107_v4  ;;  %v2271_v9 = vmul.f32 %v16078_v18, %v16108_v63  ;;  %v16109_v56 = vld [vmem:[#allocation96_spill] sm:$0xff]  ;;  %v16110_v62 = vld [vmem:[#allocation47_spill] sm:$0xff]  ;;  %v9334_v63 = vmul.f32 %v16078_v18, %v9002_v26  ;;  %v9348_v30 = vadd.f32 %v2249_v13, %v9020_v49 }
 0x239   : > { %v2272_v16 = vmul.f32 %v16078_v18, %v16109_v56  ;;  %v2273_v58 = vmul.f32 %v16078_v18, %v16110_v62  ;;  %16111 = vst [vmem:[#allocation5_spill] sm:$0xff] %v9322_v42  ;;  %v16112_v34 = vld [vmem:[#allocation43_spill] sm:$0xff]  ;;  %v16114_v56 = vld [vmem:[#allocation36_spill] sm:$0xff]  ;;  %v9345_v42 = vadd.f32 %v2248_v22, %v9017_v35  ;;  %v9354_v26 = vadd.f32 %v2251_v11, %v9026_v2 }
 0x23a   : > { %v9330_v4 = vmul.f32 %v16078_v18, %v16112_v34  ;;  %16113 = vst [vmem:[#allocation26_spill] sm:$0xff] %v9334_v63  ;;  %v9338_v53 = vmul.f32 %v16078_v18, %v16114_v56  ;;  %v16115_v62 = vld [vmem:[#allocation44_spill] sm:$0xff]  ;;  %v9351_v34 = vadd.f32 %v2250_v38, %v9023_v59  ;;  %v9357_v63 = vadd.f32 %v2252_v1, %v9029_v6  ;;  %v16131_v38 = vld [vmem:[#allocation53_spill] sm:$0xff] }
 0x23b   : > { %v9342_v28 = vmul.f32 %v16078_v18, %v16115_v62  ;;  %v9360_v56 = vadd.f32 %v2253_v12, %v9032_v32  ;;  %v9363_v18 = vadd.f32 %v2254_v57, %v9035_v47  ;;  %v9366_v35 = vadd.f32 %v2255_v25, %v9038_v44  ;;  %v16134_v13 = vld [vmem:[#allocation60_spill] sm:$0xff]  ;;  %v16137_v12 = vld [vmem:[#allocation66_spill] sm:$0xff]  ;;  %v16138_v25 = vld [vmem:[#allocation89_spill] sm:$0xff] }
 0x23c   : > { %v9369_v49 = vadd.f32 %v2256_v0, %v9041_v48  ;;  %v9372_v59 = vadd.f32 %v2257_v45, %v9044_v39  ;;  %v9375_v2 = vadd.f32 %v2258_v55, %v9047_v37  ;;  %v9378_v6 = vadd.f32 %v2259_v27, %v9050_v54  ;;  %v16130_v45 = vld [vmem:[#allocation52_spill] sm:$0xff]  ;;  %v16132_v55 = vld [vmem:[#allocation58_spill] sm:$0xff]  ;;  %v16133_v27 = vld [vmem:[#allocation59_spill] sm:$0xff] }
 0x23d   : > { %v9381_v32 = vadd.f32 %v2260_v36, %v9053_v5  ;;  %v9384_v47 = vadd.f32 %v2261_v17, %v9056_v19  ;;  %v9387_v44 = vadd.f32 %v2262_v61, %v9059_v40  ;;  %v9390_v48 = vadd.f32 %v2263_v10, %v9062_v3  ;;  %v16117_v40 = vld [vmem:[#allocation90_spill] sm:$0xff]  ;;  %v16119_v3 = vld [vmem:[#allocation77_spill] sm:$0xff]  ;;  %v16136_v11 = vld [vmem:[#allocation92_spill] sm:$0xff] }
 0x23e   : > { %v9393_v39 = vadd.f32 %v2264_v43, %v9065_v41  ;;  %v9396_v37 = vadd.f32 %v2265_v29, %v9068_v21  ;;  %v9399_v54 = vadd.f32 %v2266_v15, %v9071_v50  ;;  %v9402_v5 = vadd.f32 %v2267_v52, %v9074_v24  ;;  %v16121_v41 = vld [vmem:[#allocation84_spill] sm:$0xff]  ;;  %v16123_v21 = vld [vmem:[#allocation78_spill] sm:$0xff]  ;;  %v16127_v24 = vld [vmem:[#allocation87_spill] sm:$0xff] }
 0x23f   : > { %v9405_v19 = vadd.f32 %v2268_v14, %v9077_v20  ;;  %v9408_v61 = vadd.f32 %v2269_v51, %v16117_v40  ;;  %v9411_v17 = vadd.f32 %v2270_v23, %v16119_v3  ;;  %v9414_v36 = vadd.f32 %v2271_v9, %v16121_v41  ;;  %v16125_v50 = vld [vmem:[#allocation82_spill] sm:$0xff]  ;;  %v16129_v51 = vld [vmem:[#allocation51_spill] sm:$0xff]  ;;  %v16135_v0 = vld [vmem:[#allocation65_spill] sm:$0xff] }
 0x240   : > { %v9417_v10 = vadd.f32 %v2272_v16, %v16123_v21  ;;  %v9420_v15 = vadd.f32 %v2273_v58, %v16125_v50  ;;  %v2512_v52 = vmul.f32 %v9249_v60, %v16127_v24  ;;  %v16128_v20 = vld [vmem:[#allocation46_spill] sm:$0xff]  ;;  %v2514_v23 = vmul.f32 %v9249_v60, %v16129_v51  ;;  %v16139_v3 = vld [vmem:[#allocation67_spill] sm:$0xff]  ;;  %v16140_v21 = vld [vmem:[#allocation72_spill] sm:$0xff] }
 0x241   : > { %16116 = vst [vmem:[#allocation16_spill] sm:$0xff] %v9405_v19  ;;  %16118 = vst [vmem:[#allocation88_spill] sm:$0xff] %v9408_v61  ;;  %v2513_v14 = vmul.f32 %v9249_v60, %v16128_v20  ;;  %v2515_v9 = vmul.f32 %v9249_v60, %v16130_v45  ;;  %v2516_v16 = vmul.f32 %v9249_v60, %v16131_v38  ;;  %v16141_v24 = vld [vmem:[#allocation73_spill] sm:$0xff]  ;;  %v16142_v51 = vld [vmem:[#allocation99_spill] sm:$0xff] }
 0x242   : > { %16120 = vst [vmem:[#allocation21_spill] sm:$0xff] %v9411_v17  ;;  %16122 = vst [vmem:[#allocation10_spill] sm:$0xff] %v9414_v36  ;;  %v2517_v58 = vmul.f32 %v9249_v60, %v16132_v55  ;;  %v2518_v22 = vmul.f32 %v9249_v60, %v16133_v27  ;;  %v2519_v43 = vmul.f32 %v9249_v60, %v16134_v13  ;;  %v9455_v38 = vld [vmem:[%s5246_s17 + $0x332] sm:$0xff]  ;;  %v9458_v55 = vld [vmem:[%s5246_s17 + $0x33a] sm:$0x3f] }
 0x243   : > { %16124 = vst [vmem:[#allocation43_spill] sm:$0xff] %v9417_v10  ;;  %16126 = vst [vmem:[#allocation44_spill] sm:$0xff] %v9420_v15  ;;  %v2520_v29 = vmul.f32 %v9249_v60, %v16135_v0  ;;  %v2521_v1 = vmul.f32 %v9249_v60, %v16136_v11  ;;  %v2522_v57 = vmul.f32 %v9249_v60, %v16137_v12  ;;  %v16144_v27 = vld [vmem:[#allocation74_spill] sm:$0xff]  ;;  %v16145_v0 = vld [vmem:[#allocation79_spill] sm:$0xff] }
 0x244   : > { %v2523_v40 = vmul.f32 %v9249_v60, %v16138_v25  ;;  %v2524_v41 = vmul.f32 %v9249_v60, %v16139_v3  ;;  %v2525_v50 = vmul.f32 %v9249_v60, %v16140_v21  ;;  %v2526_v20 = vmul.f32 %v9249_v60, %v16141_v24  ;;  %16143 = vst [vmem:[#allocation90_spill] sm:$0xff] %v9455_v38  ;;  %v16146_v3 = vld [vmem:[#allocation93_spill] sm:$0xff]  ;;  %v16147_v21 = vld [vmem:[#allocation94_spill] sm:$0xff]  ;;  %v16148_v24 = vld [vmem:[#allocation23_spill] sm:$0xff] }
 0x245   : > { %v2527_v45 = vmul.f32 %v9249_v60, %v16142_v51  ;;  %v2528_v13 = vmul.f32 %v9249_v60, %v16144_v27  ;;  %v2529_v25 = vmul.f32 %v9249_v60, %v16145_v0  ;;  %v2530_v12 = vmul.f32 %v9249_v60, %v16146_v3  ;;  %v16149_v36 = vld [vmem:[#allocation14_spill] sm:$0xff]  ;;  %v16150_v17 = vld [vmem:[#allocation15_spill] sm:$0xff]  ;;  %v16151_v61 = vld [vmem:[#allocation12_spill] sm:$0xff] }
 0x246   : > { %v2531_v11 = vmul.f32 %v9249_v60, %v16147_v21  ;;  %v2532_v15 = vmul.f32 %v9249_v60, %v16148_v24  ;;  %v2533_v51 = vmul.f32 %v9249_v60, %v9149_v31  ;;  %v2534_v10 = vmul.f32 %v9249_v60, %v9455_v38  ;;  %v16153_v19 = vld [vmem:[#allocation107_spill] sm:$0xff] }
 0x247   : > { %v2535_v27 = vmul.f32 %v9249_v60, %v9458_v55  ;;  %v9477_v0 = vadd.f32 %v2512_v52, %v9168_v7  ;;  %v9480_v3 = vadd.f32 %v2513_v14, %v9171_v46  ;;  %v9483_v21 = vadd.f32 %v2514_v23, %v9174_v8  ;;  %v16155_v7 = vld [vmem:[#allocation108_spill] sm:$0xff]  ;;  %v16157_v46 = vld [vmem:[#allocation35_spill] sm:$0xff]  ;;  %v16159_v8 = vld [vmem:[#allocation37_spill] sm:$0xff] }
 0x248   : > { %v9486_v24 = vadd.f32 %v2515_v9, %v16149_v36  ;;  %v9489_v31 = vadd.f32 %v2516_v16, %v16150_v17  ;;  %v9492_v38 = vadd.f32 %v2517_v58, %v16151_v61  ;;  %v9495_v60 = vadd.f32 %v2518_v22, %v16153_v19  ;;  %v16161_v36 = vld [vmem:[#allocation49_spill] sm:$0xff]  ;;  %v16163_v17 = vld [vmem:[#allocation54_spill] sm:$0xff]  ;;  %v16165_v61 = vld [vmem:[#allocation55_spill] sm:$0xff] }
 0x249   : > { %v9498_v52 = vadd.f32 %v2519_v43, %v16155_v7  ;;  %v9501_v14 = vadd.f32 %v2520_v29, %v16157_v46  ;;  %v9504_v23 = vadd.f32 %v2521_v1, %v16159_v8  ;;  %v9507_v9 = vadd.f32 %v2522_v57, %v16161_v36  ;;  %v16167_v19 = vld [vmem:[#allocation56_spill] sm:$0xff]  ;;  %v16169_v43 = vld [vmem:[#allocation57_spill] sm:$0xff]  ;;  %v16173_v1 = vld [vmem:[#allocation62_spill] sm:$0xff] }
 0x24a   : > { %16152 = vst [vmem:[#allocation77_spill] sm:$0xff] %v9492_v38  ;;  %16154 = vst [vmem:[#allocation84_spill] sm:$0xff] %v9495_v60  ;;  %v9510_v16 = vadd.f32 %v2523_v40, %v16163_v17  ;;  %v9513_v58 = vadd.f32 %v2524_v41, %v16165_v61  ;;  %v9516_v22 = vadd.f32 %v2525_v50, %v16167_v19  ;;  %v16171_v29 = vld [vmem:[#allocation61_spill] sm:$0xff]  ;;  %v16175_v57 = vld [vmem:[#allocation63_spill] sm:$0xff] }
 0x24b   : > { %16156 = vst [vmem:[#allocation78_spill] sm:$0xff] %v9498_v52  ;;  %16158 = vst [vmem:[#allocation82_spill] sm:$0xff] %v9501_v14  ;;  %v9519_v7 = vadd.f32 %v2526_v20, %v16169_v43  ;;  %v9522_v46 = vadd.f32 %v2527_v45, %v16171_v29  ;;  %v9525_v8 = vadd.f32 %v2528_v13, %v16173_v1  ;;  %v16177_v40 = vld [vmem:[#allocation64_spill] sm:$0xff]  ;;  %v16181_v50 = vld [vmem:[#allocation18_spill] sm:$0xff] }
 0x24c   : > { %16160 = vst [vmem:[#allocation87_spill] sm:$0xff] %v9504_v23  ;;  %16162 = vst [vmem:[#allocation46_spill] sm:$0xff] %v9507_v9  ;;  %v9528_v36 = vadd.f32 %v2529_v25, %v16175_v57  ;;  %v9531_v17 = vadd.f32 %v2530_v12, %v16177_v40  ;;  %v16179_v41 = vld [vmem:[#allocation68_spill] sm:$0xff]  ;;  %v9537_v19 = vadd.f32 %v2532_v15, %v16181_v50  ;;  %v16183_v20 = vld [vmem:[#allocation19_spill] sm:$0xff] }
 0x24d   : > { %16164 = vst [vmem:[#allocation51_spill] sm:$0xff] %v9510_v16  ;;  %16166 = vst [vmem:[#allocation52_spill] sm:$0xff] %v9513_v58  ;;  %v9534_v61 = vadd.f32 %v2531_v11, %v16179_v41  ;;  %v9540_v43 = vadd.f32 %v2533_v51, %v16183_v20  ;;  %v16185_v45 = vld [vmem:[#allocation20_spill] sm:$0xff]  ;;  %v16190_v57 = vld [vmem:[#allocation5_spill] sm:$0xff] }
 0x24e   : > { %16168 = vst [vmem:[#allocation53_spill] sm:$0xff] %v9516_v22  ;;  %16170 = vst [vmem:[#allocation58_spill] sm:$0xff] %v9519_v7  ;;  %v9543_v29 = vadd.f32 %v2534_v10, %v16185_v45  ;;  %v16187_v13 = vld [vmem:[#allocation76_spill] sm:$0xff]  ;;  %v16192_v12 = vld [vmem:[#allocation31_spill] sm:$0xff] }
 0x24f   : > { %16172 = vst [vmem:[#allocation59_spill] sm:$0xff] %v9522_v46  ;;  %16174 = vst [vmem:[#allocation60_spill] sm:$0xff] %v9525_v8  ;;  %v9546_v1 = vadd.f32 %v2535_v27, %v16187_v13  ;;  %v16189_v25 = vld [vmem:[#allocation100_spill] sm:$0xff]  ;;  %v9554_v11 = vadd.f32 %v9326_v33, %v16192_v12  ;;  %v16194_v40 = vld [vmem:[#allocation50_spill] sm:$0xff] }
 0x250   : > { %16176 = vst [vmem:[#allocation65_spill] sm:$0xff] %v9528_v36  ;;  %16178 = vst [vmem:[#allocation14_spill] sm:$0xff] %v9531_v17  ;;  %v9550_v36 = vadd.f32 %v16190_v57, %v16189_v25  ;;  %v9558_v15 = vadd.f32 %v9330_v4, %v16194_v40  ;;  %v16196_v51 = vld [vmem:[#allocation17_spill] sm:$0xff]  ;;  %v16197_v41 = vld [vmem:[#allocation26_spill] sm:$0xff] }
 0x251   : > { %16180 = vst [vmem:[#allocation15_spill] sm:$0xff] %v9534_v61  ;;  %16182 = vst [vmem:[#allocation12_spill] sm:$0xff] %v9537_v19  ;;  %v9562_v50 = vadd.f32 %v16197_v41, %v16196_v51  ;;  %v16199_v10 = vld [vmem:[#allocation80_spill] sm:$0xff]  ;;  %v16201_v20 = vld [vmem:[#allocation81_spill] sm:$0xff] }
 0x252   : > { %16184 = vst [vmem:[#allocation107_spill] sm:$0xff] %v9540_v43  ;;  %16186 = vst [vmem:[#allocation108_spill] sm:$0xff] %v9543_v29  ;;  %v9566_v27 = vadd.f32 %v9338_v53, %v16199_v10  ;;  %v9570_v45 = vadd.f32 %v9342_v28, %v16201_v20  ;;  %v16203_v13 = vld [vmem:[#allocation22_spill] sm:$0xff]  ;;  %v16204_v25 = vld [vmem:[#allocation83_spill] sm:$0xff] }
 0x253   : > { %16188 = vst [vmem:[#allocation35_spill] sm:$0xff] %v9546_v1  ;;  %16191 = vst [vmem:[#allocation37_spill] sm:$0xff] %v9550_v36  ;;  %v2364_v33 = vmul.f32 %v16204_v25, %v16203_v13  ;;  %v16205_v57 = vld [vmem:[#allocation28_spill] sm:$0xff]  ;;  %v16206_v4 = vld [vmem:[#allocation39_spill] sm:$0xff] }
 0x254   : > { %16193 = vst [vmem:[#allocation49_spill] sm:$0xff] %v9554_v11  ;;  %16195 = vst [vmem:[#allocation54_spill] sm:$0xff] %v9558_v15  ;;  %v2365_v12 = vmul.f32 %v16204_v25, %v16205_v57  ;;  %v2366_v40 = vmul.f32 %v16204_v25, %v16206_v4  ;;  %v16207_v15 = vld [vmem:[#allocation13_spill] sm:$0xff]  ;;  %v16209_v10 = vld [vmem:[#allocation86_spill] sm:$0xff] }
 0x255   : > { %16198 = vst [vmem:[#allocation55_spill] sm:$0xff] %v9562_v50  ;;  %16200 = vst [vmem:[#allocation56_spill] sm:$0xff] %v9566_v27  ;;  %v2367_v51 = vmul.f32 %v16204_v25, %v16207_v15  ;;  %v16208_v41 = vld [vmem:[#allocation85_spill] sm:$0xff]  ;;  %v2369_v27 = vmul.f32 %v16204_v25, %v16209_v10  ;;  %v16210_v28 = vld [vmem:[#allocation70_spill] sm:$0xff] }
 0x256   : > { %16202 = vst [vmem:[#allocation57_spill] sm:$0xff] %v9570_v45  ;;  %v2368_v53 = vmul.f32 %v16204_v25, %v16208_v41  ;;  %v2370_v20 = vmul.f32 %v16204_v25, %v16210_v28  ;;  %v16211_v45 = vld [vmem:[#allocation105_spill] sm:$0xff]  ;;  %v16212_v57 = vld [vmem:[#allocation104_spill] sm:$0xff]  ;;  %v16214_v11 = vld [vmem:[#allocation75_spill] sm:$0xff] }
 0x257   : > { %v2371_v13 = vmul.f32 %v16204_v25, %v16211_v45  ;;  %v2372_v4 = vmul.f32 %v16204_v25, %v16212_v57  ;;  %v16213_v50 = vld [vmem:[#allocation48_spill] sm:$0xff]  ;;  %v2374_v41 = vmul.f32 %v16204_v25, %v16214_v11  ;;  %v16215_v36 = vld [vmem:[#allocation97_spill] sm:$0xff]  ;;  %v16218_v45 = vld [vmem:[#allocation11_spill] sm:$0xff] }
 0x258   : > { %v2373_v15 = vmul.f32 %v16204_v25, %v16213_v50  ;;  %v2375_v10 = vmul.f32 %v16204_v25, %v16215_v36  ;;  %v16216_v1 = vld [vmem:[#allocation8_spill] sm:$0xff]  ;;  %v16217_v29 = vld [vmem:[#allocation9_spill] sm:$0xff]  ;;  %v2378_v19 = vmul.f32 %v16204_v25, %v16218_v45  ;;  %v16220_v17 = vld [vmem:[#allocation103_spill] sm:$0xff] }
 0x259   : > { %v2376_v28 = vmul.f32 %v16204_v25, %v16216_v1  ;;  %v2377_v43 = vmul.f32 %v16204_v25, %v16217_v29  ;;  %v16219_v61 = vld [vmem:[#allocation33_spill] sm:$0xff]  ;;  %v2380_v50 = vmul.f32 %v16204_v25, %v16220_v17  ;;  %v16222_v46 = vld [vmem:[#allocation30_spill] sm:$0xff]  ;;  %v16224_v22 = vld [vmem:[#allocation32_spill] sm:$0xff] }
 0x25a   : > { %v2379_v57 = vmul.f32 %v16204_v25, %v16219_v61  ;;  %v16221_v8 = vld [vmem:[#allocation29_spill] sm:$0xff]  ;;  %v2382_v36 = vmul.f32 %v16204_v25, %v16222_v46  ;;  %v16223_v7 = vld [vmem:[#allocation34_spill] sm:$0xff]  ;;  %v2384_v29 = vmul.f32 %v16204_v25, %v16224_v22  ;;  %v16225_v58 = vld [vmem:[#allocation27_spill] sm:$0xff] }
 0x25b   : > { %v2381_v11 = vmul.f32 %v16204_v25, %v16221_v8  ;;  %v2383_v1 = vmul.f32 %v16204_v25, %v16223_v7  ;;  %v2385_v45 = vmul.f32 %v16204_v25, %v16225_v58  ;;  %v9617_v16 = vld [vmem:[%s5246_s17 + $0x16a] sm:$0xff]  ;;  %v9620_v61 = vld [vmem:[%s5246_s17 + $0x172] sm:$0x3f]  ;;  %v16228_v17 = vld [vmem:[#allocation96_spill] sm:$0xff] }
 0x25c   : > { %16226 = vst [vmem:[#allocation61_spill] sm:$0xff] %v9617_v16  ;;  %16227 = vst [vmem:[#allocation62_spill] sm:$0xff] %v9620_v61  ;;  %v2386_v9 = vmul.f32 %v16204_v25, %v16228_v17  ;;  %v16229_v8 = vld [vmem:[#allocation47_spill] sm:$0xff]  ;;  %v16230_v46 = vld [vmem:[#allocation24_spill] sm:$0xff]  ;;  %v9632_v22 = vmul.f32 %v16204_v25, %v9617_v16  ;;  %v9636_v58 = vmul.f32 %v16204_v25, %v9620_v61 }
 0x25d   : > { %v2387_v23 = vmul.f32 %v16204_v25, %v16229_v8  ;;  %v2388_v14 = vmul.f32 %v16204_v25, %v16230_v46  ;;  %v16231_v7 = vld [vmem:[#allocation25_spill] sm:$0xff]  ;;  %v16233_v60 = vld [vmem:[#allocation36_spill] sm:$0xff]  ;;  %v9644_v8 = vmul.f32 %v16204_v25, %v16115_v62  ;;  %v9658_v61 = vadd.f32 %v2365_v12, %v9348_v30 }
 0x25e   : > { %v2389_v52 = vmul.f32 %v16204_v25, %v16231_v7  ;;  %16232 = vst [vmem:[#allocation63_spill] sm:$0xff] %v9632_v22  ;;  %v9640_v17 = vmul.f32 %v16204_v25, %v16233_v60  ;;  %v16235_v46 = vld [vmem:[#allocation45_spill] sm:$0xff]  ;;  %v16236_v7 = vld [vmem:[#allocation106_spill] sm:$0xff]  ;;  %v9655_v22 = vadd.f32 %v2364_v33, %v9345_v42  ;;  %v9661_v60 = vadd.f32 %v2366_v40, %v9351_v34  ;;  %v4858_v12 = vld [vmem:[%s5246_s17 + $0x272] sm:$0xff] }
 0x25f   : > { %16234 = vst [vmem:[#allocation64_spill] sm:$0xff] %v9644_v8  ;;  %v9648_v38 = vmul.f32 %v16204_v25, %v16235_v46  ;;  %v9652_v16 = vmul.f32 %v16204_v25, %v16236_v7  ;;  %v9664_v62 = vadd.f32 %v2367_v51, %v9354_v26  ;;  %v9667_v8 = vadd.f32 %v2368_v53, %v9357_v63  ;;  %v4857_v33 = vld [vmem:[%s5246_s17 + $0x262] sm:$0x3f]  ;;  %v4860_v40 = vld [vmem:[%s5246_s17 + $0x28a] sm:$0xff] }
 0x260   : > { %v9670_v46 = vadd.f32 %v2369_v27, %v9360_v56  ;;  %v9673_v7 = vadd.f32 %v2370_v20, %v9363_v18  ;;  %v9676_v42 = vadd.f32 %v2371_v13, %v9366_v35  ;;  %v9679_v30 = vadd.f32 %v2372_v4, %v9369_v49  ;;  %v4855_v27 = vld [vmem:[%s5246_s17 + $0x24a] sm:$0x3f]  ;;  %v4859_v4 = vld [vmem:[%s5246_s17 + $0x27a] sm:$0x3f] }
 0x261   : > { %v9682_v34 = vadd.f32 %v2373_v15, %v9372_v59  ;;  %v9685_v26 = vadd.f32 %v2374_v41, %v9375_v2  ;;  %v9688_v63 = vadd.f32 %v2375_v10, %v9378_v6  ;;  %v9691_v56 = vadd.f32 %v2376_v28, %v9381_v32  ;;  %v16242_v15 = vld [vmem:[#allocation10_spill] sm:$0xff]  ;;  %v16249_v41 = vld [vmem:[#allocation92_spill] sm:$0xff]  ;;  %v2127_v28 = vld [vmem:[%s5246_s17 + $0x352] sm:$0x3f] }
 0x262   : > { %v9694_v18 = vadd.f32 %v2377_v43, %v9384_v47  ;;  %v9697_v35 = vadd.f32 %v2378_v19, %v9387_v44  ;;  %v9700_v49 = vadd.f32 %v2379_v57, %v9390_v48  ;;  %v9703_v59 = vadd.f32 %v2380_v50, %v9393_v39  ;;  %v16237_v47 = vld [vmem:[#allocation16_spill] sm:$0xff]  ;;  %v16240_v39 = vld [vmem:[#allocation21_spill] sm:$0xff]  ;;  %v2126_v10 = vld [vmem:[%s5246_s17 + $0x34a] sm:$0xff] }
 0x263   : > { %v9706_v2 = vadd.f32 %v2381_v11, %v9396_v37  ;;  %v9709_v6 = vadd.f32 %v2382_v36, %v9399_v54  ;;  %v9712_v32 = vadd.f32 %v2383_v1, %v9402_v5  ;;  %v9715_v44 = vadd.f32 %v2384_v29, %v16237_v47  ;;  %v16238_v19 = vld [vmem:[#allocation88_spill] sm:$0xff]  ;;  %v16244_v54 = vld [vmem:[#allocation43_spill] sm:$0xff]  ;;  %v4854_v29 = vld [vmem:[%s5246_s17 + $0x242] sm:$0xff] }
 0x264   : > { %v9718_v48 = vadd.f32 %v2385_v45, %v16238_v19  ;;  %v9721_v43 = vadd.f32 %v2386_v9, %v16240_v39  ;;  %v9724_v37 = vadd.f32 %v2387_v23, %v16242_v15  ;;  %v9727_v36 = vadd.f32 %v2388_v14, %v16244_v54  ;;  %v16246_v11 = vld [vmem:[#allocation44_spill] sm:$0xff]  ;;  %v16248_v1 = vld [vmem:[#allocation38_spill] sm:$0xff]  ;;  %v16251_v57 = vld [vmem:[#allocation89_spill] sm:$0xff] }
 0x265   : > { %v9730_v5 = vadd.f32 %v2389_v52, %v16246_v11  ;;  %v2628_v50 = vmul.f32 %v4854_v29, %v16248_v1  ;;  %v2629_v45 = vmul.f32 %v4855_v27, %v16248_v1  ;;  %v4856_v9 = vld [vmem:[%s5246_s17 + $0x25a] sm:$0xff]  ;;  %v2631_v23 = vmul.f32 %v4857_v33, %v16248_v1  ;;  %v16250_v20 = vld [vmem:[#allocation66_spill] sm:$0xff]  ;;  %v16252_v19 = vld [vmem:[#allocation67_spill] sm:$0xff] }
 0x266   : > { %16239 = vst [vmem:[#allocation68_spill] sm:$0xff] %v9718_v48  ;;  %16241 = vst [vmem:[#allocation18_spill] sm:$0xff] %v9721_v43  ;;  %v2630_v25 = vmul.f32 %v4856_v9, %v16248_v1  ;;  %v2632_v14 = vmul.f32 %v4858_v12, %v16248_v1  ;;  %v2633_v52 = vmul.f32 %v4859_v4, %v16248_v1  ;;  %v16253_v15 = vld [vmem:[#allocation72_spill] sm:$0xff]  ;;  %v16254_v11 = vld [vmem:[#allocation73_spill] sm:$0xff] }
 0x267   : > { %16243 = vst [vmem:[#allocation19_spill] sm:$0xff] %v9724_v37  ;;  %16245 = vst [vmem:[#allocation20_spill] sm:$0xff] %v9727_v36  ;;  %v2634_v51 = vmul.f32 %v4860_v40, %v16248_v1  ;;  %v2635_v53 = vmul.f32 %v16248_v1, %v16249_v41  ;;  %v2636_v13 = vmul.f32 %v16248_v1, %v16250_v20  ;;  %v16255_v27 = vld [vmem:[#allocation99_spill] sm:$0xff]  ;;  %v16256_v33 = vld [vmem:[#allocation74_spill] sm:$0xff] }
 0x268   : > { %16247 = vst [vmem:[#allocation76_spill] sm:$0xff] %v9730_v5  ;;  %v2637_v47 = vmul.f32 %v16248_v1, %v16251_v57  ;;  %v2638_v39 = vmul.f32 %v16248_v1, %v16252_v19  ;;  %v2639_v54 = vmul.f32 %v16248_v1, %v16253_v15  ;;  %v2640_v29 = vmul.f32 %v16248_v1, %v16254_v11  ;;  %v16257_v4 = vld [vmem:[#allocation79_spill] sm:$0xff]  ;;  %v16258_v41 = vld [vmem:[#allocation93_spill] sm:$0xff]  ;;  %v16259_v57 = vld [vmem:[#allocation94_spill] sm:$0xff] }
 0x269   : > { %v2641_v9 = vmul.f32 %v16248_v1, %v16255_v27  ;;  %v2642_v12 = vmul.f32 %v16248_v1, %v16256_v33  ;;  %v2643_v40 = vmul.f32 %v16248_v1, %v16257_v4  ;;  %v2644_v20 = vmul.f32 %v16248_v1, %v16258_v41  ;;  %v16260_v5 = vld [vmem:[#allocation23_spill] sm:$0xff]  ;;  %v16261_v36 = vld [vmem:[#allocation98_spill] sm:$0xff] }
 0x26a   : > { %v2645_v19 = vmul.f32 %v16248_v1, %v16259_v57  ;;  %v2646_v15 = vmul.f32 %v16248_v1, %v16260_v5  ;;  %v2647_v11 = vmul.f32 %v16248_v1, %v16261_v36  ;;  %v16262_v37 = vld [vmem:[#allocation90_spill] sm:$0xff]  ;;  %v2649_v33 = vmul.f32 %v16248_v1, %v9458_v55  ;;  %v16263_v55 = vld [vmem:[#allocation77_spill] sm:$0xff] }
 0x26b   : > { %v2648_v27 = vmul.f32 %v16248_v1, %v16262_v37  ;;  %v2650_v4 = vmul.f32 %v16248_v1, %v2126_v10  ;;  %v2651_v43 = vmul.f32 %v16248_v1, %v2127_v28  ;;  %v9781_v41 = vadd.f32 %v2628_v50, %v9477_v0  ;;  %v16264_v10 = vld [vmem:[#allocation84_spill] sm:$0xff]  ;;  %v16266_v0 = vld [vmem:[#allocation78_spill] sm:$0xff] }
 0x26c   : > { %v9784_v57 = vadd.f32 %v2629_v45, %v9480_v3  ;;  %v9787_v5 = vadd.f32 %v2630_v25, %v9483_v21  ;;  %v9790_v36 = vadd.f32 %v2631_v23, %v9486_v24  ;;  %v9793_v37 = vadd.f32 %v2632_v14, %v9489_v31  ;;  %v16268_v3 = vld [vmem:[#allocation82_spill] sm:$0xff]  ;;  %v16270_v21 = vld [vmem:[#allocation87_spill] sm:$0xff] }
 0x26d   : > { %v9796_v48 = vadd.f32 %v2633_v52, %v16263_v55  ;;  %v9799_v28 = vadd.f32 %v2634_v51, %v16264_v10  ;;  %v9802_v50 = vadd.f32 %v2635_v53, %v16266_v0  ;;  %v9805_v45 = vadd.f32 %v2636_v13, %v16268_v3  ;;  %v16272_v24 = vld [vmem:[#allocation46_spill] sm:$0xff]  ;;  %v16274_v31 = vld [vmem:[#allocation51_spill] sm:$0xff]  ;;  %v16276_v52 = vld [vmem:[#allocation52_spill] sm:$0xff] }
 0x26e   : > { %v9808_v25 = vadd.f32 %v2637_v47, %v16270_v21  ;;  %v9811_v23 = vadd.f32 %v2638_v39, %v16272_v24  ;;  %v9814_v14 = vadd.f32 %v2639_v54, %v16274_v31  ;;  %v9817_v55 = vadd.f32 %v2640_v29, %v16276_v52  ;;  %v16278_v51 = vld [vmem:[#allocation53_spill] sm:$0xff]  ;;  %v16280_v53 = vld [vmem:[#allocation58_spill] sm:$0xff]  ;;  %v16282_v13 = vld [vmem:[#allocation59_spill] sm:$0xff] }
 0x26f   : > { %16265 = vst [vmem:[#allocation100_spill] sm:$0xff] %v9799_v28  ;;  %16267 = vst [vmem:[#allocation5_spill] sm:$0xff] %v9802_v50  ;;  %v9820_v10 = vadd.f32 %v2641_v9, %v16278_v51  ;;  %v9823_v0 = vadd.f32 %v2642_v12, %v16280_v53  ;;  %v9826_v3 = vadd.f32 %v2643_v40, %v16282_v13  ;;  %v16284_v47 = vld [vmem:[#allocation60_spill] sm:$0xff]  ;;  %v16286_v39 = vld [vmem:[#allocation65_spill] sm:$0xff] }
 0x270   : > { %16269 = vst [vmem:[#allocation31_spill] sm:$0xff] %v9805_v45  ;;  %16271 = vst [vmem:[#allocation50_spill] sm:$0xff] %v9808_v25  ;;  %v9829_v21 = vadd.f32 %v2644_v20, %v16284_v47  ;;  %v9832_v24 = vadd.f32 %v2645_v19, %v16286_v39  ;;  %v16288_v54 = vld [vmem:[#allocation14_spill] sm:$0xff]  ;;  %v16290_v29 = vld [vmem:[#allocation15_spill] sm:$0xff] }
 0x271   : > { %16273 = vst [vmem:[#allocation17_spill] sm:$0xff] %v9811_v23  ;;  %16275 = vst [vmem:[#allocation26_spill] sm:$0xff] %v9814_v14  ;;  %v9835_v31 = vadd.f32 %v2646_v15, %v16288_v54  ;;  %v9838_v52 = vadd.f32 %v2647_v11, %v16290_v29  ;;  %v16292_v9 = vld [vmem:[#allocation12_spill] sm:$0xff]  ;;  %v16294_v12 = vld [vmem:[#allocation107_spill] sm:$0xff] }
 0x272   : > { %16277 = vst [vmem:[#allocation80_spill] sm:$0xff] %v9817_v55  ;;  %16279 = vst [vmem:[#allocation81_spill] sm:$0xff] %v9820_v10  ;;  %v9841_v51 = vadd.f32 %v2648_v27, %v16292_v9  ;;  %v9844_v53 = vadd.f32 %v2649_v33, %v16294_v12  ;;  %v16296_v40 = vld [vmem:[#allocation108_spill] sm:$0xff]  ;;  %v16298_v20 = vld [vmem:[#allocation35_spill] sm:$0xff] }
 0x273   : > { %16281 = vst [vmem:[#allocation22_spill] sm:$0xff] %v9823_v0  ;;  %16283 = vst [vmem:[#allocation83_spill] sm:$0xff] %v9826_v3  ;;  %v9847_v13 = vadd.f32 %v2650_v4, %v16296_v40  ;;  %v9850_v47 = vadd.f32 %v2651_v43, %v16298_v20  ;;  %v16300_v19 = vld [vmem:[#allocation37_spill] sm:$0xff]  ;;  %v16301_v39 = vld [vmem:[#allocation63_spill] sm:$0xff] }
 0x274   : > { %16285 = vst [vmem:[#allocation28_spill] sm:$0xff] %v9829_v21  ;;  %16287 = vst [vmem:[#allocation36_spill] sm:$0xff] %v9832_v24  ;;  %v9854_v1 = vadd.f32 %v16301_v39, %v16300_v19  ;;  %v16303_v15 = vld [vmem:[#allocation49_spill] sm:$0xff]  ;;  %v16305_v54 = vld [vmem:[#allocation54_spill] sm:$0xff] }
 0x275   : > { %16289 = vst [vmem:[#allocation45_spill] sm:$0xff] %v9835_v31  ;;  %16291 = vst [vmem:[#allocation106_spill] sm:$0xff] %v9838_v52  ;;  %v9858_v11 = vadd.f32 %v9636_v58, %v16303_v15  ;;  %v9862_v27 = vadd.f32 %v9640_v17, %v16305_v54  ;;  %v16307_v33 = vld [vmem:[#allocation55_spill] sm:$0xff]  ;;  %v16308_v29 = vld [vmem:[#allocation64_spill] sm:$0xff] }
 0x276   : > { %16293 = vst [vmem:[#allocation16_spill] sm:$0xff] %v9841_v51  ;;  %16295 = vst [vmem:[#allocation88_spill] sm:$0xff] %v9844_v53  ;;  %v9866_v9 = vadd.f32 %v16308_v29, %v16307_v33  ;;  %v16310_v4 = vld [vmem:[#allocation56_spill] sm:$0xff]  ;;  %v16312_v12 = vld [vmem:[#allocation57_spill] sm:$0xff] }
 0x277   : > { %16297 = vst [vmem:[#allocation21_spill] sm:$0xff] %v9847_v13  ;;  %16299 = vst [vmem:[#allocation10_spill] sm:$0xff] %v9850_v47  ;;  %v9870_v43 = vadd.f32 %v9648_v38, %v16310_v4  ;;  %v9874_v40 = vadd.f32 %v9652_v16, %v16312_v12  ;;  %v16314_v20 = vld [vmem:[#allocation39_spill] sm:$0xff]  ;;  %v16315_v19 = vld [vmem:[#allocation69_spill] sm:$0xff] }
 0x278   : > { %16302 = vst [vmem:[#allocation43_spill] sm:$0xff] %v9854_v1  ;;  %16304 = vst [vmem:[#allocation44_spill] sm:$0xff] %v9858_v11  ;;  %v2480_v58 = vmul.f32 %v16315_v19, %v16314_v20  ;;  %v16316_v39 = vld [vmem:[#allocation13_spill] sm:$0xff]  ;;  %v16319_v29 = vld [vmem:[#allocation70_spill] sm:$0xff] }
 0x279   : > { %16306 = vst [vmem:[#allocation92_spill] sm:$0xff] %v9862_v27  ;;  %16309 = vst [vmem:[#allocation66_spill] sm:$0xff] %v9866_v9  ;;  %v2481_v15 = vmul.f32 %v16315_v19, %v16316_v39  ;;  %v16317_v17 = vld [vmem:[#allocation85_spill] sm:$0xff]  ;;  %v16318_v27 = vld [vmem:[#allocation86_spill] sm:$0xff]  ;;  %v2484_v38 = vmul.f32 %v16315_v19, %v16319_v29 }
 0x27a   : > { %16311 = vst [vmem:[#allocation89_spill] sm:$0xff] %v9870_v43  ;;  %16313 = vst [vmem:[#allocation67_spill] sm:$0xff] %v9874_v40  ;;  %v2482_v54 = vmul.f32 %v16315_v19, %v16317_v17  ;;  %v2483_v33 = vmul.f32 %v16315_v19, %v16318_v27  ;;  %v16320_v4 = vld [vmem:[#allocation105_spill] sm:$0xff]  ;;  %v16321_v16 = vld [vmem:[#allocation104_spill] sm:$0xff] }
 0x27b   : > { %v2485_v43 = vmul.f32 %v16315_v19, %v16320_v4  ;;  %v2486_v12 = vmul.f32 %v16315_v19, %v16321_v16  ;;  %v16322_v40 = vld [vmem:[#allocation48_spill] sm:$0xff]  ;;  %v16323_v39 = vld [vmem:[#allocation75_spill] sm:$0xff]  ;;  %v16324_v9 = vld [vmem:[#allocation97_spill] sm:$0xff] }
 0x27c   : > { %v2487_v20 = vmul.f32 %v16315_v19, %v16322_v40  ;;  %v2488_v17 = vmul.f32 %v16315_v19, %v16323_v39  ;;  %v2489_v27 = vmul.f32 %v16315_v19, %v16324_v9  ;;  %v16325_v11 = vld [vmem:[#allocation8_spill] sm:$0xff]  ;;  %v16326_v1 = vld [vmem:[#allocation9_spill] sm:$0xff]  ;;  %v16327_v47 = vld [vmem:[#allocation11_spill] sm:$0xff] }
 0x27d   : > { %v2490_v29 = vmul.f32 %v16315_v19, %v16325_v11  ;;  %v2491_v4 = vmul.f32 %v16315_v19, %v16326_v1  ;;  %v2492_v16 = vmul.f32 %v16315_v19, %v16327_v47  ;;  %v16328_v13 = vld [vmem:[#allocation33_spill] sm:$0xff]  ;;  %v16329_v40 = vld [vmem:[#allocation103_spill] sm:$0xff]  ;;  %v16331_v9 = vld [vmem:[#allocation30_spill] sm:$0xff] }
 0x27e   : > { %v2493_v53 = vmul.f32 %v16315_v19, %v16328_v13  ;;  %v2494_v51 = vmul.f32 %v16315_v19, %v16329_v40  ;;  %v16330_v52 = vld [vmem:[#allocation29_spill] sm:$0xff]  ;;  %v2496_v31 = vmul.f32 %v16315_v19, %v16331_v9  ;;  %v16332_v11 = vld [vmem:[#allocation34_spill] sm:$0xff]  ;;  %v16333_v24 = vld [vmem:[#allocation32_spill] sm:$0xff] }
 0x27f   : > { %v2495_v39 = vmul.f32 %v16315_v19, %v16330_v52  ;;  %v2497_v1 = vmul.f32 %v16315_v19, %v16332_v11  ;;  %v2498_v47 = vmul.f32 %v16315_v19, %v16333_v24  ;;  %v16334_v21 = vld [vmem:[#allocation27_spill] sm:$0xff]  ;;  %v16335_v3 = vld [vmem:[#allocation96_spill] sm:$0xff]  ;;  %v9921_v10 = vld [vmem:[%s5246_s17 + $0x182] sm:$0xff] }
 0x280   : > { %v2499_v13 = vmul.f32 %v16315_v19, %v16334_v21  ;;  %v2500_v40 = vmul.f32 %v16315_v19, %v16335_v3  ;;  %v16336_v0 = vld [vmem:[#allocation47_spill] sm:$0xff]  ;;  %16337 = vst [vmem:[#allocation72_spill] sm:$0xff] %v9921_v10  ;;  %v9924_v9 = vld [vmem:[%s5246_s17 + $0x18a] sm:$0x3f]  ;;  %v16339_v55 = vld [vmem:[#allocation24_spill] sm:$0xff]  ;;  %v9936_v45 = vmul.f32 %v16315_v19, %v9921_v10 }
 0x281   : > { %v2501_v52 = vmul.f32 %v16315_v19, %v16336_v0  ;;  %16338 = vst [vmem:[#allocation73_spill] sm:$0xff] %v9924_v9  ;;  %v2502_v11 = vmul.f32 %v16315_v19, %v16339_v55  ;;  %v16340_v14 = vld [vmem:[#allocation25_spill] sm:$0xff]  ;;  %v16342_v25 = vld [vmem:[#allocation62_spill] sm:$0xff]  ;;  %v9940_v0 = vmul.f32 %v16315_v19, %v9924_v9  ;;  %v9958_v10 = vld [vmem:[%s5246_s17 + $0x21a] sm:$0x3f] }
 0x282   : > { %v2503_v24 = vmul.f32 %v16315_v19, %v16340_v14  ;;  %v16341_v23 = vld [vmem:[#allocation61_spill] sm:$0xff]  ;;  %v2505_v3 = vmul.f32 %v16315_v19, %v16342_v25  ;;  %v9962_v9 = vmul.f32 %v9958_v10, %v16315_v19 }
 0x283   : > { %v2504_v21 = vmul.f32 %v16315_v19, %v16341_v23  ;;  %16343 = vst [vmem:[#allocation99_spill] sm:$0xff] %v9940_v0  ;;  %v4861_v50 = vld [vmem:[%s5246_s17 + $0x1fa] sm:$0xff]  ;;  %v4862_v28 = vld [vmem:[%s5246_s17 + $0x202] sm:$0x3f]  ;;  %v9951_v23 = vld [vmem:[%s5246_s17 + $0x212] sm:$0xff]  ;;  %v9965_v0 = vadd.f32 %v2480_v58, %v9655_v22  ;;  %v9983_v22 = vadd.f32 %v2486_v12, %v9673_v7  ;;  %v10001_v7 = vadd.f32 %v2492_v16, %v9691_v56 }
 0x284   : > { %v9944_v55 = vmul.f32 %v4861_v50, %v16315_v19  ;;  %v9948_v14 = vmul.f32 %v4862_v28, %v16315_v19  ;;  %16345 = vst [vmem:[#allocation79_spill] sm:$0xff] %v9951_v23  ;;  %v9955_v25 = vmul.f32 %v9951_v23, %v16315_v19  ;;  %v9968_v50 = vadd.f32 %v2481_v15, %v9658_v61  ;;  %v10022_v56 = vld [vmem:[%s5246_s17 + $0x1eb] sm:$0x3f]  ;;  %v10073_v12 = vld [vmem:[%s5246_s17 + $0x25b] sm:$0xff] }
 0x285   : > { %v9971_v28 = vadd.f32 %v2482_v54, %v9661_v60  ;;  %v9977_v23 = vadd.f32 %v2484_v38, %v9667_v8  ;;  %v9980_v19 = vadd.f32 %v2485_v43, %v9670_v46  ;;  %v9986_v61 = vadd.f32 %v2487_v20, %v9676_v42  ;;  %v10019_v43 = vld [vmem:[%s5246_s17 + $0x1e3] sm:$0xff]  ;;  %16347 = vst [vmem:[#allocation94_spill] sm:$0xff] %v10022_v56  ;;  %v10061_v54 = vld [vmem:[%s5246_s17 + $0x22b] sm:$0xff] }
 0x286   : > { %16344 = vst [vmem:[#allocation74_spill] sm:$0xff] %v9948_v14  ;;  %v9974_v14 = vadd.f32 %v2483_v33, %v9664_v62  ;;  %v9989_v60 = vadd.f32 %v2488_v17, %v9679_v30  ;;  %v9992_v62 = vadd.f32 %v2489_v27, %v9682_v34  ;;  %v9995_v8 = vadd.f32 %v2490_v29, %v9685_v26  ;;  %v16355_v58 = vld [vmem:[#allocation18_spill] sm:$0xff]  ;;  %v10064_v33 = vld [vmem:[%s5246_s17 + $0x233] sm:$0x3f]  ;;  %v10090_v29 = vld [vmem:[%s5246_s17 + $0x27b] sm:$0x3f] }
 0x287   : > { %v9998_v46 = vadd.f32 %v2491_v4, %v9688_v63  ;;  %v10004_v42 = vadd.f32 %v2493_v53, %v9694_v18  ;;  %v10007_v30 = vadd.f32 %v2494_v51, %v9697_v35  ;;  %v10010_v34 = vadd.f32 %v2495_v39, %v9700_v49  ;;  %16346 = vst [vmem:[#allocation93_spill] sm:$0xff] %v10019_v43  ;;  %v10025_v18 = vld [vmem:[%s5246_s17 + $0x1fb] sm:$0xff]  ;;  %v10043_v51 = vld [vmem:[%s5246_s17 + $0x213] sm:$0xff]  ;;  %v10067_v38 = vld [vmem:[%s5246_s17 + $0x243] sm:$0xff] }
 0x288   : > { %v10013_v26 = vadd.f32 %v2496_v31, %v9703_v59  ;;  %v10016_v63 = vadd.f32 %v2497_v1, %v9706_v2  ;;  %16348 = vst [vmem:[#allocation23_spill] sm:$0xff] %v10025_v18  ;;  %v10028_v35 = vadd.f32 %v2498_v47, %v9709_v6  ;;  %v10031_v49 = vadd.f32 %v2499_v13, %v9712_v32  ;;  %v16350_v2 = vld [vmem:[#allocation68_spill] sm:$0xff]  ;;  %v10040_v31 = vld [vmem:[%s5246_s17 + $0x203] sm:$0x3f]  ;;  %v16357_v47 = vld [vmem:[#allocation19_spill] sm:$0xff] }
 0x289   : > { %v10034_v59 = vadd.f32 %v2500_v40, %v9715_v44  ;;  %v10037_v1 = vadd.f32 %v2501_v52, %v16350_v2  ;;  %16352 = vst [vmem:[#allocation77_spill] sm:$0xff] %v10040_v31  ;;  %16353 = vst [vmem:[#allocation84_spill] sm:$0xff] %v10043_v51  ;;  %v10046_v53 = vld [vmem:[%s5246_s17 + $0x21b] sm:$0x3f]  ;;  %v10049_v6 = vadd.f32 %v2502_v11, %v16355_v58  ;;  %v10070_v11 = vld [vmem:[%s5246_s17 + $0x24b] sm:$0x3f] }
 0x28a   : > { %16354 = vst [vmem:[#allocation78_spill] sm:$0xff] %v10046_v53  ;;  %v10052_v32 = vadd.f32 %v2503_v24, %v16357_v47  ;;  %v16359_v44 = vld [vmem:[#allocation20_spill] sm:$0xff]  ;;  %16363 = vst [vmem:[#allocation52_spill] sm:$0xff] %v10061_v54  ;;  %v10076_v24 = vld [vmem:[%s5246_s17 + $0x263] sm:$0x3f] }
 0x28b   : > { %16349 = vst [vmem:[#allocation98_spill] sm:$0xff] %v10034_v59  ;;  %16351 = vst [vmem:[#allocation90_spill] sm:$0xff] %v10037_v1  ;;  %v10055_v13 = vadd.f32 %v2504_v21, %v16359_v44  ;;  %v16361_v52 = vld [vmem:[#allocation76_spill] sm:$0xff]  ;;  %v16369_v21 = vld [vmem:[#allocation91_spill] sm:$0xff] }
 0x28c   : > { %16356 = vst [vmem:[#allocation82_spill] sm:$0xff] %v10049_v6  ;;  %16358 = vst [vmem:[#allocation87_spill] sm:$0xff] %v10052_v32  ;;  %v10058_v15 = vadd.f32 %v2505_v3, %v16361_v52  ;;  %v2816_v20 = vmul.f32 %v16369_v21, %v10019_v43  ;;  %v2817_v3 = vmul.f32 %v16369_v21, %v10022_v56  ;;  %v10087_v27 = vld [vmem:[%s5246_s17 + $0x273] sm:$0xff]  ;;  %v10093_v4 = vld [vmem:[%s5246_s17 + $0x28b] sm:$0xff] }
 0x28d   : > { %16360 = vst [vmem:[#allocation46_spill] sm:$0xff] %v10055_v13  ;;  %16364 = vst [vmem:[#allocation53_spill] sm:$0xff] %v10064_v33  ;;  %v2818_v39 = vmul.f32 %v16369_v21, %v10025_v18  ;;  %v2819_v17 = vmul.f32 %v16369_v21, %v10040_v31  ;;  %v2820_v16 = vmul.f32 %v16369_v21, %v10043_v51  ;;  %v10104_v47 = vld [vmem:[%s5246_s17 + $0x293] sm:$0x3f]  ;;  %v10107_v44 = vld [vmem:[%s5246_s17 + $0x2a3] sm:$0xff] }
 0x28e   : > { %16362 = vst [vmem:[#allocation51_spill] sm:$0xff] %v10058_v15  ;;  %16365 = vst [vmem:[#allocation58_spill] sm:$0xff] %v10067_v38  ;;  %v2821_v40 = vmul.f32 %v16369_v21, %v10046_v53  ;;  %v2822_v2 = vmul.f32 %v16369_v21, %v10061_v54  ;;  %v2823_v58 = vmul.f32 %v16369_v21, %v10064_v33  ;;  %v10110_v52 = vld [vmem:[%s5246_s17 + $0x2ab] sm:$0x3f]  ;;  %v10121_v53 = vld [vmem:[%s5246_s17 + $0x2bb] sm:$0xff] }
 0x28f   : > { %16366 = vst [vmem:[#allocation59_spill] sm:$0xff] %v10070_v11  ;;  %16367 = vst [vmem:[#allocation60_spill] sm:$0xff] %v10073_v12  ;;  %v2824_v56 = vmul.f32 %v16369_v21, %v10067_v38  ;;  %v2825_v43 = vmul.f32 %v16369_v21, %v10070_v11  ;;  %v2826_v54 = vmul.f32 %v16369_v21, %v10073_v12  ;;  %v10124_v51 = vld [vmem:[%s5246_s17 + $0x2c3] sm:$0x3f]  ;;  %v10127_v31 = vld [vmem:[%s5246_s17 + $0x2d3] sm:$0xff] }
 0x290   : > { %16368 = vst [vmem:[#allocation65_spill] sm:$0xff] %v10076_v24  ;;  %16370 = vst [vmem:[#allocation14_spill] sm:$0xff] %v10087_v27  ;;  %v2827_v33 = vmul.f32 %v16369_v21, %v10076_v24  ;;  %v2828_v18 = vmul.f32 %v16369_v21, %v10087_v27  ;;  %v2829_v38 = vmul.f32 %v16369_v21, %v10090_v29  ;;  %v10138_v15 = vld [vmem:[%s5246_s17 + $0x2db] sm:$0x3f]  ;;  %v10141_v24 = vld [vmem:[%s5246_s17 + $0x2eb] sm:$0xff] }
 0x291   : > { %16371 = vst [vmem:[#allocation15_spill] sm:$0xff] %v10090_v29  ;;  %16372 = vst [vmem:[#allocation12_spill] sm:$0xff] %v10093_v4  ;;  %v2830_v11 = vmul.f32 %v16369_v21, %v10093_v4  ;;  %v2831_v12 = vmul.f32 %v16369_v21, %v10104_v47  ;;  %v10144_v13 = vld [vmem:[%s5246_s17 + $0x2f3] sm:$0x3f]  ;;  %v2832_v32 = vmul.f32 %v16369_v21, %v10107_v44 }
 0x292   : > { %16373 = vst [vmem:[#allocation107_spill] sm:$0xff] %v10104_v47  ;;  %16374 = vst [vmem:[#allocation108_spill] sm:$0xff] %v10107_v44  ;;  %v2833_v27 = vmul.f32 %v16369_v21, %v10110_v52  ;;  %v2834_v29 = vmul.f32 %v16369_v21, %v10121_v53  ;;  %v2835_v4 = vmul.f32 %v16369_v21, %v10124_v51  ;;  %v16384_v59 = vld [vmem:[#allocation100_spill] sm:$0xff] }
 0x293   : > { %16375 = vst [vmem:[#allocation35_spill] sm:$0xff] %v10110_v52  ;;  %16376 = vst [vmem:[#allocation37_spill] sm:$0xff] %v10121_v53  ;;  %v2836_v47 = vmul.f32 %v16369_v21, %v10127_v31  ;;  %v2837_v6 = vmul.f32 %v16369_v21, %v10138_v15  ;;  %v2838_v1 = vmul.f32 %v16369_v21, %v10141_v24 }
 0x294   : > { %16377 = vst [vmem:[#allocation63_spill] sm:$0xff] %v10124_v51  ;;  %16378 = vst [vmem:[#allocation49_spill] sm:$0xff] %v10127_v31  ;;  %v2839_v44 = vmul.f32 %v16369_v21, %v10144_v13  ;;  %v10163_v52 = vadd.f32 %v2816_v20, %v9781_v41  ;;  %v10166_v53 = vadd.f32 %v2817_v3, %v9784_v57  ;;  %v16386_v41 = vld [vmem:[#allocation5_spill] sm:$0xff]  ;;  %v16388_v57 = vld [vmem:[#allocation31_spill] sm:$0xff] }
 0x295   : > { %16379 = vst [vmem:[#allocation54_spill] sm:$0xff] %v10138_v15  ;;  %16380 = vst [vmem:[#allocation55_spill] sm:$0xff] %v10141_v24  ;;  %v10169_v51 = vadd.f32 %v2818_v39, %v9787_v5  ;;  %v10172_v31 = vadd.f32 %v2819_v17, %v9790_v36  ;;  %v10175_v15 = vadd.f32 %v2820_v16, %v9793_v37  ;;  %v16390_v5 = vld [vmem:[#allocation50_spill] sm:$0xff]  ;;  %v16392_v36 = vld [vmem:[#allocation17_spill] sm:$0xff] }
 0x296   : > { %16381 = vst [vmem:[#allocation64_spill] sm:$0xff] %v10144_v13  ;;  %v10178_v24 = vadd.f32 %v2821_v40, %v9796_v48  ;;  %v10181_v21 = vadd.f32 %v2822_v2, %v16384_v59  ;;  %v10184_v20 = vadd.f32 %v2823_v58, %v16386_v41  ;;  %v10187_v3 = vadd.f32 %v2824_v56, %v16388_v57  ;;  %v16394_v37 = vld [vmem:[#allocation26_spill] sm:$0xff]  ;;  %v16396_v48 = vld [vmem:[#allocation80_spill] sm:$0xff]  ;;  %v16398_v59 = vld [vmem:[#allocation81_spill] sm:$0xff] }
 0x297   : > { %16382 = vst [vmem:[#allocation56_spill] sm:$0xff] %v10175_v15  ;;  %v10190_v39 = vadd.f32 %v2825_v43, %v16390_v5  ;;  %v10193_v17 = vadd.f32 %v2826_v54, %v16392_v36  ;;  %v10196_v16 = vadd.f32 %v2827_v33, %v16394_v37  ;;  %v10199_v40 = vadd.f32 %v2828_v18, %v16396_v48  ;;  %v16400_v58 = vld [vmem:[#allocation22_spill] sm:$0xff]  ;;  %v16402_v56 = vld [vmem:[#allocation83_spill] sm:$0xff]  ;;  %v16404_v43 = vld [vmem:[#allocation28_spill] sm:$0xff] }
 0x298   : > { %16383 = vst [vmem:[#allocation57_spill] sm:$0xff] %v10178_v24  ;;  %16385 = vst [vmem:[#allocation39_spill] sm:$0xff] %v10181_v21  ;;  %v10202_v2 = vadd.f32 %v2829_v38, %v16398_v59  ;;  %v10205_v41 = vadd.f32 %v2830_v11, %v16400_v58  ;;  %v10208_v57 = vadd.f32 %v2831_v12, %v16402_v56  ;;  %v16406_v54 = vld [vmem:[#allocation36_spill] sm:$0xff]  ;;  %v16408_v36 = vld [vmem:[#allocation45_spill] sm:$0xff] }
 0x299   : > { %16387 = vst [vmem:[#allocation69_spill] sm:$0xff] %v10184_v20  ;;  %16389 = vst [vmem:[#allocation13_spill] sm:$0xff] %v10187_v3  ;;  %v10211_v5 = vadd.f32 %v2832_v32, %v16404_v43  ;;  %v10214_v33 = vadd.f32 %v2833_v27, %v16406_v54  ;;  %v10217_v18 = vadd.f32 %v2834_v29, %v16408_v36  ;;  %v16410_v37 = vld [vmem:[#allocation106_spill] sm:$0xff]  ;;  %v16412_v11 = vld [vmem:[#allocation16_spill] sm:$0xff] }
 0x29a   : > { %16391 = vst [vmem:[#allocation85_spill] sm:$0xff] %v10190_v39  ;;  %16393 = vst [vmem:[#allocation86_spill] sm:$0xff] %v10193_v17  ;;  %v10220_v38 = vadd.f32 %v2835_v4, %v16410_v37  ;;  %v10223_v48 = vadd.f32 %v2836_v47, %v16412_v11  ;;  %v16414_v59 = vld [vmem:[#allocation88_spill] sm:$0xff]  ;;  %v16416_v32 = vld [vmem:[#allocation21_spill] sm:$0xff] }
 0x29b   : > { %16395 = vst [vmem:[#allocation70_spill] sm:$0xff] %v10196_v16  ;;  %16397 = vst [vmem:[#allocation105_spill] sm:$0xff] %v10199_v40  ;;  %v10226_v12 = vadd.f32 %v2837_v6, %v16414_v59  ;;  %v10229_v58 = vadd.f32 %v2838_v1, %v16416_v32  ;;  %v16418_v56 = vld [vmem:[#allocation10_spill] sm:$0xff]  ;;  %v16420_v29 = vld [vmem:[#allocation43_spill] sm:$0xff] }
 0x29c   : > { %16399 = vst [vmem:[#allocation104_spill] sm:$0xff] %v10202_v2  ;;  %16401 = vst [vmem:[#allocation48_spill] sm:$0xff] %v10205_v41  ;;  %v10232_v27 = vadd.f32 %v2839_v44, %v16418_v56  ;;  %v10236_v43 = vadd.f32 %v9936_v45, %v16420_v29  ;;  %v16422_v4 = vld [vmem:[#allocation44_spill] sm:$0xff]  ;;  %v16423_v54 = vld [vmem:[#allocation99_spill] sm:$0xff] }
 0x29d   : > { %16403 = vst [vmem:[#allocation68_spill] sm:$0xff] %v10208_v57  ;;  %16405 = vst [vmem:[#allocation18_spill] sm:$0xff] %v10211_v5  ;;  %v10240_v47 = vadd.f32 %v16423_v54, %v16422_v4  ;;  %v16425_v36 = vld [vmem:[#allocation92_spill] sm:$0xff]  ;;  %v16427_v37 = vld [vmem:[#allocation66_spill] sm:$0xff] }
 0x29e   : > { %16407 = vst [vmem:[#allocation19_spill] sm:$0xff] %v10214_v33  ;;  %16409 = vst [vmem:[#allocation20_spill] sm:$0xff] %v10217_v18  ;;  %v10244_v6 = vadd.f32 %v9944_v55, %v16425_v36  ;;  %v16428_v1 = vld [vmem:[#allocation74_spill] sm:$0xff]  ;;  %v16430_v59 = vld [vmem:[#allocation89_spill] sm:$0xff] }
 0x29f   : > { %16411 = vst [vmem:[#allocation76_spill] sm:$0xff] %v10220_v38  ;;  %16413 = vst [vmem:[#allocation100_spill] sm:$0xff] %v10223_v48  ;;  %v10248_v11 = vadd.f32 %v16428_v1, %v16427_v37  ;;  %v10252_v44 = vadd.f32 %v9955_v25, %v16430_v59  ;;  %v16432_v32 = vld [vmem:[#allocation67_spill] sm:$0xff]  ;;  %v4865_v56 = vld [vmem:[%s5246_s17 + $0x62] sm:$0xff] }
 0x2a0   : > { %16415 = vst [vmem:[#allocation5_spill] sm:$0xff] %v10226_v12  ;;  %16417 = vst [vmem:[#allocation31_spill] sm:$0xff] %v10229_v58  ;;  %v10256_v45 = vadd.f32 %v9962_v9, %v16432_v32  ;;  %v16434_v29 = vld [vmem:[#allocation38_spill] sm:$0xff]  ;;  %v4867_v55 = vld [vmem:[%s5246_s17 + $0x7a] sm:$0xff] }
 0x2a1   : > { %16419 = vst [vmem:[#allocation50_spill] sm:$0xff] %v10232_v27  ;;  %16421 = vst [vmem:[#allocation17_spill] sm:$0xff] %v10236_v43  ;;  %v2596_v4 = vmul.f32 %v4865_v56, %v16434_v29  ;;  %v4866_v54 = vld [vmem:[%s5246_s17 + $0x6a] sm:$0x3f]  ;;  %v2598_v36 = vmul.f32 %v4867_v55, %v16434_v29  ;;  %v4868_v37 = vld [vmem:[%s5246_s17 + $0x82] sm:$0x3f] }
 0x2a2   : > { %16424 = vst [vmem:[#allocation26_spill] sm:$0xff] %v10240_v47  ;;  %16426 = vst [vmem:[#allocation80_spill] sm:$0xff] %v10244_v6  ;;  %v2597_v47 = vmul.f32 %v4866_v54, %v16434_v29  ;;  %v2599_v1 = vmul.f32 %v4868_v37, %v16434_v29  ;;  %v4869_v25 = vld [vmem:[%s5246_s17 + $0x92] sm:$0xff]  ;;  %v16438_v55 = vld [vmem:[#allocation9_spill] sm:$0xff] }
 0x2a3   : > { %16429 = vst [vmem:[#allocation81_spill] sm:$0xff] %v10248_v11  ;;  %16431 = vst [vmem:[#allocation22_spill] sm:$0xff] %v10252_v44  ;;  %v2600_v59 = vmul.f32 %v4869_v25, %v16434_v29  ;;  %v4870_v44 = vld [vmem:[%s5246_s17 + $0x9a] sm:$0x3f]  ;;  %v16435_v32 = vld [vmem:[#allocation75_spill] sm:$0xff]  ;;  %v2605_v43 = vmul.f32 %v16434_v29, %v16438_v55 }
 0x2a4   : > { %16433 = vst [vmem:[#allocation83_spill] sm:$0xff] %v10256_v45  ;;  %v2601_v9 = vmul.f32 %v4870_v44, %v16434_v29  ;;  %v2602_v56 = vmul.f32 %v16434_v29, %v16435_v32  ;;  %v16436_v45 = vld [vmem:[#allocation97_spill] sm:$0xff]  ;;  %v16437_v11 = vld [vmem:[#allocation8_spill] sm:$0xff]  ;;  %v16439_v27 = vld [vmem:[#allocation11_spill] sm:$0xff] }
 0x2a5   : > { %v2603_v54 = vmul.f32 %v16434_v29, %v16436_v45  ;;  %v2604_v6 = vmul.f32 %v16434_v29, %v16437_v11  ;;  %v2606_v37 = vmul.f32 %v16434_v29, %v16439_v27  ;;  %v16440_v58 = vld [vmem:[#allocation33_spill] sm:$0xff]  ;;  %v16441_v12 = vld [vmem:[#allocation103_spill] sm:$0xff]  ;;  %v16443_v18 = vld [vmem:[#allocation30_spill] sm:$0xff] }
 0x2a6   : > { %v2607_v25 = vmul.f32 %v16434_v29, %v16440_v58  ;;  %v2608_v44 = vmul.f32 %v16434_v29, %v16441_v12  ;;  %v16442_v48 = vld [vmem:[#allocation29_spill] sm:$0xff]  ;;  %v2610_v11 = vmul.f32 %v16434_v29, %v16443_v18  ;;  %v16444_v33 = vld [vmem:[#allocation34_spill] sm:$0xff]  ;;  %v16445_v5 = vld [vmem:[#allocation32_spill] sm:$0xff] }
 0x2a7   : > { %v2609_v32 = vmul.f32 %v16434_v29, %v16442_v48  ;;  %v2090_v38 = vld [vmem:[%s5246_s17 + $0x19a] sm:$0xff]  ;;  %v2091_v45 = vld [vmem:[%s5246_s17 + $0x1a2] sm:$0x3f]  ;;  %v2611_v55 = vmul.f32 %v16434_v29, %v16444_v33  ;;  %v2612_v27 = vmul.f32 %v16434_v29, %v16445_v5  ;;  %v16446_v57 = vld [vmem:[#allocation27_spill] sm:$0xff] }
 0x2a8   : > { %v2613_v58 = vmul.f32 %v16434_v29, %v16446_v57  ;;  %v16447_v12 = vld [vmem:[#allocation96_spill] sm:$0xff]  ;;  %v16448_v48 = vld [vmem:[#allocation47_spill] sm:$0xff]  ;;  %v16450_v16 = vld [vmem:[#allocation25_spill] sm:$0xff] }
 0x2a9   : > { %v2614_v41 = vmul.f32 %v16434_v29, %v16447_v12  ;;  %v2615_v2 = vmul.f32 %v16434_v29, %v16448_v48  ;;  %v16449_v40 = vld [vmem:[#allocation24_spill] sm:$0xff]  ;;  %v2617_v17 = vmul.f32 %v16434_v29, %v16450_v16  ;;  %v16451_v33 = vld [vmem:[#allocation61_spill] sm:$0xff]  ;;  %v16452_v5 = vld [vmem:[#allocation62_spill] sm:$0xff]  ;;  %v10313_v48 = vmul.f32 %v16434_v29, %v2090_v38 }
 0x2aa   : > { %v2616_v18 = vmul.f32 %v16434_v29, %v16449_v40  ;;  %v2618_v39 = vmul.f32 %v16434_v29, %v16451_v33  ;;  %v2619_v3 = vmul.f32 %v16434_v29, %v16452_v5  ;;  %v16453_v20 = vld [vmem:[#allocation72_spill] sm:$0xff]  ;;  %v16454_v21 = vld [vmem:[#allocation73_spill] sm:$0xff]  ;;  %v10316_v40 = vmul.f32 %v16434_v29, %v2091_v45  ;;  %v16455_v16 = vld [vmem:[#allocation79_spill] sm:$0xff] }
 0x2ab   : > { %v2620_v57 = vmul.f32 %v16434_v29, %v16453_v20  ;;  %v2621_v12 = vmul.f32 %v16434_v29, %v16454_v21  ;;  %v10320_v24 = vmul.f32 %v16455_v16, %v16434_v29  ;;  %v10324_v33 = vmul.f32 %v9958_v10, %v16434_v29  ;;  %v4871_v5 = vld [vmem:[%s5246_s17 + $0x22a] sm:$0xff]  ;;  %v4872_v15 = vld [vmem:[%s5246_s17 + $0x232] sm:$0x3f] }
 0x2ac   : > { %v10328_v20 = vmul.f32 %v4871_v5, %v16434_v29  ;;  %v10332_v21 = vmul.f32 %v4872_v15, %v16434_v29  ;;  %v10335_v38 = vadd.f32 %v2596_v4, %v9965_v0  ;;  %v10338_v45 = vadd.f32 %v2597_v47, %v9968_v50 }
 0x2ad   : > { %16456 = vst [vmem:[#allocation28_spill] sm:$0xff] %v10324_v33  ;;  %v10341_v16 = vadd.f32 %v2598_v36, %v9971_v28  ;;  %v10344_v10 = vadd.f32 %v2599_v1, %v9974_v14  ;;  %v10347_v33 = vadd.f32 %v2600_v59, %v9977_v23  ;;  %v10350_v5 = vadd.f32 %v2601_v9, %v9980_v19  ;;  %v16470_v1 = vld [vmem:[#allocation77_spill] sm:$0xff]  ;;  %v16471_v59 = vld [vmem:[#allocation84_spill] sm:$0xff]  ;;  %v16472_v9 = vld [vmem:[#allocation78_spill] sm:$0xff] }
 0x2ae   : > { %v10353_v15 = vadd.f32 %v2602_v56, %v9983_v22  ;;  %v10356_v0 = vadd.f32 %v2603_v54, %v9986_v61  ;;  %v10359_v50 = vadd.f32 %v2604_v6, %v9989_v60  ;;  %v10362_v28 = vadd.f32 %v2605_v43, %v9992_v62  ;;  %v16473_v56 = vld [vmem:[#allocation52_spill] sm:$0xff] }
 0x2af   : > { %v10365_v14 = vadd.f32 %v2606_v37, %v9995_v8  ;;  %v10368_v23 = vadd.f32 %v2607_v25, %v9998_v46  ;;  %v10371_v19 = vadd.f32 %v2608_v44, %v10001_v7  ;;  %v10374_v22 = vadd.f32 %v2609_v32, %v10004_v42  ;;  %v16457_v42 = vld [vmem:[#allocation98_spill] sm:$0xff]  ;;  %v16474_v37 = vld [vmem:[#allocation53_spill] sm:$0xff] }
 0x2b0   : > { %v10377_v61 = vadd.f32 %v2610_v11, %v10007_v30  ;;  %v10380_v60 = vadd.f32 %v2611_v55, %v10010_v34  ;;  %v10383_v62 = vadd.f32 %v2612_v27, %v10013_v26  ;;  %v10386_v8 = vadd.f32 %v2613_v58, %v10016_v63  ;;  %v16458_v30 = vld [vmem:[#allocation90_spill] sm:$0xff]  ;;  %v16462_v26 = vld [vmem:[#allocation87_spill] sm:$0xff]  ;;  %v16477_v27 = vld [vmem:[#allocation60_spill] sm:$0xff] }
 0x2b1   : > { %v10389_v46 = vadd.f32 %v2614_v41, %v10028_v35  ;;  %v10392_v7 = vadd.f32 %v2615_v2, %v10031_v49  ;;  %v10395_v43 = vadd.f32 %v2616_v18, %v16457_v42  ;;  %v10398_v47 = vadd.f32 %v2617_v17, %v16458_v30  ;;  %v16460_v34 = vld [vmem:[#allocation82_spill] sm:$0xff]  ;;  %v16466_v35 = vld [vmem:[#allocation51_spill] sm:$0xff]  ;;  %v16478_v18 = vld [vmem:[#allocation65_spill] sm:$0xff] }
 0x2b2   : > { %v10401_v6 = vadd.f32 %v2618_v39, %v16460_v34  ;;  %v10404_v29 = vadd.f32 %v2619_v3, %v16462_v26  ;;  %v16464_v63 = vld [vmem:[#allocation46_spill] sm:$0xff]  ;;  %v10410_v41 = vadd.f32 %v2621_v12, %v16466_v35  ;;  %v16468_v49 = vld [vmem:[#allocation23_spill] sm:$0xff]  ;;  %v16481_v26 = vld [vmem:[#allocation12_spill] sm:$0xff] }
 0x2b3   : > { %16459 = vst [vmem:[#allocation36_spill] sm:$0xff] %v10398_v47  ;;  %v10407_v4 = vadd.f32 %v2620_v57, %v16464_v63  ;;  %v16469_v2 = vld [vmem:[#allocation71_spill] sm:$0xff]  ;;  %v16475_v44 = vld [vmem:[#allocation58_spill] sm:$0xff] }
 0x2b4   : > { %16461 = vst [vmem:[#allocation45_spill] sm:$0xff] %v10401_v6  ;;  %16463 = vst [vmem:[#allocation106_spill] sm:$0xff] %v10404_v29  ;;  %v2932_v36 = vmul.f32 %v16469_v2, %v16468_v49  ;;  %v2933_v17 = vmul.f32 %v16469_v2, %v16470_v1  ;;  %v2934_v39 = vmul.f32 %v16469_v2, %v16471_v59  ;;  %v16476_v11 = vld [vmem:[#allocation59_spill] sm:$0xff]  ;;  %v16479_v12 = vld [vmem:[#allocation14_spill] sm:$0xff] }
 0x2b5   : > { %16465 = vst [vmem:[#allocation16_spill] sm:$0xff] %v10407_v4  ;;  %16467 = vst [vmem:[#allocation88_spill] sm:$0xff] %v10410_v41  ;;  %v2935_v3 = vmul.f32 %v16469_v2, %v16472_v9  ;;  %v2936_v54 = vmul.f32 %v16469_v2, %v16473_v56  ;;  %v2937_v25 = vmul.f32 %v16469_v2, %v16474_v37  ;;  %v16480_v30 = vld [vmem:[#allocation15_spill] sm:$0xff]  ;;  %v16483_v49 = vld [vmem:[#allocation108_spill] sm:$0xff] }
 0x2b6   : > { %v2938_v32 = vmul.f32 %v16469_v2, %v16475_v44  ;;  %v2939_v55 = vmul.f32 %v16469_v2, %v16476_v11  ;;  %v2940_v58 = vmul.f32 %v16469_v2, %v16477_v27  ;;  %v2941_v57 = vmul.f32 %v16469_v2, %v16478_v18  ;;  %v16482_v35 = vld [vmem:[#allocation107_spill] sm:$0xff]  ;;  %v10445_v37 = vld [vmem:[%s5246_s17 + $0x303] sm:$0xff] }
 0x2b7   : > { %v2942_v42 = vmul.f32 %v16469_v2, %v16479_v12  ;;  %v2943_v34 = vmul.f32 %v16469_v2, %v16480_v30  ;;  %v2944_v63 = vmul.f32 %v16469_v2, %v16481_v26  ;;  %v2945_v1 = vmul.f32 %v16469_v2, %v16482_v35  ;;  %v16484_v44 = vld [vmem:[#allocation35_spill] sm:$0xff]  ;;  %16485 = vst [vmem:[#allocation21_spill] sm:$0xff] %v10445_v37  ;;  %v16487_v12 = vld [vmem:[#allocation37_spill] sm:$0xff]  ;;  %v16490_v35 = vld [vmem:[#allocation54_spill] sm:$0xff] }
 0x2b8   : > { %v2946_v11 = vmul.f32 %v16469_v2, %v16483_v49  ;;  %v2947_v27 = vmul.f32 %v16469_v2, %v16484_v44  ;;  %v10448_v18 = vld [vmem:[%s5246_s17 + $0x30b] sm:$0x3f]  ;;  %v2948_v56 = vmul.f32 %v16469_v2, %v16487_v12  ;;  %v16489_v26 = vld [vmem:[#allocation49_spill] sm:$0xff]  ;;  %v2951_v41 = vmul.f32 %v16469_v2, %v16490_v35 }
 0x2b9   : > { %16486 = vst [vmem:[#allocation10_spill] sm:$0xff] %v10448_v18  ;;  %v16488_v30 = vld [vmem:[#allocation63_spill] sm:$0xff]  ;;  %v2950_v59 = vmul.f32 %v16469_v2, %v16489_v26  ;;  %v2953_v44 = vmul.f32 %v16469_v2, %v10144_v13  ;;  %v2954_v29 = vmul.f32 %v16469_v2, %v10445_v37  ;;  %v2955_v12 = vmul.f32 %v16469_v2, %v10448_v18  ;;  %v16496_v13 = vld [vmem:[#allocation56_spill] sm:$0xff]  ;;  %v16498_v37 = vld [vmem:[#allocation57_spill] sm:$0xff] }
 0x2ba   : > { %v2949_v9 = vmul.f32 %v16469_v2, %v16488_v30  ;;  %v16491_v49 = vld [vmem:[#allocation55_spill] sm:$0xff]  ;;  %v10467_v30 = vadd.f32 %v2932_v36, %v10163_v52  ;;  %v10470_v26 = vadd.f32 %v2933_v17, %v10166_v53  ;;  %v10473_v35 = vadd.f32 %v2934_v39, %v10169_v51  ;;  %v16502_v36 = vld [vmem:[#allocation69_spill] sm:$0xff] }
 0x2bb   : > { %v2952_v4 = vmul.f32 %v16469_v2, %v16491_v49  ;;  %v10476_v49 = vadd.f32 %v2935_v3, %v10172_v31  ;;  %v10479_v6 = vadd.f32 %v2936_v54, %v16496_v13  ;;  %v10482_v47 = vadd.f32 %v2937_v25, %v16498_v37  ;;  %v16500_v18 = vld [vmem:[#allocation39_spill] sm:$0xff]  ;;  %v16504_v17 = vld [vmem:[#allocation13_spill] sm:$0xff]  ;;  %v16508_v13 = vld [vmem:[#allocation86_spill] sm:$0xff] }
 0x2bc   : > { %16492 = vst [vmem:[#allocation43_spill] sm:$0xff] %v10467_v30  ;;  %16493 = vst [vmem:[#allocation44_spill] sm:$0xff] %v10470_v26  ;;  %v10485_v52 = vadd.f32 %v2938_v32, %v16500_v18  ;;  %v10488_v53 = vadd.f32 %v2939_v55, %v16502_v36  ;;  %v10491_v51 = vadd.f32 %v2940_v58, %v16504_v17  ;;  %v16506_v39 = vld [vmem:[#allocation85_spill] sm:$0xff]  ;;  %v16510_v54 = vld [vmem:[#allocation70_spill] sm:$0xff] }
 0x2bd   : > { %16494 = vst [vmem:[#allocation99_spill] sm:$0xff] %v10473_v35  ;;  %16495 = vst [vmem:[#allocation92_spill] sm:$0xff] %v10476_v49  ;;  %v10494_v31 = vadd.f32 %v2941_v57, %v16506_v39  ;;  %v10497_v3 = vadd.f32 %v2942_v42, %v16508_v13  ;;  %v10500_v37 = vadd.f32 %v2943_v34, %v16510_v54  ;;  %v16512_v25 = vld [vmem:[#allocation105_spill] sm:$0xff]  ;;  %v16514_v55 = vld [vmem:[#allocation104_spill] sm:$0xff] }
 0x2be   : > { %16497 = vst [vmem:[#allocation66_spill] sm:$0xff] %v10479_v6  ;;  %16499 = vst [vmem:[#allocation74_spill] sm:$0xff] %v10482_v47  ;;  %v10503_v32 = vadd.f32 %v2944_v63, %v16512_v25  ;;  %v10506_v18 = vadd.f32 %v2945_v1, %v16514_v55  ;;  %v16516_v36 = vld [vmem:[#allocation48_spill] sm:$0xff]  ;;  %v2708_v57 = vld [vmem:[%s5246_s17 + $0x3] sm:$0xff] }
 0x2bf   : > { %16501 = vst [vmem:[#allocation89_spill] sm:$0xff] %v10485_v52  ;;  %16503 = vst [vmem:[#allocation67_spill] sm:$0xff] %v10488_v53  ;;  %v10509_v58 = vadd.f32 %v2946_v11, %v16516_v36  ;;  %v16518_v17 = vld [vmem:[#allocation68_spill] sm:$0xff]  ;;  %v2709_v39 = vld [vmem:[%s5246_s17 + $0xb] sm:$0x3f] }
 0x2c0   : > { %16505 = vst [vmem:[#allocation38_spill] sm:$0xff] %v10491_v51  ;;  %16507 = vst [vmem:[#allocation75_spill] sm:$0xff] %v10494_v31  ;;  %v10512_v51 = vadd.f32 %v2947_v27, %v16518_v17  ;;  %v16520_v31 = vld [vmem:[#allocation18_spill] sm:$0xff]  ;;  %v16522_v13 = vld [vmem:[#allocation19_spill] sm:$0xff] }
 0x2c1   : > { %16509 = vst [vmem:[#allocation97_spill] sm:$0xff] %v10497_v3  ;;  %16511 = vst [vmem:[#allocation8_spill] sm:$0xff] %v10500_v37  ;;  %v10517_v42 = vadd.f32 %v2948_v56, %v16520_v31  ;;  %v10520_v34 = vadd.f32 %v2949_v9, %v16522_v13  ;;  %v16524_v63 = vld [vmem:[#allocation20_spill] sm:$0xff]  ;;  %v10532_v25 = vld [vmem:[%s5246_s17 + $0x23] sm:$0x3f] }
 0x2c2   : > { %16513 = vst [vmem:[#allocation9_spill] sm:$0xff] %v10503_v32  ;;  %16515 = vst [vmem:[#allocation11_spill] sm:$0xff] %v10506_v18  ;;  %v10523_v54 = vadd.f32 %v2950_v59, %v16524_v63  ;;  %v16526_v1 = vld [vmem:[#allocation76_spill] sm:$0xff]  ;;  %v16534_v59 = vld [vmem:[#allocation5_spill] sm:$0xff] }
 0x2c3   : > { %16517 = vst [vmem:[#allocation33_spill] sm:$0xff] %v10509_v58  ;;  %16519 = vst [vmem:[#allocation103_spill] sm:$0xff] %v10512_v51  ;;  %v10526_v11 = vadd.f32 %v2951_v41, %v16526_v1  ;;  %v10529_v27 = vld [vmem:[%s5246_s17 + $0x1b] sm:$0xff]  ;;  %v10535_v55 = vld [vmem:[%s5246_s17 + $0x33] sm:$0xff]  ;;  %v10544_v36 = vadd.f32 %v2953_v44, %v16534_v59 }
 0x2c4   : > { %16521 = vst [vmem:[#allocation29_spill] sm:$0xff] %v10517_v42  ;;  %16523 = vst [vmem:[#allocation30_spill] sm:$0xff] %v10520_v34  ;;  %v10538_v56 = vld [vmem:[%s5246_s17 + $0x3b] sm:$0x3f]  ;;  %v16536_v41 = vld [vmem:[#allocation31_spill] sm:$0xff] }
 0x2c5   : > { %16525 = vst [vmem:[#allocation34_spill] sm:$0xff] %v10523_v54  ;;  %16527 = vst [vmem:[#allocation32_spill] sm:$0xff] %v10526_v11  ;;  %v16532_v9 = vld [vmem:[#allocation100_spill] sm:$0xff]  ;;  %v10547_v17 = vadd.f32 %v2954_v29, %v16536_v41  ;;  %v16538_v13 = vld [vmem:[#allocation50_spill] sm:$0xff] }
 0x2c6   : > { %16528 = vst [vmem:[#allocation27_spill] sm:$0xff] %v10529_v27  ;;  %16529 = vst [vmem:[#allocation96_spill] sm:$0xff] %v10532_v25  ;;  %v10541_v31 = vadd.f32 %v2952_v4, %v16532_v9  ;;  %v10550_v63 = vadd.f32 %v2955_v12, %v16538_v13  ;;  %v16540_v1 = vld [vmem:[#allocation17_spill] sm:$0xff]  ;;  %v16541_v54 = vld [vmem:[#allocation26_spill] sm:$0xff] }
 0x2c7   : > { %16530 = vst [vmem:[#allocation47_spill] sm:$0xff] %v10535_v55  ;;  %16531 = vst [vmem:[#allocation24_spill] sm:$0xff] %v10538_v56  ;;  %v10554_v11 = vadd.f32 %v10313_v48, %v16540_v1  ;;  %v10558_v4 = vadd.f32 %v10316_v40, %v16541_v54  ;;  %v16542_v9 = vld [vmem:[#allocation80_spill] sm:$0xff]  ;;  %v16544_v29 = vld [vmem:[#allocation81_spill] sm:$0xff] }
 0x2c8   : > { %16533 = vst [vmem:[#allocation25_spill] sm:$0xff] %v10541_v31  ;;  %16535 = vst [vmem:[#allocation61_spill] sm:$0xff] %v10544_v36  ;;  %v10562_v44 = vadd.f32 %v10320_v24, %v16542_v9  ;;  %v16545_v59 = vld [vmem:[#allocation28_spill] sm:$0xff]  ;;  %v10569_v12 = vld [vmem:[%s5246_s17 + $0x4b] sm:$0xff] }
 0x2c9   : > { %16537 = vst [vmem:[#allocation62_spill] sm:$0xff] %v10547_v17  ;;  %16539 = vst [vmem:[#allocation72_spill] sm:$0xff] %v10550_v63  ;;  %v10566_v41 = vadd.f32 %v16545_v59, %v16544_v29  ;;  %v10572_v13 = vld [vmem:[%s5246_s17 + $0x53] sm:$0x3f]  ;;  %v10575_v48 = vld [vmem:[%s5246_s17 + $0x63] sm:$0xff] }
 0x2ca   : > { %16543 = vst [vmem:[#allocation73_spill] sm:$0xff] %v10562_v44  ;;  %16547 = vst [vmem:[#allocation98_spill] sm:$0xff] %v10569_v12  ;;  %v10578_v1 = vld [vmem:[%s5246_s17 + $0x6b] sm:$0x3f]  ;;  %v10589_v29 = vld [vmem:[%s5246_s17 + $0x7b] sm:$0xff] }
 0x2cb   : > { %16546 = vst [vmem:[#allocation79_spill] sm:$0xff] %v10566_v41  ;;  %16548 = vst [vmem:[#allocation90_spill] sm:$0xff] %v10572_v13  ;;  %v16551_v40 = vld [vmem:[#allocation22_spill] sm:$0xff]  ;;  %v16553_v24 = vld [vmem:[#allocation83_spill] sm:$0xff] }
 0x2cc   : > { %16549 = vst [vmem:[#allocation82_spill] sm:$0xff] %v10575_v48  ;;  %16550 = vst [vmem:[#allocation87_spill] sm:$0xff] %v10578_v1  ;;  %v10582_v54 = vadd.f32 %v10328_v20, %v16551_v40  ;;  %v10586_v9 = vadd.f32 %v10332_v21, %v16553_v24  ;;  %v10592_v59 = vld [vmem:[%s5246_s17 + $0x83] sm:$0x3f]  ;;  %v10595_v63 = vld [vmem:[%s5246_s17 + $0x93] sm:$0xff] }
 0x2cd   : > { %16555 = vst [vmem:[#allocation56_spill] sm:$0xff] %v10589_v29  ;;  %16556 = vst [vmem:[#allocation57_spill] sm:$0xff] %v10592_v59  ;;  %v16558_v17 = vld [vmem:[#allocation91_spill] sm:$0xff]  ;;  %v10600_v34 = vld [vmem:[%s5246_s17 + $0x9b] sm:$0x3f] }
 0x2ce   : > { %16552 = vst [vmem:[#allocation46_spill] sm:$0xff] %v10582_v54  ;;  %16554 = vst [vmem:[#allocation51_spill] sm:$0xff] %v10586_v9  ;;  %v2784_v36 = vmul.f32 %v16558_v17, %v2708_v57  ;;  %v2785_v31 = vmul.f32 %v16558_v17, %v2709_v39  ;;  %v10603_v20 = vld [vmem:[%s5246_s17 + $0xab] sm:$0xff]  ;;  %v10606_v40 = vld [vmem:[%s5246_s17 + $0xb3] sm:$0x3f]  ;;  %v2786_v21 = vmul.f32 %v16558_v17, %v10529_v27 }
 0x2cf   : > { %16557 = vst [vmem:[#allocation39_spill] sm:$0xff] %v10595_v63  ;;  %16559 = vst [vmem:[#allocation69_spill] sm:$0xff] %v10600_v34  ;;  %v2787_v24 = vmul.f32 %v16558_v17, %v10532_v25  ;;  %v2788_v57 = vmul.f32 %v16558_v17, %v10535_v55  ;;  %v2789_v39 = vmul.f32 %v16558_v17, %v10538_v56  ;;  %v10617_v42 = vld [vmem:[%s5246_s17 + $0xc3] sm:$0xff]  ;;  %v10620_v51 = vld [vmem:[%s5246_s17 + $0xcb] sm:$0x3f] }
 0x2d0   : > { %16560 = vst [vmem:[#allocation13_spill] sm:$0xff] %v10603_v20  ;;  %16561 = vst [vmem:[#allocation85_spill] sm:$0xff] %v10606_v40  ;;  %v10623_v58 = vld [vmem:[%s5246_s17 + $0xdb] sm:$0xff]  ;;  %v2790_v18 = vmul.f32 %v16558_v17, %v10569_v12  ;;  %v2791_v25 = vmul.f32 %v16558_v17, %v10572_v13  ;;  %v2792_v55 = vmul.f32 %v16558_v17, %v10575_v48  ;;  %v10634_v32 = vld [vmem:[%s5246_s17 + $0xe3] sm:$0x3f] }
 0x2d1   : > { %16562 = vst [vmem:[#allocation86_spill] sm:$0xff] %v10617_v42  ;;  %16563 = vst [vmem:[#allocation70_spill] sm:$0xff] %v10620_v51  ;;  %v2793_v56 = vmul.f32 %v16558_v17, %v10578_v1  ;;  %v10637_v37 = vld [vmem:[%s5246_s17 + $0xf3] sm:$0xff]  ;;  %v10640_v3 = vld [vmem:[%s5246_s17 + $0xfb] sm:$0x3f]  ;;  %v2794_v12 = vmul.f32 %v16558_v17, %v10589_v29  ;;  %v2795_v13 = vmul.f32 %v16558_v17, %v10592_v59 }
 0x2d2   : > { %16564 = vst [vmem:[#allocation105_spill] sm:$0xff] %v10623_v58  ;;  %16565 = vst [vmem:[#allocation104_spill] sm:$0xff] %v10634_v32  ;;  %v2796_v48 = vmul.f32 %v16558_v17, %v10595_v63  ;;  %v2797_v1 = vmul.f32 %v16558_v17, %v10600_v34  ;;  %v10651_v53 = vld [vmem:[%s5246_s17 + $0x10b] sm:$0xff]  ;;  %v2744_v52 = vld [vmem:[%s5246_s17 + $0x1b3] sm:$0xff]  ;;  %v2798_v6 = vmul.f32 %v16558_v17, %v10603_v20 }
 0x2d3   : > { %16566 = vst [vmem:[#allocation48_spill] sm:$0xff] %v10637_v37  ;;  %16567 = vst [vmem:[#allocation68_spill] sm:$0xff] %v10640_v3  ;;  %v2745_v47 = vld [vmem:[%s5246_s17 + $0x1bb] sm:$0x3f]  ;;  %v2799_v29 = vmul.f32 %v16558_v17, %v10606_v40  ;;  %v2800_v59 = vmul.f32 %v16558_v17, %v10617_v42  ;;  %v2801_v63 = vmul.f32 %v16558_v17, %v10620_v51  ;;  %v10664_v34 = vld [vmem:[%s5246_s17 + $0x113] sm:$0x3f] }
 0x2d4   : > { %16568 = vst [vmem:[#allocation18_spill] sm:$0xff] %v10651_v53  ;;  %16569 = vst [vmem:[#allocation19_spill] sm:$0xff] %v10664_v34  ;;  %v10667_v49 = vld [vmem:[%s5246_s17 + $0x123] sm:$0xff]  ;;  %v10670_v35 = vld [vmem:[%s5246_s17 + $0x12b] sm:$0x3f]  ;;  %v2802_v20 = vmul.f32 %v16558_v17, %v10623_v58  ;;  %v2803_v40 = vmul.f32 %v16558_v17, %v10634_v32  ;;  %v2804_v26 = vmul.f32 %v16558_v17, %v10637_v37 }
 0x2d5   : > { %16570 = vst [vmem:[#allocation20_spill] sm:$0xff] %v10667_v49  ;;  %16571 = vst [vmem:[#allocation76_spill] sm:$0xff] %v10670_v35  ;;  %v2805_v42 = vmul.f32 %v16558_v17, %v10640_v3  ;;  %v10681_v30 = vld [vmem:[%s5246_s17 + $0x13b] sm:$0xff]  ;;  %v10684_v51 = vld [vmem:[%s5246_s17 + $0x143] sm:$0x3f]  ;;  %v2806_v2 = vmul.f32 %v16558_v17, %v10651_v53  ;;  %v2807_v27 = vmul.f32 %v16558_v17, %v10664_v34 }
 0x2d6   : > { %16572 = vst [vmem:[#allocation100_spill] sm:$0xff] %v10681_v30  ;;  %16573 = vst [vmem:[#allocation5_spill] sm:$0xff] %v10684_v51  ;;  %v2808_v58 = vmul.f32 %v16558_v17, %v10667_v49  ;;  %v2809_v32 = vmul.f32 %v16558_v17, %v10670_v35  ;;  %v10695_v37 = vld [vmem:[%s5246_s17 + $0x1cb] sm:$0xff]  ;;  %v10698_v9 = vld [vmem:[%s5246_s17 + $0x1d3] sm:$0x3f]  ;;  %v2810_v3 = vmul.f32 %v16558_v17, %v10681_v30 }
 0x2d7   : > { %v2811_v54 = vmul.f32 %v16558_v17, %v10684_v51  ;;  %v2812_v53 = vmul.f32 %v16558_v17, %v2744_v52  ;;  %v2813_v34 = vmul.f32 %v16558_v17, %v2745_v47  ;;  %v2814_v49 = vmul.f32 %v16558_v17, %v10695_v37 }
 0x2d8   : > { %v2815_v35 = vmul.f32 %v16558_v17, %v10698_v9  ;;  %v10711_v41 = vadd.f32 %v2784_v36, %v10335_v38  ;;  %v10714_v44 = vadd.f32 %v2785_v31, %v10338_v45  ;;  %v10717_v30 = vadd.f32 %v2786_v21, %v10341_v16  ;;  %v16589_v31 = vld [vmem:[#allocation7_spill] sm:$0xff] }
 0x2d9   : > { %v10720_v51 = vadd.f32 %v2787_v24, %v10344_v10  ;;  %v10723_v47 = vadd.f32 %v2788_v57, %v10347_v33  ;;  %v10726_v52 = vadd.f32 %v2789_v39, %v10350_v5  ;;  %v10729_v17 = vadd.f32 %v2790_v18, %v10353_v15  ;;  %v16605_v24 = vld [vmem:[#allocation60_spill] sm:$0xff]  ;;  %v16606_v39 = vld [vmem:[#allocation65_spill] sm:$0xff] }
 0x2da   : > { %v10732_v38 = vadd.f32 %v2791_v25, %v10356_v0  ;;  %v10735_v45 = vadd.f32 %v2792_v55, %v10359_v50  ;;  %v10738_v16 = vadd.f32 %v2793_v56, %v10362_v28  ;;  %v10741_v10 = vadd.f32 %v2794_v12, %v10365_v14  ;;  %v16598_v12 = vld [vmem:[#allocation71_spill] sm:$0xff] }
 0x2db   : > { %v10744_v33 = vadd.f32 %v2795_v13, %v10368_v23  ;;  %v10747_v5 = vadd.f32 %v2796_v48, %v10371_v19  ;;  %v10750_v15 = vadd.f32 %v2797_v1, %v10374_v22  ;;  %v10753_v0 = vadd.f32 %v2798_v6, %v10377_v61  ;;  %v16574_v61 = vld [vmem:[#allocation36_spill] sm:$0xff]  ;;  %v16600_v1 = vld [vmem:[#allocation78_spill] sm:$0xff] }
 0x2dc   : > { %v10756_v50 = vadd.f32 %v2799_v29, %v10380_v60  ;;  %v10759_v28 = vadd.f32 %v2800_v59, %v10383_v62  ;;  %v10762_v14 = vadd.f32 %v2801_v63, %v10386_v8  ;;  %v10765_v23 = vadd.f32 %v2802_v20, %v10389_v46  ;;  %v16576_v60 = vld [vmem:[#allocation45_spill] sm:$0xff]  ;;  %v16578_v62 = vld [vmem:[#allocation106_spill] sm:$0xff]  ;;  %v16580_v8 = vld [vmem:[#allocation16_spill] sm:$0xff] }
 0x2dd   : > { %v10768_v19 = vadd.f32 %v2803_v40, %v10392_v7  ;;  %v10771_v22 = vadd.f32 %v2804_v26, %v10395_v43  ;;  %v10774_v6 = vadd.f32 %v2805_v42, %v16574_v61  ;;  %v10777_v18 = vadd.f32 %v2806_v2, %v16576_v60  ;;  %v16582_v46 = vld [vmem:[#allocation88_spill] sm:$0xff]  ;;  %v16586_v26 = vld [vmem:[#allocation73_spill] sm:$0xff]  ;;  %v10798_v2 = vld [vmem:[%s5240_s21 + $0x8] sm:$0xff] }
 0x2de   : > { %v10780_v25 = vadd.f32 %v2807_v27, %v16578_v62  ;;  %v10783_v55 = vadd.f32 %v2808_v58, %v16580_v8  ;;  %v10786_v56 = vadd.f32 %v2809_v32, %v16582_v46  ;;  %v10789_v7 = vadd.f32 %v2810_v3, %v10554_v11  ;;  %16588 = vst [vmem:[#allocation83_spill] sm:$0xff] %v10798_v2  ;;  %v16591_v58 = vld [vmem:[#allocation79_spill] sm:$0xff]  ;;  %v16593_v32 = vld [vmem:[#allocation46_spill] sm:$0xff]  ;;  %v16601_v29 = vld [vmem:[#allocation52_spill] sm:$0xff] }
 0x2df   : > { %16575 = vst [vmem:[#allocation31_spill] sm:$0xff] %v10774_v6  ;;  %16577 = vst [vmem:[#allocation50_spill] sm:$0xff] %v10777_v18  ;;  %v10792_v43 = vadd.f32 %v2811_v54, %v10558_v4  ;;  %v10795_v42 = vadd.f32 %v2812_v53, %v16586_v26  ;;  %v10802_v27 = vrot.slane %v10798_v2, %v16589_v31  ;;  %v16595_v3 = vld [vmem:[#allocation51_spill] sm:$0xff]  ;;  %v16599_v53 = vld [vmem:[#allocation84_spill] sm:$0xff] }
 0x2e0   : > { %16579 = vst [vmem:[#allocation17_spill] sm:$0xff] %v10780_v25  ;;  %16581 = vst [vmem:[#allocation26_spill] sm:$0xff] %v10783_v55  ;;  %v10805_v36 = vadd.f32 %v2813_v34, %v16591_v58  ;;  %v10808_v63 = vadd.f32 %v2814_v49, %v16593_v32  ;;  %v10811_v11 = vadd.f32 %v2815_v35, %v16595_v3  ;;  %v16597_v4 = vld [vmem:[#allocation27_spill] sm:$0xff]  ;;  %v16602_v49 = vld [vmem:[#allocation53_spill] sm:$0xff] }
 0x2e1   : > { %16583 = vst [vmem:[#allocation80_spill] sm:$0xff] %v10786_v56  ;;  %16584 = vst [vmem:[#allocation81_spill] sm:$0xff] %v10789_v7  ;;  %v10815_v13 = vmul.f32 %v16598_v12, %v16597_v4  ;;  %v3048_v48 = vmul.f32 %v10802_v27, %v16599_v53  ;;  %v3049_v54 = vmul.f32 %v10802_v27, %v16600_v1  ;;  %v16603_v35 = vld [vmem:[#allocation58_spill] sm:$0xff]  ;;  %v16604_v40 = vld [vmem:[#allocation59_spill] sm:$0xff] }
 0x2e2   : > { %16585 = vst [vmem:[#allocation28_spill] sm:$0xff] %v10792_v43  ;;  %16587 = vst [vmem:[#allocation22_spill] sm:$0xff] %v10795_v42  ;;  %v3050_v34 = vmul.f32 %v10802_v27, %v16601_v29  ;;  %v3051_v59 = vmul.f32 %v10802_v27, %v16602_v49  ;;  %v3052_v20 = vmul.f32 %v10802_v27, %v16603_v35  ;;  %v16607_v60 = vld [vmem:[#allocation14_spill] sm:$0xff]  ;;  %v16608_v8 = vld [vmem:[#allocation15_spill] sm:$0xff] }
 0x2e3   : > { %16590 = vst [vmem:[#allocation91_spill] sm:$0xff] %v10802_v27  ;;  %16592 = vst [vmem:[#allocation36_spill] sm:$0xff] %v10805_v36  ;;  %v3053_v21 = vmul.f32 %v10802_v27, %v16604_v40  ;;  %v3054_v57 = vmul.f32 %v10802_v27, %v16605_v24  ;;  %v3055_v61 = vmul.f32 %v10802_v27, %v16606_v39  ;;  %v16609_v26 = vld [vmem:[#allocation12_spill] sm:$0xff]  ;;  %v16610_v58 = vld [vmem:[#allocation107_spill] sm:$0xff] }
 0x2e4   : > { %16594 = vst [vmem:[#allocation45_spill] sm:$0xff] %v10808_v63  ;;  %16596 = vst [vmem:[#allocation106_spill] sm:$0xff] %v10811_v11  ;;  %v3056_v62 = vmul.f32 %v10802_v27, %v16607_v60  ;;  %v3057_v46 = vmul.f32 %v10802_v27, %v16608_v8  ;;  %v3058_v31 = vmul.f32 %v10802_v27, %v16609_v26  ;;  %v16611_v3 = vld [vmem:[#allocation108_spill] sm:$0xff]  ;;  %v16612_v53 = vld [vmem:[#allocation35_spill] sm:$0xff] }
 0x2e5   : > { %v3059_v32 = vmul.f32 %v10802_v27, %v16610_v58  ;;  %v3060_v4 = vmul.f32 %v10802_v27, %v16611_v3  ;;  %v3061_v1 = vmul.f32 %v10802_v27, %v16612_v53  ;;  %v16613_v2 = vld [vmem:[#allocation37_spill] sm:$0xff]  ;;  %v16614_v24 = vld [vmem:[#allocation63_spill] sm:$0xff]  ;;  %v16618_v58 = vld [vmem:[#allocation54_spill] sm:$0xff] }
 0x2e6   : > { %v3062_v39 = vmul.f32 %v10802_v27, %v16613_v2  ;;  %v3063_v60 = vmul.f32 %v10802_v27, %v16614_v24  ;;  %v10850_v40 = vld [vmem:[%s5246_s17 + $0x31b] sm:$0xff]  ;;  %v10853_v8 = vld [vmem:[%s5246_s17 + $0x323] sm:$0x3f]  ;;  %v3065_v49 = vmul.f32 %v10802_v27, %v16618_v58  ;;  %v16619_v3 = vld [vmem:[#allocation55_spill] sm:$0xff] }
 0x2e7   : > { %16615 = vst [vmem:[#allocation16_spill] sm:$0xff] %v10850_v40  ;;  %16616 = vst [vmem:[#allocation88_spill] sm:$0xff] %v10853_v8  ;;  %v16617_v26 = vld [vmem:[#allocation49_spill] sm:$0xff]  ;;  %v3066_v29 = vmul.f32 %v10802_v27, %v16619_v3  ;;  %v16620_v53 = vld [vmem:[#allocation64_spill] sm:$0xff]  ;;  %v3070_v42 = vmul.f32 %v10802_v27, %v10850_v40 }
 0x2e8   : > { %v3064_v35 = vmul.f32 %v10802_v27, %v16617_v26  ;;  %v3067_v11 = vmul.f32 %v10802_v27, %v16620_v53  ;;  %v16621_v2 = vld [vmem:[#allocation21_spill] sm:$0xff]  ;;  %v16622_v24 = vld [vmem:[#allocation10_spill] sm:$0xff]  ;;  %v3071_v26 = vmul.f32 %v10802_v27, %v10853_v8  ;;  %v16623_v43 = vld [vmem:[#allocation43_spill] sm:$0xff] }
 0x2e9   : > { %v3068_v63 = vmul.f32 %v10802_v27, %v16621_v2  ;;  %v3069_v36 = vmul.f32 %v10802_v27, %v16622_v24  ;;  %v10872_v58 = vadd.f32 %v3048_v48, %v16623_v43  ;;  %v16624_v7 = vld [vmem:[#allocation44_spill] sm:$0xff]  ;;  %v16625_v56 = vld [vmem:[#allocation99_spill] sm:$0xff]  ;;  %v16629_v25 = vld [vmem:[#allocation66_spill] sm:$0xff] }
 0x2ea   : > { %v10875_v3 = vadd.f32 %v3049_v54, %v16624_v7  ;;  %v10878_v53 = vadd.f32 %v3050_v34, %v16625_v56  ;;  %v16627_v55 = vld [vmem:[#allocation92_spill] sm:$0xff]  ;;  %v10884_v24 = vadd.f32 %v3052_v20, %v16629_v25  ;;  %v16631_v18 = vld [vmem:[#allocation74_spill] sm:$0xff]  ;;  %v16633_v6 = vld [vmem:[#allocation89_spill] sm:$0xff] }
 0x2eb   : > { %v10881_v2 = vadd.f32 %v3051_v59, %v16627_v55  ;;  %v10887_v40 = vadd.f32 %v3053_v21, %v16631_v18  ;;  %v10890_v27 = vadd.f32 %v3054_v57, %v16633_v6  ;;  %v16635_v43 = vld [vmem:[#allocation67_spill] sm:$0xff]  ;;  %v16637_v7 = vld [vmem:[#allocation38_spill] sm:$0xff]  ;;  %v16641_v55 = vld [vmem:[#allocation97_spill] sm:$0xff] }
 0x2ec   : > { %16626 = vst [vmem:[#allocation73_spill] sm:$0xff] %v10878_v53  ;;  %16630 = vst [vmem:[#allocation79_spill] sm:$0xff] %v10884_v24  ;;  %v10893_v48 = vadd.f32 %v3055_v61, %v16635_v43  ;;  %v10896_v54 = vadd.f32 %v3056_v62, %v16637_v7  ;;  %v16639_v56 = vld [vmem:[#allocation75_spill] sm:$0xff]  ;;  %v10902_v59 = vadd.f32 %v3058_v31, %v16641_v55  ;;  %v16643_v25 = vld [vmem:[#allocation8_spill] sm:$0xff] }
 0x2ed   : > { %16628 = vst [vmem:[#allocation7_spill] sm:$0xff] %v10881_v2  ;;  %16632 = vst [vmem:[#allocation46_spill] sm:$0xff] %v10887_v40  ;;  %v10899_v34 = vadd.f32 %v3057_v46, %v16639_v56  ;;  %v10905_v20 = vadd.f32 %v3059_v32, %v16643_v25  ;;  %v16645_v18 = vld [vmem:[#allocation9_spill] sm:$0xff]  ;;  %v16647_v6 = vld [vmem:[#allocation11_spill] sm:$0xff] }
 0x2ee   : > { %16634 = vst [vmem:[#allocation51_spill] sm:$0xff] %v10890_v27  ;;  %16636 = vst [vmem:[#allocation27_spill] sm:$0xff] %v10893_v48  ;;  %v10908_v21 = vadd.f32 %v3060_v4, %v16645_v18  ;;  %v10911_v57 = vadd.f32 %v3061_v1, %v16647_v6  ;;  %v16649_v61 = vld [vmem:[#allocation33_spill] sm:$0xff]  ;;  %v16651_v62 = vld [vmem:[#allocation103_spill] sm:$0xff] }
 0x2ef   : > { %16638 = vst [vmem:[#allocation71_spill] sm:$0xff] %v10896_v54  ;;  %16640 = vst [vmem:[#allocation84_spill] sm:$0xff] %v10899_v34  ;;  %v10914_v43 = vadd.f32 %v3062_v39, %v16649_v61  ;;  %v10917_v7 = vadd.f32 %v3063_v60, %v16651_v62  ;;  %v16653_v46 = vld [vmem:[#allocation29_spill] sm:$0xff]  ;;  %v16655_v31 = vld [vmem:[#allocation30_spill] sm:$0xff] }
 0x2f0   : > { %16642 = vst [vmem:[#allocation78_spill] sm:$0xff] %v10902_v59  ;;  %16644 = vst [vmem:[#allocation43_spill] sm:$0xff] %v10905_v20  ;;  %v10920_v56 = vadd.f32 %v3064_v35, %v16653_v46  ;;  %v10923_v55 = vadd.f32 %v3065_v49, %v16655_v31  ;;  %v16657_v32 = vld [vmem:[#allocation34_spill] sm:$0xff]  ;;  %v16659_v4 = vld [vmem:[#allocation32_spill] sm:$0xff] }
 0x2f1   : > { %16646 = vst [vmem:[#allocation44_spill] sm:$0xff] %v10908_v21  ;;  %16648 = vst [vmem:[#allocation99_spill] sm:$0xff] %v10911_v57  ;;  %v10926_v25 = vadd.f32 %v3066_v29, %v16657_v32  ;;  %v10929_v18 = vadd.f32 %v3067_v11, %v16659_v4  ;;  %v16661_v1 = vld [vmem:[#allocation25_spill] sm:$0xff]  ;;  %v16665_v60 = vld [vmem:[#allocation62_spill] sm:$0xff] }
 0x2f2   : > { %16650 = vst [vmem:[#allocation92_spill] sm:$0xff] %v10914_v43  ;;  %16652 = vst [vmem:[#allocation66_spill] sm:$0xff] %v10917_v7  ;;  %v10932_v6 = vadd.f32 %v3068_v63, %v16661_v1  ;;  %v16663_v39 = vld [vmem:[#allocation61_spill] sm:$0xff]  ;;  %v10938_v62 = vadd.f32 %v3070_v42, %v16665_v60  ;;  %v16667_v35 = vld [vmem:[#allocation72_spill] sm:$0xff] }
 0x2f3   : > { %16654 = vst [vmem:[#allocation74_spill] sm:$0xff] %v10920_v56  ;;  %16656 = vst [vmem:[#allocation89_spill] sm:$0xff] %v10923_v55  ;;  %v10935_v61 = vadd.f32 %v3069_v36, %v16663_v39  ;;  %v10941_v46 = vadd.f32 %v3071_v26, %v16667_v35  ;;  %v16669_v49 = vld [vmem:[#allocation96_spill] sm:$0xff]  ;;  %v16670_v29 = vld [vmem:[#allocation47_spill] sm:$0xff] }
 0x2f4   : > { %16658 = vst [vmem:[#allocation67_spill] sm:$0xff] %v10926_v25  ;;  %16660 = vst [vmem:[#allocation38_spill] sm:$0xff] %v10929_v18  ;;  %v2901_v31 = vmul.f32 %v16598_v12, %v16669_v49  ;;  %v2902_v32 = vmul.f32 %v16598_v12, %v16670_v29  ;;  %v16671_v11 = vld [vmem:[#allocation24_spill] sm:$0xff]  ;;  %v16672_v63 = vld [vmem:[#allocation98_spill] sm:$0xff] }
 0x2f5   : > { %16662 = vst [vmem:[#allocation75_spill] sm:$0xff] %v10932_v6  ;;  %16664 = vst [vmem:[#allocation97_spill] sm:$0xff] %v10935_v61  ;;  %v2903_v4 = vmul.f32 %v16598_v12, %v16671_v11  ;;  %v2904_v1 = vmul.f32 %v16598_v12, %v16672_v63  ;;  %v16673_v36 = vld [vmem:[#allocation90_spill] sm:$0xff]  ;;  %v16675_v60 = vld [vmem:[#allocation87_spill] sm:$0xff] }
 0x2f6   : > { %16666 = vst [vmem:[#allocation8_spill] sm:$0xff] %v10938_v62  ;;  %16668 = vst [vmem:[#allocation9_spill] sm:$0xff] %v10941_v46  ;;  %v2905_v39 = vmul.f32 %v16598_v12, %v16673_v36  ;;  %v16674_v42 = vld [vmem:[#allocation82_spill] sm:$0xff]  ;;  %v2907_v35 = vmul.f32 %v16598_v12, %v16675_v60  ;;  %v16676_v49 = vld [vmem:[#allocation56_spill] sm:$0xff] }
 0x2f7   : > { %v2906_v26 = vmul.f32 %v16598_v12, %v16674_v42  ;;  %v2908_v29 = vmul.f32 %v16598_v12, %v16676_v49  ;;  %v16677_v46 = vld [vmem:[#allocation57_spill] sm:$0xff]  ;;  %v16678_v62 = vld [vmem:[#allocation39_spill] sm:$0xff]  ;;  %v16682_v55 = vld [vmem:[#allocation86_spill] sm:$0xff] }
 0x2f8   : > { %v2909_v11 = vmul.f32 %v16598_v12, %v16677_v46  ;;  %v2910_v63 = vmul.f32 %v16598_v12, %v16678_v62  ;;  %v16679_v61 = vld [vmem:[#allocation69_spill] sm:$0xff]  ;;  %v2914_v60 = vmul.f32 %v16598_v12, %v16682_v55  ;;  %v16683_v56 = vld [vmem:[#allocation70_spill] sm:$0xff]  ;;  %v16685_v43 = vld [vmem:[#allocation104_spill] sm:$0xff] }
 0x2f9   : > { %v2911_v36 = vmul.f32 %v16598_v12, %v16679_v61  ;;  %v16680_v6 = vld [vmem:[#allocation13_spill] sm:$0xff]  ;;  %v2915_v49 = vmul.f32 %v16598_v12, %v16683_v56  ;;  %v2917_v62 = vmul.f32 %v16598_v12, %v16685_v43  ;;  %v16686_v57 = vld [vmem:[#allocation48_spill] sm:$0xff]  ;;  %v16688_v20 = vld [vmem:[#allocation18_spill] sm:$0xff] }
 0x2fa   : > { %v2912_v18 = vmul.f32 %v16598_v12, %v16680_v6  ;;  %v16681_v42 = vld [vmem:[#allocation85_spill] sm:$0xff]  ;;  %v2918_v61 = vmul.f32 %v16598_v12, %v16686_v57  ;;  %v16687_v21 = vld [vmem:[#allocation68_spill] sm:$0xff]  ;;  %v16691_v56 = vld [vmem:[#allocation19_spill] sm:$0xff] }
 0x2fb   : > { %v2913_v25 = vmul.f32 %v16598_v12, %v16681_v42  ;;  %v16684_v7 = vld [vmem:[#allocation105_spill] sm:$0xff]  ;;  %v2919_v6 = vmul.f32 %v16598_v12, %v16687_v21  ;;  %v2920_v42 = vmul.f32 %v16598_v12, %v16688_v20  ;;  %v10984_v59 = vld [vmem:[%s5246_s17 + $0x153] sm:$0xff]  ;;  %v2921_v34 = vmul.f32 %v16598_v12, %v16691_v56  ;;  %v16697_v53 = vld [vmem:[#allocation94_spill] sm:$0xff] }
 0x2fc   : > { %v2916_v46 = vmul.f32 %v16598_v12, %v16684_v7  ;;  %16689 = vst [vmem:[#allocation11_spill] sm:$0xff] %v10984_v59  ;;  %v10987_v55 = vld [vmem:[%s5246_s17 + $0x15b] sm:$0x3f]  ;;  %v2926_v20 = vmul.f32 %v16598_v12, %v10984_v59  ;;  %v2928_v56 = vmul.f32 %v16598_v12, %v10695_v37  ;;  %v11016_v59 = vadd.f32 %v2901_v31, %v10714_v44 }
 0x2fd   : > { %16690 = vst [vmem:[#allocation33_spill] sm:$0xff] %v10987_v55  ;;  %v16692_v7 = vld [vmem:[#allocation20_spill] sm:$0xff]  ;;  %v16695_v21 = vld [vmem:[#allocation5_spill] sm:$0xff]  ;;  %v2927_v24 = vmul.f32 %v16598_v12, %v10987_v55  ;;  %v11019_v55 = vadd.f32 %v2902_v32, %v10717_v30  ;;  %v11022_v37 = vadd.f32 %v2903_v4, %v10720_v51  ;;  %v11037_v44 = vadd.f32 %v2908_v29, %v10735_v45 }
 0x2fe   : > { %v2922_v54 = vmul.f32 %v16598_v12, %v16692_v7  ;;  %v16693_v43 = vld [vmem:[#allocation76_spill] sm:$0xff]  ;;  %v2925_v40 = vmul.f32 %v16598_v12, %v16695_v21  ;;  %v2929_v7 = vmul.f32 %v16598_v12, %v10698_v9  ;;  %v16696_v2 = vld [vmem:[#allocation93_spill] sm:$0xff]  ;;  %v11013_v21 = vadd.f32 %v10815_v13, %v10711_v41 }
 0x2ff   : > { %v2923_v48 = vmul.f32 %v16598_v12, %v16693_v43  ;;  %v16694_v57 = vld [vmem:[#allocation100_spill] sm:$0xff]  ;;  %v2930_v43 = vmul.f32 %v16598_v12, %v16696_v2  ;;  %v11025_v9 = vadd.f32 %v2904_v1, %v10723_v47  ;;  %v11028_v2 = vadd.f32 %v2905_v39, %v10726_v52  ;;  %v16721_v1 = vld [vmem:[#allocation53_spill] sm:$0xff]  ;;  %v16722_v39 = vld [vmem:[#allocation58_spill] sm:$0xff] }
 0x300   : > { %v2924_v27 = vmul.f32 %v16598_v12, %v16694_v57  ;;  %v2931_v57 = vmul.f32 %v16598_v12, %v16697_v53  ;;  %v11031_v12 = vadd.f32 %v2906_v26, %v10729_v17  ;;  %v11034_v41 = vadd.f32 %v2907_v35, %v10732_v38  ;;  %v16710_v31 = vld [vmem:[#allocation40_spill] sm:$0xff]  ;;  %v16726_v35 = vld [vmem:[#allocation14_spill] sm:$0xff] }
 0x301   : > { %v11040_v30 = vadd.f32 %v2909_v11, %v10738_v16  ;;  %v11043_v51 = vadd.f32 %v2910_v63, %v10741_v10  ;;  %v11046_v47 = vadd.f32 %v2911_v36, %v10744_v33  ;;  %v11049_v52 = vadd.f32 %v2912_v18, %v10747_v5  ;;  %v16724_v26 = vld [vmem:[#allocation60_spill] sm:$0xff] }
 0x302   : > { %v11052_v17 = vadd.f32 %v2913_v25, %v10750_v15  ;;  %v11055_v38 = vadd.f32 %v2914_v60, %v10753_v0  ;;  %v11058_v45 = vadd.f32 %v2915_v49, %v10756_v50  ;;  %v11061_v16 = vadd.f32 %v2916_v46, %v10759_v28  ;;  %v16698_v0 = vld [vmem:[#allocation31_spill] sm:$0xff]  ;;  %v16699_v50 = vld [vmem:[#allocation50_spill] sm:$0xff]  ;;  %v16700_v28 = vld [vmem:[#allocation17_spill] sm:$0xff] }
 0x303   : > { %v11064_v10 = vadd.f32 %v2917_v62, %v10762_v14  ;;  %v11067_v33 = vadd.f32 %v2918_v61, %v10765_v23  ;;  %v11070_v5 = vadd.f32 %v2919_v6, %v10768_v19  ;;  %v11073_v15 = vadd.f32 %v2920_v42, %v10771_v22  ;;  %v16702_v14 = vld [vmem:[#allocation26_spill] sm:$0xff]  ;;  %v16704_v23 = vld [vmem:[#allocation80_spill] sm:$0xff]  ;;  %v16706_v19 = vld [vmem:[#allocation81_spill] sm:$0xff] }
 0x304   : > { %v11076_v13 = vadd.f32 %v2921_v34, %v16698_v0  ;;  %v11079_v25 = vadd.f32 %v2922_v54, %v16699_v50  ;;  %v11082_v18 = vadd.f32 %v2923_v48, %v16700_v28  ;;  %v11085_v62 = vadd.f32 %v2924_v27, %v16702_v14  ;;  %v16708_v22 = vld [vmem:[#allocation28_spill] sm:$0xff]  ;;  %v4874_v34 = vld [vmem:[%s5240_s21 + $0x10] sm:$0xff]  ;;  %v16712_v54 = vld [vmem:[#allocation22_spill] sm:$0xff] }
 0x305   : > { %v11088_v61 = vadd.f32 %v2925_v40, %v16704_v23  ;;  %v11091_v6 = vadd.f32 %v2926_v20, %v16706_v19  ;;  %v11094_v46 = vadd.f32 %v2927_v24, %v16708_v22  ;;  %v11098_v29 = vrot.slane %v4874_v34, %v16710_v31  ;;  %v16714_v48 = vld [vmem:[#allocation36_spill] sm:$0xff]  ;;  %v16716_v27 = vld [vmem:[#allocation45_spill] sm:$0xff]  ;;  %v16718_v40 = vld [vmem:[#allocation106_spill] sm:$0xff] }
 0x306   : > { %16701 = vst [vmem:[#allocation103_spill] sm:$0xff] %v11082_v18  ;;  %16703 = vst [vmem:[#allocation29_spill] sm:$0xff] %v11085_v62  ;;  %v11101_v32 = vadd.f32 %v2928_v56, %v16712_v54  ;;  %v11104_v11 = vadd.f32 %v2929_v7, %v16714_v48  ;;  %v11107_v4 = vadd.f32 %v2930_v43, %v16716_v27  ;;  %v16720_v20 = vld [vmem:[#allocation52_spill] sm:$0xff]  ;;  %v16723_v42 = vld [vmem:[#allocation59_spill] sm:$0xff] }
 0x307   : > { %16705 = vst [vmem:[#allocation30_spill] sm:$0xff] %v11088_v61  ;;  %16707 = vst [vmem:[#allocation34_spill] sm:$0xff] %v11091_v6  ;;  %v11110_v63 = vadd.f32 %v2931_v57, %v16718_v40  ;;  %v3164_v24 = vmul.f32 %v11098_v29, %v16720_v20  ;;  %v3165_v36 = vmul.f32 %v11098_v29, %v16721_v1  ;;  %v16725_v60 = vld [vmem:[#allocation65_spill] sm:$0xff]  ;;  %v16727_v0 = vld [vmem:[#allocation15_spill] sm:$0xff] }
 0x308   : > { %16709 = vst [vmem:[#allocation32_spill] sm:$0xff] %v11094_v46  ;;  %16711 = vst [vmem:[#allocation25_spill] sm:$0xff] %v11098_v29  ;;  %v3166_v56 = vmul.f32 %v11098_v29, %v16722_v39  ;;  %v3167_v7 = vmul.f32 %v11098_v29, %v16723_v42  ;;  %v3168_v43 = vmul.f32 %v11098_v29, %v16724_v26  ;;  %v16728_v28 = vld [vmem:[#allocation12_spill] sm:$0xff]  ;;  %v16729_v23 = vld [vmem:[#allocation107_spill] sm:$0xff] }
 0x309   : > { %16713 = vst [vmem:[#allocation61_spill] sm:$0xff] %v11101_v32  ;;  %16715 = vst [vmem:[#allocation62_spill] sm:$0xff] %v11104_v11  ;;  %v3169_v57 = vmul.f32 %v11098_v29, %v16725_v60  ;;  %v3170_v49 = vmul.f32 %v11098_v29, %v16726_v35  ;;  %v3171_v50 = vmul.f32 %v11098_v29, %v16727_v0  ;;  %v16730_v22 = vld [vmem:[#allocation108_spill] sm:$0xff]  ;;  %v16731_v54 = vld [vmem:[#allocation35_spill] sm:$0xff] }
 0x30a   : > { %16717 = vst [vmem:[#allocation72_spill] sm:$0xff] %v11107_v4  ;;  %16719 = vst [vmem:[#allocation96_spill] sm:$0xff] %v11110_v63  ;;  %v3172_v14 = vmul.f32 %v11098_v29, %v16728_v28  ;;  %v3173_v19 = vmul.f32 %v11098_v29, %v16729_v23  ;;  %v3174_v31 = vmul.f32 %v11098_v29, %v16730_v22  ;;  %v16732_v27 = vld [vmem:[#allocation37_spill] sm:$0xff]  ;;  %v16733_v20 = vld [vmem:[#allocation63_spill] sm:$0xff] }
 0x30b   : > { %v3175_v48 = vmul.f32 %v11098_v29, %v16731_v54  ;;  %v3176_v40 = vmul.f32 %v11098_v29, %v16732_v27  ;;  %v3177_v1 = vmul.f32 %v11098_v29, %v16733_v20  ;;  %v16734_v39 = vld [vmem:[#allocation49_spill] sm:$0xff]  ;;  %v16735_v26 = vld [vmem:[#allocation54_spill] sm:$0xff]  ;;  %v11145_v35 = vld [vmem:[%s5246_s17 + $0x333] sm:$0xff] }
 0x30c   : > { %v3178_v42 = vmul.f32 %v11098_v29, %v16734_v39  ;;  %v3179_v60 = vmul.f32 %v11098_v29, %v16735_v26  ;;  %16736 = vst [vmem:[#allocation94_spill] sm:$0xff] %v11145_v35  ;;  %v11148_v0 = vld [vmem:[%s5246_s17 + $0x33b] sm:$0x3f]  ;;  %v16737_v28 = vld [vmem:[#allocation55_spill] sm:$0xff]  ;;  %v16740_v20 = vld [vmem:[#allocation10_spill] sm:$0xff]  ;;  %v3185_v26 = vmul.f32 %v11098_v29, %v10853_v8  ;;  %v3186_v23 = vmul.f32 %v11098_v29, %v11145_v35 }
 0x30d   : > { %v3180_v63 = vmul.f32 %v11098_v29, %v16737_v28  ;;  %v16738_v4 = vld [vmem:[#allocation64_spill] sm:$0xff]  ;;  %v16739_v32 = vld [vmem:[#allocation21_spill] sm:$0xff]  ;;  %v3183_v54 = vmul.f32 %v11098_v29, %v16740_v20  ;;  %v3187_v28 = vmul.f32 %v11098_v29, %v11148_v0  ;;  %v16746_v6 = vld [vmem:[#allocation7_spill] sm:$0xff] }
 0x30e   : > { %v3181_v11 = vmul.f32 %v11098_v29, %v16738_v4  ;;  %v3182_v27 = vmul.f32 %v11098_v29, %v16739_v32  ;;  %v16741_v39 = vld [vmem:[#allocation16_spill] sm:$0xff]  ;;  %v11167_v4 = vadd.f32 %v3164_v24, %v10872_v58  ;;  %v11170_v32 = vadd.f32 %v3165_v36, %v10875_v3  ;;  %v16744_v46 = vld [vmem:[#allocation73_spill] sm:$0xff]  ;;  %v16748_v61 = vld [vmem:[#allocation79_spill] sm:$0xff] }
 0x30f   : > { %v3184_v22 = vmul.f32 %v11098_v29, %v16741_v39  ;;  %v11173_v20 = vadd.f32 %v3166_v56, %v16744_v46  ;;  %v11176_v39 = vadd.f32 %v3167_v7, %v16746_v6  ;;  %v11179_v8 = vadd.f32 %v3168_v43, %v16748_v61  ;;  %v16750_v62 = vld [vmem:[#allocation46_spill] sm:$0xff]  ;;  %v16752_v18 = vld [vmem:[#allocation51_spill] sm:$0xff]  ;;  %v16758_v46 = vld [vmem:[#allocation84_spill] sm:$0xff] }
 0x310   : > { %16742 = vst [vmem:[#allocation31_spill] sm:$0xff] %v11167_v4  ;;  %16743 = vst [vmem:[#allocation50_spill] sm:$0xff] %v11170_v32  ;;  %v11182_v35 = vadd.f32 %v3169_v57, %v16750_v62  ;;  %v11185_v29 = vadd.f32 %v3170_v49, %v16752_v18  ;;  %v16754_v58 = vld [vmem:[#allocation27_spill] sm:$0xff]  ;;  %v11194_v56 = vadd.f32 %v3173_v19, %v16758_v46  ;;  %v16760_v6 = vld [vmem:[#allocation78_spill] sm:$0xff] }
 0x311   : > { %16745 = vst [vmem:[#allocation17_spill] sm:$0xff] %v11173_v20  ;;  %16747 = vst [vmem:[#allocation26_spill] sm:$0xff] %v11176_v39  ;;  %v11188_v24 = vadd.f32 %v3171_v50, %v16754_v58  ;;  %v16756_v3 = vld [vmem:[#allocation71_spill] sm:$0xff]  ;;  %v11197_v7 = vadd.f32 %v3174_v31, %v16760_v6  ;;  %v16764_v62 = vld [vmem:[#allocation44_spill] sm:$0xff] }
 0x312   : > { %16749 = vst [vmem:[#allocation80_spill] sm:$0xff] %v11179_v8  ;;  %16751 = vst [vmem:[#allocation81_spill] sm:$0xff] %v11182_v35  ;;  %v11191_v36 = vadd.f32 %v3172_v14, %v16756_v3  ;;  %v16762_v61 = vld [vmem:[#allocation43_spill] sm:$0xff]  ;;  %v11203_v57 = vadd.f32 %v3176_v40, %v16764_v62  ;;  %v16768_v50 = vld [vmem:[#allocation92_spill] sm:$0xff] }
 0x313   : > { %16753 = vst [vmem:[#allocation28_spill] sm:$0xff] %v11185_v29  ;;  %16755 = vst [vmem:[#allocation40_spill] sm:$0xff] %v11188_v24  ;;  %v11200_v43 = vadd.f32 %v3175_v48, %v16762_v61  ;;  %v16766_v18 = vld [vmem:[#allocation99_spill] sm:$0xff]  ;;  %v11209_v58 = vadd.f32 %v3178_v42, %v16768_v50  ;;  %v16770_v14 = vld [vmem:[#allocation66_spill] sm:$0xff] }
 0x314   : > { %16757 = vst [vmem:[#allocation22_spill] sm:$0xff] %v11191_v36  ;;  %16759 = vst [vmem:[#allocation36_spill] sm:$0xff] %v11194_v56  ;;  %v11206_v49 = vadd.f32 %v3177_v1, %v16766_v18  ;;  %v11212_v3 = vadd.f32 %v3179_v60, %v16770_v14  ;;  %v16772_v19 = vld [vmem:[#allocation74_spill] sm:$0xff]  ;;  %v16774_v31 = vld [vmem:[#allocation89_spill] sm:$0xff] }
 0x315   : > { %16761 = vst [vmem:[#allocation45_spill] sm:$0xff] %v11197_v7  ;;  %16763 = vst [vmem:[#allocation106_spill] sm:$0xff] %v11200_v43  ;;  %v11215_v46 = vadd.f32 %v3180_v63, %v16772_v19  ;;  %v11218_v6 = vadd.f32 %v3181_v11, %v16774_v31  ;;  %v16776_v48 = vld [vmem:[#allocation67_spill] sm:$0xff]  ;;  %v16778_v40 = vld [vmem:[#allocation38_spill] sm:$0xff] }
 0x316   : > { %16765 = vst [vmem:[#allocation52_spill] sm:$0xff] %v11203_v57  ;;  %16767 = vst [vmem:[#allocation53_spill] sm:$0xff] %v11206_v49  ;;  %v11221_v61 = vadd.f32 %v3182_v27, %v16776_v48  ;;  %v11224_v62 = vadd.f32 %v3183_v54, %v16778_v40  ;;  %v16780_v1 = vld [vmem:[#allocation75_spill] sm:$0xff]  ;;  %v16782_v42 = vld [vmem:[#allocation97_spill] sm:$0xff] }
 0x317   : > { %16769 = vst [vmem:[#allocation58_spill] sm:$0xff] %v11209_v58  ;;  %16771 = vst [vmem:[#allocation59_spill] sm:$0xff] %v11212_v3  ;;  %v11227_v18 = vadd.f32 %v3184_v22, %v16780_v1  ;;  %v11230_v50 = vadd.f32 %v3185_v26, %v16782_v42  ;;  %v16784_v60 = vld [vmem:[#allocation8_spill] sm:$0xff]  ;;  %v16786_v63 = vld [vmem:[#allocation9_spill] sm:$0xff] }
 0x318   : > { %16773 = vst [vmem:[#allocation60_spill] sm:$0xff] %v11215_v46  ;;  %16775 = vst [vmem:[#allocation65_spill] sm:$0xff] %v11218_v6  ;;  %v11233_v14 = vadd.f32 %v3186_v23, %v16784_v60  ;;  %v11236_v19 = vadd.f32 %v3187_v28, %v16786_v63  ;;  %v16788_v11 = vld [vmem:[#allocation41_spill] sm:$0xff]  ;;  %v16790_v48 = vld [vmem:[#allocation42_spill] sm:$0xff] }
 0x319   : > { %16777 = vst [vmem:[#allocation14_spill] sm:$0xff] %v11221_v61  ;;  %16779 = vst [vmem:[#allocation15_spill] sm:$0xff] %v11224_v62  ;;  %v11239_v31 = vrot.slane %v4874_v34, %v16788_v11  ;;  %v4875_v27 = vld [vmem:[%s5240_s21] sm:$0xff]  ;;  %v16793_v40 = vld [vmem:[#allocation83_spill] sm:$0xff] }
 0x31a   : > { %16781 = vst [vmem:[#allocation12_spill] sm:$0xff] %v11227_v18  ;;  %16783 = vst [vmem:[#allocation73_spill] sm:$0xff] %v11230_v50  ;;  %v11243_v61 = vrot.slane %v4875_v27, %v16790_v48  ;;  %v16792_v54 = vld [vmem:[#allocation101_spill] sm:$0xff]  ;;  %v16795_v1 = vld [vmem:[#allocation95_spill] sm:$0xff] }
 0x31b   : > { %16785 = vst [vmem:[#allocation7_spill] sm:$0xff] %v11233_v14  ;;  %16787 = vst [vmem:[#allocation79_spill] sm:$0xff] %v11236_v19  ;;  %v11247_v22 = vrot.slane %v16793_v40, %v16792_v54  ;;  %v11251_v26 = vrot.slane %v16793_v40, %v16795_v1  ;;  %v16797_v23 = vld [vmem:[#allocation47_spill] sm:$0xff]  ;;  %v16799_v28 = vld [vmem:[#allocation24_spill] sm:$0xff] }
 0x31c   : > { %16789 = vst [vmem:[#allocation46_spill] sm:$0xff] %v11239_v31  ;;  %16791 = vst [vmem:[#allocation51_spill] sm:$0xff] %v11243_v61  ;;  %v16798_v42 = vld [vmem:[#allocation91_spill] sm:$0xff]  ;;  %v16800_v34 = vld [vmem:[#allocation98_spill] sm:$0xff] }
 0x31d   : > { %16794 = vst [vmem:[#allocation27_spill] sm:$0xff] %v11247_v22  ;;  %16796 = vst [vmem:[#allocation71_spill] sm:$0xff] %v11251_v26  ;;  %v3016_v60 = vmul.f32 %v16798_v42, %v16797_v23  ;;  %v3017_v63 = vmul.f32 %v16798_v42, %v16799_v28  ;;  %v3018_v11 = vmul.f32 %v16798_v42, %v16800_v34  ;;  %v16801_v19 = vld [vmem:[#allocation90_spill] sm:$0xff]  ;;  %v16803_v22 = vld [vmem:[#allocation87_spill] sm:$0xff] }
 0x31e   : > { %v3019_v27 = vmul.f32 %v16798_v42, %v16801_v19  ;;  %v16802_v48 = vld [vmem:[#allocation82_spill] sm:$0xff]  ;;  %v3021_v40 = vmul.f32 %v16798_v42, %v16803_v22  ;;  %v16804_v1 = vld [vmem:[#allocation56_spill] sm:$0xff]  ;;  %v16805_v26 = vld [vmem:[#allocation57_spill] sm:$0xff] }
 0x31f   : > { %v3020_v54 = vmul.f32 %v16798_v42, %v16802_v48  ;;  %v3022_v23 = vmul.f32 %v16798_v42, %v16804_v1  ;;  %v3023_v28 = vmul.f32 %v16798_v42, %v16805_v26  ;;  %v16806_v61 = vld [vmem:[#allocation39_spill] sm:$0xff]  ;;  %v16807_v14 = vld [vmem:[#allocation69_spill] sm:$0xff]  ;;  %v16810_v22 = vld [vmem:[#allocation86_spill] sm:$0xff] }
 0x320   : > { %v3024_v34 = vmul.f32 %v16798_v42, %v16806_v61  ;;  %v3025_v19 = vmul.f32 %v16798_v42, %v16807_v14  ;;  %v16808_v50 = vld [vmem:[#allocation13_spill] sm:$0xff]  ;;  %v3028_v6 = vmul.f32 %v16798_v42, %v16810_v22  ;;  %v16811_v46 = vld [vmem:[#allocation70_spill] sm:$0xff]  ;;  %v16813_v58 = vld [vmem:[#allocation104_spill] sm:$0xff] }
 0x321   : > { %v3026_v48 = vmul.f32 %v16798_v42, %v16808_v50  ;;  %v16809_v18 = vld [vmem:[#allocation85_spill] sm:$0xff]  ;;  %v3029_v1 = vmul.f32 %v16798_v42, %v16811_v46  ;;  %v3031_v61 = vmul.f32 %v16798_v42, %v16813_v58  ;;  %v16814_v49 = vld [vmem:[#allocation48_spill] sm:$0xff]  ;;  %v16816_v43 = vld [vmem:[#allocation18_spill] sm:$0xff] }
 0x322   : > { %v3027_v62 = vmul.f32 %v16798_v42, %v16809_v18  ;;  %v16812_v3 = vld [vmem:[#allocation105_spill] sm:$0xff]  ;;  %v3032_v14 = vmul.f32 %v16798_v42, %v16814_v49  ;;  %v16815_v57 = vld [vmem:[#allocation68_spill] sm:$0xff]  ;;  %v3034_v18 = vmul.f32 %v16798_v42, %v16816_v43  ;;  %v16817_v7 = vld [vmem:[#allocation19_spill] sm:$0xff] }
 0x323   : > { %v3030_v26 = vmul.f32 %v16798_v42, %v16812_v3  ;;  %v3033_v50 = vmul.f32 %v16798_v42, %v16815_v57  ;;  %v3035_v22 = vmul.f32 %v16798_v42, %v16817_v7  ;;  %v11294_v56 = vld [vmem:[%s5246_s17 + $0x16b] sm:$0xff]  ;;  %v11297_v46 = vld [vmem:[%s5246_s17 + $0x173] sm:$0x3f]  ;;  %v16823_v57 = vld [vmem:[#allocation5_spill] sm:$0xff] }
 0x324   : > { %16818 = vst [vmem:[#allocation84_spill] sm:$0xff] %v11294_v56  ;;  %16819 = vst [vmem:[#allocation78_spill] sm:$0xff] %v11297_v46  ;;  %v16820_v3 = vld [vmem:[#allocation20_spill] sm:$0xff]  ;;  %v3039_v35 = vmul.f32 %v16798_v42, %v16823_v57  ;;  %v16824_v43 = vld [vmem:[#allocation11_spill] sm:$0xff]  ;;  %v3042_v20 = vmul.f32 %v16798_v42, %v11294_v56  ;;  %v11332_v56 = vadd.f32 %v3016_v60, %v11013_v21 }
 0x325   : > { %v3036_v36 = vmul.f32 %v16798_v42, %v16820_v3  ;;  %v16821_v58 = vld [vmem:[#allocation76_spill] sm:$0xff]  ;;  %v3040_v8 = vmul.f32 %v16798_v42, %v16824_v43  ;;  %v16825_v7 = vld [vmem:[#allocation33_spill] sm:$0xff]  ;;  %v3043_v3 = vmul.f32 %v16798_v42, %v11297_v46  ;;  %v16828_v57 = vld [vmem:[#allocation23_spill] sm:$0xff]  ;;  %v11335_v46 = vadd.f32 %v3017_v63, %v11016_v59 }
 0x326   : > { %v3037_v24 = vmul.f32 %v16798_v42, %v16821_v58  ;;  %v16822_v49 = vld [vmem:[#allocation100_spill] sm:$0xff]  ;;  %v3041_v39 = vmul.f32 %v16798_v42, %v16825_v7  ;;  %v16826_v32 = vld [vmem:[#allocation93_spill] sm:$0xff]  ;;  %v11325_v43 = vmul.f32 %v16798_v42, %v16828_v57  ;;  %v11347_v57 = vadd.f32 %v3021_v40, %v11028_v2  ;;  %v2778_v63 = vld [vmem:[%s5246_s17 + $0x34b] sm:$0xff] }
 0x327   : > { %v3038_v29 = vmul.f32 %v16798_v42, %v16822_v49  ;;  %v11317_v58 = vmul.f32 %v16798_v42, %v16826_v32  ;;  %v11321_v49 = vmul.f32 %v16798_v42, %v16697_v53  ;;  %v16829_v4 = vld [vmem:[#allocation77_spill] sm:$0xff]  ;;  %v11338_v32 = vadd.f32 %v3018_v11, %v11019_v55  ;;  %v16842_v11 = vld [vmem:[#allocation108_spill] sm:$0xff] }
 0x328   : > { %v11329_v7 = vmul.f32 %v16798_v42, %v16829_v4  ;;  %v11341_v53 = vadd.f32 %v3019_v27, %v11022_v37  ;;  %v11350_v4 = vadd.f32 %v3022_v23, %v11031_v12  ;;  %v11353_v21 = vadd.f32 %v3023_v28, %v11034_v41  ;;  %v16841_v42 = vld [vmem:[#allocation107_spill] sm:$0xff]  ;;  %v16844_v40 = vld [vmem:[#allocation37_spill] sm:$0xff] }
 0x329   : > { %16827 = vst [vmem:[#allocation43_spill] sm:$0xff] %v11321_v49  ;;  %v11344_v49 = vadd.f32 %v3020_v54, %v11025_v9  ;;  %v11356_v59 = vadd.f32 %v3024_v34, %v11037_v44  ;;  %v11359_v55 = vadd.f32 %v3025_v19, %v11040_v30  ;;  %v11362_v37 = vadd.f32 %v3026_v48, %v11043_v51  ;;  %v4881_v19 = vld [vmem:[%s5246_s17 + $0x27b] sm:$0x3f]  ;;  %v2779_v34 = vld [vmem:[%s5246_s17 + $0x353] sm:$0x3f] }
 0x32a   : > { %v11365_v9 = vadd.f32 %v3027_v62, %v11046_v47  ;;  %v11368_v2 = vadd.f32 %v3028_v6, %v11049_v52  ;;  %v11371_v12 = vadd.f32 %v3029_v1, %v11052_v17  ;;  %v11374_v41 = vadd.f32 %v3030_v26, %v11055_v38  ;;  %v16839_v62 = vld [vmem:[#allocation32_spill] sm:$0xff]  ;;  %v16843_v48 = vld [vmem:[#allocation35_spill] sm:$0xff] }
 0x32b   : > { %v11377_v44 = vadd.f32 %v3031_v61, %v11058_v45  ;;  %v11380_v30 = vadd.f32 %v3032_v14, %v11061_v16  ;;  %v11383_v51 = vadd.f32 %v3033_v50, %v11064_v10  ;;  %v11386_v47 = vadd.f32 %v3034_v18, %v11067_v33  ;;  %v16831_v16 = vld [vmem:[#allocation103_spill] sm:$0xff]  ;;  %v16833_v33 = vld [vmem:[#allocation29_spill] sm:$0xff]  ;;  %v16835_v61 = vld [vmem:[#allocation30_spill] sm:$0xff] }
 0x32c   : > { %v11389_v52 = vadd.f32 %v3035_v22, %v11070_v5  ;;  %v11392_v17 = vadd.f32 %v3036_v36, %v11073_v15  ;;  %v11395_v38 = vadd.f32 %v3037_v24, %v11076_v13  ;;  %v11398_v45 = vadd.f32 %v3038_v29, %v11079_v25  ;;  %v16837_v15 = vld [vmem:[#allocation34_spill] sm:$0xff]  ;;  %v4880_v14 = vld [vmem:[%s5246_s17 + $0x273] sm:$0xff] }
 0x32d   : > { %v11401_v10 = vadd.f32 %v3039_v35, %v16831_v16  ;;  %v11404_v6 = vadd.f32 %v3040_v8, %v16833_v33  ;;  %v11407_v5 = vadd.f32 %v3041_v39, %v16835_v61  ;;  %v11410_v36 = vadd.f32 %v3042_v20, %v16837_v15  ;;  %v4876_v25 = vld [vmem:[%s5246_s17 + $0x243] sm:$0xff]  ;;  %v4877_v35 = vld [vmem:[%s5246_s17 + $0x24b] sm:$0x3f]  ;;  %v4878_v8 = vld [vmem:[%s5246_s17 + $0x25b] sm:$0xff] }
 0x32e   : > { %16830 = vst [vmem:[#allocation44_spill] sm:$0xff] %v11398_v45  ;;  %v11413_v13 = vadd.f32 %v3043_v3, %v16839_v62  ;;  %v3280_v29 = vmul.f32 %v4876_v25, %v11239_v31  ;;  %v3281_v24 = vmul.f32 %v4877_v35, %v11239_v31  ;;  %v3282_v18 = vmul.f32 %v4878_v8, %v11239_v31  ;;  %v4879_v50 = vld [vmem:[%s5246_s17 + $0x263] sm:$0x3f]  ;;  %v4882_v22 = vld [vmem:[%s5246_s17 + $0x28b] sm:$0xff]  ;;  %v16849_v35 = vld [vmem:[#allocation64_spill] sm:$0xff] }
 0x32f   : > { %16832 = vst [vmem:[#allocation99_spill] sm:$0xff] %v11401_v10  ;;  %16834 = vst [vmem:[#allocation92_spill] sm:$0xff] %v11404_v6  ;;  %v3283_v39 = vmul.f32 %v4879_v50, %v11239_v31  ;;  %v3284_v20 = vmul.f32 %v4880_v14, %v11239_v31  ;;  %v3285_v3 = vmul.f32 %v4881_v19, %v11239_v31  ;;  %v16845_v23 = vld [vmem:[#allocation63_spill] sm:$0xff]  ;;  %v16846_v16 = vld [vmem:[#allocation49_spill] sm:$0xff] }
 0x330   : > { %16836 = vst [vmem:[#allocation66_spill] sm:$0xff] %v11407_v5  ;;  %16838 = vst [vmem:[#allocation74_spill] sm:$0xff] %v11410_v36  ;;  %v3286_v26 = vmul.f32 %v4882_v22, %v11239_v31  ;;  %v3287_v60 = vmul.f32 %v11239_v31, %v16841_v42  ;;  %v3288_v27 = vmul.f32 %v11239_v31, %v16842_v11  ;;  %v16847_v61 = vld [vmem:[#allocation54_spill] sm:$0xff]  ;;  %v16848_v62 = vld [vmem:[#allocation55_spill] sm:$0xff] }
 0x331   : > { %16840 = vst [vmem:[#allocation89_spill] sm:$0xff] %v11413_v13  ;;  %v3289_v54 = vmul.f32 %v11239_v31, %v16843_v48  ;;  %v3290_v1 = vmul.f32 %v11239_v31, %v16844_v40  ;;  %v3291_v28 = vmul.f32 %v11239_v31, %v16845_v23  ;;  %v3292_v33 = vmul.f32 %v11239_v31, %v16846_v16  ;;  %v16850_v50 = vld [vmem:[#allocation21_spill] sm:$0xff]  ;;  %v16851_v19 = vld [vmem:[#allocation10_spill] sm:$0xff]  ;;  %v16852_v42 = vld [vmem:[#allocation16_spill] sm:$0xff] }
 0x332   : > { %v3293_v15 = vmul.f32 %v11239_v31, %v16847_v61  ;;  %v3294_v25 = vmul.f32 %v11239_v31, %v16848_v62  ;;  %v3295_v8 = vmul.f32 %v11239_v31, %v16849_v35  ;;  %v3296_v14 = vmul.f32 %v11239_v31, %v16850_v50  ;;  %v16853_v48 = vld [vmem:[#allocation88_spill] sm:$0xff]  ;;  %v16854_v23 = vld [vmem:[#allocation94_spill] sm:$0xff]  ;;  %v16855_v50 = vld [vmem:[#allocation31_spill] sm:$0xff] }
 0x333   : > { %v3297_v22 = vmul.f32 %v11239_v31, %v16851_v19  ;;  %v3298_v11 = vmul.f32 %v11239_v31, %v16852_v42  ;;  %v3299_v40 = vmul.f32 %v11239_v31, %v16853_v48  ;;  %v3300_v16 = vmul.f32 %v11239_v31, %v16854_v23  ;;  %v16856_v19 = vld [vmem:[#allocation50_spill] sm:$0xff]  ;;  %v16857_v42 = vld [vmem:[#allocation17_spill] sm:$0xff]  ;;  %v16859_v23 = vld [vmem:[#allocation80_spill] sm:$0xff] }
 0x334   : > { %v3301_v61 = vmul.f32 %v11239_v31, %v11148_v0  ;;  %v3302_v62 = vmul.f32 %v11239_v31, %v2778_v63  ;;  %v3303_v35 = vmul.f32 %v11239_v31, %v2779_v34  ;;  %v11464_v13 = vadd.f32 %v3280_v29, %v16855_v50  ;;  %v16858_v48 = vld [vmem:[#allocation26_spill] sm:$0xff]  ;;  %v16861_v0 = vld [vmem:[#allocation81_spill] sm:$0xff]  ;;  %v16863_v63 = vld [vmem:[#allocation28_spill] sm:$0xff] }
 0x335   : > { %v11467_v36 = vadd.f32 %v3281_v24, %v16856_v19  ;;  %v11470_v5 = vadd.f32 %v3282_v18, %v16857_v42  ;;  %v11473_v6 = vadd.f32 %v3283_v39, %v16858_v48  ;;  %v11476_v10 = vadd.f32 %v3284_v20, %v16859_v23  ;;  %v16865_v29 = vld [vmem:[#allocation40_spill] sm:$0xff]  ;;  %v16867_v24 = vld [vmem:[#allocation22_spill] sm:$0xff]  ;;  %v16871_v39 = vld [vmem:[#allocation45_spill] sm:$0xff] }
 0x336   : > { %v11479_v45 = vadd.f32 %v3285_v3, %v16861_v0  ;;  %v11482_v34 = vadd.f32 %v3286_v26, %v16863_v63  ;;  %v11485_v50 = vadd.f32 %v3287_v60, %v16865_v29  ;;  %v11488_v19 = vadd.f32 %v3288_v27, %v16867_v24  ;;  %v16869_v18 = vld [vmem:[#allocation36_spill] sm:$0xff]  ;;  %v16873_v20 = vld [vmem:[#allocation106_spill] sm:$0xff]  ;;  %v16877_v26 = vld [vmem:[#allocation53_spill] sm:$0xff] }
 0x337   : > { %16860 = vst [vmem:[#allocation67_spill] sm:$0xff] %v11476_v10  ;;  %v11491_v42 = vadd.f32 %v3289_v54, %v16869_v18  ;;  %v11494_v48 = vadd.f32 %v3290_v1, %v16871_v39  ;;  %v11497_v23 = vadd.f32 %v3291_v28, %v16873_v20  ;;  %v16875_v3 = vld [vmem:[#allocation52_spill] sm:$0xff]  ;;  %v11503_v63 = vadd.f32 %v3293_v15, %v16877_v26  ;;  %v16879_v60 = vld [vmem:[#allocation58_spill] sm:$0xff]  ;;  %v16881_v27 = vld [vmem:[#allocation59_spill] sm:$0xff] }
 0x338   : > { %16862 = vst [vmem:[#allocation38_spill] sm:$0xff] %v11479_v45  ;;  %16864 = vst [vmem:[#allocation75_spill] sm:$0xff] %v11482_v34  ;;  %v11500_v0 = vadd.f32 %v3292_v33, %v16875_v3  ;;  %v11506_v29 = vadd.f32 %v3294_v25, %v16879_v60  ;;  %v11509_v24 = vadd.f32 %v3295_v8, %v16881_v27  ;;  %v16883_v54 = vld [vmem:[#allocation60_spill] sm:$0xff]  ;;  %v16885_v1 = vld [vmem:[#allocation65_spill] sm:$0xff] }
 0x339   : > { %16866 = vst [vmem:[#allocation97_spill] sm:$0xff] %v11485_v50  ;;  %16868 = vst [vmem:[#allocation8_spill] sm:$0xff] %v11488_v19  ;;  %v11512_v18 = vadd.f32 %v3296_v14, %v16883_v54  ;;  %v11515_v39 = vadd.f32 %v3297_v22, %v16885_v1  ;;  %v16887_v28 = vld [vmem:[#allocation14_spill] sm:$0xff]  ;;  %v16889_v33 = vld [vmem:[#allocation15_spill] sm:$0xff] }
 0x33a   : > { %16870 = vst [vmem:[#allocation9_spill] sm:$0xff] %v11491_v42  ;;  %16872 = vst [vmem:[#allocation41_spill] sm:$0xff] %v11494_v48  ;;  %v11518_v20 = vadd.f32 %v3298_v11, %v16887_v28  ;;  %v11521_v3 = vadd.f32 %v3299_v40, %v16889_v33  ;;  %v16891_v15 = vld [vmem:[#allocation12_spill] sm:$0xff]  ;;  %v16893_v25 = vld [vmem:[#allocation73_spill] sm:$0xff] }
 0x33b   : > { %16874 = vst [vmem:[#allocation42_spill] sm:$0xff] %v11497_v23  ;;  %16876 = vst [vmem:[#allocation101_spill] sm:$0xff] %v11500_v0  ;;  %v11524_v26 = vadd.f32 %v3300_v16, %v16891_v15  ;;  %v11527_v60 = vadd.f32 %v3301_v61, %v16893_v25  ;;  %v16895_v8 = vld [vmem:[#allocation7_spill] sm:$0xff]  ;;  %v16899_v22 = vld [vmem:[#allocation61_spill] sm:$0xff] }
 0x33c   : > { %16878 = vst [vmem:[#allocation83_spill] sm:$0xff] %v11503_v63  ;;  %16880 = vst [vmem:[#allocation95_spill] sm:$0xff] %v11506_v29  ;;  %v11530_v27 = vadd.f32 %v3302_v62, %v16895_v8  ;;  %v16897_v14 = vld [vmem:[#allocation79_spill] sm:$0xff]  ;;  %v11537_v1 = vadd.f32 %v11317_v58, %v16899_v22  ;;  %v16901_v11 = vld [vmem:[#allocation62_spill] sm:$0xff] }
 0x33d   : > { %16882 = vst [vmem:[#allocation47_spill] sm:$0xff] %v11509_v24  ;;  %16884 = vst [vmem:[#allocation91_spill] sm:$0xff] %v11512_v18  ;;  %v11533_v54 = vadd.f32 %v3303_v35, %v16897_v14  ;;  %v16902_v28 = vld [vmem:[#allocation43_spill] sm:$0xff]  ;;  %v16904_v33 = vld [vmem:[#allocation72_spill] sm:$0xff] }
 0x33e   : > { %16886 = vst [vmem:[#allocation24_spill] sm:$0xff] %v11515_v39  ;;  %16888 = vst [vmem:[#allocation93_spill] sm:$0xff] %v11518_v20  ;;  %v11541_v40 = vadd.f32 %v16902_v28, %v16901_v11  ;;  %v11545_v16 = vadd.f32 %v11325_v43, %v16904_v33  ;;  %v16906_v61 = vld [vmem:[#allocation96_spill] sm:$0xff]  ;;  %v16908_v62 = vld [vmem:[#allocation98_spill] sm:$0xff] }
 0x33f   : > { %16890 = vst [vmem:[#allocation23_spill] sm:$0xff] %v11521_v3  ;;  %16892 = vst [vmem:[#allocation77_spill] sm:$0xff] %v11524_v26  ;;  %v11549_v15 = vadd.f32 %v11329_v7, %v16906_v61  ;;  %v16909_v25 = vld [vmem:[#allocation25_spill] sm:$0xff]  ;;  %v16910_v8 = vld [vmem:[#allocation90_spill] sm:$0xff] }
 0x340   : > { %16894 = vst [vmem:[#allocation103_spill] sm:$0xff] %v11527_v60  ;;  %16896 = vst [vmem:[#allocation29_spill] sm:$0xff] %v11530_v27  ;;  %v3132_v35 = vmul.f32 %v16909_v25, %v16908_v62  ;;  %v3133_v14 = vmul.f32 %v16909_v25, %v16910_v8  ;;  %v16911_v58 = vld [vmem:[#allocation82_spill] sm:$0xff]  ;;  %v16912_v31 = vld [vmem:[#allocation87_spill] sm:$0xff] }
 0x341   : > { %16898 = vst [vmem:[#allocation30_spill] sm:$0xff] %v11533_v54  ;;  %16900 = vst [vmem:[#allocation34_spill] sm:$0xff] %v11537_v1  ;;  %v3134_v22 = vmul.f32 %v16909_v25, %v16911_v58  ;;  %v3135_v11 = vmul.f32 %v16909_v25, %v16912_v31  ;;  %v16913_v28 = vld [vmem:[#allocation56_spill] sm:$0xff]  ;;  %v16914_v33 = vld [vmem:[#allocation57_spill] sm:$0xff] }
 0x342   : > { %16903 = vst [vmem:[#allocation32_spill] sm:$0xff] %v11541_v40  ;;  %16905 = vst [vmem:[#allocation107_spill] sm:$0xff] %v11545_v16  ;;  %v3136_v43 = vmul.f32 %v16909_v25, %v16913_v28  ;;  %v3137_v7 = vmul.f32 %v16909_v25, %v16914_v33  ;;  %v16915_v61 = vld [vmem:[#allocation39_spill] sm:$0xff]  ;;  %v16917_v16 = vld [vmem:[#allocation13_spill] sm:$0xff] }
 0x343   : > { %16907 = vst [vmem:[#allocation108_spill] sm:$0xff] %v11549_v15  ;;  %v3138_v62 = vmul.f32 %v16909_v25, %v16915_v61  ;;  %v16916_v15 = vld [vmem:[#allocation69_spill] sm:$0xff]  ;;  %v3140_v58 = vmul.f32 %v16909_v25, %v16917_v16  ;;  %v16919_v1 = vld [vmem:[#allocation86_spill] sm:$0xff]  ;;  %v16922_v26 = vld [vmem:[#allocation104_spill] sm:$0xff] }
 0x344   : > { %v3139_v8 = vmul.f32 %v16909_v25, %v16916_v15  ;;  %v16918_v40 = vld [vmem:[#allocation85_spill] sm:$0xff]  ;;  %v3142_v28 = vmul.f32 %v16909_v25, %v16919_v1  ;;  %v16920_v54 = vld [vmem:[#allocation70_spill] sm:$0xff]  ;;  %v3145_v61 = vmul.f32 %v16909_v25, %v16922_v26  ;;  %v16923_v3 = vld [vmem:[#allocation48_spill] sm:$0xff] }
 0x345   : > { %v3141_v31 = vmul.f32 %v16909_v25, %v16918_v40  ;;  %v3143_v27 = vmul.f32 %v16909_v25, %v16920_v54  ;;  %v16921_v33 = vld [vmem:[#allocation105_spill] sm:$0xff]  ;;  %v3146_v15 = vmul.f32 %v16909_v25, %v16923_v3  ;;  %v16924_v20 = vld [vmem:[#allocation68_spill] sm:$0xff]  ;;  %v16925_v40 = vld [vmem:[#allocation18_spill] sm:$0xff] }
 0x346   : > { %v3144_v60 = vmul.f32 %v16909_v25, %v16921_v33  ;;  %v3147_v16 = vmul.f32 %v16909_v25, %v16924_v20  ;;  %v3148_v39 = vmul.f32 %v16909_v25, %v16925_v40  ;;  %v16926_v1 = vld [vmem:[#allocation19_spill] sm:$0xff]  ;;  %v16927_v18 = vld [vmem:[#allocation20_spill] sm:$0xff]  ;;  %v11592_v29 = vld [vmem:[%s5246_s17 + $0x183] sm:$0xff] }
 0x347   : > { %v3149_v54 = vmul.f32 %v16909_v25, %v16926_v1  ;;  %v3150_v33 = vmul.f32 %v16909_v25, %v16927_v18  ;;  %v16928_v24 = vld [vmem:[#allocation76_spill] sm:$0xff]  ;;  %16929 = vst [vmem:[#allocation35_spill] sm:$0xff] %v11592_v29  ;;  %v11595_v3 = vld [vmem:[%s5246_s17 + $0x18b] sm:$0x3f]  ;;  %v16932_v40 = vld [vmem:[#allocation5_spill] sm:$0xff]  ;;  %v3158_v34 = vmul.f32 %v16909_v25, %v11592_v29 }
 0x348   : > { %v3151_v26 = vmul.f32 %v16909_v25, %v16928_v24  ;;  %16930 = vst [vmem:[#allocation37_spill] sm:$0xff] %v11595_v3  ;;  %v16931_v20 = vld [vmem:[#allocation100_spill] sm:$0xff]  ;;  %v3153_v0 = vmul.f32 %v16909_v25, %v16932_v40  ;;  %v16933_v23 = vld [vmem:[#allocation11_spill] sm:$0xff]  ;;  %v16934_v48 = vld [vmem:[#allocation33_spill] sm:$0xff] }
 0x349   : > { %v3152_v63 = vmul.f32 %v16909_v25, %v16931_v20  ;;  %v3154_v1 = vmul.f32 %v16909_v25, %v16933_v23  ;;  %v3155_v18 = vmul.f32 %v16909_v25, %v16934_v48  ;;  %v16935_v42 = vld [vmem:[#allocation84_spill] sm:$0xff]  ;;  %v16936_v19 = vld [vmem:[#allocation78_spill] sm:$0xff]  ;;  %v3159_v20 = vmul.f32 %v16909_v25, %v11595_v3 }
 0x34a   : > { %v3156_v24 = vmul.f32 %v16909_v25, %v16935_v42  ;;  %v3157_v50 = vmul.f32 %v16909_v25, %v16936_v19  ;;  %v4883_v45 = vld [vmem:[%s5246_s17 + $0x1fb] sm:$0xff]  ;;  %v4884_v23 = vld [vmem:[%s5246_s17 + $0x203] sm:$0x3f]  ;;  %v11622_v48 = vld [vmem:[%s5246_s17 + $0x213] sm:$0xff]  ;;  %v11636_v3 = vadd.f32 %v3132_v35, %v11332_v56  ;;  %v11654_v56 = vadd.f32 %v3138_v62, %v11350_v4 }
 0x34b   : > { %v11615_v40 = vmul.f32 %v4883_v45, %v16909_v25  ;;  %v11619_v10 = vmul.f32 %v4884_v23, %v16909_v25  ;;  %16938 = vst [vmem:[#allocation49_spill] sm:$0xff] %v11622_v48  ;;  %v11626_v42 = vmul.f32 %v11622_v48, %v16909_v25  ;;  %v11629_v19 = vld [vmem:[%s5246_s17 + $0x21b] sm:$0x3f]  ;;  %v11639_v45 = vadd.f32 %v3133_v14, %v11335_v46 }
 0x34c   : > { %v11633_v29 = vmul.f32 %v11629_v19, %v16909_v25  ;;  %v11642_v23 = vadd.f32 %v3134_v22, %v11338_v32  ;;  %v11648_v48 = vadd.f32 %v3136_v43, %v11344_v49  ;;  %v11657_v46 = vadd.f32 %v3139_v8, %v11353_v21  ;;  %v11723_v25 = vld [vmem:[%s5246_s17 + $0x21c] sm:$0x3f]  ;;  %v11738_v22 = vld [vmem:[%s5246_s17 + $0x22c] sm:$0xff]  ;;  %v11744_v43 = vld [vmem:[%s5246_s17 + $0x244] sm:$0xff] }
 0x34d   : > { %16937 = vst [vmem:[#allocation63_spill] sm:$0xff] %v11619_v10  ;;  %16939 = vst [vmem:[#allocation54_spill] sm:$0xff] %v11626_v42  ;;  %v11645_v10 = vadd.f32 %v3135_v11, %v11341_v53  ;;  %v11651_v42 = vadd.f32 %v3137_v7, %v11347_v57  ;;  %v11660_v32 = vadd.f32 %v3140_v58, %v11356_v59  ;;  %v16950_v35 = vld [vmem:[#allocation92_spill] sm:$0xff] }
 0x34e   : > { %v11663_v53 = vadd.f32 %v3141_v31, %v11359_v55  ;;  %v11666_v49 = vadd.f32 %v3142_v28, %v11362_v37  ;;  %v11669_v57 = vadd.f32 %v3143_v27, %v11365_v9  ;;  %v11672_v4 = vadd.f32 %v3144_v60, %v11368_v2  ;;  %v11696_v60 = vld [vmem:[%s5246_s17 + $0x1e4] sm:$0xff]  ;;  %16949 = vst [vmem:[#allocation31_spill] sm:$0xff] %v11723_v25  ;;  %v11741_v11 = vld [vmem:[%s5246_s17 + $0x234] sm:$0x3f]  ;;  %v11750_v7 = vld [vmem:[%s5246_s17 + $0x25c] sm:$0xff] }
 0x34f   : > { %v11675_v21 = vadd.f32 %v3145_v61, %v11371_v12  ;;  %v11678_v59 = vadd.f32 %v3146_v15, %v11374_v41  ;;  %v11681_v55 = vadd.f32 %v3147_v16, %v11377_v44  ;;  %v11684_v37 = vadd.f32 %v3148_v39, %v11380_v30  ;;  %16940 = vst [vmem:[#allocation55_spill] sm:$0xff] %v11696_v60  ;;  %v11699_v41 = vld [vmem:[%s5246_s17 + $0x1ec] sm:$0x3f]  ;;  %v11702_v44 = vld [vmem:[%s5246_s17 + $0x1fc] sm:$0xff]  ;;  %v11717_v27 = vld [vmem:[%s5246_s17 + $0x204] sm:$0x3f] }
 0x350   : > { %v11687_v9 = vadd.f32 %v3149_v54, %v11383_v51  ;;  %v11690_v2 = vadd.f32 %v3150_v33, %v11386_v47  ;;  %v11693_v12 = vadd.f32 %v3151_v26, %v11389_v52  ;;  %16941 = vst [vmem:[#allocation64_spill] sm:$0xff] %v11699_v41  ;;  %16942 = vst [vmem:[#allocation21_spill] sm:$0xff] %v11702_v44  ;;  %v16943_v47 = vld [vmem:[#allocation44_spill] sm:$0xff]  ;;  %v16945_v39 = vld [vmem:[#allocation99_spill] sm:$0xff] }
 0x351   : > { %v11705_v30 = vadd.f32 %v3152_v63, %v11392_v17  ;;  %v11708_v51 = vadd.f32 %v3153_v0, %v11395_v38  ;;  %v11711_v52 = vadd.f32 %v3154_v1, %v16943_v47  ;;  %v11714_v26 = vadd.f32 %v3155_v18, %v16945_v39  ;;  %16947 = vst [vmem:[#allocation88_spill] sm:$0xff] %v11717_v27  ;;  %v11720_v54 = vld [vmem:[%s5246_s17 + $0x214] sm:$0xff]  ;;  %v16952_v63 = vld [vmem:[#allocation66_spill] sm:$0xff]  ;;  %v16956_v18 = vld [vmem:[#allocation89_spill] sm:$0xff] }
 0x352   : > { %16948 = vst [vmem:[#allocation94_spill] sm:$0xff] %v11720_v54  ;;  %v11726_v17 = vadd.f32 %v3156_v24, %v16950_v35  ;;  %v11729_v38 = vadd.f32 %v3157_v50, %v16952_v63  ;;  %v16954_v0 = vld [vmem:[#allocation74_spill] sm:$0xff]  ;;  %v11735_v14 = vadd.f32 %v3159_v20, %v16956_v18  ;;  %16958 = vst [vmem:[#allocation81_spill] sm:$0xff] %v11738_v22  ;;  %v11764_v31 = vld [vmem:[%s5246_s17 + $0x274] sm:$0xff] }
 0x353   : > { %16944 = vst [vmem:[#allocation10_spill] sm:$0xff] %v11711_v52  ;;  %16946 = vst [vmem:[#allocation16_spill] sm:$0xff] %v11714_v26  ;;  %v11732_v1 = vadd.f32 %v3158_v34, %v16954_v0  ;;  %v11747_v24 = vld [vmem:[%s5246_s17 + $0x24c] sm:$0x3f]  ;;  %v11753_v50 = vld [vmem:[%s5246_s17 + $0x264] sm:$0x3f] }
 0x354   : > { %16951 = vst [vmem:[#allocation50_spill] sm:$0xff] %v11726_v17  ;;  %16953 = vst [vmem:[#allocation17_spill] sm:$0xff] %v11729_v38  ;;  %v16964_v34 = vld [vmem:[#allocation51_spill] sm:$0xff]  ;;  %v11767_v28 = vld [vmem:[%s5246_s17 + $0x27c] sm:$0x3f] }
 0x355   : > { %16955 = vst [vmem:[#allocation26_spill] sm:$0xff] %v11732_v1  ;;  %16957 = vst [vmem:[#allocation80_spill] sm:$0xff] %v11735_v14  ;;  %v3468_v62 = vmul.f32 %v16964_v34, %v11696_v60  ;;  %v3469_v20 = vmul.f32 %v16964_v34, %v11699_v41  ;;  %v3470_v8 = vmul.f32 %v16964_v34, %v11702_v44  ;;  %v11770_v33 = vld [vmem:[%s5246_s17 + $0x28c] sm:$0xff]  ;;  %v11781_v39 = vld [vmem:[%s5246_s17 + $0x294] sm:$0x3f] }
 0x356   : > { %16959 = vst [vmem:[#allocation28_spill] sm:$0xff] %v11741_v11  ;;  %16960 = vst [vmem:[#allocation40_spill] sm:$0xff] %v11744_v43  ;;  %v3471_v58 = vmul.f32 %v16964_v34, %v11717_v27  ;;  %v3472_v61 = vmul.f32 %v16964_v34, %v11720_v54  ;;  %v3473_v15 = vmul.f32 %v16964_v34, %v11723_v25  ;;  %v11784_v35 = vld [vmem:[%s5246_s17 + $0x2a4] sm:$0xff]  ;;  %v11787_v63 = vld [vmem:[%s5246_s17 + $0x2ac] sm:$0x3f] }
 0x357   : > { %16961 = vst [vmem:[#allocation22_spill] sm:$0xff] %v11747_v24  ;;  %16962 = vst [vmem:[#allocation36_spill] sm:$0xff] %v11750_v7  ;;  %v3474_v16 = vmul.f32 %v16964_v34, %v11738_v22  ;;  %v3475_v47 = vmul.f32 %v16964_v34, %v11741_v11  ;;  %v3476_v0 = vmul.f32 %v16964_v34, %v11744_v43  ;;  %v11798_v11 = vld [vmem:[%s5246_s17 + $0x2bc] sm:$0xff]  ;;  %v11801_v22 = vld [vmem:[%s5246_s17 + $0x2c4] sm:$0x3f] }
 0x358   : > { %16963 = vst [vmem:[#allocation45_spill] sm:$0xff] %v11753_v50  ;;  %16965 = vst [vmem:[#allocation106_spill] sm:$0xff] %v11764_v31  ;;  %v3477_v18 = vmul.f32 %v16964_v34, %v11747_v24  ;;  %v3478_v41 = vmul.f32 %v16964_v34, %v11750_v7  ;;  %v3479_v60 = vmul.f32 %v16964_v34, %v11753_v50  ;;  %v11804_v25 = vld [vmem:[%s5246_s17 + $0x2d4] sm:$0xff]  ;;  %v11815_v27 = vld [vmem:[%s5246_s17 + $0x2dc] sm:$0x3f] }
 0x359   : > { %16966 = vst [vmem:[#allocation52_spill] sm:$0xff] %v11767_v28  ;;  %16967 = vst [vmem:[#allocation53_spill] sm:$0xff] %v11770_v33  ;;  %v3480_v54 = vmul.f32 %v16964_v34, %v11764_v31  ;;  %v3481_v43 = vmul.f32 %v16964_v34, %v11767_v28  ;;  %v3482_v24 = vmul.f32 %v16964_v34, %v11770_v33  ;;  %v11818_v50 = vld [vmem:[%s5246_s17 + $0x2ec] sm:$0xff]  ;;  %v11821_v44 = vld [vmem:[%s5246_s17 + $0x2f4] sm:$0x3f] }
 0x35a   : > { %16968 = vst [vmem:[#allocation58_spill] sm:$0xff] %v11781_v39  ;;  %16969 = vst [vmem:[#allocation59_spill] sm:$0xff] %v11784_v35  ;;  %v3483_v7 = vmul.f32 %v16964_v34, %v11781_v39  ;;  %v3484_v14 = vmul.f32 %v16964_v34, %v11784_v35  ;;  %v3485_v31 = vmul.f32 %v16964_v34, %v11787_v63  ;;  %v16980_v17 = vld [vmem:[#allocation67_spill] sm:$0xff]  ;;  %v16982_v26 = vld [vmem:[#allocation38_spill] sm:$0xff] }
 0x35b   : > { %16970 = vst [vmem:[#allocation60_spill] sm:$0xff] %v11787_v63  ;;  %16971 = vst [vmem:[#allocation65_spill] sm:$0xff] %v11798_v11  ;;  %v3486_v28 = vmul.f32 %v16964_v34, %v11798_v11  ;;  %v3487_v33 = vmul.f32 %v16964_v34, %v11801_v22  ;;  %v3488_v39 = vmul.f32 %v16964_v34, %v11804_v25  ;;  %v16984_v52 = vld [vmem:[#allocation75_spill] sm:$0xff] }
 0x35c   : > { %16972 = vst [vmem:[#allocation14_spill] sm:$0xff] %v11801_v22  ;;  %16973 = vst [vmem:[#allocation15_spill] sm:$0xff] %v11804_v25  ;;  %v3489_v1 = vmul.f32 %v16964_v34, %v11815_v27  ;;  %v3490_v38 = vmul.f32 %v16964_v34, %v11818_v50  ;;  %v3491_v35 = vmul.f32 %v16964_v34, %v11821_v44 }
 0x35d   : > { %16974 = vst [vmem:[#allocation12_spill] sm:$0xff] %v11815_v27  ;;  %16975 = vst [vmem:[#allocation73_spill] sm:$0xff] %v11818_v50  ;;  %v11840_v63 = vadd.f32 %v3468_v62, %v11464_v13  ;;  %v11843_v11 = vadd.f32 %v3469_v20, %v11467_v36  ;;  %v11846_v22 = vadd.f32 %v3470_v8, %v11470_v5  ;;  %v16986_v13 = vld [vmem:[#allocation97_spill] sm:$0xff]  ;;  %v16988_v36 = vld [vmem:[#allocation8_spill] sm:$0xff] }
 0x35e   : > { %16976 = vst [vmem:[#allocation7_spill] sm:$0xff] %v11821_v44  ;;  %v11849_v25 = vadd.f32 %v3471_v58, %v11473_v6  ;;  %v11852_v27 = vadd.f32 %v3472_v61, %v16980_v17  ;;  %v11855_v50 = vadd.f32 %v3473_v15, %v16982_v26  ;;  %v11858_v34 = vadd.f32 %v3474_v16, %v16984_v52  ;;  %v16990_v5 = vld [vmem:[#allocation9_spill] sm:$0xff]  ;;  %v16994_v17 = vld [vmem:[#allocation42_spill] sm:$0xff]  ;;  %v16998_v52 = vld [vmem:[#allocation83_spill] sm:$0xff] }
 0x35f   : > { %16977 = vst [vmem:[#allocation79_spill] sm:$0xff] %v11843_v11  ;;  %16978 = vst [vmem:[#allocation61_spill] sm:$0xff] %v11846_v22  ;;  %v11861_v62 = vadd.f32 %v3475_v47, %v16986_v13  ;;  %v11864_v20 = vadd.f32 %v3476_v0, %v16988_v36  ;;  %v11867_v8 = vadd.f32 %v3477_v18, %v16990_v5  ;;  %v16992_v6 = vld [vmem:[#allocation41_spill] sm:$0xff]  ;;  %v17000_v47 = vld [vmem:[#allocation95_spill] sm:$0xff] }
 0x360   : > { %16979 = vst [vmem:[#allocation62_spill] sm:$0xff] %v11849_v25  ;;  %16981 = vst [vmem:[#allocation43_spill] sm:$0xff] %v11852_v27  ;;  %v11870_v58 = vadd.f32 %v3478_v41, %v16992_v6  ;;  %v11873_v61 = vadd.f32 %v3479_v60, %v16994_v17  ;;  %v16996_v26 = vld [vmem:[#allocation101_spill] sm:$0xff]  ;;  %v11879_v16 = vadd.f32 %v3481_v43, %v16998_v52  ;;  %v17002_v0 = vld [vmem:[#allocation47_spill] sm:$0xff] }
 0x361   : > { %16983 = vst [vmem:[#allocation72_spill] sm:$0xff] %v11855_v50  ;;  %16985 = vst [vmem:[#allocation96_spill] sm:$0xff] %v11858_v34  ;;  %v11876_v15 = vadd.f32 %v3480_v54, %v16996_v26  ;;  %v11882_v13 = vadd.f32 %v3482_v24, %v17000_v47  ;;  %v11885_v18 = vadd.f32 %v3483_v7, %v17002_v0  ;;  %v17004_v36 = vld [vmem:[#allocation91_spill] sm:$0xff]  ;;  %v17006_v5 = vld [vmem:[#allocation24_spill] sm:$0xff] }
 0x362   : > { %16987 = vst [vmem:[#allocation98_spill] sm:$0xff] %v11861_v62  ;;  %16989 = vst [vmem:[#allocation25_spill] sm:$0xff] %v11864_v20  ;;  %v11888_v41 = vadd.f32 %v3484_v14, %v17004_v36  ;;  %v11891_v60 = vadd.f32 %v3485_v31, %v17006_v5  ;;  %v17008_v54 = vld [vmem:[#allocation93_spill] sm:$0xff]  ;;  %v17010_v17 = vld [vmem:[#allocation23_spill] sm:$0xff] }
 0x363   : > { %16991 = vst [vmem:[#allocation90_spill] sm:$0xff] %v11867_v8  ;;  %16993 = vst [vmem:[#allocation82_spill] sm:$0xff] %v11870_v58  ;;  %v11894_v6 = vadd.f32 %v3486_v28, %v17008_v54  ;;  %v11897_v43 = vadd.f32 %v3487_v33, %v17010_v17  ;;  %v17012_v24 = vld [vmem:[#allocation77_spill] sm:$0xff]  ;;  %v17014_v52 = vld [vmem:[#allocation103_spill] sm:$0xff] }
 0x364   : > { %16995 = vst [vmem:[#allocation87_spill] sm:$0xff] %v11873_v61  ;;  %16997 = vst [vmem:[#allocation56_spill] sm:$0xff] %v11876_v15  ;;  %v11900_v26 = vadd.f32 %v3488_v39, %v17012_v24  ;;  %v11903_v7 = vadd.f32 %v3489_v1, %v17014_v52  ;;  %v17016_v14 = vld [vmem:[#allocation29_spill] sm:$0xff]  ;;  %v17018_v0 = vld [vmem:[#allocation30_spill] sm:$0xff] }
 0x365   : > { %16999 = vst [vmem:[#allocation57_spill] sm:$0xff] %v11879_v16  ;;  %17001 = vst [vmem:[#allocation39_spill] sm:$0xff] %v11882_v13  ;;  %v11906_v47 = vadd.f32 %v3490_v38, %v17016_v14  ;;  %v11909_v31 = vadd.f32 %v3491_v35, %v17018_v0  ;;  %v17020_v28 = vld [vmem:[#allocation34_spill] sm:$0xff]  ;;  %v17022_v33 = vld [vmem:[#allocation32_spill] sm:$0xff] }
 0x366   : > { %17003 = vst [vmem:[#allocation69_spill] sm:$0xff] %v11885_v18  ;;  %17005 = vst [vmem:[#allocation13_spill] sm:$0xff] %v11888_v41  ;;  %v11913_v36 = vadd.f32 %v11615_v40, %v17020_v28  ;;  %v17023_v5 = vld [vmem:[#allocation63_spill] sm:$0xff]  ;;  %v17026_v17 = vld [vmem:[#allocation54_spill] sm:$0xff] }
 0x367   : > { %17007 = vst [vmem:[#allocation85_spill] sm:$0xff] %v11891_v60  ;;  %17009 = vst [vmem:[#allocation44_spill] sm:$0xff] %v11894_v6  ;;  %v11917_v39 = vadd.f32 %v17023_v5, %v17022_v33  ;;  %v17025_v54 = vld [vmem:[#allocation107_spill] sm:$0xff]  ;;  %v17028_v24 = vld [vmem:[#allocation108_spill] sm:$0xff] }
 0x368   : > { %17011 = vst [vmem:[#allocation99_spill] sm:$0xff] %v11897_v43  ;;  %17013 = vst [vmem:[#allocation92_spill] sm:$0xff] %v11900_v26  ;;  %v11921_v1 = vadd.f32 %v17026_v17, %v17025_v54  ;;  %v11925_v38 = vadd.f32 %v11633_v29, %v17028_v24  ;;  %v4887_v35 = vld [vmem:[%s5246_s17 + $0x63] sm:$0xff]  ;;  %v4888_v0 = vld [vmem:[%s5246_s17 + $0x6b] sm:$0x3f] }
 0x369   : > { %17015 = vst [vmem:[#allocation66_spill] sm:$0xff] %v11903_v7  ;;  %17017 = vst [vmem:[#allocation74_spill] sm:$0xff] %v11906_v47  ;;  %v17030_v52 = vld [vmem:[#allocation46_spill] sm:$0xff]  ;;  %v4889_v28 = vld [vmem:[%s5246_s17 + $0x7b] sm:$0xff] }
 0x36a   : > { %17019 = vst [vmem:[#allocation89_spill] sm:$0xff] %v11909_v31  ;;  %17021 = vst [vmem:[#allocation67_spill] sm:$0xff] %v11913_v36  ;;  %v3248_v14 = vmul.f32 %v4887_v35, %v17030_v52  ;;  %v3249_v40 = vmul.f32 %v4888_v0, %v17030_v52  ;;  %v3250_v33 = vmul.f32 %v4889_v28, %v17030_v52  ;;  %v4890_v5 = vld [vmem:[%s5246_s17 + $0x83] sm:$0x3f]  ;;  %v4891_v17 = vld [vmem:[%s5246_s17 + $0x93] sm:$0xff] }
 0x36b   : > { %17024 = vst [vmem:[#allocation38_spill] sm:$0xff] %v11917_v39  ;;  %17027 = vst [vmem:[#allocation75_spill] sm:$0xff] %v11921_v1  ;;  %v3251_v54 = vmul.f32 %v4890_v5, %v17030_v52  ;;  %v3252_v1 = vmul.f32 %v4891_v17, %v17030_v52  ;;  %v4892_v39 = vld [vmem:[%s5246_s17 + $0x9b] sm:$0x3f]  ;;  %v4893_v24 = vld [vmem:[%s5246_s17 + $0xab] sm:$0xff] }
 0x36c   : > { %17029 = vst [vmem:[#allocation97_spill] sm:$0xff] %v11925_v38  ;;  %v3253_v29 = vmul.f32 %v4892_v39, %v17030_v52  ;;  %v3254_v35 = vmul.f32 %v4893_v24, %v17030_v52  ;;  %v4894_v38 = vld [vmem:[%s5246_s17 + $0xb3] sm:$0x3f]  ;;  %v17031_v36 = vld [vmem:[#allocation86_spill] sm:$0xff]  ;;  %v17033_v7 = vld [vmem:[#allocation105_spill] sm:$0xff] }
 0x36d   : > { %v3255_v0 = vmul.f32 %v4894_v38, %v17030_v52  ;;  %v3256_v31 = vmul.f32 %v17030_v52, %v17031_v36  ;;  %v17032_v28 = vld [vmem:[#allocation70_spill] sm:$0xff]  ;;  %v3258_v5 = vmul.f32 %v17030_v52, %v17033_v7  ;;  %v17034_v26 = vld [vmem:[#allocation104_spill] sm:$0xff]  ;;  %v17038_v18 = vld [vmem:[#allocation19_spill] sm:$0xff] }
 0x36e   : > { %v3257_v47 = vmul.f32 %v17030_v52, %v17032_v28  ;;  %v3259_v17 = vmul.f32 %v17030_v52, %v17034_v26  ;;  %v2742_v43 = vld [vmem:[%s5246_s17 + $0x19b] sm:$0xff]  ;;  %v2743_v39 = vld [vmem:[%s5246_s17 + $0x1a3] sm:$0x3f]  ;;  %v3263_v28 = vmul.f32 %v17030_v52, %v17038_v18  ;;  %v17043_v58 = vld [vmem:[#allocation11_spill] sm:$0xff] }
 0x36f   : > { %v17035_v6 = vld [vmem:[#allocation48_spill] sm:$0xff]  ;;  %v17037_v41 = vld [vmem:[#allocation18_spill] sm:$0xff]  ;;  %v17042_v61 = vld [vmem:[#allocation5_spill] sm:$0xff]  ;;  %v3275_v25 = vmul.f32 %v17030_v52, %v2743_v39  ;;  %v12006_v39 = vadd.f32 %v3250_v33, %v11642_v23 }
 0x370   : > { %v3260_v24 = vmul.f32 %v17030_v52, %v17035_v6  ;;  %v17036_v60 = vld [vmem:[#allocation68_spill] sm:$0xff]  ;;  %v3262_v36 = vmul.f32 %v17030_v52, %v17037_v41  ;;  %v3268_v41 = vmul.f32 %v17030_v52, %v17043_v58  ;;  %v17044_v8 = vld [vmem:[#allocation33_spill] sm:$0xff]  ;;  %v17047_v50 = vld [vmem:[#allocation35_spill] sm:$0xff]  ;;  %v12027_v23 = vadd.f32 %v3257_v47, %v11663_v53 }
 0x371   : > { %v3261_v38 = vmul.f32 %v17030_v52, %v17036_v60  ;;  %v17039_v13 = vld [vmem:[#allocation20_spill] sm:$0xff]  ;;  %v3267_v60 = vmul.f32 %v17030_v52, %v17042_v61  ;;  %v3269_v20 = vmul.f32 %v17030_v52, %v17044_v8  ;;  %v17048_v27 = vld [vmem:[#allocation37_spill] sm:$0xff]  ;;  %v3274_v61 = vmul.f32 %v17030_v52, %v2742_v43 }
 0x372   : > { %v3264_v7 = vmul.f32 %v17030_v52, %v17039_v13  ;;  %v17040_v16 = vld [vmem:[#allocation76_spill] sm:$0xff]  ;;  %v17046_v13 = vld [vmem:[#allocation78_spill] sm:$0xff]  ;;  %v17049_v58 = vld [vmem:[#allocation49_spill] sm:$0xff]  ;;  %v11989_v8 = vmul.f32 %v11629_v19, %v17030_v52  ;;  %v12003_v43 = vadd.f32 %v3249_v40, %v11639_v45  ;;  %v12009_v19 = vadd.f32 %v3251_v54, %v11645_v10 }
 0x373   : > { %v3265_v26 = vmul.f32 %v17030_v52, %v17040_v16  ;;  %v17041_v15 = vld [vmem:[#allocation100_spill] sm:$0xff]  ;;  %v3271_v34 = vmul.f32 %v17030_v52, %v17046_v13  ;;  %v3272_v16 = vmul.f32 %v17030_v52, %v17047_v50  ;;  %v11985_v22 = vmul.f32 %v17049_v58, %v17030_v52 }
 0x374   : > { %v3266_v6 = vmul.f32 %v17030_v52, %v17041_v15  ;;  %v17045_v18 = vld [vmem:[#allocation84_spill] sm:$0xff]  ;;  %v3273_v15 = vmul.f32 %v17030_v52, %v17048_v27  ;;  %v12000_v27 = vadd.f32 %v3248_v14, %v11636_v3  ;;  %v12012_v58 = vadd.f32 %v3252_v1, %v11648_v48 }
 0x375   : > { %v3270_v62 = vmul.f32 %v17030_v52, %v17045_v18  ;;  %v4895_v18 = vld [vmem:[%s5246_s17 + $0x22b] sm:$0xff]  ;;  %v4896_v50 = vld [vmem:[%s5246_s17 + $0x233] sm:$0x3f]  ;;  %v12021_v3 = vadd.f32 %v3255_v0, %v11657_v46  ;;  %v12024_v45 = vadd.f32 %v3256_v31, %v11660_v32  ;;  %v12030_v10 = vadd.f32 %v3258_v5, %v11666_v49 }
 0x376   : > { %v11993_v13 = vmul.f32 %v4895_v18, %v17030_v52  ;;  %v11997_v11 = vmul.f32 %v4896_v50, %v17030_v52  ;;  %v12015_v18 = vadd.f32 %v3253_v29, %v11651_v42  ;;  %v12018_v52 = vadd.f32 %v3254_v35, %v11654_v56  ;;  %v17064_v29 = vld [vmem:[#allocation94_spill] sm:$0xff]  ;;  %v17065_v0 = vld [vmem:[#allocation31_spill] sm:$0xff]  ;;  %v17073_v50 = vld [vmem:[#allocation52_spill] sm:$0xff] }
 0x377   : > { %v12033_v48 = vadd.f32 %v3259_v17, %v11669_v57  ;;  %v12036_v42 = vadd.f32 %v3260_v24, %v11672_v4  ;;  %v12039_v56 = vadd.f32 %v3261_v38, %v11675_v21  ;;  %v12042_v46 = vadd.f32 %v3262_v36, %v11678_v59  ;;  %v17066_v17 = vld [vmem:[#allocation81_spill] sm:$0xff]  ;;  %v17067_v38 = vld [vmem:[#allocation28_spill] sm:$0xff] }
 0x378   : > { %v12045_v32 = vadd.f32 %v3263_v28, %v11681_v55  ;;  %v12048_v53 = vadd.f32 %v3264_v7, %v11684_v37  ;;  %v12051_v49 = vadd.f32 %v3265_v26, %v11687_v9  ;;  %v12054_v57 = vadd.f32 %v3266_v6, %v11690_v2  ;;  %v17050_v55 = vld [vmem:[#allocation10_spill] sm:$0xff]  ;;  %v17051_v37 = vld [vmem:[#allocation16_spill] sm:$0xff]  ;;  %v17055_v2 = vld [vmem:[#allocation17_spill] sm:$0xff] }
 0x379   : > { %v12057_v4 = vadd.f32 %v3267_v60, %v11693_v12  ;;  %v12060_v21 = vadd.f32 %v3268_v41, %v11705_v30  ;;  %v12063_v59 = vadd.f32 %v3269_v20, %v11708_v51  ;;  %v12066_v47 = vadd.f32 %v3270_v62, %v17050_v55  ;;  %v17053_v9 = vld [vmem:[#allocation50_spill] sm:$0xff]  ;;  %v17059_v30 = vld [vmem:[#allocation80_spill] sm:$0xff]  ;;  %v17061_v51 = vld [vmem:[#allocation21_spill] sm:$0xff] }
 0x37a   : > { %v12069_v31 = vadd.f32 %v3271_v34, %v17051_v37  ;;  %v12072_v1 = vadd.f32 %v3272_v16, %v17053_v9  ;;  %v12075_v14 = vadd.f32 %v3273_v15, %v17055_v2  ;;  %v17057_v12 = vld [vmem:[#allocation26_spill] sm:$0xff]  ;;  %v12081_v33 = vadd.f32 %v3275_v25, %v17059_v30  ;;  %v17062_v20 = vld [vmem:[#allocation27_spill] sm:$0xff]  ;;  %v17063_v62 = vld [vmem:[#allocation88_spill] sm:$0xff] }
 0x37b   : > { %v12078_v40 = vadd.f32 %v3274_v61, %v17057_v12  ;;  %v3584_v54 = vmul.f32 %v17062_v20, %v17061_v51  ;;  %v3585_v34 = vmul.f32 %v17062_v20, %v17063_v62  ;;  %v3586_v35 = vmul.f32 %v17062_v20, %v17064_v29  ;;  %v17068_v36 = vld [vmem:[#allocation40_spill] sm:$0xff]  ;;  %v17069_v7 = vld [vmem:[#allocation22_spill] sm:$0xff]  ;;  %v17071_v41 = vld [vmem:[#allocation45_spill] sm:$0xff] }
 0x37c   : > { %17052 = vst [vmem:[#allocation8_spill] sm:$0xff] %v12069_v31  ;;  %17054 = vst [vmem:[#allocation9_spill] sm:$0xff] %v12072_v1  ;;  %v3587_v5 = vmul.f32 %v17062_v20, %v17065_v0  ;;  %v3588_v24 = vmul.f32 %v17062_v20, %v17066_v17  ;;  %v3589_v25 = vmul.f32 %v17062_v20, %v17067_v38  ;;  %v17070_v6 = vld [vmem:[#allocation36_spill] sm:$0xff]  ;;  %v17072_v15 = vld [vmem:[#allocation106_spill] sm:$0xff] }
 0x37d   : > { %17056 = vst [vmem:[#allocation41_spill] sm:$0xff] %v12075_v14  ;;  %17058 = vst [vmem:[#allocation42_spill] sm:$0xff] %v12078_v40  ;;  %v3590_v28 = vmul.f32 %v17062_v20, %v17068_v36  ;;  %v3591_v26 = vmul.f32 %v17062_v20, %v17069_v7  ;;  %v3592_v60 = vmul.f32 %v17062_v20, %v17070_v6  ;;  %v17074_v37 = vld [vmem:[#allocation53_spill] sm:$0xff]  ;;  %v17075_v2 = vld [vmem:[#allocation58_spill] sm:$0xff] }
 0x37e   : > { %17060 = vst [vmem:[#allocation101_spill] sm:$0xff] %v12081_v33  ;;  %v3593_v16 = vmul.f32 %v17062_v20, %v17071_v41  ;;  %v3594_v61 = vmul.f32 %v17062_v20, %v17072_v15  ;;  %v3595_v55 = vmul.f32 %v17062_v20, %v17073_v50  ;;  %v3596_v9 = vmul.f32 %v17062_v20, %v17074_v37  ;;  %v17076_v30 = vld [vmem:[#allocation59_spill] sm:$0xff]  ;;  %v17077_v51 = vld [vmem:[#allocation60_spill] sm:$0xff]  ;;  %v12116_v7 = vld [vmem:[%s5246_s17 + $0x304] sm:$0xff] }
 0x37f   : > { %v3597_v12 = vmul.f32 %v17062_v20, %v17075_v2  ;;  %v3598_v62 = vmul.f32 %v17062_v20, %v17076_v30  ;;  %v3599_v6 = vmul.f32 %v17062_v20, %v17077_v51  ;;  %17078 = vst [vmem:[#allocation83_spill] sm:$0xff] %v12116_v7  ;;  %v12119_v41 = vld [vmem:[%s5246_s17 + $0x30c] sm:$0x3f]  ;;  %v17080_v15 = vld [vmem:[#allocation65_spill] sm:$0xff]  ;;  %v17083_v2 = vld [vmem:[#allocation12_spill] sm:$0xff]  ;;  %v3605_v51 = vmul.f32 %v17062_v20, %v11821_v44 }
 0x380   : > { %17079 = vst [vmem:[#allocation95_spill] sm:$0xff] %v12119_v41  ;;  %v3600_v36 = vmul.f32 %v17062_v20, %v17080_v15  ;;  %v17081_v50 = vld [vmem:[#allocation14_spill] sm:$0xff]  ;;  %v17082_v37 = vld [vmem:[#allocation15_spill] sm:$0xff]  ;;  %v3603_v0 = vmul.f32 %v17062_v20, %v17083_v2  ;;  %v17084_v30 = vld [vmem:[#allocation73_spill] sm:$0xff]  ;;  %v3606_v33 = vmul.f32 %v17062_v20, %v12116_v7  ;;  %v3607_v15 = vmul.f32 %v17062_v20, %v12119_v41 }
 0x381   : > { %v3601_v38 = vmul.f32 %v17062_v20, %v17081_v50  ;;  %v3602_v17 = vmul.f32 %v17062_v20, %v17082_v37  ;;  %v3604_v29 = vmul.f32 %v17062_v20, %v17084_v30  ;;  %v12138_v50 = vadd.f32 %v3584_v54, %v11840_v63  ;;  %v17086_v37 = vld [vmem:[#allocation79_spill] sm:$0xff]  ;;  %v17088_v2 = vld [vmem:[#allocation61_spill] sm:$0xff]  ;;  %v17090_v30 = vld [vmem:[#allocation62_spill] sm:$0xff] }
 0x382   : > { %v12141_v40 = vadd.f32 %v3585_v34, %v17086_v37  ;;  %v12144_v14 = vadd.f32 %v3586_v35, %v17088_v2  ;;  %v12147_v1 = vadd.f32 %v3587_v5, %v17090_v30  ;;  %v17092_v44 = vld [vmem:[#allocation43_spill] sm:$0xff]  ;;  %v17094_v31 = vld [vmem:[#allocation72_spill] sm:$0xff]  ;;  %v17098_v34 = vld [vmem:[#allocation98_spill] sm:$0xff] }
 0x383   : > { %17085 = vst [vmem:[#allocation47_spill] sm:$0xff] %v12138_v50  ;;  %v12150_v7 = vadd.f32 %v3588_v24, %v17092_v44  ;;  %v12153_v20 = vadd.f32 %v3589_v25, %v17094_v31  ;;  %v17096_v63 = vld [vmem:[#allocation96_spill] sm:$0xff]  ;;  %v12159_v37 = vadd.f32 %v3591_v26, %v17098_v34  ;;  %v17102_v2 = vld [vmem:[#allocation90_spill] sm:$0xff]  ;;  %v17106_v24 = vld [vmem:[#allocation87_spill] sm:$0xff] }
 0x384   : > { %17087 = vst [vmem:[#allocation91_spill] sm:$0xff] %v12141_v40  ;;  %17089 = vst [vmem:[#allocation24_spill] sm:$0xff] %v12144_v14  ;;  %v12156_v54 = vadd.f32 %v3590_v28, %v17096_v63  ;;  %v17100_v40 = vld [vmem:[#allocation25_spill] sm:$0xff]  ;;  %v12165_v5 = vadd.f32 %v3593_v16, %v17102_v2  ;;  %v17104_v30 = vld [vmem:[#allocation82_spill] sm:$0xff]  ;;  %v12171_v31 = vadd.f32 %v3595_v55, %v17106_v24 }
 0x385   : > { %17091 = vst [vmem:[#allocation93_spill] sm:$0xff] %v12147_v1  ;;  %17093 = vst [vmem:[#allocation23_spill] sm:$0xff] %v12150_v7  ;;  %v12162_v35 = vadd.f32 %v3592_v60, %v17100_v40  ;;  %v12168_v44 = vadd.f32 %v3594_v61, %v17104_v30  ;;  %v3361_v25 = vld [vmem:[%s5246_s17 + $0xc] sm:$0x3f]  ;;  %v17108_v28 = vld [vmem:[#allocation56_spill] sm:$0xff] }
 0x386   : > { %17095 = vst [vmem:[#allocation77_spill] sm:$0xff] %v12153_v20  ;;  %17097 = vst [vmem:[#allocation103_spill] sm:$0xff] %v12156_v54  ;;  %v12175_v26 = vadd.f32 %v3596_v9, %v17108_v28  ;;  %v17110_v63 = vld [vmem:[#allocation57_spill] sm:$0xff]  ;;  %v17112_v60 = vld [vmem:[#allocation39_spill] sm:$0xff] }
 0x387   : > { %17099 = vst [vmem:[#allocation29_spill] sm:$0xff] %v12159_v37  ;;  %17101 = vst [vmem:[#allocation30_spill] sm:$0xff] %v12162_v35  ;;  %v12178_v40 = vadd.f32 %v3597_v12, %v17110_v63  ;;  %v12181_v34 = vadd.f32 %v3598_v62, %v17112_v60  ;;  %v17114_v16 = vld [vmem:[#allocation69_spill] sm:$0xff]  ;;  %v17122_v12 = vld [vmem:[#allocation44_spill] sm:$0xff] }
 0x388   : > { %17103 = vst [vmem:[#allocation34_spill] sm:$0xff] %v12165_v5  ;;  %17105 = vst [vmem:[#allocation32_spill] sm:$0xff] %v12168_v44  ;;  %v12184_v2 = vadd.f32 %v3599_v6, %v17114_v16  ;;  %v3360_v61 = vld [vmem:[%s5246_s17 + $0x4] sm:$0xff]  ;;  %v12188_v30 = vld [vmem:[%s5246_s17 + $0x1c] sm:$0xff]  ;;  %v12200_v28 = vadd.f32 %v3602_v17, %v17122_v12 }
 0x389   : > { %17107 = vst [vmem:[#allocation63_spill] sm:$0xff] %v12171_v31  ;;  %17109 = vst [vmem:[#allocation107_spill] sm:$0xff] %v12175_v26  ;;  %v12191_v44 = vld [vmem:[%s5246_s17 + $0x24] sm:$0x3f]  ;;  %v17124_v62 = vld [vmem:[#allocation99_spill] sm:$0xff] }
 0x38a   : > { %17111 = vst [vmem:[#allocation54_spill] sm:$0xff] %v12178_v40  ;;  %17113 = vst [vmem:[#allocation108_spill] sm:$0xff] %v12181_v34  ;;  %v17118_v55 = vld [vmem:[#allocation13_spill] sm:$0xff]  ;;  %v12203_v6 = vadd.f32 %v3603_v0, %v17124_v62  ;;  %v12206_v63 = vld [vmem:[%s5246_s17 + $0x34] sm:$0xff] }
 0x38b   : > { %17115 = vst [vmem:[#allocation46_spill] sm:$0xff] %v12184_v2  ;;  %17116 = vst [vmem:[#allocation86_spill] sm:$0xff] %v12188_v30  ;;  %v12194_v24 = vadd.f32 %v3600_v36, %v17118_v55  ;;  %v17120_v31 = vld [vmem:[#allocation85_spill] sm:$0xff]  ;;  %v12212_v36 = vld [vmem:[%s5246_s17 + $0x4c] sm:$0xff] }
 0x38c   : > { %17117 = vst [vmem:[#allocation70_spill] sm:$0xff] %v12191_v44  ;;  %v12197_v9 = vadd.f32 %v3601_v38, %v17120_v31  ;;  %17123 = vst [vmem:[#allocation48_spill] sm:$0xff] %v12200_v28  ;;  %v12209_v60 = vld [vmem:[%s5246_s17 + $0x3c] sm:$0x3f]  ;;  %v12215_v38 = vld [vmem:[%s5246_s17 + $0x54] sm:$0x3f] }
 0x38d   : > { %17119 = vst [vmem:[#allocation105_spill] sm:$0xff] %v12194_v24  ;;  %17125 = vst [vmem:[#allocation68_spill] sm:$0xff] %v12203_v6  ;;  %v17130_v31 = vld [vmem:[#allocation92_spill] sm:$0xff]  ;;  %v17132_v17 = vld [vmem:[#allocation66_spill] sm:$0xff] }
 0x38e   : > { %17121 = vst [vmem:[#allocation104_spill] sm:$0xff] %v12197_v9  ;;  %17126 = vst [vmem:[#allocation18_spill] sm:$0xff] %v12206_v63  ;;  %v12218_v16 = vadd.f32 %v3604_v29, %v17130_v31  ;;  %v12221_v55 = vadd.f32 %v3605_v51, %v17132_v17  ;;  %v17134_v0 = vld [vmem:[#allocation74_spill] sm:$0xff]  ;;  %v17136_v62 = vld [vmem:[#allocation89_spill] sm:$0xff] }
 0x38f   : > { %17127 = vst [vmem:[#allocation19_spill] sm:$0xff] %v12209_v60  ;;  %17128 = vst [vmem:[#allocation20_spill] sm:$0xff] %v12212_v36  ;;  %v12224_v12 = vadd.f32 %v3606_v33, %v17134_v0  ;;  %v12227_v6 = vadd.f32 %v3607_v15, %v17136_v62  ;;  %v17138_v28 = vld [vmem:[#allocation67_spill] sm:$0xff]  ;;  %v17140_v24 = vld [vmem:[#allocation38_spill] sm:$0xff] }
 0x390   : > { %17129 = vst [vmem:[#allocation76_spill] sm:$0xff] %v12215_v38  ;;  %17131 = vst [vmem:[#allocation100_spill] sm:$0xff] %v12218_v16  ;;  %v12231_v9 = vadd.f32 %v11985_v22, %v17138_v28  ;;  %v12235_v2 = vadd.f32 %v11989_v8, %v17140_v24  ;;  %v17142_v29 = vld [vmem:[#allocation75_spill] sm:$0xff]  ;;  %v17144_v33 = vld [vmem:[#allocation97_spill] sm:$0xff] }
 0x391   : > { %17133 = vst [vmem:[#allocation5_spill] sm:$0xff] %v12221_v55  ;;  %17135 = vst [vmem:[#allocation11_spill] sm:$0xff] %v12224_v12  ;;  %v12239_v51 = vadd.f32 %v11993_v13, %v17142_v29  ;;  %v12243_v31 = vadd.f32 %v11997_v11, %v17144_v33  ;;  %v12246_v15 = vld [vmem:[%s5246_s17 + $0x64] sm:$0xff]  ;;  %v12249_v17 = vld [vmem:[%s5246_s17 + $0x6c] sm:$0x3f] }
 0x392   : > { %17137 = vst [vmem:[#allocation33_spill] sm:$0xff] %v12227_v6  ;;  %17139 = vst [vmem:[#allocation84_spill] sm:$0xff] %v12231_v9  ;;  %v12252_v22 = vld [vmem:[%s5246_s17 + $0x7c] sm:$0xff]  ;;  %v12255_v28 = vld [vmem:[%s5246_s17 + $0x84] sm:$0x3f] }
 0x393   : > { %17141 = vst [vmem:[#allocation78_spill] sm:$0xff] %v12235_v2  ;;  %17143 = vst [vmem:[#allocation35_spill] sm:$0xff] %v12239_v51  ;;  %v12258_v8 = vld [vmem:[%s5246_s17 + $0x94] sm:$0xff]  ;;  %v12261_v24 = vld [vmem:[%s5246_s17 + $0x9c] sm:$0x3f] }
 0x394   : > { %17145 = vst [vmem:[#allocation37_spill] sm:$0xff] %v12243_v31  ;;  %17146 = vst [vmem:[#allocation49_spill] sm:$0xff] %v12246_v15  ;;  %v12264_v13 = vld [vmem:[%s5246_s17 + $0xac] sm:$0xff]  ;;  %v12273_v31 = vld [vmem:[%s5246_s17 + $0xb4] sm:$0x3f] }
 0x395   : > { %17147 = vst [vmem:[#allocation10_spill] sm:$0xff] %v12249_v17  ;;  %17148 = vst [vmem:[#allocation16_spill] sm:$0xff] %v12252_v22  ;;  %v17153_v0 = vld [vmem:[#allocation51_spill] sm:$0xff]  ;;  %v12276_v51 = vld [vmem:[%s5246_s17 + $0xc4] sm:$0xff] }
 0x396   : > { %17149 = vst [vmem:[#allocation50_spill] sm:$0xff] %v12255_v28  ;;  %17150 = vst [vmem:[#allocation17_spill] sm:$0xff] %v12258_v8  ;;  %v3436_v11 = vmul.f32 %v17153_v0, %v3360_v61  ;;  %v3437_v62 = vmul.f32 %v17153_v0, %v3361_v25  ;;  %v3438_v29 = vmul.f32 %v17153_v0, %v12188_v30  ;;  %v12279_v2 = vld [vmem:[%s5246_s17 + $0xcc] sm:$0x3f]  ;;  %v12290_v9 = vld [vmem:[%s5246_s17 + $0xdc] sm:$0xff] }
 0x397   : > { %17151 = vst [vmem:[#allocation26_spill] sm:$0xff] %v12261_v24  ;;  %17152 = vst [vmem:[#allocation80_spill] sm:$0xff] %v12264_v13  ;;  %v3439_v33 = vmul.f32 %v17153_v0, %v12191_v44  ;;  %v3440_v61 = vmul.f32 %v17153_v0, %v12206_v63  ;;  %v3441_v25 = vmul.f32 %v17153_v0, %v12209_v60  ;;  %v12293_v6 = vld [vmem:[%s5246_s17 + $0xe4] sm:$0x3f]  ;;  %v12296_v12 = vld [vmem:[%s5246_s17 + $0xf4] sm:$0xff] }
 0x398   : > { %17154 = vst [vmem:[#allocation79_spill] sm:$0xff] %v12273_v31  ;;  %17155 = vst [vmem:[#allocation61_spill] sm:$0xff] %v12276_v51  ;;  %v3442_v30 = vmul.f32 %v17153_v0, %v12212_v36  ;;  %v3443_v44 = vmul.f32 %v17153_v0, %v12215_v38  ;;  %v3444_v63 = vmul.f32 %v17153_v0, %v12246_v15  ;;  %v12307_v55 = vld [vmem:[%s5246_s17 + $0xfc] sm:$0x3f]  ;;  %v12310_v16 = vld [vmem:[%s5246_s17 + $0x10c] sm:$0xff] }
 0x399   : > { %17156 = vst [vmem:[#allocation62_spill] sm:$0xff] %v12279_v2  ;;  %17157 = vst [vmem:[#allocation43_spill] sm:$0xff] %v12290_v9  ;;  %v3445_v60 = vmul.f32 %v17153_v0, %v12249_v17  ;;  %v3446_v36 = vmul.f32 %v17153_v0, %v12252_v22  ;;  %v3447_v38 = vmul.f32 %v17153_v0, %v12255_v28  ;;  %v12313_v34 = vld [vmem:[%s5246_s17 + $0x114] sm:$0x3f]  ;;  %v12324_v40 = vld [vmem:[%s5246_s17 + $0x124] sm:$0xff] }
 0x39a   : > { %17158 = vst [vmem:[#allocation72_spill] sm:$0xff] %v12293_v6  ;;  %17159 = vst [vmem:[#allocation96_spill] sm:$0xff] %v12296_v12  ;;  %v3448_v15 = vmul.f32 %v17153_v0, %v12258_v8  ;;  %v3449_v17 = vmul.f32 %v17153_v0, %v12261_v24  ;;  %v3450_v22 = vmul.f32 %v17153_v0, %v12264_v13  ;;  %v3396_v26 = vld [vmem:[%s5246_s17 + $0x1b4] sm:$0xff]  ;;  %v3397_v5 = vld [vmem:[%s5246_s17 + $0x1bc] sm:$0x3f] }
 0x39b   : > { %17160 = vst [vmem:[#allocation98_spill] sm:$0xff] %v12307_v55  ;;  %17161 = vst [vmem:[#allocation25_spill] sm:$0xff] %v12310_v16  ;;  %v3451_v28 = vmul.f32 %v17153_v0, %v12273_v31  ;;  %v3452_v35 = vmul.f32 %v17153_v0, %v12276_v51  ;;  %v3453_v8 = vmul.f32 %v17153_v0, %v12279_v2  ;;  %v12337_v37 = vld [vmem:[%s5246_s17 + $0x12c] sm:$0x3f]  ;;  %v12340_v31 = vld [vmem:[%s5246_s17 + $0x13c] sm:$0xff] }
 0x39c   : > { %17162 = vst [vmem:[#allocation90_spill] sm:$0xff] %v12313_v34  ;;  %17163 = vst [vmem:[#allocation82_spill] sm:$0xff] %v12324_v40  ;;  %v3454_v24 = vmul.f32 %v17153_v0, %v12290_v9  ;;  %v3455_v13 = vmul.f32 %v17153_v0, %v12293_v6  ;;  %v12343_v54 = vld [vmem:[%s5246_s17 + $0x144] sm:$0x3f]  ;;  %v3456_v20 = vmul.f32 %v17153_v0, %v12296_v12  ;;  %v12354_v7 = vld [vmem:[%s5246_s17 + $0x1cc] sm:$0xff] }
 0x39d   : > { %17164 = vst [vmem:[#allocation87_spill] sm:$0xff] %v12337_v37  ;;  %17165 = vst [vmem:[#allocation56_spill] sm:$0xff] %v12340_v31  ;;  %v3457_v51 = vmul.f32 %v17153_v0, %v12307_v55  ;;  %v3458_v2 = vmul.f32 %v17153_v0, %v12310_v16  ;;  %v3459_v9 = vmul.f32 %v17153_v0, %v12313_v34  ;;  %v12357_v6 = vld [vmem:[%s5246_s17 + $0x1d4] sm:$0x3f] }
 0x39e   : > { %17166 = vst [vmem:[#allocation57_spill] sm:$0xff] %v12343_v54  ;;  %17167 = vst [vmem:[#allocation39_spill] sm:$0xff] %v12354_v7  ;;  %v3460_v1 = vmul.f32 %v17153_v0, %v12324_v40  ;;  %v3461_v14 = vmul.f32 %v17153_v0, %v12337_v37  ;;  %v3462_v12 = vmul.f32 %v17153_v0, %v12340_v31 }
 0x39f   : > { %v3463_v55 = vmul.f32 %v17153_v0, %v12343_v54  ;;  %v12368_v16 = vmul.f32 %v17153_v0, %v3396_v26  ;;  %v12371_v34 = vmul.f32 %v17153_v0, %v3397_v5  ;;  %v12375_v50 = vmul.f32 %v17153_v0, %v12354_v7 }
 0x3a0   : > { %v12379_v40 = vmul.f32 %v17153_v0, %v12357_v6  ;;  %v12382_v37 = vadd.f32 %v3436_v11, %v12000_v27  ;;  %v12385_v31 = vadd.f32 %v3437_v62, %v12003_v43  ;;  %v12388_v26 = vadd.f32 %v3438_v29, %v12006_v39  ;;  %v17191_v11 = vld [vmem:[#allocation52_spill] sm:$0xff]  ;;  %v17192_v29 = vld [vmem:[#allocation53_spill] sm:$0xff] }
 0x3a1   : > { %v12391_v5 = vadd.f32 %v3439_v33, %v12009_v19  ;;  %v12394_v54 = vadd.f32 %v3440_v61, %v12012_v58  ;;  %v12397_v7 = vadd.f32 %v3441_v25, %v12015_v18  ;;  %v12400_v0 = vadd.f32 %v3442_v30, %v12018_v52  ;;  %v17193_v61 = vld [vmem:[#allocation58_spill] sm:$0xff] }
 0x3a2   : > { %v12403_v27 = vadd.f32 %v3443_v44, %v12021_v3  ;;  %v12406_v43 = vadd.f32 %v3444_v63, %v12024_v45  ;;  %v12409_v39 = vadd.f32 %v3445_v60, %v12027_v23  ;;  %v12412_v19 = vadd.f32 %v3446_v36, %v12030_v10  ;;  %v17182_v60 = vld [vmem:[#allocation71_spill] sm:$0xff] }
 0x3a3   : > { %v12415_v58 = vadd.f32 %v3447_v38, %v12033_v48  ;;  %v12418_v18 = vadd.f32 %v3448_v15, %v12036_v42  ;;  %v12421_v52 = vadd.f32 %v3449_v17, %v12039_v56  ;;  %v12424_v3 = vadd.f32 %v3450_v22, %v12042_v46  ;;  %v17185_v38 = vld [vmem:[#allocation28_spill] sm:$0xff]  ;;  %v17187_v15 = vld [vmem:[#allocation22_spill] sm:$0xff] }
 0x3a4   : > { %v12427_v45 = vadd.f32 %v3451_v28, %v12045_v32  ;;  %v12430_v23 = vadd.f32 %v3452_v35, %v12048_v53  ;;  %v12433_v10 = vadd.f32 %v3453_v8, %v12051_v49  ;;  %v12436_v48 = vadd.f32 %v3454_v24, %v12054_v57  ;;  %v17171_v53 = vld [vmem:[#allocation8_spill] sm:$0xff]  ;;  %v17173_v49 = vld [vmem:[#allocation9_spill] sm:$0xff]  ;;  %v17190_v24 = vld [vmem:[#allocation106_spill] sm:$0xff] }
 0x3a5   : > { %v12439_v42 = vadd.f32 %v3455_v13, %v12057_v4  ;;  %v12442_v56 = vadd.f32 %v3456_v20, %v12060_v21  ;;  %v12445_v46 = vadd.f32 %v3457_v51, %v12063_v59  ;;  %v12448_v32 = vadd.f32 %v3458_v2, %v12066_v47  ;;  %v17175_v57 = vld [vmem:[#allocation41_spill] sm:$0xff]  ;;  %v17177_v4 = vld [vmem:[#allocation42_spill] sm:$0xff]  ;;  %v17183_v47 = vld [vmem:[#allocation31_spill] sm:$0xff] }
 0x3a6   : > { %v12451_v35 = vadd.f32 %v3459_v9, %v17171_v53  ;;  %v12454_v44 = vadd.f32 %v3460_v1, %v17173_v49  ;;  %v12457_v30 = vadd.f32 %v3461_v14, %v17175_v57  ;;  %v12460_v63 = vadd.f32 %v3462_v12, %v17177_v4  ;;  %v17179_v21 = vld [vmem:[#allocation101_spill] sm:$0xff]  ;;  %v17181_v59 = vld [vmem:[#allocation94_spill] sm:$0xff]  ;;  %v17186_v51 = vld [vmem:[#allocation40_spill] sm:$0xff] }
 0x3a7   : > { %17168 = vst [vmem:[#allocation69_spill] sm:$0xff] %v12442_v56  ;;  %17169 = vst [vmem:[#allocation13_spill] sm:$0xff] %v12445_v46  ;;  %v12463_v20 = vadd.f32 %v3463_v55, %v17179_v21  ;;  %v3700_v36 = vmul.f32 %v17182_v60, %v17181_v59  ;;  %v3701_v2 = vmul.f32 %v17182_v60, %v17183_v47  ;;  %v17184_v9 = vld [vmem:[#allocation81_spill] sm:$0xff]  ;;  %v17188_v17 = vld [vmem:[#allocation36_spill] sm:$0xff] }
 0x3a8   : > { %17170 = vst [vmem:[#allocation85_spill] sm:$0xff] %v12448_v32  ;;  %17172 = vst [vmem:[#allocation44_spill] sm:$0xff] %v12451_v35  ;;  %v3702_v1 = vmul.f32 %v17182_v60, %v17184_v9  ;;  %v3703_v14 = vmul.f32 %v17182_v60, %v17185_v38  ;;  %v3704_v12 = vmul.f32 %v17182_v60, %v17186_v51  ;;  %v17189_v28 = vld [vmem:[#allocation45_spill] sm:$0xff]  ;;  %v17194_v53 = vld [vmem:[#allocation59_spill] sm:$0xff] }
 0x3a9   : > { %17174 = vst [vmem:[#allocation99_spill] sm:$0xff] %v12454_v44  ;;  %17176 = vst [vmem:[#allocation92_spill] sm:$0xff] %v12457_v30  ;;  %v3705_v55 = vmul.f32 %v17182_v60, %v17187_v15  ;;  %v3706_v22 = vmul.f32 %v17182_v60, %v17188_v17  ;;  %v3707_v8 = vmul.f32 %v17182_v60, %v17189_v28  ;;  %v17195_v57 = vld [vmem:[#allocation60_spill] sm:$0xff]  ;;  %v17196_v21 = vld [vmem:[#allocation65_spill] sm:$0xff] }
 0x3aa   : > { %17178 = vst [vmem:[#allocation66_spill] sm:$0xff] %v12460_v63  ;;  %17180 = vst [vmem:[#allocation74_spill] sm:$0xff] %v12463_v20  ;;  %v3708_v13 = vmul.f32 %v17182_v60, %v17190_v24  ;;  %v3709_v62 = vmul.f32 %v17182_v60, %v17191_v11  ;;  %v3710_v33 = vmul.f32 %v17182_v60, %v17192_v29  ;;  %v17197_v47 = vld [vmem:[#allocation14_spill] sm:$0xff]  ;;  %v12498_v28 = vld [vmem:[%s5246_s17 + $0x31c] sm:$0xff] }
 0x3ab   : > { %v3711_v25 = vmul.f32 %v17182_v60, %v17193_v61  ;;  %v3712_v49 = vmul.f32 %v17182_v60, %v17194_v53  ;;  %v3713_v4 = vmul.f32 %v17182_v60, %v17195_v57  ;;  %v3714_v59 = vmul.f32 %v17182_v60, %v17196_v21  ;;  %17198 = vst [vmem:[#allocation89_spill] sm:$0xff] %v12498_v28  ;;  %v12501_v11 = vld [vmem:[%s5246_s17 + $0x324] sm:$0x3f]  ;;  %v17200_v29 = vld [vmem:[#allocation15_spill] sm:$0xff]  ;;  %v17201_v61 = vld [vmem:[#allocation12_spill] sm:$0xff] }
 0x3ac   : > { %v3715_v24 = vmul.f32 %v17182_v60, %v17197_v47  ;;  %17199 = vst [vmem:[#allocation67_spill] sm:$0xff] %v12501_v11  ;;  %v3716_v17 = vmul.f32 %v17182_v60, %v17200_v29  ;;  %v3717_v15 = vmul.f32 %v17182_v60, %v17201_v61  ;;  %v17202_v53 = vld [vmem:[#allocation73_spill] sm:$0xff]  ;;  %v17203_v57 = vld [vmem:[#allocation7_spill] sm:$0xff]  ;;  %v3721_v47 = vmul.f32 %v17182_v60, %v12119_v41  ;;  %v17209_v44 = vld [vmem:[#allocation24_spill] sm:$0xff] }
 0x3ad   : > { %v3718_v51 = vmul.f32 %v17182_v60, %v17202_v53  ;;  %v3719_v38 = vmul.f32 %v17182_v60, %v17203_v57  ;;  %v17204_v21 = vld [vmem:[#allocation83_spill] sm:$0xff]  ;;  %v3722_v20 = vmul.f32 %v17182_v60, %v12498_v28  ;;  %v3723_v29 = vmul.f32 %v17182_v60, %v12501_v11  ;;  %v17211_v35 = vld [vmem:[#allocation93_spill] sm:$0xff] }
 0x3ae   : > { %v3720_v9 = vmul.f32 %v17182_v60, %v17204_v21  ;;  %v17205_v63 = vld [vmem:[#allocation47_spill] sm:$0xff]  ;;  %v12526_v57 = vadd.f32 %v3702_v1, %v17209_v44  ;;  %v12529_v21 = vadd.f32 %v3703_v14, %v17211_v35  ;;  %v17215_v46 = vld [vmem:[#allocation77_spill] sm:$0xff]  ;;  %v17223_v44 = vld [vmem:[#allocation34_spill] sm:$0xff] }
 0x3af   : > { %v12520_v61 = vadd.f32 %v3700_v36, %v17205_v63  ;;  %v17207_v30 = vld [vmem:[#allocation91_spill] sm:$0xff]  ;;  %v12535_v28 = vadd.f32 %v3705_v55, %v17215_v46  ;;  %v17219_v63 = vld [vmem:[#allocation29_spill] sm:$0xff]  ;;  %v12547_v1 = vadd.f32 %v3709_v62, %v17223_v44  ;;  %v17225_v35 = vld [vmem:[#allocation32_spill] sm:$0xff] }
 0x3b0   : > { %v12523_v53 = vadd.f32 %v3701_v2, %v17207_v30  ;;  %17210 = vst [vmem:[#allocation97_spill] sm:$0xff] %v12526_v57  ;;  %17212 = vst [vmem:[#allocation51_spill] sm:$0xff] %v12529_v21  ;;  %v17213_v32 = vld [vmem:[#allocation23_spill] sm:$0xff]  ;;  %v12541_v36 = vadd.f32 %v3707_v8, %v17219_v63  ;;  %v17221_v30 = vld [vmem:[#allocation30_spill] sm:$0xff]  ;;  %v12550_v14 = vadd.f32 %v3710_v33, %v17225_v35 }
 0x3b1   : > { %17206 = vst [vmem:[#allocation38_spill] sm:$0xff] %v12520_v61  ;;  %v12532_v41 = vadd.f32 %v3704_v12, %v17213_v32  ;;  %17216 = vst [vmem:[#allocation9_spill] sm:$0xff] %v12535_v28  ;;  %v17217_v56 = vld [vmem:[#allocation103_spill] sm:$0xff]  ;;  %v12544_v2 = vadd.f32 %v3708_v13, %v17221_v30  ;;  %v17233_v8 = vld [vmem:[#allocation108_spill] sm:$0xff] }
 0x3b2   : > { %17208 = vst [vmem:[#allocation75_spill] sm:$0xff] %v12523_v53  ;;  %v12538_v11 = vadd.f32 %v3706_v22, %v17217_v56  ;;  %17220 = vst [vmem:[#allocation42_spill] sm:$0xff] %v12541_v36  ;;  %v17227_v32 = vld [vmem:[#allocation63_spill] sm:$0xff]  ;;  %v17231_v56 = vld [vmem:[#allocation54_spill] sm:$0xff]  ;;  %v12562_v63 = vadd.f32 %v3714_v59, %v17233_v8 }
 0x3b3   : > { %17214 = vst [vmem:[#allocation8_spill] sm:$0xff] %v12532_v41  ;;  %17222 = vst [vmem:[#allocation101_spill] sm:$0xff] %v12544_v2  ;;  %v12553_v12 = vadd.f32 %v3711_v25, %v17227_v32  ;;  %v17229_v46 = vld [vmem:[#allocation107_spill] sm:$0xff]  ;;  %v12559_v22 = vadd.f32 %v3713_v4, %v17231_v56  ;;  %v17235_v13 = vld [vmem:[#allocation46_spill] sm:$0xff] }
 0x3b4   : > { %17218 = vst [vmem:[#allocation41_spill] sm:$0xff] %v12538_v11  ;;  %17224 = vst [vmem:[#allocation94_spill] sm:$0xff] %v12547_v1  ;;  %v12556_v55 = vadd.f32 %v3712_v49, %v17229_v46  ;;  %v12565_v30 = vadd.f32 %v3715_v24, %v17235_v13  ;;  %v17237_v62 = vld [vmem:[#allocation105_spill] sm:$0xff]  ;;  %v17239_v33 = vld [vmem:[#allocation104_spill] sm:$0xff] }
 0x3b5   : > { %17226 = vst [vmem:[#allocation31_spill] sm:$0xff] %v12550_v14  ;;  %17228 = vst [vmem:[#allocation47_spill] sm:$0xff] %v12553_v12  ;;  %v12568_v44 = vadd.f32 %v3716_v17, %v17237_v62  ;;  %v12571_v35 = vadd.f32 %v3717_v15, %v17239_v33  ;;  %v17241_v25 = vld [vmem:[#allocation48_spill] sm:$0xff]  ;;  %v17247_v59 = vld [vmem:[#allocation5_spill] sm:$0xff] }
 0x3b6   : > { %17230 = vst [vmem:[#allocation91_spill] sm:$0xff] %v12556_v55  ;;  %17232 = vst [vmem:[#allocation24_spill] sm:$0xff] %v12559_v22  ;;  %v12574_v32 = vadd.f32 %v3718_v51, %v17241_v25  ;;  %v17243_v49 = vld [vmem:[#allocation68_spill] sm:$0xff]  ;;  %v12583_v8 = vadd.f32 %v3721_v47, %v17247_v59  ;;  %v17249_v24 = vld [vmem:[#allocation11_spill] sm:$0xff] }
 0x3b7   : > { %17234 = vst [vmem:[#allocation93_spill] sm:$0xff] %v12562_v63  ;;  %17236 = vst [vmem:[#allocation23_spill] sm:$0xff] %v12565_v30  ;;  %v12577_v46 = vadd.f32 %v3719_v38, %v17243_v49  ;;  %v17245_v4 = vld [vmem:[#allocation100_spill] sm:$0xff]  ;;  %v12586_v13 = vadd.f32 %v3722_v20, %v17249_v24  ;;  %v17251_v17 = vld [vmem:[#allocation33_spill] sm:$0xff] }
 0x3b8   : > { %17238 = vst [vmem:[#allocation77_spill] sm:$0xff] %v12568_v44  ;;  %17240 = vst [vmem:[#allocation103_spill] sm:$0xff] %v12571_v35  ;;  %v12580_v56 = vadd.f32 %v3720_v9, %v17245_v4  ;;  %v12589_v62 = vadd.f32 %v3723_v29, %v17251_v17  ;;  %v17253_v15 = vld [vmem:[#allocation84_spill] sm:$0xff]  ;;  %v17254_v51 = vld [vmem:[#allocation78_spill] sm:$0xff] }
 0x3b9   : > { %17242 = vst [vmem:[#allocation29_spill] sm:$0xff] %v12574_v32  ;;  %17244 = vst [vmem:[#allocation30_spill] sm:$0xff] %v12577_v46  ;;  %v12593_v33 = vadd.f32 %v12368_v16, %v17253_v15  ;;  %v12597_v38 = vadd.f32 %v12371_v34, %v17254_v51  ;;  %v17255_v25 = vld [vmem:[#allocation35_spill] sm:$0xff]  ;;  %v17256_v47 = vld [vmem:[#allocation37_spill] sm:$0xff] }
 0x3ba   : > { %17246 = vst [vmem:[#allocation34_spill] sm:$0xff] %v12580_v56  ;;  %17248 = vst [vmem:[#allocation32_spill] sm:$0xff] %v12583_v8  ;;  %v12601_v9 = vadd.f32 %v12375_v50, %v17255_v25  ;;  %v12605_v49 = vadd.f32 %v12379_v40, %v17256_v47  ;;  %v17257_v20 = vld [vmem:[#allocation86_spill] sm:$0xff]  ;;  %v17258_v4 = vld [vmem:[#allocation27_spill] sm:$0xff] }
 0x3bb   : > { %17250 = vst [vmem:[#allocation63_spill] sm:$0xff] %v12586_v13  ;;  %17252 = vst [vmem:[#allocation107_spill] sm:$0xff] %v12589_v62  ;;  %v3552_v29 = vmul.f32 %v17258_v4, %v17257_v20  ;;  %v17259_v59 = vld [vmem:[#allocation70_spill] sm:$0xff]  ;;  %v17261_v15 = vld [vmem:[#allocation19_spill] sm:$0xff] }
 0x3bc   : > { %v3553_v24 = vmul.f32 %v17258_v4, %v17259_v59  ;;  %v17260_v16 = vld [vmem:[#allocation18_spill] sm:$0xff]  ;;  %v3555_v34 = vmul.f32 %v17258_v4, %v17261_v15  ;;  %v17262_v51 = vld [vmem:[#allocation20_spill] sm:$0xff]  ;;  %v17264_v47 = vld [vmem:[#allocation49_spill] sm:$0xff] }
 0x3bd   : > { %v3554_v17 = vmul.f32 %v17258_v4, %v17260_v16  ;;  %v3556_v50 = vmul.f32 %v17258_v4, %v17262_v51  ;;  %v17263_v25 = vld [vmem:[#allocation76_spill] sm:$0xff]  ;;  %v3558_v20 = vmul.f32 %v17258_v4, %v17264_v47  ;;  %v17265_v62 = vld [vmem:[#allocation10_spill] sm:$0xff]  ;;  %v17268_v32 = vld [vmem:[#allocation17_spill] sm:$0xff] }
 0x3be   : > { %v3557_v40 = vmul.f32 %v17258_v4, %v17263_v25  ;;  %v3559_v59 = vmul.f32 %v17258_v4, %v17265_v62  ;;  %v17266_v13 = vld [vmem:[#allocation16_spill] sm:$0xff]  ;;  %v17267_v56 = vld [vmem:[#allocation50_spill] sm:$0xff]  ;;  %v3562_v35 = vmul.f32 %v17258_v4, %v17268_v32  ;;  %v17271_v22 = vld [vmem:[#allocation79_spill] sm:$0xff] }
 0x3bf   : > { %v3560_v8 = vmul.f32 %v17258_v4, %v17266_v13  ;;  %v3561_v46 = vmul.f32 %v17258_v4, %v17267_v56  ;;  %v17269_v44 = vld [vmem:[#allocation26_spill] sm:$0xff]  ;;  %v17270_v25 = vld [vmem:[#allocation80_spill] sm:$0xff]  ;;  %v3565_v47 = vmul.f32 %v17258_v4, %v17271_v22  ;;  %v17272_v55 = vld [vmem:[#allocation61_spill] sm:$0xff] }
 0x3c0   : > { %v3563_v30 = vmul.f32 %v17258_v4, %v17269_v44  ;;  %v3564_v63 = vmul.f32 %v17258_v4, %v17270_v25  ;;  %v3566_v62 = vmul.f32 %v17258_v4, %v17272_v55  ;;  %v17273_v12 = vld [vmem:[#allocation62_spill] sm:$0xff]  ;;  %v17274_v14 = vld [vmem:[#allocation43_spill] sm:$0xff]  ;;  %v17275_v1 = vld [vmem:[#allocation72_spill] sm:$0xff] }
 0x3c1   : > { %v3567_v13 = vmul.f32 %v17258_v4, %v17273_v12  ;;  %v3568_v56 = vmul.f32 %v17258_v4, %v17274_v14  ;;  %v3569_v32 = vmul.f32 %v17258_v4, %v17275_v1  ;;  %v17276_v2 = vld [vmem:[#allocation96_spill] sm:$0xff]  ;;  %v17277_v36 = vld [vmem:[#allocation98_spill] sm:$0xff]  ;;  %v17280_v55 = vld [vmem:[#allocation25_spill] sm:$0xff] }
 0x3c2   : > { %v3570_v44 = vmul.f32 %v17258_v4, %v17276_v2  ;;  %v3571_v25 = vmul.f32 %v17258_v4, %v17277_v36  ;;  %v12648_v11 = vld [vmem:[%s5246_s17 + $0x154] sm:$0xff]  ;;  %v12651_v22 = vld [vmem:[%s5246_s17 + $0x15c] sm:$0x3f]  ;;  %v3572_v28 = vmul.f32 %v17258_v4, %v17280_v55  ;;  %v17281_v12 = vld [vmem:[#allocation90_spill] sm:$0xff] }
 0x3c3   : > { %17278 = vst [vmem:[#allocation54_spill] sm:$0xff] %v12648_v11  ;;  %17279 = vst [vmem:[#allocation108_spill] sm:$0xff] %v12651_v22  ;;  %v3573_v41 = vmul.f32 %v17258_v4, %v17281_v12  ;;  %v17282_v14 = vld [vmem:[#allocation82_spill] sm:$0xff]  ;;  %v17283_v1 = vld [vmem:[#allocation87_spill] sm:$0xff]  ;;  %v3578_v51 = vmul.f32 %v17258_v4, %v12648_v11  ;;  %v3579_v55 = vmul.f32 %v17258_v4, %v12651_v22 }
 0x3c4   : > { %v3574_v21 = vmul.f32 %v17258_v4, %v17282_v14  ;;  %v3575_v57 = vmul.f32 %v17258_v4, %v17283_v1  ;;  %v17284_v2 = vld [vmem:[#allocation56_spill] sm:$0xff]  ;;  %v17285_v36 = vld [vmem:[#allocation57_spill] sm:$0xff]  ;;  %v17286_v15 = vld [vmem:[#allocation39_spill] sm:$0xff]  ;;  %v3581_v14 = vmul.f32 %v17258_v4, %v12357_v6  ;;  %v12681_v11 = vadd.f32 %v3553_v24, %v12385_v31 }
 0x3c5   : > { %v3576_v53 = vmul.f32 %v17258_v4, %v17284_v2  ;;  %v3577_v61 = vmul.f32 %v17258_v4, %v17285_v36  ;;  %v3580_v12 = vmul.f32 %v17258_v4, %v17286_v15  ;;  %v17287_v60 = vld [vmem:[#allocation55_spill] sm:$0xff]  ;;  %v17288_v16 = vld [vmem:[#allocation64_spill] sm:$0xff]  ;;  %v12678_v36 = vadd.f32 %v3552_v29, %v12382_v37  ;;  %v17322_v29 = vld [vmem:[#allocation18_spill] sm:$0xff] }
 0x3c6   : > { %v3582_v1 = vmul.f32 %v17258_v4, %v17287_v60  ;;  %v3583_v2 = vmul.f32 %v17258_v4, %v17288_v16  ;;  %v12684_v22 = vadd.f32 %v3554_v17, %v12388_v26  ;;  %v12687_v15 = vadd.f32 %v3555_v34, %v12391_v5  ;;  %v17323_v24 = vld [vmem:[#allocation71_spill] sm:$0xff] }
 0x3c7   : > { %v12690_v6 = vadd.f32 %v3556_v50, %v12394_v54  ;;  %v12693_v60 = vadd.f32 %v3557_v40, %v12397_v7  ;;  %v12696_v4 = vadd.f32 %v3558_v20, %v12400_v0  ;;  %v12699_v37 = vadd.f32 %v3559_v59, %v12403_v27  ;;  %v17324_v17 = vld [vmem:[#allocation19_spill] sm:$0xff]  ;;  %v17332_v59 = vld [vmem:[#allocation106_spill] sm:$0xff] }
 0x3c8   : > { %v12702_v31 = vadd.f32 %v3560_v8, %v12406_v43  ;;  %v12705_v26 = vadd.f32 %v3561_v46, %v12409_v39  ;;  %v12708_v5 = vadd.f32 %v3562_v35, %v12412_v19  ;;  %v12711_v54 = vadd.f32 %v3563_v30, %v12415_v58 }
 0x3c9   : > { %v12714_v7 = vadd.f32 %v3564_v63, %v12418_v18  ;;  %v12717_v0 = vadd.f32 %v3565_v47, %v12421_v52  ;;  %v12720_v27 = vadd.f32 %v3566_v62, %v12424_v3  ;;  %v12723_v43 = vadd.f32 %v3567_v13, %v12427_v45  ;;  %v17301_v52 = vld [vmem:[#allocation69_spill] sm:$0xff]  ;;  %v17320_v13 = vld [vmem:[#allocation102_spill] sm:$0xff] }
 0x3ca   : > { %17289 = vst [vmem:[#allocation46_spill] sm:$0xff] %v12702_v31  ;;  %17290 = vst [vmem:[#allocation105_spill] sm:$0xff] %v12705_v26  ;;  %v12726_v39 = vadd.f32 %v3568_v56, %v12430_v23  ;;  %v12729_v19 = vadd.f32 %v3569_v32, %v12433_v10  ;;  %v12732_v58 = vadd.f32 %v3570_v44, %v12436_v48  ;;  %v17303_v3 = vld [vmem:[#allocation13_spill] sm:$0xff]  ;;  %v17307_v23 = vld [vmem:[#allocation44_spill] sm:$0xff] }
 0x3cb   : > { %17291 = vst [vmem:[#allocation104_spill] sm:$0xff] %v12708_v5  ;;  %17292 = vst [vmem:[#allocation48_spill] sm:$0xff] %v12711_v54  ;;  %v12735_v18 = vadd.f32 %v3571_v25, %v12439_v42  ;;  %v12738_v63 = vadd.f32 %v3572_v28, %v17301_v52  ;;  %v12741_v30 = vadd.f32 %v3573_v41, %v17303_v3  ;;  %v17305_v45 = vld [vmem:[#allocation85_spill] sm:$0xff]  ;;  %v17309_v10 = vld [vmem:[#allocation99_spill] sm:$0xff] }
 0x3cc   : > { %17293 = vst [vmem:[#allocation68_spill] sm:$0xff] %v12714_v7  ;;  %17294 = vst [vmem:[#allocation100_spill] sm:$0xff] %v12717_v0  ;;  %v12744_v35 = vadd.f32 %v3574_v21, %v17305_v45  ;;  %v12747_v46 = vadd.f32 %v3575_v57, %v17307_v23  ;;  %v12750_v32 = vadd.f32 %v3576_v53, %v17309_v10  ;;  %v17311_v48 = vld [vmem:[#allocation92_spill] sm:$0xff]  ;;  %v17313_v42 = vld [vmem:[#allocation66_spill] sm:$0xff] }
 0x3cd   : > { %17295 = vst [vmem:[#allocation5_spill] sm:$0xff] %v12720_v27  ;;  %17296 = vst [vmem:[#allocation11_spill] sm:$0xff] %v12723_v43  ;;  %v12753_v44 = vadd.f32 %v3577_v61, %v17311_v48  ;;  %v12756_v56 = vadd.f32 %v3578_v51, %v17313_v42  ;;  %v17315_v28 = vld [vmem:[#allocation74_spill] sm:$0xff]  ;;  %v12762_v41 = vadd.f32 %v3580_v12, %v12593_v33  ;;  %v4897_v53 = vld [vmem:[%s5240_s21 + $0x10] sm:$0xff] }
 0x3ce   : > { %17297 = vst [vmem:[#allocation33_spill] sm:$0xff] %v12726_v39  ;;  %17298 = vst [vmem:[#allocation84_spill] sm:$0xff] %v12729_v19  ;;  %v12759_v8 = vadd.f32 %v3579_v55, %v17315_v28  ;;  %v12765_v21 = vadd.f32 %v3581_v14, %v12597_v38  ;;  %v12768_v57 = vadd.f32 %v3582_v1, %v12601_v9  ;;  %v17325_v14 = vld [vmem:[#allocation20_spill] sm:$0xff]  ;;  %v17326_v1 = vld [vmem:[#allocation81_spill] sm:$0xff] }
 0x3cf   : > { %17299 = vst [vmem:[#allocation78_spill] sm:$0xff] %v12732_v58  ;;  %17300 = vst [vmem:[#allocation35_spill] sm:$0xff] %v12735_v18  ;;  %v12772_v62 = vrot.slane %v4897_v53, %v17320_v13  ;;  %v12775_v61 = vadd.f32 %v3583_v2, %v12605_v49  ;;  %v12779_v55 = vmul.f32 %v17323_v24, %v17322_v29  ;;  %v17327_v9 = vld [vmem:[#allocation28_spill] sm:$0xff]  ;;  %v17329_v51 = vld [vmem:[#allocation22_spill] sm:$0xff] }
 0x3d0   : > { %17302 = vst [vmem:[#allocation37_spill] sm:$0xff] %v12738_v63  ;;  %17304 = vst [vmem:[#allocation86_spill] sm:$0xff] %v12741_v30  ;;  %v12783_v12 = vmul.f32 %v17323_v24, %v17324_v17  ;;  %v12787_v33 = vmul.f32 %v17323_v24, %v17325_v14  ;;  %v17328_v49 = vld [vmem:[#allocation40_spill] sm:$0xff]  ;;  %v17331_v47 = vld [vmem:[#allocation45_spill] sm:$0xff] }
 0x3d1   : > { %17306 = vst [vmem:[#allocation27_spill] sm:$0xff] %v12744_v35  ;;  %17308 = vst [vmem:[#allocation70_spill] sm:$0xff] %v12747_v46  ;;  %v3816_v38 = vmul.f32 %v12772_v62, %v17326_v1  ;;  %v3817_v2 = vmul.f32 %v12772_v62, %v17327_v9  ;;  %v3818_v34 = vmul.f32 %v12772_v62, %v17328_v49  ;;  %v17330_v25 = vld [vmem:[#allocation36_spill] sm:$0xff]  ;;  %v17334_v23 = vld [vmem:[#allocation53_spill] sm:$0xff] }
 0x3d2   : > { %17310 = vst [vmem:[#allocation39_spill] sm:$0xff] %v12750_v32  ;;  %17312 = vst [vmem:[#allocation64_spill] sm:$0xff] %v12753_v44  ;;  %v3819_v50 = vmul.f32 %v12772_v62, %v17329_v51  ;;  %v3820_v40 = vmul.f32 %v12772_v62, %v17330_v25  ;;  %v3821_v20 = vmul.f32 %v12772_v62, %v17331_v47  ;;  %v17333_v3 = vld [vmem:[#allocation52_spill] sm:$0xff]  ;;  %v17335_v48 = vld [vmem:[#allocation58_spill] sm:$0xff] }
 0x3d3   : > { %17314 = vst [vmem:[#allocation69_spill] sm:$0xff] %v12756_v56  ;;  %17316 = vst [vmem:[#allocation13_spill] sm:$0xff] %v12759_v8  ;;  %v3822_v52 = vmul.f32 %v12772_v62, %v17332_v59  ;;  %v3823_v45 = vmul.f32 %v12772_v62, %v17333_v3  ;;  %v3824_v10 = vmul.f32 %v12772_v62, %v17334_v23  ;;  %v17336_v28 = vld [vmem:[#allocation59_spill] sm:$0xff]  ;;  %v17337_v13 = vld [vmem:[#allocation60_spill] sm:$0xff] }
 0x3d4   : > { %17317 = vst [vmem:[#allocation85_spill] sm:$0xff] %v12762_v41  ;;  %17318 = vst [vmem:[#allocation44_spill] sm:$0xff] %v12765_v21  ;;  %v3825_v42 = vmul.f32 %v12772_v62, %v17335_v48  ;;  %v3826_v53 = vmul.f32 %v12772_v62, %v17336_v28  ;;  %v3827_v29 = vmul.f32 %v12772_v62, %v17337_v13  ;;  %v17338_v17 = vld [vmem:[#allocation65_spill] sm:$0xff]  ;;  %v17339_v9 = vld [vmem:[#allocation14_spill] sm:$0xff] }
 0x3d5   : > { %17319 = vst [vmem:[#allocation99_spill] sm:$0xff] %v12768_v57  ;;  %17321 = vst [vmem:[#allocation92_spill] sm:$0xff] %v12775_v61  ;;  %v3828_v1 = vmul.f32 %v12772_v62, %v17338_v17  ;;  %v3829_v49 = vmul.f32 %v12772_v62, %v17339_v9  ;;  %v17340_v61 = vld [vmem:[#allocation15_spill] sm:$0xff]  ;;  %v17341_v21 = vld [vmem:[#allocation12_spill] sm:$0xff] }
 0x3d6   : > { %v3830_v57 = vmul.f32 %v12772_v62, %v17340_v61  ;;  %v3831_v41 = vmul.f32 %v12772_v62, %v17341_v21  ;;  %v12822_v8 = vld [vmem:[%s5246_s17 + $0x334] sm:$0xff]  ;;  %v12825_v56 = vld [vmem:[%s5246_s17 + $0x33c] sm:$0x3f]  ;;  %v17350_v54 = vld [vmem:[#allocation38_spill] sm:$0xff] }
 0x3d7   : > { %17342 = vst [vmem:[#allocation66_spill] sm:$0xff] %v12822_v8  ;;  %17343 = vst [vmem:[#allocation74_spill] sm:$0xff] %v12825_v56  ;;  %v17344_v44 = vld [vmem:[#allocation73_spill] sm:$0xff]  ;;  %v17345_v46 = vld [vmem:[#allocation7_spill] sm:$0xff]  ;;  %v3838_v0 = vmul.f32 %v12772_v62, %v12822_v8  ;;  %v3839_v7 = vmul.f32 %v12772_v62, %v12825_v56  ;;  %v12844_v5 = vadd.f32 %v3816_v38, %v17350_v54 }
 0x3d8   : > { %v3832_v32 = vmul.f32 %v12772_v62, %v17344_v44  ;;  %v3833_v35 = vmul.f32 %v12772_v62, %v17345_v46  ;;  %v17346_v30 = vld [vmem:[#allocation83_spill] sm:$0xff]  ;;  %v17348_v19 = vld [vmem:[#allocation89_spill] sm:$0xff]  ;;  %v17355_v44 = vld [vmem:[#allocation8_spill] sm:$0xff] }
 0x3d9   : > { %v3834_v63 = vmul.f32 %v12772_v62, %v17346_v30  ;;  %v17347_v18 = vld [vmem:[#allocation95_spill] sm:$0xff]  ;;  %v3836_v39 = vmul.f32 %v12772_v62, %v17348_v19  ;;  %17351 = vst [vmem:[#allocation102_spill] sm:$0xff] %v12844_v5  ;;  %v17353_v30 = vld [vmem:[#allocation97_spill] sm:$0xff]  ;;  %v17358_v54 = vld [vmem:[#allocation42_spill] sm:$0xff] }
 0x3da   : > { %v3835_v58 = vmul.f32 %v12772_v62, %v17347_v18  ;;  %v17349_v43 = vld [vmem:[#allocation67_spill] sm:$0xff]  ;;  %v12850_v18 = vadd.f32 %v3818_v34, %v17353_v30  ;;  %v17356_v21 = vld [vmem:[#allocation9_spill] sm:$0xff]  ;;  %v12865_v38 = vadd.f32 %v3823_v45, %v17358_v54  ;;  %v17360_v30 = vld [vmem:[#allocation94_spill] sm:$0xff] }
 0x3db   : > { %v3837_v27 = vmul.f32 %v12772_v62, %v17349_v43  ;;  %v17352_v26 = vld [vmem:[#allocation75_spill] sm:$0xff]  ;;  %v12856_v43 = vadd.f32 %v3820_v40, %v17355_v44  ;;  %v12859_v8 = vadd.f32 %v3821_v20, %v17356_v21  ;;  %v17357_v61 = vld [vmem:[#allocation41_spill] sm:$0xff]  ;;  %v12871_v34 = vadd.f32 %v3825_v42, %v17360_v30  ;;  %v17393_v5 = vld [vmem:[#allocation80_spill] sm:$0xff] }
 0x3dc   : > { %v12847_v31 = vadd.f32 %v3817_v2, %v17352_v26  ;;  %v17354_v46 = vld [vmem:[#allocation51_spill] sm:$0xff]  ;;  %v12862_v56 = vadd.f32 %v3822_v52, %v17357_v61  ;;  %v17359_v26 = vld [vmem:[#allocation101_spill] sm:$0xff]  ;;  %v17364_v61 = vld [vmem:[#allocation24_spill] sm:$0xff] }
 0x3dd   : > { %v12853_v19 = vadd.f32 %v3819_v50, %v17354_v46  ;;  %v12868_v2 = vadd.f32 %v3824_v10, %v17359_v26  ;;  %v17361_v46 = vld [vmem:[#allocation31_spill] sm:$0xff]  ;;  %v12883_v52 = vadd.f32 %v3829_v49, %v17364_v61  ;;  %v17365_v45 = vld [vmem:[#allocation93_spill] sm:$0xff]  ;;  %v17376_v49 = vld [vmem:[#allocation34_spill] sm:$0xff] }
 0x3de   : > { %v12874_v50 = vadd.f32 %v3826_v53, %v17361_v46  ;;  %v17362_v44 = vld [vmem:[#allocation47_spill] sm:$0xff]  ;;  %v12886_v54 = vadd.f32 %v3830_v57, %v17365_v45  ;;  %v17368_v42 = vld [vmem:[#allocation77_spill] sm:$0xff]  ;;  %v12904_v61 = vadd.f32 %v3836_v39, %v17376_v49  ;;  %v17378_v57 = vld [vmem:[#allocation32_spill] sm:$0xff] }
 0x3df   : > { %v12877_v40 = vadd.f32 %v3827_v29, %v17362_v44  ;;  %v17363_v21 = vld [vmem:[#allocation91_spill] sm:$0xff]  ;;  %v12892_v30 = vadd.f32 %v3832_v32, %v17368_v42  ;;  %v17372_v29 = vld [vmem:[#allocation29_spill] sm:$0xff]  ;;  %v12907_v45 = vadd.f32 %v3837_v27, %v17378_v57  ;;  %v17388_v49 = vld [vmem:[#allocation50_spill] sm:$0xff] }
 0x3e0   : > { %v12880_v20 = vadd.f32 %v3828_v1, %v17363_v21  ;;  %v17366_v10 = vld [vmem:[#allocation23_spill] sm:$0xff]  ;;  %v12898_v44 = vadd.f32 %v3834_v63, %v17372_v29  ;;  %v17374_v1 = vld [vmem:[#allocation30_spill] sm:$0xff]  ;;  %17377 = vst [vmem:[#allocation28_spill] sm:$0xff] %v12904_v61  ;;  %v17385_v63 = vld [vmem:[#allocation49_spill] sm:$0xff] }
 0x3e1   : > { %v12889_v26 = vadd.f32 %v3831_v41, %v17366_v10  ;;  %17369 = vst [vmem:[#allocation71_spill] sm:$0xff] %v12892_v30  ;;  %v17370_v53 = vld [vmem:[#allocation103_spill] sm:$0xff]  ;;  %v12901_v21 = vadd.f32 %v3835_v58, %v17374_v1  ;;  %17379 = vst [vmem:[#allocation40_spill] sm:$0xff] %v12907_v45  ;;  %v3672_v58 = vmul.f32 %v17323_v24, %v17385_v63  ;;  %v17386_v29 = vld [vmem:[#allocation10_spill] sm:$0xff] }
 0x3e2   : > { %v12895_v46 = vadd.f32 %v3833_v35, %v17370_v53  ;;  %17373 = vst [vmem:[#allocation20_spill] sm:$0xff] %v12898_v44  ;;  %v17380_v41 = vld [vmem:[#allocation63_spill] sm:$0xff]  ;;  %v17384_v35 = vld [vmem:[#allocation76_spill] sm:$0xff]  ;;  %v3673_v39 = vmul.f32 %v17323_v24, %v17386_v29  ;;  %v17389_v57 = vld [vmem:[#allocation17_spill] sm:$0xff] }
 0x3e3   : > { %17367 = vst [vmem:[#allocation18_spill] sm:$0xff] %v12889_v26  ;;  %17375 = vst [vmem:[#allocation81_spill] sm:$0xff] %v12901_v21  ;;  %v12910_v10 = vadd.f32 %v3838_v0, %v17380_v41  ;;  %v17382_v32 = vld [vmem:[#allocation107_spill] sm:$0xff]  ;;  %v3671_v53 = vmul.f32 %v17323_v24, %v17384_v35  ;;  %v17387_v1 = vld [vmem:[#allocation16_spill] sm:$0xff]  ;;  %v3675_v0 = vmul.f32 %v17323_v24, %v17388_v49 }
 0x3e4   : > { %17371 = vst [vmem:[#allocation19_spill] sm:$0xff] %v12895_v46  ;;  %v12913_v42 = vadd.f32 %v3839_v7, %v17382_v32  ;;  %v3674_v27 = vmul.f32 %v17323_v24, %v17387_v1  ;;  %v12927_v7 = vmul.f32 %v17323_v24, %v17389_v57  ;;  %v17391_v41 = vld [vmem:[#allocation26_spill] sm:$0xff]  ;;  %v17397_v61 = vld [vmem:[#allocation61_spill] sm:$0xff]  ;;  %v17401_v46 = vld [vmem:[#allocation43_spill] sm:$0xff] }
 0x3e5   : > { %17381 = vst [vmem:[#allocation22_spill] sm:$0xff] %v12910_v10  ;;  %v12931_v32 = vmul.f32 %v17323_v24, %v17391_v41  ;;  %v17395_v10 = vld [vmem:[#allocation79_spill] sm:$0xff]  ;;  %v12943_v21 = vmul.f32 %v17323_v24, %v17397_v61  ;;  %v17399_v44 = vld [vmem:[#allocation62_spill] sm:$0xff]  ;;  %v12951_v30 = vmul.f32 %v17323_v24, %v17401_v46 }
 0x3e6   : > { %17383 = vst [vmem:[#allocation36_spill] sm:$0xff] %v12913_v42  ;;  %17390 = vst [vmem:[#allocation45_spill] sm:$0xff] %v12927_v7  ;;  %v12935_v42 = vmul.f32 %v17323_v24, %v17393_v5  ;;  %v12939_v45 = vmul.f32 %v17323_v24, %v17395_v10  ;;  %v12947_v7 = vmul.f32 %v17323_v24, %v17399_v44  ;;  %v17412_v46 = vld [vmem:[#allocation90_spill] sm:$0xff] }
 0x3e7   : > { %17392 = vst [vmem:[#allocation106_spill] sm:$0xff] %v12931_v32  ;;  %17398 = vst [vmem:[#allocation58_spill] sm:$0xff] %v12943_v21  ;;  %v17403_v32 = vld [vmem:[#allocation72_spill] sm:$0xff]  ;;  %v17409_v21 = vld [vmem:[#allocation25_spill] sm:$0xff] }
 0x3e8   : > { %17394 = vst [vmem:[#allocation52_spill] sm:$0xff] %v12935_v42  ;;  %17396 = vst [vmem:[#allocation53_spill] sm:$0xff] %v12939_v45  ;;  %v12955_v5 = vmul.f32 %v17323_v24, %v17403_v32  ;;  %v17405_v42 = vld [vmem:[#allocation96_spill] sm:$0xff]  ;;  %v17407_v45 = vld [vmem:[#allocation98_spill] sm:$0xff]  ;;  %v12967_v44 = vmul.f32 %v17323_v24, %v17409_v21 }
 0x3e9   : > { %17400 = vst [vmem:[#allocation59_spill] sm:$0xff] %v12947_v7  ;;  %17402 = vst [vmem:[#allocation60_spill] sm:$0xff] %v12951_v30  ;;  %v12959_v10 = vmul.f32 %v17323_v24, %v17405_v42  ;;  %v12963_v61 = vmul.f32 %v17323_v24, %v17407_v45  ;;  %v12970_v7 = vld [vmem:[%s5246_s17 + $0x16c] sm:$0xff]  ;;  %v12974_v30 = vmul.f32 %v17323_v24, %v17412_v46  ;;  %v17418_v45 = vld [vmem:[#allocation56_spill] sm:$0xff] }
 0x3ea   : > { %17404 = vst [vmem:[#allocation65_spill] sm:$0xff] %v12955_v5  ;;  %17410 = vst [vmem:[#allocation75_spill] sm:$0xff] %v12967_v44  ;;  %v17414_v32 = vld [vmem:[#allocation82_spill] sm:$0xff]  ;;  %v17416_v42 = vld [vmem:[#allocation87_spill] sm:$0xff] }
 0x3eb   : > { %17406 = vst [vmem:[#allocation14_spill] sm:$0xff] %v12959_v10  ;;  %17408 = vst [vmem:[#allocation38_spill] sm:$0xff] %v12963_v61  ;;  %v12978_v5 = vmul.f32 %v17323_v24, %v17414_v32  ;;  %v12982_v10 = vmul.f32 %v17323_v24, %v17416_v42  ;;  %v12986_v61 = vmul.f32 %v17323_v24, %v17418_v45  ;;  %v12989_v21 = vld [vmem:[%s5246_s17 + $0x174] sm:$0x3f]  ;;  %v17421_v44 = vld [vmem:[#allocation57_spill] sm:$0xff] }
 0x3ec   : > { %17411 = vst [vmem:[#allocation97_spill] sm:$0xff] %v12970_v7  ;;  %17413 = vst [vmem:[#allocation51_spill] sm:$0xff] %v12974_v30  ;;  %v12993_v26 = vmul.f32 %v17323_v24, %v17421_v44  ;;  %v17423_v46 = vld [vmem:[#allocation54_spill] sm:$0xff]  ;;  %v17425_v32 = vld [vmem:[#allocation108_spill] sm:$0xff]  ;;  %v13005_v42 = vmul.f32 %v17323_v24, %v12970_v7  ;;  %v13009_v45 = vmul.f32 %v17323_v24, %v12989_v21 }
 0x3ed   : > { %17415 = vst [vmem:[#allocation8_spill] sm:$0xff] %v12978_v5  ;;  %17417 = vst [vmem:[#allocation9_spill] sm:$0xff] %v12982_v10  ;;  %v12997_v30 = vmul.f32 %v17323_v24, %v17423_v46  ;;  %v13001_v5 = vmul.f32 %v17323_v24, %v17425_v32  ;;  %v13017_v46 = vmul.f32 %v17323_v24, %v17288_v16  ;;  %v17434_v7 = vld [vmem:[#allocation88_spill] sm:$0xff] }
 0x3ee   : > { %17419 = vst [vmem:[#allocation41_spill] sm:$0xff] %v12986_v61  ;;  %17420 = vst [vmem:[#allocation42_spill] sm:$0xff] %v12989_v21  ;;  %v17429_v61 = vld [vmem:[#allocation55_spill] sm:$0xff]  ;;  %v3724_v21 = vadd.f32 %v12779_v55, %v12678_v36  ;;  %v3726_v16 = vadd.f32 %v12787_v33, %v12684_v22  ;;  %v3786_v36 = vmul.f32 %v12772_v62, %v17385_v63 }
 0x3ef   : > { %17422 = vst [vmem:[#allocation101_spill] sm:$0xff] %v12993_v26  ;;  %17424 = vst [vmem:[#allocation94_spill] sm:$0xff] %v12997_v30  ;;  %v13013_v44 = vmul.f32 %v17323_v24, %v17429_v61  ;;  %v17432_v30 = vld [vmem:[#allocation21_spill] sm:$0xff]  ;;  %v3725_v61 = vadd.f32 %v12783_v12, %v12681_v11  ;;  %v3787_v11 = vmul.f32 %v12772_v62, %v17386_v29  ;;  %v17446_v26 = vld [vmem:[#allocation74_spill] sm:$0xff] }
 0x3f0   : > { %17426 = vst [vmem:[#allocation31_spill] sm:$0xff] %v13001_v5  ;;  %17427 = vst [vmem:[#allocation47_spill] sm:$0xff] %v13005_v42  ;;  %v13021_v32 = vmul.f32 %v17323_v24, %v17432_v30  ;;  %v13024_v5 = vld [vmem:[%s5240_s21 + $0x18] ss:$0 sm:$0xff]  ;;  %v13028_v42 = vmul.f32 %v17323_v24, %v17434_v7  ;;  %v13038_v30 = vadd.f32 %v3672_v58, %v12690_v6 }
 0x3f1   : > { %17428 = vst [vmem:[#allocation91_spill] sm:$0xff] %v13009_v45  ;;  %17430 = vst [vmem:[#allocation24_spill] sm:$0xff] %v13013_v44  ;;  %v3784_v24 = vmul.f32 %v12772_v62, %v17325_v14  ;;  %v3785_v7 = vmul.f32 %v12772_v62, %v17384_v35  ;;  %v3789_v22 = vmul.f32 %v12772_v62, %v17388_v49  ;;  %v17444_v44 = vld [vmem:[#allocation67_spill] sm:$0xff]  ;;  %v17445_v45 = vld [vmem:[#allocation66_spill] sm:$0xff] }
 0x3f2   : > { %17431 = vst [vmem:[#allocation93_spill] sm:$0xff] %v13017_v46  ;;  %17433 = vst [vmem:[#allocation23_spill] sm:$0xff] %v13021_v32  ;;  %v3727_v46 = vadd.f32 %v3671_v53, %v12687_v15  ;;  %v3729_v32 = vadd.f32 %v3673_v39, %v12693_v60  ;;  %v13052_v15 = vadd.f32 %v3674_v27, %v12696_v4 }
 0x3f3   : > { %17435 = vst [vmem:[#allocation77_spill] sm:$0xff] %v13028_v42  ;;  %v13055_v60 = vadd.f32 %v3675_v0, %v12699_v37  ;;  %v3900_v6 = vmul.f32 %v13024_v5, %v17385_v63  ;;  %v3901_v55 = vmul.f32 %v13024_v5, %v17386_v29  ;;  %v13063_v12 = vmul.f32 %v13024_v5, %v17387_v1  ;;  %v17443_v42 = vld [vmem:[#allocation89_spill] sm:$0xff] }
 0x3f4   : > { %v3903_v14 = vmul.f32 %v13024_v5, %v17388_v49  ;;  %v13069_v4 = vmul.f32 %v13024_v5, %v17389_v57  ;;  %v13073_v37 = vmul.f32 %v13024_v5, %v17391_v41  ;;  %v3788_v33 = vmul.f32 %v12772_v62, %v17387_v1 }
 0x3f5   : > { %v13079_v35 = vmul.f32 %v12772_v62, %v17389_v57  ;;  %v13083_v53 = vmul.f32 %v12772_v62, %v17391_v41  ;;  %v3840_v63 = vadd.f32 %v3784_v24, %v3724_v21  ;;  %v3841_v58 = vadd.f32 %v3785_v7, %v3725_v61  ;;  %v17437_v61 = vld [vmem:[#allocation15_spill] sm:$0xff]  ;;  %v17439_v24 = vld [vmem:[#allocation73_spill] sm:$0xff] }
 0x3f6   : > { %17436 = vst [vmem:[#allocation103_spill] sm:$0xff] %v13069_v4  ;;  %v3842_v29 = vadd.f32 %v3786_v36, %v3726_v16  ;;  %v3843_v39 = vadd.f32 %v3787_v11, %v3727_v46  ;;  %v13085_v27 = vadd.f32 %v3789_v22, %v3729_v32  ;;  %v3933_v49 = vmul.f32 %v13024_v5, %v17329_v51  ;;  %v3430_v32 = vld [vmem:[%s5246_s17 + $0x34c] sm:$0xff]  ;;  %v17438_v16 = vld [vmem:[#allocation12_spill] sm:$0xff] }
 0x3f7   : > { %v3934_v1 = vmul.f32 %v13024_v5, %v17330_v25  ;;  %v3935_v0 = vmul.f32 %v13024_v5, %v17331_v47  ;;  %v3936_v57 = vmul.f32 %v13024_v5, %v17332_v59  ;;  %v3937_v21 = vmul.f32 %v13024_v5, %v17333_v3  ;;  %v3431_v25 = vld [vmem:[%s5246_s17 + $0x354] sm:$0x3f] }
 0x3f8   : > { %v3938_v46 = vmul.f32 %v13024_v5, %v17334_v23  ;;  %v3939_v41 = vmul.f32 %v13024_v5, %v17335_v48  ;;  %v3940_v51 = vmul.f32 %v13024_v5, %v17336_v28  ;;  %v3941_v47 = vmul.f32 %v13024_v5, %v17337_v13  ;;  %v17440_v7 = vld [vmem:[#allocation7_spill] sm:$0xff] }
 0x3f9   : > { %v3942_v59 = vmul.f32 %v13024_v5, %v17338_v17  ;;  %v3943_v3 = vmul.f32 %v13024_v5, %v17339_v9  ;;  %v3944_v23 = vmul.f32 %v13024_v5, %v17437_v61  ;;  %v3945_v48 = vmul.f32 %v13024_v5, %v17438_v16  ;;  %v17441_v11 = vld [vmem:[#allocation83_spill] sm:$0xff] }
 0x3fa   : > { %v3946_v28 = vmul.f32 %v13024_v5, %v17439_v24  ;;  %v3947_v36 = vmul.f32 %v13024_v5, %v17440_v7  ;;  %v3948_v13 = vmul.f32 %v13024_v5, %v17441_v11  ;;  %v17442_v22 = vld [vmem:[#allocation95_spill] sm:$0xff]  ;;  %v3950_v9 = vmul.f32 %v13024_v5, %v17443_v42 }
 0x3fb   : > { %v3949_v17 = vmul.f32 %v13024_v5, %v17442_v22  ;;  %v3951_v61 = vmul.f32 %v13024_v5, %v17444_v44  ;;  %v3952_v16 = vmul.f32 %v13024_v5, %v17445_v45  ;;  %v3953_v24 = vmul.f32 %v13024_v5, %v17446_v26 }
 0x3fc   : > { %v3954_v7 = vmul.f32 %v13024_v5, %v3430_v32  ;;  %v3955_v10 = vmul.f32 %v13024_v5, %v3431_v25  ;;  %v13133_v11 = vadd.f32 %v3900_v6, %v3840_v63  ;;  %v13135_v4 = vadd.f32 %v3901_v55, %v3841_v58 }
 0x3fd   : > { %v13137_v22 = vadd.f32 %v3903_v14, %v3843_v39  ;;  %v13140_v42 = vadd.f32 %v3933_v49, %v12847_v31  ;;  %v13143_v44 = vadd.f32 %v3934_v1, %v12850_v18  ;;  %v13146_v45 = vadd.f32 %v3935_v0, %v12853_v19 }
 0x3fe   : > { %17447 = vst [vmem:[#allocation29_spill] sm:$0xff] %v13133_v11  ;;  %17448 = vst [vmem:[#allocation30_spill] sm:$0xff] %v13135_v4  ;;  %v13149_v26 = vadd.f32 %v3936_v57, %v12856_v43  ;;  %v13152_v32 = vadd.f32 %v3937_v21, %v12859_v8  ;;  %v13155_v6 = vadd.f32 %v3938_v46, %v12862_v56  ;;  %v17472_v57 = vld [vmem:[#allocation22_spill] sm:$0xff] }
 0x3ff   : > { %17449 = vst [vmem:[#allocation34_spill] sm:$0xff] %v13137_v22  ;;  %v13158_v55 = vadd.f32 %v3939_v41, %v12865_v38  ;;  %v13161_v31 = vadd.f32 %v3940_v51, %v12868_v2  ;;  %v13164_v18 = vadd.f32 %v3941_v47, %v12871_v34  ;;  %v13167_v19 = vadd.f32 %v3942_v59, %v12874_v50  ;;  %v17458_v2 = vld [vmem:[#allocation18_spill] sm:$0xff]  ;;  %v17460_v34 = vld [vmem:[#allocation71_spill] sm:$0xff]  ;;  %v17475_v51 = vld [vmem:[#allocation36_spill] sm:$0xff] }
 0x400   : > { %v13170_v43 = vadd.f32 %v3943_v3, %v12877_v40  ;;  %v13173_v8 = vadd.f32 %v3944_v23, %v12880_v20  ;;  %v13176_v56 = vadd.f32 %v3945_v48, %v12883_v52  ;;  %v13179_v38 = vadd.f32 %v3946_v28, %v12886_v54  ;;  %v17462_v50 = vld [vmem:[#allocation19_spill] sm:$0xff]  ;;  %v17464_v40 = vld [vmem:[#allocation20_spill] sm:$0xff]  ;;  %v17466_v20 = vld [vmem:[#allocation81_spill] sm:$0xff] }
 0x401   : > { %17450 = vst [vmem:[#allocation32_spill] sm:$0xff] %v13158_v55  ;;  %17451 = vst [vmem:[#allocation63_spill] sm:$0xff] %v13161_v31  ;;  %v13182_v14 = vadd.f32 %v3947_v36, %v17458_v2  ;;  %v13185_v63 = vadd.f32 %v3948_v13, %v17460_v34  ;;  %v13188_v58 = vadd.f32 %v3949_v17, %v17462_v50  ;;  %v17468_v52 = vld [vmem:[#allocation28_spill] sm:$0xff]  ;;  %v17477_v47 = vld [vmem:[#allocation46_spill] sm:$0xff]  ;;  %v4016_v50 = vsel %vm4012_vm0, %v13137_v22, 0.0 }
 0x402   : > { %17452 = vst [vmem:[#allocation107_spill] sm:$0xff] %v13164_v18  ;;  %17453 = vst [vmem:[#allocation76_spill] sm:$0xff] %v13167_v19  ;;  %v13191_v39 = vadd.f32 %v3950_v9, %v17464_v40  ;;  %v13194_v49 = vadd.f32 %v3951_v61, %v17466_v20  ;;  %v13197_v1 = vadd.f32 %v3952_v16, %v17468_v52  ;;  %v17470_v54 = vld [vmem:[#allocation40_spill] sm:$0xff]  ;;  %v17478_v59 = vld [vmem:[#allocation45_spill] sm:$0xff]  ;;  %v4013_v9 = vsel %vm4012_vm0, %v13135_v4, 0.0 }
 0x403   : > { %17454 = vst [vmem:[#allocation49_spill] sm:$0xff] %v13170_v43  ;;  %17455 = vst [vmem:[#allocation10_spill] sm:$0xff] %v13173_v8  ;;  %v13200_v0 = vadd.f32 %v3953_v24, %v17470_v54  ;;  %v13203_v21 = vadd.f32 %v3954_v7, %v17472_v57  ;;  %v3844_v46 = vadd.f32 %v3788_v33, %v13038_v30  ;;  %v17479_v23 = vld [vmem:[#allocation105_spill] sm:$0xff]  ;;  %v17480_v48 = vld [vmem:[#allocation106_spill] sm:$0xff] }
 0x404   : > { %17456 = vst [vmem:[#allocation16_spill] sm:$0xff] %v13176_v56  ;;  %17457 = vst [vmem:[#allocation50_spill] sm:$0xff] %v13179_v38  ;;  %v13207_v41 = vadd.f32 %v13063_v12, %v3842_v29  ;;  %v13210_v25 = vadd.f32 %v3955_v10, %v17475_v51  ;;  %v3732_v3 = vadd.f32 %v17478_v59, %v17477_v47  ;;  %v17481_v36 = vld [vmem:[#allocation104_spill] sm:$0xff]  ;;  %v17484_v33 = vld [vmem:[#allocation53_spill] sm:$0xff] }
 0x405   : > { %17459 = vst [vmem:[#allocation17_spill] sm:$0xff] %v13182_v14  ;;  %17461 = vst [vmem:[#allocation26_spill] sm:$0xff] %v13185_v63  ;;  %v3733_v28 = vadd.f32 %v17480_v48, %v17479_v23  ;;  %v17482_v13 = vld [vmem:[#allocation52_spill] sm:$0xff]  ;;  %v17485_v29 = vld [vmem:[#allocation79_spill] sm:$0xff]  ;;  %v4014_v24 = vadd.f32 %v4013_v9, %v13133_v11  ;;  %v3847_v7 = vadd.f32 %v13083_v53, %v13055_v60 }
 0x406   : > { %17463 = vst [vmem:[#allocation55_spill] sm:$0xff] %v13188_v58  ;;  %17465 = vst [vmem:[#allocation21_spill] sm:$0xff] %v13191_v39  ;;  %v3734_v17 = vadd.f32 %v17482_v13, %v17481_v36  ;;  %v17483_v30 = vld [vmem:[#allocation48_spill] sm:$0xff]  ;;  %v3793_v10 = vmul.f32 %v12772_v62, %v17485_v29  ;;  %v3907_v2 = vmul.f32 %v13024_v5, %v17485_v29  ;;  %v17487_v52 = vld [vmem:[#allocation103_spill] sm:$0xff] }
 0x407   : > { %17467 = vst [vmem:[#allocation88_spill] sm:$0xff] %v13194_v49  ;;  %17469 = vst [vmem:[#allocation15_spill] sm:$0xff] %v13197_v1  ;;  %v3735_v12 = vadd.f32 %v17484_v33, %v17483_v30  ;;  %v17486_v61 = vld [vmem:[#allocation80_spill] sm:$0xff]  ;;  %v13233_v34 = vadd.f32 %v13073_v37, %v13085_v27  ;;  %v3846_v20 = vadd.f32 %v13079_v35, %v13052_v15  ;;  %v17489_v57 = vld [vmem:[#allocation58_spill] sm:$0xff] }
 0x408   : > { %17471 = vst [vmem:[#allocation12_spill] sm:$0xff] %v13200_v0  ;;  %17473 = vst [vmem:[#allocation73_spill] sm:$0xff] %v13203_v21  ;;  %v3906_v16 = vmul.f32 %v13024_v5, %v17486_v61  ;;  %v3792_v40 = vmul.f32 %v12772_v62, %v17486_v61  ;;  %v13242_v54 = vadd.f32 %v17487_v52, %v3844_v46  ;;  %v17488_v53 = vld [vmem:[#allocation68_spill] sm:$0xff]  ;;  %v17491_v37 = vld [vmem:[#allocation59_spill] sm:$0xff] }
 0x409   : > { %17474 = vst [vmem:[#allocation7_spill] sm:$0xff] %v13207_v41  ;;  %17476 = vst [vmem:[#allocation83_spill] sm:$0xff] %v13210_v25  ;;  %v4015_v60 = vadd.f32 %v4014_v24, %v13207_v41  ;;  %v3736_v51 = vadd.f32 %v17489_v57, %v17488_v53  ;;  %v17490_v47 = vld [vmem:[#allocation100_spill] sm:$0xff]  ;;  %v17492_v59 = vld [vmem:[#allocation5_spill] sm:$0xff]  ;;  %v3849_v52 = vadd.f32 %v3793_v10, %v3733_v28 }
 0x40a   : > { %v3737_v27 = vadd.f32 %v17491_v37, %v17490_v47  ;;  %v17493_v23 = vld [vmem:[#allocation60_spill] sm:$0xff]  ;;  %v17494_v36 = vld [vmem:[#allocation11_spill] sm:$0xff]  ;;  %v17495_v13 = vld [vmem:[#allocation65_spill] sm:$0xff]  ;;  %v13263_v57 = vadd.f32 %v3907_v2, %v3847_v7  ;;  %v4019_v47 = vsel %vm4012_vm0, %v13233_v34, 0.0  ;;  %v3848_v37 = vadd.f32 %v3792_v40, %v3732_v3 }
 0x40b   : > { %v3738_v48 = vadd.f32 %v17493_v23, %v17492_v59  ;;  %v3739_v9 = vadd.f32 %v17495_v13, %v17494_v36  ;;  %v17496_v30 = vld [vmem:[#allocation33_spill] sm:$0xff]  ;;  %v17497_v33 = vld [vmem:[#allocation14_spill] sm:$0xff]  ;;  %v4017_v24 = vadd.f32 %v4016_v50, %v4015_v60  ;;  %v13269_v23 = vadd.f32 %v3906_v16, %v3846_v20  ;;  %v17500_v13 = vld [vmem:[#allocation84_spill] sm:$0xff] }
 0x40c   : > { %v13255_v15 = vadd.f32 %v17497_v33, %v17496_v30  ;;  %v17498_v35 = vld [vmem:[#allocation61_spill] sm:$0xff]  ;;  %v17499_v29 = vld [vmem:[#allocation62_spill] sm:$0xff]  ;;  %v17503_v10 = vld [vmem:[#allocation75_spill] sm:$0xff]  ;;  %v4104_v56 = vmul.f32 %v13207_v41, %v13207_v41 }
 0x40d   : > { %v3794_v46 = vmul.f32 %v12772_v62, %v17498_v35  ;;  %v3795_v61 = vmul.f32 %v12772_v62, %v17499_v29  ;;  %v3909_v53 = vmul.f32 %v13024_v5, %v17499_v29  ;;  %v3908_v59 = vmul.f32 %v13024_v5, %v17498_v35  ;;  %v17501_v30 = vld [vmem:[#allocation38_spill] sm:$0xff]  ;;  %v17504_v7 = vld [vmem:[#allocation35_spill] sm:$0xff]  ;;  %v17506_v29 = vld [vmem:[#allocation37_spill] sm:$0xff] }
 0x40e   : > { %v4018_v36 = vadd.f32 %v4017_v24, %v13242_v54  ;;  %v3741_v50 = vadd.f32 %v17501_v30, %v17500_v13  ;;  %v17502_v28 = vld [vmem:[#allocation78_spill] sm:$0xff]  ;;  %v17505_v2 = vld [vmem:[#allocation51_spill] sm:$0xff]  ;;  %v17507_v3 = vld [vmem:[#allocation8_spill] sm:$0xff] }
 0x40f   : > { %v13276_v60 = vadd.f32 %v17503_v10, %v17502_v28  ;;  %v13280_v33 = vadd.f32 %v17505_v2, %v17504_v7  ;;  %v13284_v40 = vadd.f32 %v17507_v3, %v17506_v29  ;;  %v17508_v35 = vld [vmem:[#allocation86_spill] sm:$0xff]  ;;  %v17509_v16 = vld [vmem:[#allocation9_spill] sm:$0xff]  ;;  %v17510_v24 = vld [vmem:[#allocation43_spill] sm:$0xff]  ;;  %v3851_v10 = vadd.f32 %v3795_v61, %v3735_v12 }
 0x410   : > { %v13288_v20 = vadd.f32 %v17509_v16, %v17508_v35  ;;  %v3796_v25 = vmul.f32 %v12772_v62, %v17510_v24  ;;  %v17511_v13 = vld [vmem:[#allocation72_spill] sm:$0xff]  ;;  %v4020_v28 = vadd.f32 %v4019_v47, %v4018_v36  ;;  %v13296_v2 = vadd.f32 %v3909_v53, %v3849_v52  ;;  %v17512_v1 = vld [vmem:[#allocation27_spill] sm:$0xff]  ;;  %v17513_v0 = vld [vmem:[#allocation41_spill] sm:$0xff] }
 0x411   : > { %v3797_v30 = vmul.f32 %v12772_v62, %v17511_v13  ;;  %v3911_v7 = vmul.f32 %v13024_v5, %v17511_v13  ;;  %v4022_v29 = vsel %vm4012_vm0, %v13263_v57, 0.0  ;;  %v3850_v3 = vadd.f32 %v3794_v46, %v3734_v17  ;;  %v17514_v12 = vld [vmem:[#allocation70_spill] sm:$0xff]  ;;  %v17515_v61 = vld [vmem:[#allocation101_spill] sm:$0xff]  ;;  %v17516_v52 = vld [vmem:[#allocation39_spill] sm:$0xff] }
 0x412   : > { %v3910_v35 = vmul.f32 %v13024_v5, %v17510_v24  ;;  %v13302_v16 = vadd.f32 %v3908_v59, %v3848_v37  ;;  %v4021_v21 = vadd.f32 %v4020_v28, %v13269_v23  ;;  %v13307_v47 = vadd.f32 %v17513_v0, %v17512_v1  ;;  %v17517_v53 = vld [vmem:[#allocation94_spill] sm:$0xff]  ;;  %v17518_v17 = vld [vmem:[#allocation64_spill] sm:$0xff]  ;;  %v17519_v46 = vld [vmem:[#allocation31_spill] sm:$0xff] }
 0x413   : > { %v13311_v36 = vadd.f32 %v17515_v61, %v17514_v12  ;;  %v13315_v13 = vadd.f32 %v17517_v53, %v17516_v52  ;;  %v13319_v39 = vadd.f32 %v17519_v46, %v17518_v17  ;;  %v17520_v37 = vld [vmem:[#allocation69_spill] sm:$0xff]  ;;  %v17521_v59 = vld [vmem:[#allocation47_spill] sm:$0xff]  ;;  %v17522_v28 = vld [vmem:[#allocation96_spill] sm:$0xff]  ;;  %v3853_v61 = vadd.f32 %v3797_v30, %v3737_v27 }
 0x414   : > { %v13323_v24 = vadd.f32 %v17521_v59, %v17520_v37  ;;  %v3798_v1 = vmul.f32 %v12772_v62, %v17522_v28  ;;  %v17523_v0 = vld [vmem:[#allocation98_spill] sm:$0xff]  ;;  %v4023_v12 = vadd.f32 %v4022_v29, %v4021_v21  ;;  %v13331_v53 = vadd.f32 %v3911_v7, %v3851_v10  ;;  %v17525_v58 = vld [vmem:[#allocation13_spill] sm:$0xff]  ;;  %v17526_v38 = vld [vmem:[#allocation91_spill] sm:$0xff] }
 0x415   : > { %v3799_v49 = vmul.f32 %v12772_v62, %v17523_v0  ;;  %v3913_v52 = vmul.f32 %v13024_v5, %v17523_v0  ;;  %v4025_v17 = vsel %vm4012_vm0, %v13296_v2, 0.0  ;;  %v3852_v46 = vadd.f32 %v3796_v25, %v3736_v51  ;;  %v17527_v27 = vld [vmem:[#allocation85_spill] sm:$0xff]  ;;  %v17528_v30 = vld [vmem:[#allocation24_spill] sm:$0xff]  ;;  %v17531_v25 = vld [vmem:[#allocation99_spill] sm:$0xff] }
 0x416   : > { %17524 = vst [vmem:[#allocation95_spill] sm:$0xff] %v13331_v53  ;;  %v3912_v37 = vmul.f32 %v13024_v5, %v17522_v28  ;;  %v13337_v59 = vadd.f32 %v3910_v35, %v3850_v3  ;;  %v4024_v63 = vadd.f32 %v4023_v12, %v13302_v16  ;;  %v13342_v21 = vadd.f32 %v17526_v38, %v17525_v58  ;;  %v17529_v10 = vld [vmem:[#allocation44_spill] sm:$0xff]  ;;  %v17530_v7 = vld [vmem:[#allocation93_spill] sm:$0xff]  ;;  %v17532_v51 = vld [vmem:[#allocation23_spill] sm:$0xff] }
 0x417   : > { %v13346_v29 = vadd.f32 %v17528_v30, %v17527_v27  ;;  %v13350_v0 = vadd.f32 %v17530_v7, %v17529_v10  ;;  %v13354_v14 = vadd.f32 %v17532_v51, %v17531_v25  ;;  %v17533_v3 = vld [vmem:[#allocation25_spill] sm:$0xff]  ;;  %v17534_v28 = vld [vmem:[#allocation90_spill] sm:$0xff]  ;;  %v3854_v38 = vadd.f32 %v3798_v1, %v3738_v48 }
 0x418   : > { %v3800_v35 = vmul.f32 %v12772_v62, %v17533_v3  ;;  %v3801_v12 = vmul.f32 %v12772_v62, %v17534_v28  ;;  %v4026_v58 = vadd.f32 %v4025_v17, %v4024_v63  ;;  %v3855_v8 = vadd.f32 %v3799_v49, %v3739_v9  ;;  %v17535_v63 = vld [vmem:[#allocation92_spill] sm:$0xff]  ;;  %v17536_v49 = vld [vmem:[#allocation77_spill] sm:$0xff]  ;;  %v17537_v1 = vld [vmem:[#allocation82_spill] sm:$0xff] }
 0x419   : > { %v3915_v27 = vmul.f32 %v13024_v5, %v17534_v28  ;;  %v13362_v30 = vadd.f32 %v3913_v52, %v3853_v61  ;;  %v4028_v10 = vsel %vm4012_vm0, %v13331_v53, 0.0  ;;  %v3914_v7 = vmul.f32 %v13024_v5, %v17533_v3  ;;  %v17538_v52 = vld [vmem:[#allocation87_spill] sm:$0xff] }
 0x41a   : > { %v13368_v25 = vadd.f32 %v3912_v37, %v3852_v46  ;;  %v4027_v51 = vadd.f32 %v4026_v58, %v13337_v59  ;;  %v4103_v48 = vmul.f32 %v13135_v4, %v13135_v4  ;;  %v13375_v9 = vadd.f32 %v17536_v49, %v17535_v63 }
 0x41b   : > { %v3802_v61 = vmul.f32 %v12772_v62, %v17537_v1  ;;  %v3803_v17 = vmul.f32 %v12772_v62, %v17538_v52  ;;  %v4102_v3 = vmul.f32 %v13133_v11, %v13133_v11  ;;  %v3856_v46 = vadd.f32 %v3800_v35, %v13255_v15 }
 0x41c   : > { %v3857_v37 = vadd.f32 %v3801_v12, %v3741_v50  ;;  %v4029_v28 = vadd.f32 %v4028_v10, %v4027_v51  ;;  %v4105_v58 = vmul.f32 %v13137_v22, %v13137_v22  ;;  %v3917_v63 = vmul.f32 %v13024_v5, %v17538_v52  ;;  %v17539_v12 = vld [vmem:[#allocation56_spill] sm:$0xff] }
 0x41d   : > { %v13388_v49 = vadd.f32 %v3915_v27, %v3855_v8  ;;  %v4031_v4 = vsel %vm4012_vm0, %v13362_v30, 0.0  ;;  %v3916_v11 = vmul.f32 %v13024_v5, %v17537_v1  ;;  %v13396_v15 = vadd.f32 %v3914_v7, %v3854_v38  ;;  %v17540_v8 = vld [vmem:[#allocation57_spill] sm:$0xff] }
 0x41e   : > { %v4030_v50 = vadd.f32 %v4029_v28, %v13368_v25  ;;  %v4158_v35 = vsel %vm4012_vm0, %v4103_v48, 0.0  ;;  %v3804_v10 = vmul.f32 %v12772_v62, %v17539_v12  ;;  %v3805_v27 = vmul.f32 %v12772_v62, %v17540_v8 }
 0x41f   : > { %v3859_v51 = vadd.f32 %v3803_v17, %v13280_v33  ;;  %v4159_v52 = vadd.f32 %v4158_v35, %v4102_v3  ;;  %v3919_v22 = vmul.f32 %v13024_v5, %v17540_v8  ;;  %v4107_v38 = vmul.f32 %v13233_v34, %v13233_v34 }
 0x420   : > { %v4032_v41 = vadd.f32 %v4031_v4, %v4030_v50  ;;  %v4161_v7 = vsel %vm4012_vm0, %v4105_v58, 0.0  ;;  %v13410_v1 = vadd.f32 %v3917_v63, %v3857_v37  ;;  %v4034_v48 = vsel %vm4012_vm0, %v13388_v49, 0.0  ;;  %v17541_v50 = vld [vmem:[#allocation54_spill] sm:$0xff]  ;;  %v17542_v58 = vld [vmem:[#allocation108_spill] sm:$0xff] }
 0x421   : > { %v4106_v28 = vmul.f32 %v13242_v54, %v13242_v54  ;;  %v4160_v19 = vadd.f32 %v4159_v52, %v4104_v56  ;;  %v3858_v33 = vadd.f32 %v3802_v61, %v13276_v60  ;;  %v3918_v17 = vmul.f32 %v13024_v5, %v17539_v12 }
 0x422   : > { %v13419_v4 = vadd.f32 %v3916_v11, %v3856_v46  ;;  %v4033_v3 = vadd.f32 %v4032_v41, %v13396_v15  ;;  %v3806_v37 = vmul.f32 %v12772_v62, %v17541_v50  ;;  %v3807_v63 = vmul.f32 %v12772_v62, %v17542_v58 }
 0x423   : > { %v3861_v35 = vadd.f32 %v3805_v27, %v13288_v20  ;;  %v4162_v8 = vadd.f32 %v4161_v7, %v4160_v19  ;;  %v3921_v56 = vmul.f32 %v13024_v5, %v17542_v58  ;;  %v4109_v61 = vmul.f32 %v13263_v57, %v13263_v57  ;;  %v17544_v7 = vld [vmem:[#allocation42_spill] sm:$0xff] }
 0x424   : > { %v4035_v60 = vadd.f32 %v4034_v48, %v4033_v3  ;;  %v4164_v11 = vsel %vm4012_vm0, %v4107_v38, 0.0  ;;  %v13432_v46 = vadd.f32 %v3919_v22, %v3859_v51  ;;  %v4037_v41 = vsel %vm4012_vm0, %v13410_v1, 0.0  ;;  %v17543_v22 = vld [vmem:[#allocation97_spill] sm:$0xff] }
 0x425   : > { %v4108_v12 = vmul.f32 %v13269_v23, %v13269_v23  ;;  %v4163_v20 = vadd.f32 %v4162_v8, %v4106_v28  ;;  %v3860_v19 = vadd.f32 %v3804_v10, %v13284_v40  ;;  %v3920_v27 = vmul.f32 %v13024_v5, %v17541_v50 }
 0x426   : > { %v13441_v52 = vadd.f32 %v3918_v17, %v3858_v33  ;;  %v4036_v38 = vadd.f32 %v4035_v60, %v13419_v4  ;;  %v3808_v51 = vmul.f32 %v12772_v62, %v17543_v22  ;;  %v3809_v48 = vmul.f32 %v12772_v62, %v17544_v7  ;;  %v3393_v17 = vld [vmem:[%s5246_s17 + $0x18c] sm:$0x3f]  ;;  %v3392_v60 = vld [vmem:[%s5246_s17 + $0x184] sm:$0xff] }
 0x427   : > { %v3863_v3 = vadd.f32 %v3807_v63, %v13311_v36  ;;  %v4165_v58 = vadd.f32 %v4164_v11, %v4163_v20  ;;  %v3923_v40 = vmul.f32 %v13024_v5, %v17544_v7  ;;  %v4111_v28 = vmul.f32 %v13296_v2, %v13296_v2 }
 0x428   : > { %v4038_v10 = vadd.f32 %v4037_v41, %v4036_v38  ;;  %v4167_v33 = vsel %vm4012_vm0, %v4109_v61, 0.0  ;;  %v13455_v50 = vadd.f32 %v3921_v56, %v3861_v35  ;;  %v4040_v8 = vsel %vm4012_vm0, %v13432_v46, 0.0 }
 0x429   : > { %v4110_v36 = vmul.f32 %v13302_v16, %v13302_v16  ;;  %v4166_v63 = vadd.f32 %v4165_v58, %v4108_v12  ;;  %v3862_v11 = vadd.f32 %v3806_v37, %v13307_v47  ;;  %v3922_v41 = vmul.f32 %v13024_v5, %v17543_v22 }
 0x42a   : > { %v13465_v20 = vadd.f32 %v3920_v27, %v3860_v19  ;;  %v4039_v61 = vadd.f32 %v4038_v10, %v13441_v52  ;;  %v3810_v35 = vmul.f32 %v12772_v62, %v3392_v60  ;;  %v3811_v56 = vmul.f32 %v12772_v62, %v3393_v17  ;;  %v3395_v27 = vld [vmem:[%s5246_s17 + $0x1a4] sm:$0x3f] }
 0x42b   : > { %v3865_v38 = vadd.f32 %v3809_v48, %v13319_v39  ;;  %v4168_v7 = vadd.f32 %v4167_v33, %v4166_v63  ;;  %v3925_v12 = vmul.f32 %v13024_v5, %v3393_v17  ;;  %v4113_v37 = vmul.f32 %v13331_v53, %v13331_v53  ;;  %v3394_v63 = vld [vmem:[%s5246_s17 + $0x19c] sm:$0xff] }
 0x42c   : > { %v4041_v47 = vadd.f32 %v4040_v8, %v4039_v61  ;;  %v4170_v19 = vsel %vm4012_vm0, %v4111_v28, 0.0  ;;  %v13476_v22 = vadd.f32 %v3923_v40, %v3863_v3  ;;  %v4043_v58 = vsel %vm4012_vm0, %v13455_v50, 0.0  ;;  %v4898_v28 = vld [vmem:[%s5246_s17 + $0x1fc] sm:$0xff]  ;;  %v4899_v40 = vld [vmem:[%s5246_s17 + $0x204] sm:$0x3f] }
 0x42d   : > { %v4112_v39 = vmul.f32 %v13337_v59, %v13337_v59  ;;  %v4169_v48 = vadd.f32 %v4168_v7, %v4110_v36  ;;  %v3864_v10 = vadd.f32 %v3808_v51, %v13315_v13  ;;  %v3924_v33 = vmul.f32 %v13024_v5, %v3392_v60 }
 0x42e   : > { %v13484_v17 = vadd.f32 %v3922_v41, %v3862_v11  ;;  %v4042_v8 = vadd.f32 %v4041_v47, %v13465_v20  ;;  %v3812_v3 = vmul.f32 %v4898_v28, %v12772_v62  ;;  %v3813_v61 = vmul.f32 %v4899_v40, %v12772_v62 }
 0x42f   : > { %v3867_v53 = vadd.f32 %v3811_v56, %v13342_v21  ;;  %v4171_v36 = vadd.f32 %v4170_v19, %v4169_v48  ;;  %v3927_v13 = vmul.f32 %v13024_v5, %v3395_v27  ;;  %v4115_v60 = vmul.f32 %v13362_v30, %v13362_v30 }
 0x430   : > { %v4044_v51 = vadd.f32 %v4043_v58, %v4042_v8  ;;  %v4173_v11 = vsel %vm4012_vm0, %v4113_v37, 0.0  ;;  %v13497_v41 = vadd.f32 %v3925_v12, %v3865_v38  ;;  %v4046_v7 = vsel %vm4012_vm0, %v13476_v22, 0.0  ;;  %v4900_v58 = vld [vmem:[%s5246_s17 + $0x214] sm:$0xff]  ;;  %v4901_v38 = vld [vmem:[%s5246_s17 + $0x21c] sm:$0x3f] }
 0x431   : > { %v4114_v47 = vmul.f32 %v13368_v25, %v13368_v25  ;;  %v4172_v28 = vadd.f32 %v4171_v36, %v4112_v39  ;;  %v3866_v21 = vadd.f32 %v3810_v35, %v13323_v24  ;;  %v3926_v56 = vmul.f32 %v13024_v5, %v3394_v63 }
 0x432   : > { %v13505_v19 = vadd.f32 %v3924_v33, %v3864_v10  ;;  %v4045_v27 = vadd.f32 %v4044_v51, %v13484_v17  ;;  %v3814_v37 = vmul.f32 %v4900_v58, %v12772_v62  ;;  %v3815_v12 = vmul.f32 %v4901_v38, %v12772_v62 }
 0x433   : > { %v3869_v48 = vadd.f32 %v3813_v61, %v13350_v0  ;;  %v4174_v8 = vadd.f32 %v4173_v11, %v4172_v28  ;;  %v3929_v39 = vmul.f32 %v4901_v38, %v13024_v5  ;;  %v4117_v24 = vmul.f32 %v13388_v49, %v13388_v49 }
 0x434   : > { %v4047_v40 = vadd.f32 %v4046_v7, %v4045_v27  ;;  %v4176_v35 = vsel %vm4012_vm0, %v4115_v60, 0.0  ;;  %v13517_v10 = vadd.f32 %v3927_v13, %v3867_v53  ;;  %v4049_v33 = vsel %vm4012_vm0, %v13497_v41, 0.0  ;;  %v4902_v13 = vld [vmem:[%s5246_s17 + $0x234] sm:$0x3f]  ;;  %v4903_v27 = vld [vmem:[%s5246_s17 + $0x22c] sm:$0xff] }
 0x435   : > { %v4116_v62 = vmul.f32 %v13396_v15, %v13396_v15  ;;  %v4175_v63 = vadd.f32 %v4174_v8, %v4114_v47  ;;  %v3868_v0 = vadd.f32 %v3812_v3, %v13346_v29  ;;  %v3928_v61 = vmul.f32 %v4900_v58, %v13024_v5 }
 0x436   : > { %v13525_v36 = vadd.f32 %v3926_v56, %v3866_v21  ;;  %v4048_v51 = vadd.f32 %v4047_v40, %v13505_v19  ;;  %v3871_v60 = vadd.f32 %v3815_v12, %v13375_v9  ;;  %v3931_v11 = vmul.f32 %v4902_v13, %v13024_v5 }
 0x437   : > { %v4177_v53 = vadd.f32 %v4176_v35, %v4175_v63  ;;  %v4119_v28 = vmul.f32 %v13410_v1, %v13410_v1  ;;  %v4179_v47 = vsel %vm4012_vm0, %v4117_v24, 0.0  ;;  %v13534_v29 = vadd.f32 %v3929_v39, %v3869_v48 }
 0x438   : > { %v4050_v7 = vadd.f32 %v4049_v33, %v4048_v51  ;;  %v4052_v3 = vsel %vm4012_vm0, %v13517_v10, 0.0  ;;  %v4118_v21 = vmul.f32 %v13419_v4, %v13419_v4  ;;  %v3870_v56 = vadd.f32 %v3814_v37, %v13354_v14  ;;  %v4904_v33 = vld [vmem:[%s5246_s17 + $0x244] sm:$0xff] }
 0x439   : > { %v4178_v9 = vadd.f32 %v4177_v53, %v4116_v62  ;;  %v3930_v58 = vmul.f32 %v4903_v27, %v13024_v5  ;;  %v13543_v38 = vadd.f32 %v3928_v61, %v3868_v0  ;;  %v4121_v39 = vmul.f32 %v13432_v46, %v13432_v46 }
 0x43a   : > { %v4051_v12 = vadd.f32 %v4050_v7, %v13525_v36  ;;  %v4182_v40 = vsel %vm4012_vm0, %v4119_v28, 0.0  ;;  %v13549_v24 = vadd.f32 %v3931_v11, %v3871_v60  ;;  %v4055_v35 = vsel %vm4012_vm0, %v13534_v29, 0.0  ;;  %v17545_v28 = vld [vmem:[#allocation102_spill] sm:$0xff] }
 0x43b   : > { %v4180_v8 = vadd.f32 %v4179_v47, %v4178_v9  ;;  %v4120_v14 = vmul.f32 %v13441_v52, %v13441_v52  ;;  %v3932_v62 = vmul.f32 %v4904_v33, %v13024_v5  ;;  %v13557_v63 = vadd.f32 %v3930_v58, %v3870_v56 }
 0x43c   : > { %v4053_v48 = vadd.f32 %v4052_v3, %v4051_v12  ;;  %v4123_v60 = vmul.f32 %v13455_v50, %v13455_v50  ;;  %v4185_v53 = vsel %vm4012_vm0, %v4121_v39, 0.0  ;;  %v4058_v13 = vsel %vm4012_vm0, %v13549_v24, 0.0 }
 0x43d   : > { %v4181_v37 = vadd.f32 %v4180_v8, %v4118_v21  ;;  %v4122_v11 = vmul.f32 %v13465_v20, %v13465_v20  ;;  %v13568_v5 = vadd.f32 %v3932_v62, %v17545_v28  ;;  %v4125_v9 = vmul.f32 %v13476_v22, %v13476_v22 }
 0x43e   : > { %v4054_v0 = vadd.f32 %v4053_v48, %v13543_v38  ;;  %v4188_v56 = vsel %vm4012_vm0, %v4123_v60, 0.0  ;;  %v4061_v27 = vsel %vm4012_vm0, %v13140_v42, 0.0  ;;  %v4124_v58 = vmul.f32 %v13484_v17, %v13484_v17 }
 0x43f   : > { %v4183_v61 = vadd.f32 %v4182_v40, %v4181_v37  ;;  %v4127_v40 = vmul.f32 %v13497_v41, %v13497_v41  ;;  %v4126_v37 = vmul.f32 %v13505_v19, %v13505_v19 }
 0x440   : > { %v4056_v51 = vadd.f32 %v4055_v35, %v4054_v0  ;;  %v4191_v35 = vsel %vm4012_vm0, %v4125_v9, 0.0  ;;  %v4070_v9 = vsel %vm4012_vm0, %v13158_v55, 0.0 }
 0x441   : > { %v4184_v7 = vadd.f32 %v4183_v61, %v4120_v14  ;;  %v4064_v14 = vsel %vm4012_vm0, %v13146_v45, 0.0  ;;  %v4194_v60 = vsel %vm4012_vm0, %v4127_v40, 0.0  ;;  %v4073_v40 = vsel %vm4012_vm0, %v13164_v18, 0.0 }
 0x442   : > { %v4057_v47 = vadd.f32 %v4056_v51, %v13557_v63  ;;  %v4129_v51 = vmul.f32 %v13517_v10, %v13517_v10 }
 0x443   : > { %v4186_v3 = vadd.f32 %v4185_v53, %v4184_v7  ;;  %v4067_v53 = vsel %vm4012_vm0, %v13152_v32, 0.0 }
 0x444   : > { %v4059_v21 = vadd.f32 %v4058_v13, %v4057_v47  ;;  %v4128_v13 = vmul.f32 %v13525_v36, %v13525_v36 }
 0x445   : > { %v4187_v12 = vadd.f32 %v4186_v3, %v4122_v11  ;;  %v4131_v3 = vmul.f32 %v13534_v29, %v13534_v29 }
 0x446   : > { %v4060_v8 = vadd.f32 %v4059_v21, %v13568_v5  ;;  %v4197_v21 = vsel %vm4012_vm0, %v4129_v51, 0.0  ;;  %v4076_v51 = vsel %vm4012_vm0, %v13170_v43, 0.0 }
 0x447   : > { %v4189_v48 = vadd.f32 %v4188_v56, %v4187_v12  ;;  %v4130_v56 = vmul.f32 %v13543_v38, %v13543_v38 }
 0x448   : > { %v4062_v39 = vadd.f32 %v4061_v27, %v4060_v8 }
 0x449   : > { %v4190_v33 = vadd.f32 %v4189_v48, %v4124_v58  ;;  %v4133_v48 = vmul.f32 %v13549_v24, %v13549_v24 }
 0x44a   : > { %v4063_v62 = vadd.f32 %v4062_v39, %v13143_v44  ;;  %v4200_v39 = vsel %vm4012_vm0, %v4131_v3, 0.0 }
 0x44b   : > { %v4192_v0 = vadd.f32 %v4191_v35, %v4190_v33  ;;  %v4132_v35 = vmul.f32 %v13557_v63, %v13557_v63 }
 0x44c   : > { %v4065_v61 = vadd.f32 %v4064_v14, %v4063_v62 }
 0x44d   : > { %v4193_v11 = vadd.f32 %v4192_v0, %v4126_v37  ;;  %v4135_v0 = vmul.f32 %v13140_v42, %v13140_v42 }
 0x44e   : > { %v4066_v7 = vadd.f32 %v4065_v61, %v13149_v26  ;;  %v4203_v61 = vsel %vm4012_vm0, %v4133_v48, 0.0 }
 0x44f   : > { %v4195_v28 = vadd.f32 %v4194_v60, %v4193_v11  ;;  %v4134_v60 = vmul.f32 %v13568_v5, %v13568_v5  ;;  %v4206_v3 = vsel %vm4012_vm0, %v4135_v0, 0.0 }
 0x450   : > { %v4068_v47 = vadd.f32 %v4067_v53, %v4066_v7 }
 0x451   : > { %v4196_v27 = vadd.f32 %v4195_v28, %v4128_v13  ;;  %v17546_v13 = vld [vmem:[#allocation76_spill] sm:$0xff] }
 0x452   : > { %v4069_v58 = vadd.f32 %v4068_v47, %v13155_v6  ;;  %v4137_v47 = vmul.f32 %v13146_v45, %v13146_v45 }
 0x453   : > { %v4198_v12 = vadd.f32 %v4197_v21, %v4196_v27  ;;  %v17547_v21 = vld [vmem:[#allocation16_spill] sm:$0xff] }
 0x454   : > { %v4071_v8 = vadd.f32 %v4070_v9, %v4069_v58  ;;  %v4079_v9 = vsel %vm4012_vm0, %v17547_v21, 0.0  ;;  %v17548_v58 = vld [vmem:[#allocation10_spill] sm:$0xff] }
 0x455   : > { %v4199_v14 = vadd.f32 %v4198_v12, %v4130_v56  ;;  %v4136_v56 = vmul.f32 %v13143_v44, %v13143_v44 }
 0x456   : > { %v4072_v37 = vadd.f32 %v4071_v8, %v13161_v31 }
 0x457   : > { %v4201_v33 = vadd.f32 %v4200_v39, %v4199_v14  ;;  %v4139_v39 = vmul.f32 %v13152_v32, %v13152_v32 }
 0x458   : > { %v4074_v62 = vadd.f32 %v4073_v40, %v4072_v37  ;;  %v4209_v40 = vsel %vm4012_vm0, %v4137_v47, 0.0  ;;  %v4138_v37 = vmul.f32 %v13149_v26, %v13149_v26 }
 0x459   : > { %v4202_v53 = vadd.f32 %v4201_v33, %v4132_v35  ;;  %v17549_v35 = vld [vmem:[#allocation17_spill] sm:$0xff] }
 0x45a   : > { %v4075_v11 = vadd.f32 %v4074_v62, %v17546_v13  ;;  %v4082_v14 = vsel %vm4012_vm0, %v17549_v35, 0.0  ;;  %v17550_v62 = vld [vmem:[#allocation50_spill] sm:$0xff] }
 0x45b   : > { %v4204_v7 = vadd.f32 %v4203_v61, %v4202_v53  ;;  %v4212_v53 = vsel %vm4012_vm0, %v4139_v39, 0.0  ;;  %v4142_v39 = vmul.f32 %v13161_v31, %v13161_v31 }
 0x45c   : > { %v4077_v28 = vadd.f32 %v4076_v51, %v4075_v11  ;;  %v17551_v11 = vld [vmem:[#allocation55_spill] sm:$0xff] }
 0x45d   : > { %v4205_v27 = vadd.f32 %v4204_v7, %v4134_v60  ;;  %v4141_v60 = vmul.f32 %v13158_v55, %v13158_v55  ;;  %v4085_v7 = vsel %vm4012_vm0, %v17551_v11, 0.0 }
 0x45e   : > { %v4078_v12 = vadd.f32 %v4077_v28, %v17548_v58  ;;  %v4140_v28 = vmul.f32 %v13155_v6, %v13155_v6 }
 0x45f   : > { %v4207_v8 = vadd.f32 %v4206_v3, %v4205_v27  ;;  %v17552_v3 = vld [vmem:[#allocation26_spill] sm:$0xff] }
 0x460   : > { %v4080_v48 = vadd.f32 %v4079_v9, %v4078_v12  ;;  %v4143_v12 = vmul.f32 %v13164_v18, %v13164_v18 }
 0x461   : > { %v4208_v33 = vadd.f32 %v4207_v8, %v4136_v56  ;;  %v4215_v8 = vsel %vm4012_vm0, %v4141_v60, 0.0  ;;  %v4144_v60 = vmul.f32 %v17546_v13, %v17546_v13 }
 0x462   : > { %v4081_v0 = vadd.f32 %v4080_v48, %v17550_v62  ;;  %v17553_v48 = vld [vmem:[#allocation88_spill] sm:$0xff] }
 0x463   : > { %v4210_v61 = vadd.f32 %v4209_v40, %v4208_v33  ;;  %v4088_v40 = vsel %vm4012_vm0, %v17553_v48, 0.0  ;;  %v17554_v33 = vld [vmem:[#allocation21_spill] sm:$0xff] }
 0x464   : > { %v4083_v51 = vadd.f32 %v4082_v14, %v4081_v0 }
 0x465   : > { %v4211_v47 = vadd.f32 %v4210_v61, %v4138_v37  ;;  %v4145_v61 = vmul.f32 %v13170_v43, %v13170_v43  ;;  %v17558_v43 = vld [vmem:[#allocation83_spill] sm:$0xff] }
 0x466   : > { %v4084_v9 = vadd.f32 %v4083_v51, %v17552_v3  ;;  %v4218_v51 = vsel %vm4012_vm0, %v4143_v12, 0.0  ;;  %v4094_v13 = vsel %vm4012_vm0, %v17558_v43, 0.0 }
 0x467   : > { %v4213_v27 = vadd.f32 %v4212_v53, %v4211_v47  ;;  %v17555_v53 = vld [vmem:[#allocation12_spill] sm:$0xff] }
 0x468   : > { %v4086_v56 = vadd.f32 %v4085_v7, %v4084_v9  ;;  %v4091_v7 = vsel %vm4012_vm0, %v17555_v53, 0.0  ;;  %v17556_v9 = vld [vmem:[#allocation15_spill] sm:$0xff] }
 0x469   : > { %v4214_v14 = vadd.f32 %v4213_v27, %v4140_v28  ;;  %v4147_v27 = vmul.f32 %v17547_v21, %v17547_v21 }
 0x46a   : > { %v4087_v0 = vadd.f32 %v4086_v56, %v17554_v33  ;;  %v4221_v56 = vsel %vm4012_vm0, %v4145_v61, 0.0 }
 0x46b   : > { %v4216_v55 = vadd.f32 %v4215_v8, %v4214_v14  ;;  %v4146_v8 = vmul.f32 %v17548_v58, %v17548_v58 }
 0x46c   : > { %v4089_v37 = vadd.f32 %v4088_v40, %v4087_v0  ;;  %v17557_v40 = vld [vmem:[#allocation73_spill] sm:$0xff] }
 0x46d   : > { %v4217_v47 = vadd.f32 %v4216_v55, %v4142_v39  ;;  %v4149_v55 = vmul.f32 %v17549_v35, %v17549_v35  ;;  %v4148_v39 = vmul.f32 %v17550_v62, %v17550_v62 }
 0x46e   : > { %v4090_v18 = vadd.f32 %v4089_v37, %v17556_v9 }
 0x46f   : > { %v4219_v31 = vadd.f32 %v4218_v51, %v4217_v47 }
 0x470   : > { %v4092_v28 = vadd.f32 %v4091_v7, %v4090_v18  ;;  %v4224_v18 = vsel %vm4012_vm0, %v4147_v27, 0.0  ;;  %v4227_v7 = vsel %vm4012_vm0, %v4149_v55, 0.0  ;;  %v4153_v27 = vmul.f32 %v17553_v48, %v17553_v48 }
 0x471   : > { %v4220_v12 = vadd.f32 %v4219_v31, %v4144_v60  ;;  %v4151_v31 = vmul.f32 %v17551_v11, %v17551_v11  ;;  %v4150_v60 = vmul.f32 %v17552_v3, %v17552_v3  ;;  %v4155_v55 = vmul.f32 %v17555_v53, %v17555_v53 }
 0x472   : > { %v4093_v14 = vadd.f32 %v4092_v28, %v17557_v40 }
 0x473   : > { %v4222_v0 = vadd.f32 %v4221_v56, %v4220_v12  ;;  %v4230_v12 = vsel %vm4012_vm0, %v4151_v31, 0.0  ;;  %v4157_v31 = vmul.f32 %v17558_v43, %v17558_v43 }
 0x474   : > { %v4095_v61 = vadd.f32 %v4094_v13, %v4093_v14  ;;  %v4152_v13 = vmul.f32 %v17554_v33, %v17554_v33 }
 0x475   : > { %v4223_v37 = vadd.f32 %v4222_v0, %v4146_v8 }
 0x476   : > { %v4096_v28 = vrot.slane %v4095_v61, 4 }
 0x477   : > { %v4225_v51 = vadd.f32 %v4224_v18, %v4223_v37  ;;  %v4233_v18 = vsel %vm4012_vm0, %v4153_v27, 0.0 }
 0x478   : > { %v4097_v14 = vadd.f32 %v4096_v28, %v4095_v61  ;;  %v4156_v61 = vmul.f32 %v17557_v40, %v17557_v40 }
 0x479   : > { %v4226_v47 = vadd.f32 %v4225_v51, %v4148_v39  ;;  %v4154_v39 = vmul.f32 %v17556_v9, %v17556_v9 }
 0x47a   : > { %v4098_v51 = vrot.slane %v4097_v14, 2 }
 0x47b   : > { %v4228_v56 = vadd.f32 %v4227_v7, %v4226_v47  ;;  %v4236_v47 = vsel %vm4012_vm0, %v4155_v55, 0.0 }
 0x47c   : > { %v4099_v28 = vadd.f32 %v4098_v51, %v4097_v14 }
 0x47d   : > { %v4229_v8 = vadd.f32 %v4228_v56, %v4150_v60 }
 0x47f   : > { %v4231_v0 = vadd.f32 %v4230_v12, %v4229_v8  ;;  %v4239_v12 = vsel %vm4012_vm0, %v4157_v31, 0.0  ;;  %v4100_v8 = vrot.slane %v4099_v28, 1  ;;  %v4253_v31 = vld [vmem:[%s744_s26] sm:$0x1] }
 0x481   : > { %v4232_v37 = vadd.f32 %v4231_v0, %v4152_v13  ;;  %v4101_v0 = vadd.f32 %v4100_v8, %v4099_v28  ;;  %v17560_v28 = vld [vmem:[#allocation29_spill] sm:$0xff]  ;;  %v17562_v8 = vld [vmem:[#allocation7_spill] sm:$0xff] }
 0x483   : > { %v4234_v7 = vadd.f32 %v4233_v18, %v4232_v37  ;;  %v4248_v9 = vmul.f32 0.0025510204, %v4101_v0  ;;  %v17563_v0 = vld [vmem:[#allocation34_spill] sm:$0xff] }
 0x485   : > { %v4235_v60 = vadd.f32 %v4234_v7, %v4154_v39  ;;  %v4250_v33 = vmul.f32 %v4248_v9, %v4248_v9 }
 0x487   : > { %v4237_v56 = vadd.f32 %v4236_v47, %v4235_v60  ;;  %v4257_v47 = vld [vmem:[%s747_s29] sm:$0x1] }
 0x489   : > { %v4238_v27 = vadd.f32 %v4237_v56, %v4156_v61 }
 0x48b   : > { %v4240_v53 = vadd.f32 %v4239_v12, %v4238_v27  ;;  %v17561_v12 = vld [vmem:[#allocation30_spill] sm:$0xff] }
 0x48d   : > { %v4241_v13 = vrot.slane %v4240_v53, 4 }
 0x48f   : > { %v4242_v18 = vadd.f32 %v4241_v13, %v4240_v53 }
 0x491   : > { %v4243_v37 = vrot.slane %v4242_v18, 2 }
 0x493   : > { %v4244_v43 = vadd.f32 %v4243_v37, %v4242_v18 }
 0x495   : > { %v4245_v55 = vrot.slane %v4244_v43, 1 }
 0x497   : > { %v4246_v48 = vadd.f32 %v4245_v55, %v4244_v43 }
 0x499   : > { %v4249_v39 = vmul.f32 0.0025510204, %v4246_v48  ;;  %v17559_v48 = vld [vmem:[#allocation6_spill] sm:$0xff] }
 0x49b   : > { %v4251_v14 = vsub.f32 %v4249_v39, %v4250_v33 }
 0x49d   : > { %v4252_v51 = vmax.f32 %v4251_v14, 0.0 }
 0x49f   : > { %v4254_v7 = vadd.f32 1e-05, %v4252_v51 }
 0x4a1   : > { %4833 = vrsqrt.f32 %v4254_v7 }
 0x4ab   : > { %v4834_v53 = vpop.eup %4833 }
 0x4ac   : > { %v4256_v43 = vmul.f32 %v4834_v53, %v4253_v31  ;;  %v17564_v31 = vld [vmem:[#allocation95_spill] sm:$0xff] }
 0x4ae   : > { %v4258_v61 = vmul.f32 %v4256_v43, %v4248_v9  ;;  %v13702_v33 = vrot.slane %v4256_v43, %v17559_v48 }
 0x4b0   : > { %v4259_v60 = vsub.f32 %v4257_v47, %v4258_v61  ;;  %v4266_v56 = vmul.f32 %v13702_v33, %v17560_v28  ;;  %v4267_v27 = vmul.f32 %v13702_v33, %v17561_v12  ;;  %v4268_v13 = vmul.f32 %v13702_v33, %v17562_v8 }
 0x4b1   : > { %v4269_v18 = vmul.f32 %v13702_v33, %v17563_v0  ;;  %v4270_v9 = vmul.f32 %v13702_v33, %v13242_v54  ;;  %v4271_v37 = vmul.f32 %v13702_v33, %v13233_v34  ;;  %v4272_v55 = vmul.f32 %v13702_v33, %v13269_v23 }
 0x4b2   : > { %v13720_v39 = vrot.slane %v4259_v60, %v17559_v48  ;;  %v4273_v14 = vmul.f32 %v13702_v33, %v13263_v57  ;;  %v4274_v51 = vmul.f32 %v13702_v33, %v13302_v16  ;;  %v4275_v7 = vmul.f32 %v13702_v33, %v13296_v2 }
 0x4b3   : > { %v4276_v54 = vmul.f32 %v13702_v33, %v13337_v59  ;;  %v4277_v34 = vmul.f32 %v13702_v33, %v17564_v31  ;;  %v4278_v23 = vmul.f32 %v13702_v33, %v13368_v25  ;;  %v4279_v53 = vmul.f32 %v13702_v33, %v13362_v30 }
 0x4b4   : > { %v4328_v57 = vadd.f32 %v13720_v39, %v4266_v56  ;;  %v4329_v43 = vadd.f32 %v13720_v39, %v4267_v27  ;;  %v4330_v16 = vadd.f32 %v13720_v39, %v4268_v13  ;;  %v4331_v2 = vadd.f32 %v13720_v39, %v4269_v18 }
 0x4b5   : > { %v4332_v47 = vadd.f32 %v13720_v39, %v4270_v9  ;;  %v4333_v59 = vadd.f32 %v13720_v39, %v4271_v37  ;;  %v4334_v61 = vadd.f32 %v13720_v39, %v4272_v55  ;;  %v4335_v48 = vadd.f32 %v13720_v39, %v4273_v14 }
 0x4b6   : > { %4384 = vst [vmem:[%s13744_s5] sm:$0xff] %v4328_v57  ;;  %4385 = vst [vmem:[%s13744_s5 + $0x8] sm:$0x3f] %v4329_v43  ;;  %v4336_v30 = vadd.f32 %v13720_v39, %v4274_v51  ;;  %v4337_v25 = vadd.f32 %v13720_v39, %v4275_v7  ;;  %v4338_v60 = vadd.f32 %v13720_v39, %v4276_v54 }
 0x4b7   : > { %4386 = vst [vmem:[%s13744_s5 + $0x10] sm:$0xff] %v4330_v16  ;;  %4387 = vst [vmem:[%s13744_s5 + $0x18] sm:$0x3f] %v4331_v2  ;;  %v4339_v28 = vadd.f32 %v13720_v39, %v4277_v34  ;;  %v4340_v56 = vadd.f32 %v13720_v39, %v4278_v23  ;;  %v4341_v12 = vadd.f32 %v13720_v39, %v4279_v53 }
 0x4b8   : > { %4388 = vst [vmem:[%s13744_s5 + $0x20] sm:$0xff] %v4332_v47  ;;  %4389 = vst [vmem:[%s13744_s5 + $0x28] sm:$0x3f] %v4333_v59  ;;  %v4280_v27 = vmul.f32 %v13702_v33, %v13396_v15  ;;  %v4281_v8 = vmul.f32 %v13702_v33, %v13388_v49  ;;  %v4282_v13 = vmul.f32 %v13702_v33, %v13419_v4 }
 0x4b9   : > { %4390 = vst [vmem:[%s13744_s5 + $0x30] sm:$0xff] %v4334_v61  ;;  %4391 = vst [vmem:[%s13744_s5 + $0x38] sm:$0x3f] %v4335_v48  ;;  %v4283_v0 = vmul.f32 %v13702_v33, %v13410_v1  ;;  %v4284_v18 = vmul.f32 %v13702_v33, %v13441_v52  ;;  %v4285_v15 = vmul.f32 %v13702_v33, %v13432_v46 }
 0x4ba   : > { %4392 = vst [vmem:[%s13744_s5 + $0x40] sm:$0xff] %v4336_v30  ;;  %4393 = vst [vmem:[%s13744_s5 + $0x48] sm:$0x3f] %v4337_v25  ;;  %v4342_v49 = vadd.f32 %v13720_v39, %v4280_v27  ;;  %v4343_v9 = vadd.f32 %v13720_v39, %v4281_v8  ;;  %v4286_v4 = vmul.f32 %v13702_v33, %v13465_v20  ;;  %v17568_v8 = vld [vmem:[#allocation76_spill] sm:$0xff] }
 0x4bb   : > { %4394 = vst [vmem:[%s13744_s5 + $0x50] sm:$0xff] %v4338_v60  ;;  %4395 = vst [vmem:[%s13744_s5 + $0x58] sm:$0x3f] %v4339_v28  ;;  %v4287_v1 = vmul.f32 %v13702_v33, %v13455_v50  ;;  %v4344_v52 = vadd.f32 %v13720_v39, %v4282_v13  ;;  %v4345_v46 = vadd.f32 %v13720_v39, %v4283_v0  ;;  %v17566_v28 = vld [vmem:[#allocation63_spill] sm:$0xff]  ;;  %v17569_v0 = vld [vmem:[#allocation49_spill] sm:$0xff] }
 0x4bc   : > { %4396 = vst [vmem:[%s13744_s5 + $0x60] sm:$0xff] %v4340_v56  ;;  %4397 = vst [vmem:[%s13744_s5 + $0x68] sm:$0x3f] %v4341_v12  ;;  %v4346_v37 = vadd.f32 %v13720_v39, %v4284_v18  ;;  %v4347_v55 = vadd.f32 %v13720_v39, %v4285_v15  ;;  %v4348_v14 = vadd.f32 %v13720_v39, %v4286_v4  ;;  %v17567_v12 = vld [vmem:[#allocation107_spill] sm:$0xff] }
 0x4bd   : > { %4398 = vst [vmem:[%s13744_s5 + $0x70] sm:$0xff] %v4342_v49  ;;  %4399 = vst [vmem:[%s13744_s5 + $0x78] sm:$0x3f] %v4343_v9  ;;  %v4349_v51 = vadd.f32 %v13720_v39, %v4287_v1  ;;  %v4288_v20 = vmul.f32 %v13702_v33, %v13484_v17  ;;  %v4289_v50 = vmul.f32 %v13702_v33, %v13476_v22 }
 0x4be   : > { %4400 = vst [vmem:[%s13744_s5 + $0x80] sm:$0xff] %v4344_v52  ;;  %4401 = vst [vmem:[%s13744_s5 + $0x88] sm:$0x3f] %v4345_v46  ;;  %v4290_v7 = vmul.f32 %v13702_v33, %v13505_v19  ;;  %v4291_v54 = vmul.f32 %v13702_v33, %v13497_v41  ;;  %v4292_v31 = vmul.f32 %v13702_v33, %v13525_v36 }
 0x4bf   : > { %4402 = vst [vmem:[%s13744_s5 + $0x90] sm:$0xff] %v4346_v37  ;;  %4403 = vst [vmem:[%s13744_s5 + $0x98] sm:$0x3f] %v4347_v55  ;;  %v4293_v17 = vmul.f32 %v13702_v33, %v13517_v10  ;;  %v4350_v22 = vadd.f32 %v13720_v39, %v4288_v20  ;;  %v4351_v34 = vadd.f32 %v13720_v39, %v4289_v50  ;;  %v17570_v20 = vld [vmem:[#allocation21_spill] sm:$0xff] }
 0x4c0   : > { %4404 = vst [vmem:[%s13744_s5 + $0xa0] sm:$0xff] %v4348_v14  ;;  %4405 = vst [vmem:[%s13744_s5 + $0xa8] sm:$0x3f] %v4349_v51  ;;  %v4294_v19 = vmul.f32 %v13702_v33, %v13543_v38  ;;  %v4295_v41 = vmul.f32 %v13702_v33, %v13534_v29  ;;  %v4352_v36 = vadd.f32 %v13720_v39, %v4290_v7  ;;  %v17571_v7 = vld [vmem:[#allocation88_spill] sm:$0xff] }
 0x4c1   : > { %v4353_v10 = vadd.f32 %v13720_v39, %v4291_v54  ;;  %v4354_v23 = vadd.f32 %v13720_v39, %v4292_v31  ;;  %v4355_v53 = vadd.f32 %v13720_v39, %v4293_v17  ;;  %4406 = vst [vmem:[%s13744_s5 + $0xb0] sm:$0xff] %v4350_v22  ;;  %4407 = vst [vmem:[%s13744_s5 + $0xb8] sm:$0x3f] %v4351_v34  ;;  %v17572_v31 = vld [vmem:[#allocation15_spill] sm:$0xff] }
 0x4c2   : > { %v4356_v57 = vadd.f32 %v13720_v39, %v4294_v19  ;;  %v4357_v43 = vadd.f32 %v13720_v39, %v4295_v41  ;;  %v4296_v38 = vmul.f32 %v13702_v33, %v13557_v63  ;;  %v4297_v29 = vmul.f32 %v13702_v33, %v13549_v24  ;;  %4408 = vst [vmem:[%s13744_s5 + $0xc0] sm:$0xff] %v4352_v36 }
 0x4c3   : > { %4409 = vst [vmem:[%s13744_s5 + $0xc8] sm:$0x3f] %v4353_v10  ;;  %4410 = vst [vmem:[%s13744_s5 + $0xd0] sm:$0xff] %v4354_v23  ;;  %v4298_v16 = vmul.f32 %v13702_v33, %v13568_v5  ;;  %v4299_v2 = vmul.f32 %v13702_v33, %v13140_v42  ;;  %v4300_v47 = vmul.f32 %v13702_v33, %v13143_v44 }
 0x4c4   : > { %4411 = vst [vmem:[%s13744_s5 + $0xd8] sm:$0x3f] %v4355_v53  ;;  %v4301_v63 = vmul.f32 %v13702_v33, %v13146_v45  ;;  %4412 = vst [vmem:[%s13744_s5 + $0xe0] sm:$0xff] %v4356_v57  ;;  %v4358_v24 = vadd.f32 %v13720_v39, %v4296_v38  ;;  %v4359_v59 = vadd.f32 %v13720_v39, %v4297_v29  ;;  %v17574_v53 = vld [vmem:[#allocation83_spill] sm:$0xff] }
 0x4c5   : > { %4413 = vst [vmem:[%s13744_s5 + $0xe8] sm:$0x3f] %v4357_v43  ;;  %v4302_v5 = vmul.f32 %v13702_v33, %v13149_v26  ;;  %v4303_v42 = vmul.f32 %v13702_v33, %v13152_v32  ;;  %v4360_v44 = vadd.f32 %v13720_v39, %v4298_v16  ;;  %v4361_v45 = vadd.f32 %v13720_v39, %v4299_v2  ;;  %v17565_v32 = vld [vmem:[#allocation32_spill] sm:$0xff]  ;;  %v4590_v29 = vld [vmem:[%s13744_s5 + $0x10] sm:$0xff] (%p4989_p5)  ;;  %v4594_v16 = vld [vmem:[%s13744_s5 + $0x20] sm:$0xff] (%p4989_p5) }
 0x4c6   : > { %v4362_v61 = vadd.f32 %v13720_v39, %v4300_v47  ;;  %v4363_v48 = vadd.f32 %v13720_v39, %v4301_v63  ;;  %4414 = vst [vmem:[%s13744_s5 + $0xf0] sm:$0xff] %v4358_v24  ;;  %4415 = vst [vmem:[%s13744_s5 + $0xf8] sm:$0x3f] %v4359_v59  ;;  %v4304_v26 = vmul.f32 %v13702_v33, %v13155_v6  ;;  %v4596_v2 = vld [vmem:[%s13744_s5 + $0x28] sm:$0xff] (%p4989_p5)  ;;  %v4598_v47 = vld [vmem:[%s13744_s5 + $0x30] sm:$0xff] (%p4989_p5) }
 0x4c7   : > { %v4364_v30 = vadd.f32 %v13720_v39, %v4302_v5  ;;  %v4365_v25 = vadd.f32 %v13720_v39, %v4303_v42  ;;  %v4305_v60 = vmul.f32 %v13702_v33, %v17565_v32  ;;  %4416 = vst [vmem:[%s13744_s5 + $0x100] sm:$0xff] %v4360_v44  ;;  %4417 = vst [vmem:[%s13744_s5 + $0x108] sm:$0x3f] %v4361_v45  ;;  %v4600_v63 = vld [vmem:[%s13744_s5 + $0x38] sm:$0xff] (%p4989_p5)  ;;  %v4602_v24 = vld [vmem:[%s13744_s5 + $0x40] sm:$0xff] (%p4989_p5) }
 0x4c8   : > { %4418 = vst [vmem:[%s13744_s5 + $0x110] sm:$0xff] %v4362_v61  ;;  %4419 = vst [vmem:[%s13744_s5 + $0x118] sm:$0x3f] %v4363_v48  ;;  %v4306_v56 = vmul.f32 %v13702_v33, %v17566_v28  ;;  %v4307_v27 = vmul.f32 %v13702_v33, %v17567_v12  ;;  %v4308_v13 = vmul.f32 %v13702_v33, %v17568_v8  ;;  %v4604_v59 = vld [vmem:[%s13744_s5 + $0x48] sm:$0xff] (%p4989_p5)  ;;  %v4606_v5 = vld [vmem:[%s13744_s5 + $0x50] sm:$0xff] (%p4989_p5) }
 0x4c9   : > { %v4309_v6 = vmul.f32 %v13702_v33, %v17569_v0  ;;  %4420 = vst [vmem:[%s13744_s5 + $0x120] sm:$0xff] %v4364_v30  ;;  %4421 = vst [vmem:[%s13744_s5 + $0x128] sm:$0x3f] %v4365_v25  ;;  %v4366_v18 = vadd.f32 %v13720_v39, %v4304_v26  ;;  %v4367_v15 = vadd.f32 %v13720_v39, %v4305_v60  ;;  %v4608_v42 = vld [vmem:[%s13744_s5 + $0x58] sm:$0xff] (%p4989_p5)  ;;  %v4610_v44 = vld [vmem:[%s13744_s5 + $0x60] sm:$0xff] (%p4989_p5) }
 0x4ca   : > { %v4310_v49 = vmul.f32 %v13702_v33, %v17548_v58  ;;  %v4311_v9 = vmul.f32 %v13702_v33, %v17547_v21  ;;  %v4368_v4 = vadd.f32 %v13720_v39, %v4306_v56  ;;  %v4369_v1 = vadd.f32 %v13720_v39, %v4307_v27  ;;  %4591 = vst [vmem:[%s13943_s9 + $0x20] sm:$0xff] (%p4989_p5), %v4590_v29  ;;  %v4612_v45 = vld [vmem:[%s13744_s5 + $0x68] sm:$0xff] (%p4989_p5)  ;;  %v4614_v61 = vld [vmem:[%s13744_s5 + $0x70] sm:$0xff] (%p4989_p5)  ;;  %v4616_v48 = vld [vmem:[%s13744_s5 + $0x78] sm:$0xff] (%p4989_p5) }
 0x4cb   : > { %v4370_v52 = vadd.f32 %v13720_v39, %v4308_v13  ;;  %v4371_v46 = vadd.f32 %v13720_v39, %v4309_v6  ;;  %4422 = vst [vmem:[%s13744_s5 + $0x130] sm:$0xff] %v4366_v18  ;;  %4423 = vst [vmem:[%s13744_s5 + $0x138] sm:$0x3f] %v4367_v15  ;;  %v4312_v58 = vmul.f32 %v13702_v33, %v17550_v62  ;;  %v4618_v30 = vld [vmem:[%s13744_s5 + $0x80] sm:$0xff] (%p4989_p5)  ;;  %v4620_v25 = vld [vmem:[%s13744_s5 + $0x88] sm:$0xff] (%p4989_p5) }
 0x4cc   : > { %v4372_v37 = vadd.f32 %v13720_v39, %v4310_v49  ;;  %v4373_v55 = vadd.f32 %v13720_v39, %v4311_v9  ;;  %v4313_v21 = vmul.f32 %v13702_v33, %v17549_v35  ;;  %4424 = vst [vmem:[%s13744_s5 + $0x140] sm:$0xff] %v4368_v4  ;;  %4425 = vst [vmem:[%s13744_s5 + $0x148] sm:$0x3f] %v4369_v1  ;;  %v4622_v26 = vld [vmem:[%s13744_s5 + $0x90] sm:$0xff] (%p4989_p5)  ;;  %v4624_v32 = vld [vmem:[%s13744_s5 + $0x98] sm:$0xff] (%p4989_p5) }
 0x4cd   : > { %4426 = vst [vmem:[%s13744_s5 + $0x150] sm:$0xff] %v4370_v52  ;;  %4427 = vst [vmem:[%s13744_s5 + $0x158] sm:$0x3f] %v4371_v46  ;;  %v4314_v14 = vmul.f32 %v13702_v33, %v17552_v3  ;;  %v4315_v51 = vmul.f32 %v13702_v33, %v17551_v11  ;;  %v4316_v50 = vmul.f32 %v13702_v33, %v17570_v20  ;;  %v17573_v11 = vld [vmem:[#allocation12_spill] sm:$0xff]  ;;  %v4626_v60 = vld [vmem:[%s13744_s5 + $0xa0] sm:$0xff] (%p4989_p5) }
 0x4ce   : > { %v4317_v62 = vmul.f32 %v13702_v33, %v17571_v7  ;;  %4428 = vst [vmem:[%s13744_s5 + $0x160] sm:$0xff] %v4372_v37  ;;  %4429 = vst [vmem:[%s13744_s5 + $0x168] sm:$0x3f] %v4373_v55  ;;  %v4374_v35 = vadd.f32 %v13720_v39, %v4312_v58  ;;  %v4375_v54 = vadd.f32 %v13720_v39, %v4313_v21  ;;  %v4628_v28 = vld [vmem:[%s13744_s5 + $0xa8] sm:$0xff] (%p4989_p5)  ;;  %v4630_v56 = vld [vmem:[%s13744_s5 + $0xb0] sm:$0xff] (%p4989_p5) }
 0x4cf   : > { %v4318_v3 = vmul.f32 %v13702_v33, %v17572_v31  ;;  %v4319_v17 = vmul.f32 %v13702_v33, %v17573_v11  ;;  %v4376_v22 = vadd.f32 %v13720_v39, %v4314_v14  ;;  %v4377_v34 = vadd.f32 %v13720_v39, %v4315_v51  ;;  %4446 = sbr.rel (!%p4989_p5) target bundleno = 1264 (0x4f0), region = 116  ;;  %4595 = vst [vmem:[%s13943_s9 + $0x40] sm:$0xff] (%p4989_p5), %v4594_v16  ;;  %v4632_v12 = vld [vmem:[%s13744_s5 + $0xb8] sm:$0xff] (%p4989_p5)  ;;  %v4634_v27 = vld [vmem:[%s13744_s5 + $0xc0] sm:$0xff] (%p4989_p5)  ;;  %v4636_v8 = vld [vmem:[%s13744_s5 + $0xc8] sm:$0xff] (%p4989_p5) }
 0x4d0   : > { %v4378_v19 = vadd.f32 %v13720_v39, %v4316_v50  ;;  %v4379_v41 = vadd.f32 %v13720_v39, %v4317_v62  ;;  %4430 = vst [vmem:[%s13744_s5 + $0x170] sm:$0xff] %v4374_v35  ;;  %4431 = vst [vmem:[%s13744_s5 + $0x178] sm:$0x3f] %v4375_v54  ;;  %v4320_v23 = vmul.f32 %v13702_v33, %v17557_v40  ;;  %v4586_v40 = vld [vmem:[%s13744_s5] sm:$0xff] (%p4989_p5)  ;;  %v4638_v13 = vld [vmem:[%s13744_s5 + $0xd0] sm:$0xff] (%p4989_p5) }
 0x4d1   : > { %v4380_v36 = vadd.f32 %v13720_v39, %v4318_v3  ;;  %v4381_v10 = vadd.f32 %v13720_v39, %v4319_v17  ;;  %v4321_v57 = vmul.f32 %v13702_v33, %v17574_v53  ;;  %4432 = vst [vmem:[%s13744_s5 + $0x180] sm:$0xff] %v4376_v22  ;;  %4433 = vst [vmem:[%s13744_s5 + $0x188] sm:$0x3f] %v4377_v34  ;;  %v4588_v33 = vld [vmem:[%s13744_s5 + $0x8] sm:$0xff] (%p4989_p5)  ;;  %v4640_v0 = vld [vmem:[%s13744_s5 + $0xd8] sm:$0xff] (%p4989_p5) }
 0x4d2   : > { %4434 = vst [vmem:[%s13744_s5 + $0x190] sm:$0xff] %v4378_v19  ;;  %4435 = vst [vmem:[%s13744_s5 + $0x198] sm:$0x3f] %v4379_v41  ;;  %v4382_v43 = vadd.f32 %v13720_v39, %v4320_v23  ;;  %v4642_v6 = vld [vmem:[%s13744_s5 + $0xe0] sm:$0xff] (%p4989_p5)  ;;  %v4644_v18 = vld [vmem:[%s13744_s5 + $0xe8] sm:$0xff] (%p4989_p5) }
 0x4d3   : > { %4436 = vst [vmem:[%s13744_s5 + $0x1a0] sm:$0xff] %v4380_v36  ;;  %4437 = vst [vmem:[%s13744_s5 + $0x1a8] sm:$0x3f] %v4381_v10  ;;  %v4383_v38 = vadd.f32 %v13720_v39, %v4321_v57  ;;  %v4592_v39 = vld [vmem:[%s13744_s5 + $0x18] sm:$0xff] (%p4989_p5)  ;;  %v4646_v15 = vld [vmem:[%s13744_s5 + $0xf0] sm:$0xff] (%p4989_p5) }
 0x4d4   : > { %4438 = vst [vmem:[%s13744_s5 + $0x1b0] sm:$0xff] %v4382_v43  ;;  %4587 = vst [vmem:[%s13943_s9] sm:$0xff] (%p4989_p5), %v4586_v40  ;;  %v4648_v49 = vld [vmem:[%s13744_s5 + $0xf8] sm:$0xff] (%p4989_p5)  ;;  %v4650_v9 = vld [vmem:[%s13744_s5 + $0x100] sm:$0xff] (%p4989_p5) }
 0x4d5   : > { %4439 = vst [vmem:[%s13744_s5 + $0x1b8] sm:$0x3f] %v4383_v38  ;;  %4589 = vst [vmem:[%s13943_s9 + $0x10] sm:$0xff] (%p4989_p5), %v4588_v33  ;;  %v4652_v4 = vld [vmem:[%s13744_s5 + $0x108] sm:$0xff] (%p4989_p5)  ;;  %v4654_v1 = vld [vmem:[%s13744_s5 + $0x110] sm:$0xff] (%p4989_p5) }
 0x4d6   : > { %4593 = vst [vmem:[%s13943_s9 + $0x30] sm:$0xff] %v4592_v39  ;;  %4597 = vst [vmem:[%s13943_s9 + $0x50] sm:$0xff] %v4596_v2  ;;  %v4656_v52 = vld [vmem:[%s13744_s5 + $0x118] sm:$0xff]  ;;  %v4658_v46 = vld [vmem:[%s13744_s5 + $0x120] sm:$0xff] }
 0x4d7   : > { %4599 = vst [vmem:[%s13943_s9 + $0x60] sm:$0xff] %v4598_v47  ;;  %4601 = vst [vmem:[%s13943_s9 + $0x70] sm:$0xff] %v4600_v63  ;;  %v4660_v37 = vld [vmem:[%s13744_s5 + $0x128] sm:$0xff]  ;;  %v4662_v55 = vld [vmem:[%s13744_s5 + $0x130] sm:$0xff] }
 0x4d8   : > { %4603 = vst [vmem:[%s13943_s9 + $0x80] sm:$0xff] %v4602_v24  ;;  %4605 = vst [vmem:[%s13943_s9 + $0x90] sm:$0xff] %v4604_v59  ;;  %v4664_v58 = vld [vmem:[%s13744_s5 + $0x138] sm:$0xff]  ;;  %v4666_v21 = vld [vmem:[%s13744_s5 + $0x140] sm:$0xff] }
 0x4d9   : > { %4607 = vst [vmem:[%s13943_s9 + $0xa0] sm:$0xff] %v4606_v5  ;;  %4609 = vst [vmem:[%s13943_s9 + $0xb0] sm:$0xff] %v4608_v42  ;;  %v4668_v14 = vld [vmem:[%s13744_s5 + $0x148] sm:$0xff]  ;;  %v4670_v51 = vld [vmem:[%s13744_s5 + $0x150] sm:$0xff] }
 0x4da   : > { %4611 = vst [vmem:[%s13943_s9 + $0xc0] sm:$0xff] %v4610_v44  ;;  %4613 = vst [vmem:[%s13943_s9 + $0xd0] sm:$0xff] %v4612_v45  ;;  %v4672_v20 = vld [vmem:[%s13744_s5 + $0x158] sm:$0xff]  ;;  %v4674_v50 = vld [vmem:[%s13744_s5 + $0x160] sm:$0xff] }
 0x4db   : > { %4615 = vst [vmem:[%s13943_s9 + $0xe0] sm:$0xff] %v4614_v61  ;;  %4617 = vst [vmem:[%s13943_s9 + $0xf0] sm:$0xff] %v4616_v48  ;;  %v4676_v7 = vld [vmem:[%s13744_s5 + $0x168] sm:$0xff]  ;;  %v4678_v62 = vld [vmem:[%s13744_s5 + $0x170] sm:$0xff] }
 0x4dc   : > { %4619 = vst [vmem:[%s13943_s9 + $0x100] sm:$0xff] %v4618_v30  ;;  %4621 = vst [vmem:[%s13943_s9 + $0x110] sm:$0xff] %v4620_v25  ;;  %v4680_v35 = vld [vmem:[%s13744_s5 + $0x178] sm:$0xff]  ;;  %v4682_v54 = vld [vmem:[%s13744_s5 + $0x180] sm:$0xff] }
 0x4dd   : > { %4623 = vst [vmem:[%s13943_s9 + $0x120] sm:$0xff] %v4622_v26  ;;  %4625 = vst [vmem:[%s13943_s9 + $0x130] sm:$0xff] %v4624_v32  ;;  %v4684_v31 = vld [vmem:[%s13744_s5 + $0x188] sm:$0xff]  ;;  %v4686_v3 = vld [vmem:[%s13744_s5 + $0x190] sm:$0xff] }
 0x4de   : > { %4627 = vst [vmem:[%s13943_s9 + $0x140] sm:$0xff] %v4626_v60  ;;  %4629 = vst [vmem:[%s13943_s9 + $0x150] sm:$0xff] %v4628_v28  ;;  %v4688_v11 = vld [vmem:[%s13744_s5 + $0x198] sm:$0xff]  ;;  %v4690_v17 = vld [vmem:[%s13744_s5 + $0x1a0] sm:$0xff] }
 0x4df   : > { %4631 = vst [vmem:[%s13943_s9 + $0x160] sm:$0xff] %v4630_v56  ;;  %4633 = vst [vmem:[%s13943_s9 + $0x170] sm:$0xff] %v4632_v12  ;;  %v4692_v22 = vld [vmem:[%s13744_s5 + $0x1a8] sm:$0xff]  ;;  %v4694_v34 = vld [vmem:[%s13744_s5 + $0x1b0] sm:$0xff] }
 0x4e0   : > { %4635 = vst [vmem:[%s13943_s9 + $0x180] sm:$0xff] %v4634_v27  ;;  %4637 = vst [vmem:[%s13943_s9 + $0x190] sm:$0xff] %v4636_v8  ;;  %v4696_v19 = vld [vmem:[%s13744_s5 + $0x1b8] sm:$0xff] }
 0x4e1   : > { %4639 = vst [vmem:[%s13943_s9 + $0x1a0] sm:$0xff] %v4638_v13  ;;  %4641 = vst [vmem:[%s13943_s9 + $0x1b0] sm:$0xff] %v4640_v0 }
 0x4e2   : > { %4643 = vst [vmem:[%s13943_s9 + $0x1c0] sm:$0xff] %v4642_v6  ;;  %4645 = vst [vmem:[%s13943_s9 + $0x1d0] sm:$0xff] %v4644_v18 }
 0x4e3   : > { %4647 = vst [vmem:[%s13943_s9 + $0x1e0] sm:$0xff] %v4646_v15  ;;  %4649 = vst [vmem:[%s13943_s9 + $0x1f0] sm:$0xff] %v4648_v49 }
 0x4e4   : > { %4651 = vst [vmem:[%s13943_s9 + $0x200] sm:$0xff] %v4650_v9  ;;  %4653 = vst [vmem:[%s13943_s9 + $0x210] sm:$0xff] %v4652_v4 }
 0x4e5   : > { %4655 = vst [vmem:[%s13943_s9 + $0x220] sm:$0xff] %v4654_v1  ;;  %4657 = vst [vmem:[%s13943_s9 + $0x230] sm:$0xff] %v4656_v52 }
 0x4e6   : > { %4659 = vst [vmem:[%s13943_s9 + $0x240] sm:$0xff] %v4658_v46  ;;  %4661 = vst [vmem:[%s13943_s9 + $0x250] sm:$0xff] %v4660_v37 }
 0x4e7   : > { %4663 = vst [vmem:[%s13943_s9 + $0x260] sm:$0xff] %v4662_v55  ;;  %4665 = vst [vmem:[%s13943_s9 + $0x270] sm:$0xff] %v4664_v58 }
 0x4e8   : > { %4667 = vst [vmem:[%s13943_s9 + $0x280] sm:$0xff] %v4666_v21  ;;  %4669 = vst [vmem:[%s13943_s9 + $0x290] sm:$0xff] %v4668_v14 }
 0x4e9   : > { %4671 = vst [vmem:[%s13943_s9 + $0x2a0] sm:$0xff] %v4670_v51  ;;  %4673 = vst [vmem:[%s13943_s9 + $0x2b0] sm:$0xff] %v4672_v20 }
 0x4ea   : > { %4675 = vst [vmem:[%s13943_s9 + $0x2c0] sm:$0xff] %v4674_v50  ;;  %4677 = vst [vmem:[%s13943_s9 + $0x2d0] sm:$0xff] %v4676_v7 }
 0x4eb   : > { %4679 = vst [vmem:[%s13943_s9 + $0x2e0] sm:$0xff] %v4678_v62  ;;  %4681 = vst [vmem:[%s13943_s9 + $0x2f0] sm:$0xff] %v4680_v35 }
 0x4ec   : > { %4683 = vst [vmem:[%s13943_s9 + $0x300] sm:$0xff] %v4682_v54  ;;  %4685 = vst [vmem:[%s13943_s9 + $0x310] sm:$0xff] %v4684_v31 }
 0x4ed   : > { %4687 = vst [vmem:[%s13943_s9 + $0x320] sm:$0xff] %v4686_v3  ;;  %4689 = vst [vmem:[%s13943_s9 + $0x330] sm:$0xff] %v4688_v11 }
 0x4ee   : > { %4691 = vst [vmem:[%s13943_s9 + $0x340] sm:$0xff] %v4690_v17  ;;  %4693 = vst [vmem:[%s13943_s9 + $0x350] sm:$0xff] %v4692_v22 }
 0x4ef   : > { %4695 = vst [vmem:[%s13943_s9 + $0x360] sm:$0xff] %v4694_v34  ;;  %4697 = vst [vmem:[%s13943_s9 + $0x370] sm:$0xff] %v4696_v19 }
 0x4f0 PF: > { %p11_p11 = scmp.ge.s32.totalorder %s4973_s19, 4   ;;  %s17575_s15 = smov %s4923_s16 }
 0x4f1   : > { %s17576_s16 = smov %s4983_s22  ;;  %s17577_s17 = smov %s4973_s19 }
 0x4f2   :  { %13 = sbr.rel (!%p11_p11) target bundleno = 2 (0x2), region = 199 }

</bundles_post_ra>
